<compile_context>
chip_gen: v7x
topology: tpu7x:2x2x1
jax: 0.10.0
libtpu: 0.0.40
codegen_flags: <defaults>
</compile_context>

<pallas_src>
import functools

import jax
import jax.numpy as jnp
from jax.experimental import pallas as pl
from jax.experimental.pallas import tpu as pltpu


# ---------------------------------------------------------------------------
# helpers
# ---------------------------------------------------------------------------
def _round_up(x, m):
    return (x + m - 1) // m * m


def _pad_to(a, axis, size):
    pad = size - a.shape[axis]
    if pad <= 0:
        return a
    widths = [(0, 0)] * a.ndim
    widths[axis] = (0, pad)
    return jnp.pad(a, widths)


def _pad_gates(w, h, hp):
    """Pad the trailing (4*h) gate axis to (4*hp), padding each i/f/g/o block separately."""
    if h == hp:
        return w
    lead = w.shape[:-1]
    w4 = w.reshape(lead + (4, h))
    w4 = jnp.pad(w4, [(0, 0)] * len(lead) + [(0, 0), (0, hp - h)])
    return w4.reshape(lead + (4 * hp,))


def _pick_tile(size, max_tile, quantum):
    t = max(quantum, (min(max_tile, size) // quantum) * quantum)
    while size % t:
        t -= quantum
    return t


# ---------------------------------------------------------------------------
# fused grouped GEMM:  out = act( sum_g a[g] @ w[g] + b )
#   used for (1) the hoisted x @ W_ih gate projection (G=1, both directions fused in N)
#            (2) the per-layer tanh(Linear) projection consuming fwd/bwd slabs (G=2, no concat)
# ---------------------------------------------------------------------------
def _gemm_kernel(a_ref, w_ref, b_ref, o_ref, acc_ref, *, activation):
    g = pl.program_id(2)

    @pl.when(g == 0)
    def _():
        acc_ref[...] = jnp.zeros_like(acc_ref)

    acc_ref[...] += jnp.dot(a_ref[...], w_ref[...],
                            preferred_element_type=jnp.float32)

    @pl.when(g == pl.num_programs(2) - 1)
    def _():
        r = acc_ref[...] + b_ref[...]
        if activation == "tanh":
            r = jnp.tanh(r)
        o_ref[...] = r.astype(o_ref.dtype)


def fused_matmul(a, w, b, *, activation=None, out_dtype=jnp.bfloat16,
                 tm_max=256, tn_max=512):
    """a: (G, M, K) bf16, w: (G, K, N) bf16, b: (1, N) f32 -> (M, N) out_dtype."""
    G, M, K = a.shape
    _, _, N = w.shape
    tm = _pick_tile(M, tm_max, 8)
    tn = _pick_tile(N, tn_max, 128)
    return pl.pallas_call(
        functools.partial(_gemm_kernel, activation=activation),
        out_shape=jax.ShapeDtypeStruct((M, N), out_dtype),
        grid_spec=pltpu.PrefetchScalarGridSpec(
            num_scalar_prefetch=0,
            grid=(M // tm, N // tn, G),
            in_specs=[
                pl.BlockSpec((None, tm, K), lambda i, j, g: (g, i, 0)),
                pl.BlockSpec((None, K, tn), lambda i, j, g: (g, 0, j)),
                pl.BlockSpec((1, tn), lambda i, j, g: (0, j)),
            ],
            out_specs=pl.BlockSpec((tm, tn), lambda i, j, g: (i, j)),
            scratch_shapes=[pltpu.VMEM((tm, tn), jnp.float32)],
        ),
        compiler_params=pltpu.CompilerParams(
            dimension_semantics=("parallel", "parallel", "arbitrary")),
    )(a, w, b)


# ---------------------------------------------------------------------------
# sequential bidirectional LSTM recurrence (gates_x precomputed)
# grid = (direction, time-chunk); direction axis is "parallel" (2 TCs on v7x)
# ---------------------------------------------------------------------------
def _bilstm_kernel(len_ref, gx_ref, whh_ref, y_ref, h_scr, c_scr,
                   *, chunk, seq_len, hidden):
    d = pl.program_id(0)          # 0 = forward, 1 = backward
    c = pl.program_id(1)          # chunk counter (per direction)

    @pl.when(c == 0)
    def _():
        h_scr[...] = jnp.zeros_like(h_scr)
        c_scr[...] = jnp.zeros_like(c_scr)

    lens = len_ref[...]           # (B, H) int32, lane-dense broadcast of per-sequence lengths
    whh = whh_ref[...]            # (H, 4H) bf16
    base = c * chunk
    fw = 1 - d                    # 1 if forward else 0

    def step(j, carry):
        h, cc = carry
        k = base + j                               # step counter within this direction
        t = fw * k + d * (seq_len - 1 - k)         # actual timestep
        jj = fw * j + d * (chunk - 1 - j)          # row inside the current (chunk, B, .) block

        gates = gx_ref[jj].astype(jnp.float32) + jnp.dot(
            h.astype(jnp.bfloat16), whh, preferred_element_type=jnp.float32)

        i_g = jax.nn.sigmoid(gates[:, 0 * hidden:1 * hidden])
        f_g = jax.nn.sigmoid(gates[:, 1 * hidden:2 * hidden])
        g_g = jnp.tanh(gates[:, 2 * hidden:3 * hidden])
        o_g = jax.nn.sigmoid(gates[:, 3 * hidden:4 * hidden])

        c_new = f_g * cc + i_g * g_g
        h_new = o_g * jnp.tanh(c_new)

        valid = t < lens                           # (B, H) bool  (pack_padded semantics)
        y_ref[jj] = jnp.where(valid, h_new, 0.0).astype(y_ref.dtype)
        h = jnp.where(valid, h_new, h)
        cc = jnp.where(valid, c_new, cc)
        return h, cc

    h_fin, c_fin = jax.lax.fori_loop(0, chunk, step,
                                     (h_scr[...], c_scr[...]), unroll=True)
    h_scr[...] = h_fin
    c_scr[...] = c_fin


def bilstm_scan(gx, whh, len_bh, *, hidden, chunk):
    """gx: (Tp, Bp, 8*hidden) bf16, whh: (2, hidden, 4*hidden) bf16, len_bh: (Bp, hidden) int32.
    Returns y: (2, Tp, Bp, hidden) bf16  (dir 0 = forward, dir 1 = backward)."""
    Tp, Bp, _ = gx.shape
    nc = Tp // chunk

    def gx_map(d, c):
        return (c * (1 - d) + (nc - 1 - c) * d, 0, d)

    def y_map(d, c):
        return (d, c * (1 - d) + (nc - 1 - c) * d, 0, 0)

    kernel = functools.partial(_bilstm_kernel, chunk=chunk, seq_len=Tp, hidden=hidden)
    return pl.pallas_call(
        kernel,
        out_shape=jax.ShapeDtypeStruct((2, Tp, Bp, hidden), jnp.bfloat16),
        grid_spec=pltpu.PrefetchScalarGridSpec(
            num_scalar_prefetch=0,
            grid=(2, nc),
            in_specs=[
                pl.BlockSpec((Bp, hidden), lambda d, c: (0, 0)),            # lengths broadcast
                pl.BlockSpec((chunk, Bp, 4 * hidden), gx_map),              # precomputed x-gates
                pl.BlockSpec((None, hidden, 4 * hidden), lambda d, c: (d, 0, 0)),  # W_hh^T per dir
            ],
            out_specs=pl.BlockSpec((None, chunk, Bp, hidden), y_map),
            scratch_shapes=[pltpu.VMEM((Bp, hidden), jnp.float32),          # h carry
                            pltpu.VMEM((Bp, hidden), jnp.float32)],         # c carry
        ),
        compiler_params=pltpu.CompilerParams(
            dimension_semantics=("parallel", "arbitrary")),
    )(len_bh, gx, whh)


# ---------------------------------------------------------------------------
# AudioEncoder forward
# ---------------------------------------------------------------------------
def audio_encoder_forward(x, enc_len, params, *, sample_rate, sample_style="drop",
                          time_chunk=8):
    """x: (B, T, D) f32, enc_len: (B,) int. params: per-layer tuple
    (wih_f, whh_f, b_f, wih_b, whh_b, b_b, wp, bp) with logical (unpadded) shapes.
    Returns (x_out (B, T_out, 2*H_last) f32, enc_len_out (B,) int32)."""
    B, T, D = x.shape
    Bp = _round_up(B, 8)
    lengths = jnp.asarray(enc_len, jnp.int32)
    len_pad = _pad_to(lengths, 0, Bp)                # padded batch rows -> length 0

    Tl = T                                           # logical time length
    Tp = _round_up(Tl, time_chunk)

    cur = jnp.transpose(x, (1, 0, 2)).astype(jnp.bfloat16)   # (T, B, D)
    cur = _pad_to(_pad_to(cur, 0, Tp), 1, Bp)
    Fp = _round_up(D, 128)
    cur = _pad_to(cur, 2, Fp)

    n_layers = len(params)
    H = None
    for l, (wih_f, whh_f, b_f, wih_b, whh_b, b_b, wp, bp) in enumerate(params):
        H = whh_f.shape[0]
        Hp = _round_up(H, 128)
        sr = int(sample_rate[l])
        last = l == n_layers - 1

        # -------- gate weights: both directions fused along N = 8*Hp --------
        w_g = jnp.concatenate(
            [_pad_gates(_pad_to(wih_f, 0, Fp), H, Hp),
             _pad_gates(_pad_to(wih_b, 0, Fp), H, Hp)], axis=1).astype(jnp.bfloat16)
        b_g = jnp.concatenate([_pad_gates(b_f, H, Hp),
                               _pad_gates(b_b, H, Hp)], axis=0)[None, :].astype(jnp.float32)
        whh = jnp.stack([_pad_gates(_pad_to(whh_f, 0, Hp), H, Hp),
                         _pad_gates(_pad_to(whh_b, 0, Hp), H, Hp)], axis=0).astype(jnp.bfloat16)

        # -------- hoisted input projection: one big GEMM over all timesteps --------
        M = Tp * Bp
        gx = fused_matmul(cur.reshape(1, M, Fp), w_g[None], b_g,
                          activation=None, out_dtype=jnp.bfloat16)        # (M, 8*Hp)
        gx = gx.reshape(Tp, Bp, 8 * Hp)

        # -------- sequential bidirectional recurrence --------
        len_bh = jnp.broadcast_to(len_pad[:, None], (Bp, Hp)).astype(jnp.int32)
        y = bilstm_scan(gx, whh, len_bh, hidden=Hp, chunk=time_chunk)     # (2, Tp, Bp, Hp) bf16

        # dropout between layers: identity in eval mode.
        # -------- 'drop' style time-downsampling --------
        if sr > 1:
            if sample_style != "drop":
                raise NotImplementedError("sample_style='concat' not implemented")
            y = y[:, :Tl][:, ::sr]
            Tl = y.shape[1]
            lengths = lengths // sr
            len_pad = len_pad // sr
            Tp = _round_up(Tl, time_chunk)
            y = _pad_to(y, 1, Tp)

        # -------- per-layer projection + tanh (grouped: consumes fwd/bwd slabs, no concat) ----
        Np = _round_up(2 * H, 128)
        wp_s = jnp.stack([_pad_to(_pad_to(wp[:H], 0, Hp), 1, Np),
                          _pad_to(_pad_to(wp[H:], 0, Hp), 1, Np)], axis=0).astype(jnp.bfloat16)
        bp_p = _pad_to(bp, 0, Np)[None, :].astype(jnp.float32)
        out_dt = jnp.float32 if last else jnp.bfloat16
        proj = fused_matmul(y.reshape(2, Tp * Bp, Hp), wp_s, bp_p,
                            activation="tanh", out_dtype=out_dt)          # (Tp*Bp, Np)
        cur = proj.reshape(Tp, Bp, Np)
        Fp = Np

    x_out = jnp.transpose(cur[:Tl, :B, :2 * H], (1, 0, 2))
    return x_out, lengths


# ---------------------------------------------------------------------------
# pure-JAX reference (mirrors the kernel's bf16-matmul / f32-accumulate numerics)
# ---------------------------------------------------------------------------
def _ref_layer_dir(x_btd, lengths, wih, whh, b, reverse):
    B, T, Din = x_btd.shape
    H = whh.shape[0]
    bf = jnp.bfloat16
    gx = (jnp.dot(x_btd.reshape(-1, Din).astype(bf), wih.astype(bf),
                  preferred_element_type=jnp.float32) + b).astype(bf).reshape(B, T, 4 * H)
    h = jnp.zeros((B, H), jnp.float32)
    c = jnp.zeros((B, H), jnp.float32)
    ys = [None] * T
    order = range(T - 1, -1, -1) if reverse else range(T)
    for t in order:
        gates = gx[:, t].astype(jnp.float32) + jnp.dot(
            h.astype(bf), whh.astype(bf), preferred_element_type=jnp.float32)
        i = jax.nn.sigmoid(gates[:, :H])
        f = jax.nn.sigmoid(gates[:, H:2 * H])
        g = jnp.tanh(gates[:, 2 * H:3 * H])
        o = jax.nn.sigmoid(gates[:, 3 * H:])
        c_new = f * c + i * g
        h_new = o * jnp.tanh(c_new)
        m = (t < lengths)[:, None]
        h = jnp.where(m, h_new, h)
        c = jnp.where(m, c_new, c)
        ys[t] = jnp.where(m, h_new, 0.0).astype(bf)
    return jnp.stack(ys, axis=1)                     # (B, T, H) bf16


def ref_audio_encoder(x, enc_len, params, sample_rate, sample_style="drop"):
    B, T, _ = x.shape
    lengths = jnp.asarray(enc_len, jnp.int32)
    cur = x.astype(jnp.bfloat16)
    n = len(params)
    for l, (wih_f, whh_f, b_f, wih_b, whh_b, b_b, wp, bp) in enumerate(params):
        H = whh_f.shape[0]
        yf = _ref_layer_dir(cur, lengths, wih_f, whh_f, b_f, False)
        yb = _ref_layer_dir(cur, lengths, wih_b, whh_b, b_b, True)
        y = jnp.concatenate([yf, yb], axis=-1)       # (B, T, 2H) bf16
        sr = int(sample_rate[l])
        if sr > 1:
            y = y[:, ::sr]
            lengths = lengths // sr
            T = y.shape[1]
        proj = jnp.dot(y.reshape(-1, 2 * H).astype(jnp.bfloat16), wp.astype(jnp.bfloat16),
                       preferred_element_type=jnp.float32) + bp
        act = jnp.tanh(proj).reshape(B, T, 2 * H)
        cur = act.astype(jnp.float32 if l == n - 1 else jnp.bfloat16)
    return cur, lengths


# ---------------------------------------------------------------------------
# deterministic parameter init (shapes per nn.LSTM / nn.Linear)
# ---------------------------------------------------------------------------
def init_params(key, input_dim, dims):
    params = []
    d_in = input_dim
    for H in dims:
        k = float(H) ** -0.5
        key, *ks = jax.random.split(key, 11)
        wih_f = jax.random.uniform(ks[0], (d_in, 4 * H), jnp.float32, -k, k)
        whh_f = jax.random.uniform(ks[1], (H, 4 * H), jnp.float32, -k, k)
        b_f = (jax.random.uniform(ks[2], (4 * H,), jnp.float32, -k, k)
               + jax.random.uniform(ks[3], (4 * H,), jnp.float32, -k, k))
        wih_b = jax.random.uniform(ks[4], (d_in, 4 * H), jnp.float32, -k, k)
        whh_b = jax.random.uniform(ks[5], (H, 4 * H), jnp.float32, -k, k)
        b_b = (jax.random.uniform(ks[6], (4 * H,), jnp.float32, -k, k)
               + jax.random.uniform(ks[7], (4 * H,), jnp.float32, -k, k))
        rnn_out = 2 * H
        kp = float(rnn_out) ** -0.5
        wp = jax.random.uniform(ks[8], (rnn_out, rnn_out), jnp.float32, -kp, kp)  # stored as (in, out)
        bp = jax.random.uniform(ks[9], (rnn_out,), jnp.float32, -kp, kp)
        params.append((wih_f, whh_f, b_f, wih_b, whh_b, b_b, wp, bp))
        d_in = rnn_out
    return params


if __name__ == "__main__":
    # AudioEncoder('BiRNN', sample_rate='1_2', sample_style='drop', dim='96_96',
    #              dropout='0.0_0.0', rnn_cell='LSTM') on a (B=6, T=20, D=80) input.
    dims = [96, 96]
    sample_rates = [1, 2]
    B, T, D = 6, 20, 80

    key = jax.random.PRNGKey(0)
    kx, kp = jax.random.split(key)
    x = jax.random.normal(kx, (B, T, D), jnp.float32)
    enc_len = jnp.array([20, 17, 9, 20, 5, 12], jnp.int32)
    params = init_params(kp, D, dims)

    fwd = jax.jit(lambda xx, ll, pp: audio_encoder_forward(
        xx, ll, pp, sample_rate=sample_rates, sample_style="drop", time_chunk=8))
    x_out, out_len = fwd(x, enc_len, params)
    jax.block_until_ready((x_out, out_len))

    T_out = -(-T // sample_rates[1])
    assert x_out.shape == (B, T_out, 2 * dims[-1]), x_out.shape
    assert out_len.shape == (B,), out_len.shape

    ref_fn = jax.jit(lambda xx, ll, pp: ref_audio_encoder(xx, ll, pp, sample_rates, "drop"))
    ref_out, ref_len = ref_fn(x, enc_len, params)
    jax.block_until_ready((ref_out, ref_len))

    assert jnp.array_equal(out_len, ref_len), (out_len, ref_len)
    max_diff = float(jnp.max(jnp.abs(x_out - ref_out)))
    assert jnp.allclose(x_out, ref_out, rtol=1e-2, atol=1e-2), max_diff

    print("KERNEL_OK")
</pallas_src>

<mosaic_0001>
module attributes {stable_mosaic.version = 11 : i64} {
  func.func @_gemm_kernel(%arg0: i32, %arg1: i32, %arg2: i32, %arg3: memref<1x192x128xbf16, #tpu.memory_space<vmem>>, %arg4: memref<1x128x512xbf16, #tpu.memory_space<vmem>>, %arg5: memref<1x512xf32, #tpu.memory_space<vmem>>, %arg6: memref<192x512xbf16, #tpu.memory_space<vmem>>, %arg7: memref<192x512xf32, #tpu.memory_space<vmem>>) attributes {dimension_semantics = [#tpu.dimension_semantics<parallel>, #tpu.dimension_semantics<parallel>, #tpu.dimension_semantics<arbitrary>], iteration_bounds = array<i64: 1, 2, 1>, scalar_prefetch = 0 : i64, scratch_operands = 1 : i64, tpu.core_type = #tpu.core_type<tc>, window_params = [{transform_indices = @transform_0, window_bounds = array<i64: 1, 192, 128>}, {transform_indices = @transform_1, window_bounds = array<i64: 1, 128, 512>}, {transform_indices = @transform_2, window_bounds = array<i64: 1, 512>}, {transform_indices = @transform_3, window_bounds = array<i64: 192, 512>}]} {
    %c0_i32 = arith.constant 0 : i32
    %0 = arith.cmpi eq, %arg2, %c0_i32 : i32
    %1 = arith.extui %0 : i1 to i32
    %c0_i32_0 = arith.constant 0 : i32
    %2 = arith.cmpi ne, %1, %c0_i32_0 : i32
    scf.if %2 {
      %cst_12 = arith.constant 0.000000e+00 : f32
      %14 = vector.broadcast %cst_12 : f32 to vector<192x512xf32>
      %c0_13 = arith.constant 0 : index
      %c0_14 = arith.constant 0 : index
      %15 = vector.load %arg7[%c0_13, %c0_14] : memref<192x512xf32, #tpu.memory_space<vmem>>, vector<192x512xf32>
      tpu.vector_store %arg7[%c0_13, %c0_14], %14 {strides = array<i32>} : memref<192x512xf32, #tpu.memory_space<vmem>>, vector<192x512xf32>,
    } else {
    }
    %c0 = arith.constant 0 : index
    %c0_1 = arith.constant 0 : index
    %3 = vector.load %arg7[%c0, %c0_1] : memref<192x512xf32, #tpu.memory_space<vmem>>, vector<192x512xf32>
    %c0_2 = arith.constant 0 : index
    %c0_3 = arith.constant 0 : index
    %c0_4 = arith.constant 0 : index
    %4 = vector.load %arg3[%c0_2, %c0_3, %c0_4] : memref<1x192x128xbf16, #tpu.memory_space<vmem>>, vector<1x192x128xbf16>
    %5 = vector.shape_cast %4 : vector<1x192x128xbf16> to vector<192x128xbf16>
    %c0_5 = arith.constant 0 : index
    %c0_6 = arith.constant 0 : index
    %c0_7 = arith.constant 0 : index
    %6 = vector.load %arg4[%c0_5, %c0_6, %c0_7] : memref<1x128x512xbf16, #tpu.memory_space<vmem>>, vector<1x128x512xbf16>
    %7 = vector.shape_cast %6 : vector<1x128x512xbf16> to vector<128x512xbf16>
    %cst = arith.constant dense<0.000000e+00> : vector<192x512xf32>
    %8 = tpu.matmul %5, %7, %cst {dimension_numbers = #tpu.dot_dimension_numbers<[1], [0], [0], [1], [0, 0, 1, 1], [], []>} : vector<192x128xbf16>, vector<128x512xbf16>, vector<192x512xf32> -> vector<192x512xf32>
    %9 = arith.addf %3, %8 : vector<192x512xf32>
    %c0_8 = arith.constant 0 : index
    %c0_9 = arith.constant 0 : index
    %10 = vector.load %arg7[%c0_8, %c0_9] : memref<192x512xf32, #tpu.memory_space<vmem>>, vector<192x512xf32>
    tpu.vector_store %arg7[%c0_8, %c0_9], %9 {strides = array<i32>} : memref<192x512xf32, #tpu.memory_space<vmem>>, vector<192x512xf32>,
    %c0_i32_10 = arith.constant 0 : i32
    %11 = arith.cmpi eq, %arg2, %c0_i32_10 : i32
    %12 = arith.extui %11 : i1 to i32
    %c0_i32_11 = arith.constant 0 : i32
    %13 = arith.cmpi ne, %12, %c0_i32_11 : i32
    scf.if %13 {
      %c0_12 = arith.constant 0 : index
      %c0_13 = arith.constant 0 : index
      %14 = vector.load %arg7[%c0_12, %c0_13] : memref<192x512xf32, #tpu.memory_space<vmem>>, vector<192x512xf32>
      %c0_14 = arith.constant 0 : index
      %c0_15 = arith.constant 0 : index
      %15 = vector.load %arg5[%c0_14, %c0_15] : memref<1x512xf32, #tpu.memory_space<vmem>>, vector<1x512xf32>
      %16 = vector.broadcast %15 : vector<1x512xf32> to vector<192x512xf32>
      %17 = arith.addf %14, %16 : vector<192x512xf32>
      %18 = arith.truncf %17 : vector<192x512xf32> to vector<192x512xbf16>
      %c0_16 = arith.constant 0 : index
      %c0_17 = arith.constant 0 : index
      %19 = vector.load %arg6[%c0_16, %c0_17] : memref<192x512xbf16, #tpu.memory_space<vmem>>, vector<192x512xbf16>
      tpu.vector_store %arg6[%c0_16, %c0_17], %18 {strides = array<i32>} : memref<192x512xbf16, #tpu.memory_space<vmem>>, vector<192x512xbf16>,
    } else {
    }
    return
  }
  func.func @transform_0(%arg0: i32, %arg1: i32, %arg2: i32) -> (i32, i32, i32) {
    %c0_i32 = arith.constant 0 : i32
    %c0_i32_0 = arith.constant 0 : i32
    return %arg2, %arg0, %c0_i32 : i32, i32, i32
  }
  func.func @transform_1(%arg0: i32, %arg1: i32, %arg2: i32) -> (i32, i32, i32) {
    %c0_i32 = arith.constant 0 : i32
    %c0_i32_0 = arith.constant 0 : i32
    return %arg2, %c0_i32, %arg1 : i32, i32, i32
  }
  func.func @transform_2(%arg0: i32, %arg1: i32, %arg2: i32) -> (i32, i32) {
    %c0_i32 = arith.constant 0 : i32
    %c0_i32_0 = arith.constant 0 : i32
    return %c0_i32, %arg1 : i32, i32
  }
  func.func @transform_3(%arg0: i32, %arg1: i32, %arg2: i32) -> (i32, i32) {
    %c0_i32 = arith.constant 0 : i32
    return %arg0, %arg1 : i32, i32
  }
}

module attributes {stable_mosaic.version = 11 : i64} {
  func.func @_bilstm_kernel(%arg0: i32, %arg1: i32, %arg2: memref<8x128xi32, #tpu.memory_space<vmem>>, %arg3: memref<8x8x512xbf16, #tpu.memory_space<vmem>>, %arg4: memref<1x128x512xbf16, #tpu.memory_space<vmem>>, %arg5: memref<1x8x8x128xbf16, #tpu.memory_space<vmem>>, %arg6: memref<8x128xf32, #tpu.memory_space<vmem>>, %arg7: memref<8x128xf32, #tpu.memory_space<vmem>>) attributes {dimension_semantics = [#tpu.dimension_semantics<parallel>, #tpu.dimension_semantics<arbitrary>], iteration_bounds = array<i64: 2, 3>, scalar_prefetch = 0 : i64, scratch_operands = 2 : i64, tpu.core_type = #tpu.core_type<tc>, window_params = [{pipeline_mode = #tpu.pipeline_mode<synchronous>, transform_indices = @transform_0, window_bounds = array<i64: 8, 128>}, {transform_indices = @transform_1, window_bounds = array<i64: 8, 8, 512>}, {transform_indices = @transform_2, window_bounds = array<i64: 1, 128, 512>}, {transform_indices = @transform_3, window_bounds = array<i64: 1, 8, 8, 128>}]} {
    %c0_i32 = arith.constant 0 : i32
    %0 = arith.cmpi eq, %arg1, %c0_i32 : i32
    %1 = arith.extui %0 : i1 to i32
    %c0_i32_0 = arith.constant 0 : i32
    %2 = arith.cmpi ne, %1, %c0_i32_0 : i32
    scf.if %2 {
      %cst_110 = arith.constant 0.000000e+00 : f32
      %428 = vector.broadcast %cst_110 : f32 to vector<8x128xf32>
      %c0_111 = arith.constant 0 : index
      %c0_112 = arith.constant 0 : index
      %429 = vector.load %arg6[%c0_111, %c0_112] : memref<8x128xf32, #tpu.memory_space<vmem>>, vector<8x128xf32>
      tpu.vector_store %arg6[%c0_111, %c0_112], %428 {strides = array<i32>} : memref<8x128xf32, #tpu.memory_space<vmem>>, vector<8x128xf32>,
      %cst_113 = arith.constant 0.000000e+00 : f32
      %430 = vector.broadcast %cst_113 : f32 to vector<8x128xf32>
      %c0_114 = arith.constant 0 : index
      %c0_115 = arith.constant 0 : index
      %431 = vector.load %arg7[%c0_114, %c0_115] : memref<8x128xf32, #tpu.memory_space<vmem>>, vector<8x128xf32>
      tpu.vector_store %arg7[%c0_114, %c0_115], %430 {strides = array<i32>} : memref<8x128xf32, #tpu.memory_space<vmem>>, vector<8x128xf32>,
    } else {
    }
    %c0 = arith.constant 0 : index
    %c0_1 = arith.constant 0 : index
    %3 = vector.load %arg2[%c0, %c0_1] : memref<8x128xi32, #tpu.memory_space<vmem>>, vector<8x128xi32>
    %c0_2 = arith.constant 0 : index
    %c0_3 = arith.constant 0 : index
    %c0_4 = arith.constant 0 : index
    %4 = vector.load %arg4[%c0_2, %c0_3, %c0_4] : memref<1x128x512xbf16, #tpu.memory_space<vmem>>, vector<1x128x512xbf16>
    %5 = vector.shape_cast %4 : vector<1x128x512xbf16> to vector<128x512xbf16>
    %c8_i32 = arith.constant 8 : i32
    %6 = arith.muli %arg1, %c8_i32 : i32
    %c1_i32 = arith.constant 1 : i32
    %7 = arith.subi %c1_i32, %arg0 : i32
    %c0_5 = arith.constant 0 : index
    %c0_6 = arith.constant 0 : index
    %8 = vector.load %arg6[%c0_5, %c0_6] : memref<8x128xf32, #tpu.memory_space<vmem>>, vector<8x128xf32>
    %c0_7 = arith.constant 0 : index
    %c0_8 = arith.constant 0 : index
    %9 = vector.load %arg7[%c0_7, %c0_8] : memref<8x128xf32, #tpu.memory_space<vmem>>, vector<8x128xf32>
    %c0_i32_9 = arith.constant 0 : i32
    %10 = arith.addi %6, %c0_i32_9 : i32
    %11 = arith.muli %7, %10 : i32
    %c23_i32 = arith.constant 23 : i32
    %12 = arith.subi %c23_i32, %10 : i32
    %13 = arith.muli %arg0, %12 : i32
    %14 = arith.addi %11, %13 : i32
    %15 = arith.muli %7, %c0_i32_9 : i32
    %c7_i32 = arith.constant 7 : i32
    %16 = arith.subi %c7_i32, %c0_i32_9 : i32
    %17 = arith.muli %arg0, %16 : i32
    %18 = arith.addi %15, %17 : i32
    %19 = arith.index_cast %18 : i32 to index
    %c0_10 = arith.constant 0 : index
    %c0_11 = arith.constant 0 : index
    %20 = vector.load %arg3[%19, %c0_10, %c0_11] : memref<8x8x512xbf16, #tpu.memory_space<vmem>>, vector<1x8x512xbf16>
    %21 = vector.shape_cast %20 : vector<1x8x512xbf16> to vector<8x512xbf16>
    %22 = arith.extf %21 : vector<8x512xbf16> to vector<8x512xf32>
    %23 = arith.truncf %8 : vector<8x128xf32> to vector<8x128xbf16>
    %cst = arith.constant dense<0.000000e+00> : vector<8x512xf32>
    %24 = tpu.matmul %23, %5, %cst {dimension_numbers = #tpu.dot_dimension_numbers<[1], [0], [0], [1], [0, 0, 1, 1], [], []>} : vector<8x128xbf16>, vector<128x512xbf16>, vector<8x512xf32> -> vector<8x512xf32>
    %25 = arith.addf %22, %24 : vector<8x512xf32>
    %26 = vector.extract_strided_slice %25 {offsets = [0, 0], sizes = [8, 128], strides = [1, 1]} : vector<8x512xf32> to vector<8x128xf32>
    %27 = arith.negf %26 : vector<8x128xf32>
    %28 = math.exp %27 : vector<8x128xf32>
    %cst_12 = arith.constant 1.000000e+00 : f32
    %29 = vector.broadcast %cst_12 : f32 to vector<8x128xf32>
    %30 = arith.addf %29, %28 : vector<8x128xf32>
    %31 = arith.divf %29, %30 : vector<8x128xf32>
    %32 = vector.extract_strided_slice %25 {offsets = [0, 128], sizes = [8, 128], strides = [1, 1]} : vector<8x512xf32> to vector<8x128xf32>
    %33 = arith.negf %32 : vector<8x128xf32>
    %34 = math.exp %33 : vector<8x128xf32>
    %cst_13 = arith.constant 1.000000e+00 : f32
    %35 = vector.broadcast %cst_13 : f32 to vector<8x128xf32>
    %36 = arith.addf %35, %34 : vector<8x128xf32>
    %37 = arith.divf %35, %36 : vector<8x128xf32>
    %38 = vector.extract_strided_slice %25 {offsets = [0, 256], sizes = [8, 128], strides = [1, 1]} : vector<8x512xf32> to vector<8x128xf32>
    %39 = math.tanh %38 : vector<8x128xf32>
    %40 = vector.extract_strided_slice %25 {offsets = [0, 384], sizes = [8, 128], strides = [1, 1]} : vector<8x512xf32> to vector<8x128xf32>
    %41 = arith.negf %40 : vector<8x128xf32>
    %42 = math.exp %41 : vector<8x128xf32>
    %cst_14 = arith.constant 1.000000e+00 : f32
    %43 = vector.broadcast %cst_14 : f32 to vector<8x128xf32>
    %44 = arith.addf %43, %42 : vector<8x128xf32>
    %45 = arith.divf %43, %44 : vector<8x128xf32>
    %46 = arith.mulf %37, %9 : vector<8x128xf32>
    %47 = arith.mulf %31, %39 : vector<8x128xf32>
    %48 = arith.addf %46, %47 : vector<8x128xf32>
    %49 = math.tanh %48 : vector<8x128xf32>
    %50 = arith.mulf %45, %49 : vector<8x128xf32>
    %51 = vector.broadcast %14 : i32 to vector<8x128xi32>
    %52 = arith.cmpi slt, %51, %3 : vector<8x128xi32>
    %cst_15 = arith.constant 0.000000e+00 : f32
    %53 = vector.broadcast %cst_15 : f32 to vector<8x128xf32>
    %54 = arith.select %52, %50, %53 : vector<8x128xi1>, vector<8x128xf32>
    %55 = arith.truncf %54 : vector<8x128xf32> to vector<8x128xbf16>
    %c0_16 = arith.constant 0 : index
    %56 = arith.index_cast %18 : i32 to index
    %c0_17 = arith.constant 0 : index
    %c0_18 = arith.constant 0 : index
    %57 = vector.load %arg5[%c0_16, %56, %c0_17, %c0_18] : memref<1x8x8x128xbf16, #tpu.memory_space<vmem>>, vector<1x1x8x128xbf16>
    %58 = vector.shape_cast %57 : vector<1x1x8x128xbf16> to vector<8x128xbf16>
    %59 = vector.shape_cast %55 : vector<8x128xbf16> to vector<1x1x8x128xbf16>
    tpu.vector_store %arg5[%c0_16, %56, %c0_17, %c0_18], %59 {strides = array<i32>} : memref<1x8x8x128xbf16, #tpu.memory_space<vmem>>, vector<1x1x8x128xbf16>,
    %60 = arith.select %52, %50, %8 : vector<8x128xi1>, vector<8x128xf32>
    %61 = arith.select %52, %48, %9 : vector<8x128xi1>, vector<8x128xf32>
    %c1_i32_19 = arith.constant 1 : i32
    %62 = arith.addi %6, %c1_i32_19 : i32
    %63 = arith.muli %7, %62 : i32
    %c23_i32_20 = arith.constant 23 : i32
    %64 = arith.subi %c23_i32_20, %62 : i32
    %65 = arith.muli %arg0, %64 : i32
    %66 = arith.addi %63, %65 : i32
    %67 = arith.muli %7, %c1_i32_19 : i32
    %c7_i32_21 = arith.constant 7 : i32
    %68 = arith.subi %c7_i32_21, %c1_i32_19 : i32
    %69 = arith.muli %arg0, %68 : i32
    %70 = arith.addi %67, %69 : i32
    %71 = arith.index_cast %70 : i32 to index
    %c0_22 = arith.constant 0 : index
    %c0_23 = arith.constant 0 : index
    %72 = vector.load %arg3[%71, %c0_22, %c0_23] : memref<8x8x512xbf16, #tpu.memory_space<vmem>>, vector<1x8x512xbf16>
    %73 = vector.shape_cast %72 : vector<1x8x512xbf16> to vector<8x512xbf16>
    %74 = arith.extf %73 : vector<8x512xbf16> to vector<8x512xf32>
    %75 = arith.truncf %60 : vector<8x128xf32> to vector<8x128xbf16>
    %cst_24 = arith.constant dense<0.000000e+00> : vector<8x512xf32>
    %76 = tpu.matmul %75, %5, %cst_24 {dimension_numbers = #tpu.dot_dimension_numbers<[1], [0], [0], [1], [0, 0, 1, 1], [], []>} : vector<8x128xbf16>, vector<128x512xbf16>, vector<8x512xf32> -> vector<8x512xf32>
    %77 = arith.addf %74, %76 : vector<8x512xf32>
    %78 = vector.extract_strided_slice %77 {offsets = [0, 0], sizes = [8, 128], strides = [1, 1]} : vector<8x512xf32> to vector<8x128xf32>
    %79 = arith.negf %78 : vector<8x128xf32>
    %80 = math.exp %79 : vector<8x128xf32>
    %cst_25 = arith.constant 1.000000e+00 : f32
    %81 = vector.broadcast %cst_25 : f32 to vector<8x128xf32>
    %82 = arith.addf %81, %80 : vector<8x128xf32>
    %83 = arith.divf %81, %82 : vector<8x128xf32>
    %84 = vector.extract_strided_slice %77 {offsets = [0, 128], sizes = [8, 128], strides = [1, 1]} : vector<8x512xf32> to vector<8x128xf32>
    %85 = arith.negf %84 : vector<8x128xf32>
    %86 = math.exp %85 : vector<8x128xf32>
    %cst_26 = arith.constant 1.000000e+00 : f32
    %87 = vector.broadcast %cst_26 : f32 to vector<8x128xf32>
    %88 = arith.addf %87, %86 : vector<8x128xf32>
    %89 = arith.divf %87, %88 : vector<8x128xf32>
    %90 = vector.extract_strided_slice %77 {offsets = [0, 256], sizes = [8, 128], strides = [1, 1]} : vector<8x512xf32> to vector<8x128xf32>
    %91 = math.tanh %90 : vector<8x128xf32>
    %92 = vector.extract_strided_slice %77 {offsets = [0, 384], sizes = [8, 128], strides = [1, 1]} : vector<8x512xf32> to vector<8x128xf32>
    %93 = arith.negf %92 : vector<8x128xf32>
    %94 = math.exp %93 : vector<8x128xf32>
    %cst_27 = arith.constant 1.000000e+00 : f32
    %95 = vector.broadcast %cst_27 : f32 to vector<8x128xf32>
    %96 = arith.addf %95, %94 : vector<8x128xf32>
    %97 = arith.divf %95, %96 : vector<8x128xf32>
    %98 = arith.mulf %89, %61 : vector<8x128xf32>
    %99 = arith.mulf %83, %91 : vector<8x128xf32>
    %100 = arith.addf %98, %99 : vector<8x128xf32>
    %101 = math.tanh %100 : vector<8x128xf32>
    %102 = arith.mulf %97, %101 : vector<8x128xf32>
    %103 = vector.broadcast %66 : i32 to vector<8x128xi32>
    %104 = arith.cmpi slt, %103, %3 : vector<8x128xi32>
    %cst_28 = arith.constant 0.000000e+00 : f32
    %105 = vector.broadcast %cst_28 : f32 to vector<8x128xf32>
    %106 = arith.select %104, %102, %105 : vector<8x128xi1>, vector<8x128xf32>
    %107 = arith.truncf %106 : vector<8x128xf32> to vector<8x128xbf16>
    %c0_29 = arith.constant 0 : index
    %108 = arith.index_cast %70 : i32 to index
    %c0_30 = arith.constant 0 : index
    %c0_31 = arith.constant 0 : index
    %109 = vector.load %arg5[%c0_29, %108, %c0_30, %c0_31] : memref<1x8x8x128xbf16, #tpu.memory_space<vmem>>, vector<1x1x8x128xbf16>
    %110 = vector.shape_cast %109 : vector<1x1x8x128xbf16> to vector<8x128xbf16>
    %111 = vector.shape_cast %107 : vector<8x128xbf16> to vector<1x1x8x128xbf16>
    tpu.vector_store %arg5[%c0_29, %108, %c0_30, %c0_31], %111 {strides = array<i32>} : memref<1x8x8x128xbf16, #tpu.memory_space<vmem>>, vector<1x1x8x128xbf16>,
    %112 = arith.select %104, %102, %60 : vector<8x128xi1>, vector<8x128xf32>
    %113 = arith.select %104, %100, %61 : vector<8x128xi1>, vector<8x128xf32>
    %c2_i32 = arith.constant 2 : i32
    %114 = arith.addi %6, %c2_i32 : i32
    %115 = arith.muli %7, %114 : i32
    %c23_i32_32 = arith.constant 23 : i32
    %116 = arith.subi %c23_i32_32, %114 : i32
    %117 = arith.muli %arg0, %116 : i32
    %118 = arith.addi %115, %117 : i32
    %119 = arith.muli %7, %c2_i32 : i32
    %c7_i32_33 = arith.constant 7 : i32
    %120 = arith.subi %c7_i32_33, %c2_i32 : i32
    %121 = arith.muli %arg0, %120 : i32
    %122 = arith.addi %119, %121 : i32
    %123 = arith.index_cast %122 : i32 to index
    %c0_34 = arith.constant 0 : index
    %c0_35 = arith.constant 0 : index
    %124 = vector.load %arg3[%123, %c0_34, %c0_35] : memref<8x8x512xbf16, #tpu.memory_space<vmem>>, vector<1x8x512xbf16>
    %125 = vector.shape_cast %124 : vector<1x8x512xbf16> to vector<8x512xbf16>
    %126 = arith.extf %125 : vector<8x512xbf16> to vector<8x512xf32>
    %127 = arith.truncf %112 : vector<8x128xf32> to vector<8x128xbf16>
    %cst_36 = arith.constant dense<0.000000e+00> : vector<8x512xf32>
    %128 = tpu.matmul %127, %5, %cst_36 {dimension_numbers = #tpu.dot_dimension_numbers<[1], [0], [0], [1], [0, 0, 1, 1], [], []>} : vector<8x128xbf16>, vector<128x512xbf16>, vector<8x512xf32> -> vector<8x512xf32>
    %129 = arith.addf %126, %128 : vector<8x512xf32>
    %130 = vector.extract_strided_slice %129 {offsets = [0, 0], sizes = [8, 128], strides = [1, 1]} : vector<8x512xf32> to vector<8x128xf32>
    %131 = arith.negf %130 : vector<8x128xf32>
    %132 = math.exp %131 : vector<8x128xf32>
    %cst_37 = arith.constant 1.000000e+00 : f32
    %133 = vector.broadcast %cst_37 : f32 to vector<8x128xf32>
    %134 = arith.addf %133, %132 : vector<8x128xf32>
    %135 = arith.divf %133, %134 : vector<8x128xf32>
    %136 = vector.extract_strided_slice %129 {offsets = [0, 128], sizes = [8, 128], strides = [1, 1]} : vector<8x512xf32> to vector<8x128xf32>
    %137 = arith.negf %136 : vector<8x128xf32>
    %138 = math.exp %137 : vector<8x128xf32>
    %cst_38 = arith.constant 1.000000e+00 : f32
    %139 = vector.broadcast %cst_38 : f32 to vector<8x128xf32>
    %140 = arith.addf %139, %138 : vector<8x128xf32>
    %141 = arith.divf %139, %140 : vector<8x128xf32>
    %142 = vector.extract_strided_slice %129 {offsets = [0, 256], sizes = [8, 128], strides = [1, 1]} : vector<8x512xf32> to vector<8x128xf32>
    %143 = math.tanh %142 : vector<8x128xf32>
    %144 = vector.extract_strided_slice %129 {offsets = [0, 384], sizes = [8, 128], strides = [1, 1]} : vector<8x512xf32> to vector<8x128xf32>
    %145 = arith.negf %144 : vector<8x128xf32>
    %146 = math.exp %145 : vector<8x128xf32>
    %cst_39 = arith.constant 1.000000e+00 : f32
    %147 = vector.broadcast %cst_39 : f32 to vector<8x128xf32>
    %148 = arith.addf %147, %146 : vector<8x128xf32>
    %149 = arith.divf %147, %148 : vector<8x128xf32>
    %150 = arith.mulf %141, %113 : vector<8x128xf32>
    %151 = arith.mulf %135, %143 : vector<8x128xf32>
    %152 = arith.addf %150, %151 : vector<8x128xf32>
    %153 = math.tanh %152 : vector<8x128xf32>
    %154 = arith.mulf %149, %153 : vector<8x128xf32>
    %155 = vector.broadcast %118 : i32 to vector<8x128xi32>
    %156 = arith.cmpi slt, %155, %3 : vector<8x128xi32>
    %cst_40 = arith.constant 0.000000e+00 : f32
    %157 = vector.broadcast %cst_40 : f32 to vector<8x128xf32>
    %158 = arith.select %156, %154, %157 : vector<8x128xi1>, vector<8x128xf32>
    %159 = arith.truncf %158 : vector<8x128xf32> to vector<8x128xbf16>
    %c0_41 = arith.constant 0 : index
    %160 = arith.index_cast %122 : i32 to index
    %c0_42 = arith.constant 0 : index
    %c0_43 = arith.constant 0 : index
    %161 = vector.load %arg5[%c0_41, %160, %c0_42, %c0_43] : memref<1x8x8x128xbf16, #tpu.memory_space<vmem>>, vector<1x1x8x128xbf16>
    %162 = vector.shape_cast %161 : vector<1x1x8x128xbf16> to vector<8x128xbf16>
    %163 = vector.shape_cast %159 : vector<8x128xbf16> to vector<1x1x8x128xbf16>
    tpu.vector_store %arg5[%c0_41, %160, %c0_42, %c0_43], %163 {strides = array<i32>} : memref<1x8x8x128xbf16, #tpu.memory_space<vmem>>, vector<1x1x8x128xbf16>,
    %164 = arith.select %156, %154, %112 : vector<8x128xi1>, vector<8x128xf32>
    %165 = arith.select %156, %152, %113 : vector<8x128xi1>, vector<8x128xf32>
    %c3_i32 = arith.constant 3 : i32
    %166 = arith.addi %6, %c3_i32 : i32
    %167 = arith.muli %7, %166 : i32
    %c23_i32_44 = arith.constant 23 : i32
    %168 = arith.subi %c23_i32_44, %166 : i32
    %169 = arith.muli %arg0, %168 : i32
    %170 = arith.addi %167, %169 : i32
    %171 = arith.muli %7, %c3_i32 : i32
    %c7_i32_45 = arith.constant 7 : i32
    %172 = arith.subi %c7_i32_45, %c3_i32 : i32
    %173 = arith.muli %arg0, %172 : i32
    %174 = arith.addi %171, %173 : i32
    %175 = arith.index_cast %174 : i32 to index
    %c0_46 = arith.constant 0 : index
    %c0_47 = arith.constant 0 : index
    %176 = vector.load %arg3[%175, %c0_46, %c0_47] : memref<8x8x512xbf16, #tpu.memory_space<vmem>>, vector<1x8x512xbf16>
    %177 = vector.shape_cast %176 : vector<1x8x512xbf16> to vector<8x512xbf16>
    %178 = arith.extf %177 : vector<8x512xbf16> to vector<8x512xf32>
    %179 = arith.truncf %164 : vector<8x128xf32> to vector<8x128xbf16>
    %cst_48 = arith.constant dense<0.000000e+00> : vector<8x512xf32>
    %180 = tpu.matmul %179, %5, %cst_48 {dimension_numbers = #tpu.dot_dimension_numbers<[1], [0], [0], [1], [0, 0, 1, 1], [], []>} : vector<8x128xbf16>, vector<128x512xbf16>, vector<8x512xf32> -> vector<8x512xf32>
    %181 = arith.addf %178, %180 : vector<8x512xf32>
    %182 = vector.extract_strided_slice %181 {offsets = [0, 0], sizes = [8, 128], strides = [1, 1]} : vector<8x512xf32> to vector<8x128xf32>
    %183 = arith.negf %182 : vector<8x128xf32>
    %184 = math.exp %183 : vector<8x128xf32>
    %cst_49 = arith.constant 1.000000e+00 : f32
    %185 = vector.broadcast %cst_49 : f32 to vector<8x128xf32>
    %186 = arith.addf %185, %184 : vector<8x128xf32>
    %187 = arith.divf %185, %186 : vector<8x128xf32>
    %188 = vector.extract_strided_slice %181 {offsets = [0, 128], sizes = [8, 128], strides = [1, 1]} : vector<8x512xf32> to vector<8x128xf32>
    %189 = arith.negf %188 : vector<8x128xf32>
    %190 = math.exp %189 : vector<8x128xf32>
    %cst_50 = arith.constant 1.000000e+00 : f32
    %191 = vector.broadcast %cst_50 : f32 to vector<8x128xf32>
    %192 = arith.addf %191, %190 : vector<8x128xf32>
    %193 = arith.divf %191, %192 : vector<8x128xf32>
    %194 = vector.extract_strided_slice %181 {offsets = [0, 256], sizes = [8, 128], strides = [1, 1]} : vector<8x512xf32> to vector<8x128xf32>
    %195 = math.tanh %194 : vector<8x128xf32>
    %196 = vector.extract_strided_slice %181 {offsets = [0, 384], sizes = [8, 128], strides = [1, 1]} : vector<8x512xf32> to vector<8x128xf32>
    %197 = arith.negf %196 : vector<8x128xf32>
    %198 = math.exp %197 : vector<8x128xf32>
    %cst_51 = arith.constant 1.000000e+00 : f32
    %199 = vector.broadcast %cst_51 : f32 to vector<8x128xf32>
    %200 = arith.addf %199, %198 : vector<8x128xf32>
    %201 = arith.divf %199, %200 : vector<8x128xf32>
    %202 = arith.mulf %193, %165 : vector<8x128xf32>
    %203 = arith.mulf %187, %195 : vector<8x128xf32>
    %204 = arith.addf %202, %203 : vector<8x128xf32>
    %205 = math.tanh %204 : vector<8x128xf32>
    %206 = arith.mulf %201, %205 : vector<8x128xf32>
    %207 = vector.broadcast %170 : i32 to vector<8x128xi32>
    %208 = arith.cmpi slt, %207, %3 : vector<8x128xi32>
    %cst_52 = arith.constant 0.000000e+00 : f32
    %209 = vector.broadcast %cst_52 : f32 to vector<8x128xf32>
    %210 = arith.select %208, %206, %209 : vector<8x128xi1>, vector<8x128xf32>
    %211 = arith.truncf %210 : vector<8x128xf32> to vector<8x128xbf16>
    %c0_53 = arith.constant 0 : index
    %212 = arith.index_cast %174 : i32 to index
    %c0_54 = arith.constant 0 : index
    %c0_55 = arith.constant 0 : index
    %213 = vector.load %arg5[%c0_53, %212, %c0_54, %c0_55] : memref<1x8x8x128xbf16, #tpu.memory_space<vmem>>, vector<1x1x8x128xbf16>
    %214 = vector.shape_cast %213 : vector<1x1x8x128xbf16> to vector<8x128xbf16>
    %215 = vector.shape_cast %211 : vector<8x128xbf16> to vector<1x1x8x128xbf16>
    tpu.vector_store %arg5[%c0_53, %212, %c0_54, %c0_55], %215 {strides = array<i32>} : memref<1x8x8x128xbf16, #tpu.memory_space<vmem>>, vector<1x1x8x128xbf16>,
    %216 = arith.select %208, %206, %164 : vector<8x128xi1>, vector<8x128xf32>
    %217 = arith.select %208, %204, %165 : vector<8x128xi1>, vector<8x128xf32>
    %c4_i32 = arith.constant 4 : i32
    %218 = arith.addi %6, %c4_i32 : i32
    %219 = arith.muli %7, %218 : i32
    %c23_i32_56 = arith.constant 23 : i32
    %220 = arith.subi %c23_i32_56, %218 : i32
    %221 = arith.muli %arg0, %220 : i32
    %222 = arith.addi %219, %221 : i32
    %223 = arith.muli %7, %c4_i32 : i32
    %c7_i32_57 = arith.constant 7 : i32
    %224 = arith.subi %c7_i32_57, %c4_i32 : i32
    %225 = arith.muli %arg0, %224 : i32
    %226 = arith.addi %223, %225 : i32
    %227 = arith.index_cast %226 : i32 to index
    %c0_58 = arith.constant 0 : index
    %c0_59 = arith.constant 0 : index
    %228 = vector.load %arg3[%227, %c0_58, %c0_59] : memref<8x8x512xbf16, #tpu.memory_space<vmem>>, vector<1x8x512xbf16>
    %229 = vector.shape_cast %228 : vector<1x8x512xbf16> to vector<8x512xbf16>
    %230 = arith.extf %229 : vector<8x512xbf16> to vector<8x512xf32>
    %231 = arith.truncf %216 : vector<8x128xf32> to vector<8x128xbf16>
    %cst_60 = arith.constant dense<0.000000e+00> : vector<8x512xf32>
    %232 = tpu.matmul %231, %5, %cst_60 {dimension_numbers = #tpu.dot_dimension_numbers<[1], [0], [0], [1], [0, 0, 1, 1], [], []>} : vector<8x128xbf16>, vector<128x512xbf16>, vector<8x512xf32> -> vector<8x512xf32>
    %233 = arith.addf %230, %232 : vector<8x512xf32>
    %234 = vector.extract_strided_slice %233 {offsets = [0, 0], sizes = [8, 128], strides = [1, 1]} : vector<8x512xf32> to vector<8x128xf32>
    %235 = arith.negf %234 : vector<8x128xf32>
    %236 = math.exp %235 : vector<8x128xf32>
    %cst_61 = arith.constant 1.000000e+00 : f32
    %237 = vector.broadcast %cst_61 : f32 to vector<8x128xf32>
    %238 = arith.addf %237, %236 : vector<8x128xf32>
    %239 = arith.divf %237, %238 : vector<8x128xf32>
    %240 = vector.extract_strided_slice %233 {offsets = [0, 128], sizes = [8, 128], strides = [1, 1]} : vector<8x512xf32> to vector<8x128xf32>
    %241 = arith.negf %240 : vector<8x128xf32>
    %242 = math.exp %241 : vector<8x128xf32>
    %cst_62 = arith.constant 1.000000e+00 : f32
    %243 = vector.broadcast %cst_62 : f32 to vector<8x128xf32>
    %244 = arith.addf %243, %242 : vector<8x128xf32>
    %245 = arith.divf %243, %244 : vector<8x128xf32>
    %246 = vector.extract_strided_slice %233 {offsets = [0, 256], sizes = [8, 128], strides = [1, 1]} : vector<8x512xf32> to vector<8x128xf32>
    %247 = math.tanh %246 : vector<8x128xf32>
    %248 = vector.extract_strided_slice %233 {offsets = [0, 384], sizes = [8, 128], strides = [1, 1]} : vector<8x512xf32> to vector<8x128xf32>
    %249 = arith.negf %248 : vector<8x128xf32>
    %250 = math.exp %249 : vector<8x128xf32>
    %cst_63 = arith.constant 1.000000e+00 : f32
    %251 = vector.broadcast %cst_63 : f32 to vector<8x128xf32>
    %252 = arith.addf %251, %250 : vector<8x128xf32>
    %253 = arith.divf %251, %252 : vector<8x128xf32>
    %254 = arith.mulf %245, %217 : vector<8x128xf32>
    %255 = arith.mulf %239, %247 : vector<8x128xf32>
    %256 = arith.addf %254, %255 : vector<8x128xf32>
    %257 = math.tanh %256 : vector<8x128xf32>
    %258 = arith.mulf %253, %257 : vector<8x128xf32>
    %259 = vector.broadcast %222 : i32 to vector<8x128xi32>
    %260 = arith.cmpi slt, %259, %3 : vector<8x128xi32>
    %cst_64 = arith.constant 0.000000e+00 : f32
    %261 = vector.broadcast %cst_64 : f32 to vector<8x128xf32>
    %262 = arith.select %260, %258, %261 : vector<8x128xi1>, vector<8x128xf32>
    %263 = arith.truncf %262 : vector<8x128xf32> to vector<8x128xbf16>
    %c0_65 = arith.constant 0 : index
    %264 = arith.index_cast %226 : i32 to index
    %c0_66 = arith.constant 0 : index
    %c0_67 = arith.constant 0 : index
    %265 = vector.load %arg5[%c0_65, %264, %c0_66, %c0_67] : memref<1x8x8x128xbf16, #tpu.memory_space<vmem>>, vector<1x1x8x128xbf16>
    %266 = vector.shape_cast %265 : vector<1x1x8x128xbf16> to vector<8x128xbf16>
    %267 = vector.shape_cast %263 : vector<8x128xbf16> to vector<1x1x8x128xbf16>
    tpu.vector_store %arg5[%c0_65, %264, %c0_66, %c0_67], %267 {strides = array<i32>} : memref<1x8x8x128xbf16, #tpu.memory_space<vmem>>, vector<1x1x8x128xbf16>,
    %268 = arith.select %260, %258, %216 : vector<8x128xi1>, vector<8x128xf32>
    %269 = arith.select %260, %256, %217 : vector<8x128xi1>, vector<8x128xf32>
    %c5_i32 = arith.constant 5 : i32
    %270 = arith.addi %6, %c5_i32 : i32
    %271 = arith.muli %7, %270 : i32
    %c23_i32_68 = arith.constant 23 : i32
    %272 = arith.subi %c23_i32_68, %270 : i32
    %273 = arith.muli %arg0, %272 : i32
    %274 = arith.addi %271, %273 : i32
    %275 = arith.muli %7, %c5_i32 : i32
    %c7_i32_69 = arith.constant 7 : i32
    %276 = arith.subi %c7_i32_69, %c5_i32 : i32
    %277 = arith.muli %arg0, %276 : i32
    %278 = arith.addi %275, %277 : i32
    %279 = arith.index_cast %278 : i32 to index
    %c0_70 = arith.constant 0 : index
    %c0_71 = arith.constant 0 : index
    %280 = vector.load %arg3[%279, %c0_70, %c0_71] : memref<8x8x512xbf16, #tpu.memory_space<vmem>>, vector<1x8x512xbf16>
    %281 = vector.shape_cast %280 : vector<1x8x512xbf16> to vector<8x512xbf16>
    %282 = arith.extf %281 : vector<8x512xbf16> to vector<8x512xf32>
    %283 = arith.truncf %268 : vector<8x128xf32> to vector<8x128xbf16>
    %cst_72 = arith.constant dense<0.000000e+00> : vector<8x512xf32>
    %284 = tpu.matmul %283, %5, %cst_72 {dimension_numbers = #tpu.dot_dimension_numbers<[1], [0], [0], [1], [0, 0, 1, 1], [], []>} : vector<8x128xbf16>, vector<128x512xbf16>, vector<8x512xf32> -> vector<8x512xf32>
    %285 = arith.addf %282, %284 : vector<8x512xf32>
    %286 = vector.extract_strided_slice %285 {offsets = [0, 0], sizes = [8, 128], strides = [1, 1]} : vector<8x512xf32> to vector<8x128xf32>
    %287 = arith.negf %286 : vector<8x128xf32>
    %288 = math.exp %287 : vector<8x128xf32>
    %cst_73 = arith.constant 1.000000e+00 : f32
    %289 = vector.broadcast %cst_73 : f32 to vector<8x128xf32>
    %290 = arith.addf %289, %288 : vector<8x128xf32>
    %291 = arith.divf %289, %290 : vector<8x128xf32>
    %292 = vector.extract_strided_slice %285 {offsets = [0, 128], sizes = [8, 128], strides = [1, 1]} : vector<8x512xf32> to vector<8x128xf32>
    %293 = arith.negf %292 : vector<8x128xf32>
    %294 = math.exp %293 : vector<8x128xf32>
    %cst_74 = arith.constant 1.000000e+00 : f32
    %295 = vector.broadcast %cst_74 : f32 to vector<8x128xf32>
    %296 = arith.addf %295, %294 : vector<8x128xf32>
    %297 = arith.divf %295, %296 : vector<8x128xf32>
    %298 = vector.extract_strided_slice %285 {offsets = [0, 256], sizes = [8, 128], strides = [1, 1]} : vector<8x512xf32> to vector<8x128xf32>
    %299 = math.tanh %298 : vector<8x128xf32>
    %300 = vector.extract_strided_slice %285 {offsets = [0, 384], sizes = [8, 128], strides = [1, 1]} : vector<8x512xf32> to vector<8x128xf32>
    %301 = arith.negf %300 : vector<8x128xf32>
    %302 = math.exp %301 : vector<8x128xf32>
    %cst_75 = arith.constant 1.000000e+00 : f32
    %303 = vector.broadcast %cst_75 : f32 to vector<8x128xf32>
    %304 = arith.addf %303, %302 : vector<8x128xf32>
    %305 = arith.divf %303, %304 : vector<8x128xf32>
    %306 = arith.mulf %297, %269 : vector<8x128xf32>
    %307 = arith.mulf %291, %299 : vector<8x128xf32>
    %308 = arith.addf %306, %307 : vector<8x128xf32>
    %309 = math.tanh %308 : vector<8x128xf32>
    %310 = arith.mulf %305, %309 : vector<8x128xf32>
    %311 = vector.broadcast %274 : i32 to vector<8x128xi32>
    %312 = arith.cmpi slt, %311, %3 : vector<8x128xi32>
    %cst_76 = arith.constant 0.000000e+00 : f32
    %313 = vector.broadcast %cst_76 : f32 to vector<8x128xf32>
    %314 = arith.select %312, %310, %313 : vector<8x128xi1>, vector<8x128xf32>
    %315 = arith.truncf %314 : vector<8x128xf32> to vector<8x128xbf16>
    %c0_77 = arith.constant 0 : index
    %316 = arith.index_cast %278 : i32 to index
    %c0_78 = arith.constant 0 : index
    %c0_79 = arith.constant 0 : index
    %317 = vector.load %arg5[%c0_77, %316, %c0_78, %c0_79] : memref<1x8x8x128xbf16, #tpu.memory_space<vmem>>, vector<1x1x8x128xbf16>
    %318 = vector.shape_cast %317 : vector<1x1x8x128xbf16> to vector<8x128xbf16>
    %319 = vector.shape_cast %315 : vector<8x128xbf16> to vector<1x1x8x128xbf16>
    tpu.vector_store %arg5[%c0_77, %316, %c0_78, %c0_79], %319 {strides = array<i32>} : memref<1x8x8x128xbf16, #tpu.memory_space<vmem>>, vector<1x1x8x128xbf16>,
    %320 = arith.select %312, %310, %268 : vector<8x128xi1>, vector<8x128xf32>
    %321 = arith.select %312, %308, %269 : vector<8x128xi1>, vector<8x128xf32>
    %c6_i32 = arith.constant 6 : i32
    %322 = arith.addi %6, %c6_i32 : i32
    %323 = arith.muli %7, %322 : i32
    %c23_i32_80 = arith.constant 23 : i32
    %324 = arith.subi %c23_i32_80, %322 : i32
    %325 = arith.muli %arg0, %324 : i32
    %326 = arith.addi %323, %325 : i32
    %327 = arith.muli %7, %c6_i32 : i32
    %c7_i32_81 = arith.constant 7 : i32
    %328 = arith.subi %c7_i32_81, %c6_i32 : i32
    %329 = arith.muli %arg0, %328 : i32
    %330 = arith.addi %327, %329 : i32
    %331 = arith.index_cast %330 : i32 to index
    %c0_82 = arith.constant 0 : index
    %c0_83 = arith.constant 0 : index
    %332 = vector.load %arg3[%331, %c0_82, %c0_83] : memref<8x8x512xbf16, #tpu.memory_space<vmem>>, vector<1x8x512xbf16>
    %333 = vector.shape_cast %332 : vector<1x8x512xbf16> to vector<8x512xbf16>
    %334 = arith.extf %333 : vector<8x512xbf16> to vector<8x512xf32>
    %335 = arith.truncf %320 : vector<8x128xf32> to vector<8x128xbf16>
    %cst_84 = arith.constant dense<0.000000e+00> : vector<8x512xf32>
    %336 = tpu.matmul %335, %5, %cst_84 {dimension_numbers = #tpu.dot_dimension_numbers<[1], [0], [0], [1], [0, 0, 1, 1], [], []>} : vector<8x128xbf16>, vector<128x512xbf16>, vector<8x512xf32> -> vector<8x512xf32>
    %337 = arith.addf %334, %336 : vector<8x512xf32>
    %338 = vector.extract_strided_slice %337 {offsets = [0, 0], sizes = [8, 128], strides = [1, 1]} : vector<8x512xf32> to vector<8x128xf32>
    %339 = arith.negf %338 : vector<8x128xf32>
    %340 = math.exp %339 : vector<8x128xf32>
    %cst_85 = arith.constant 1.000000e+00 : f32
    %341 = vector.broadcast %cst_85 : f32 to vector<8x128xf32>
    %342 = arith.addf %341, %340 : vector<8x128xf32>
    %343 = arith.divf %341, %342 : vector<8x128xf32>
    %344 = vector.extract_strided_slice %337 {offsets = [0, 128], sizes = [8, 128], strides = [1, 1]} : vector<8x512xf32> to vector<8x128xf32>
    %345 = arith.negf %344 : vector<8x128xf32>
    %346 = math.exp %345 : vector<8x128xf32>
    %cst_86 = arith.constant 1.000000e+00 : f32
    %347 = vector.broadcast %cst_86 : f32 to vector<8x128xf32>
    %348 = arith.addf %347, %346 : vector<8x128xf32>
    %349 = arith.divf %347, %348 : vector<8x128xf32>
    %350 = vector.extract_strided_slice %337 {offsets = [0, 256], sizes = [8, 128], strides = [1, 1]} : vector<8x512xf32> to vector<8x128xf32>
    %351 = math.tanh %350 : vector<8x128xf32>
    %352 = vector.extract_strided_slice %337 {offsets = [0, 384], sizes = [8, 128], strides = [1, 1]} : vector<8x512xf32> to vector<8x128xf32>
    %353 = arith.negf %352 : vector<8x128xf32>
    %354 = math.exp %353 : vector<8x128xf32>
    %cst_87 = arith.constant 1.000000e+00 : f32
    %355 = vector.broadcast %cst_87 : f32 to vector<8x128xf32>
    %356 = arith.addf %355, %354 : vector<8x128xf32>
    %357 = arith.divf %355, %356 : vector<8x128xf32>
    %358 = arith.mulf %349, %321 : vector<8x128xf32>
    %359 = arith.mulf %343, %351 : vector<8x128xf32>
    %360 = arith.addf %358, %359 : vector<8x128xf32>
    %361 = math.tanh %360 : vector<8x128xf32>
    %362 = arith.mulf %357, %361 : vector<8x128xf32>
    %363 = vector.broadcast %326 : i32 to vector<8x128xi32>
    %364 = arith.cmpi slt, %363, %3 : vector<8x128xi32>
    %cst_88 = arith.constant 0.000000e+00 : f32
    %365 = vector.broadcast %cst_88 : f32 to vector<8x128xf32>
    %366 = arith.select %364, %362, %365 : vector<8x128xi1>, vector<8x128xf32>
    %367 = arith.truncf %366 : vector<8x128xf32> to vector<8x128xbf16>
    %c0_89 = arith.constant 0 : index
    %368 = arith.index_cast %330 : i32 to index
    %c0_90 = arith.constant 0 : index
    %c0_91 = arith.constant 0 : index
    %369 = vector.load %arg5[%c0_89, %368, %c0_90, %c0_91] : memref<1x8x8x128xbf16, #tpu.memory_space<vmem>>, vector<1x1x8x128xbf16>
    %370 = vector.shape_cast %369 : vector<1x1x8x128xbf16> to vector<8x128xbf16>
    %371 = vector.shape_cast %367 : vector<8x128xbf16> to vector<1x1x8x128xbf16>
    tpu.vector_store %arg5[%c0_89, %368, %c0_90, %c0_91], %371 {strides = array<i32>} : memref<1x8x8x128xbf16, #tpu.memory_space<vmem>>, vector<1x1x8x128xbf16>,
    %372 = arith.select %364, %362, %320 : vector<8x128xi1>, vector<8x128xf32>
    %373 = arith.select %364, %360, %321 : vector<8x128xi1>, vector<8x128xf32>
    %c7_i32_92 = arith.constant 7 : i32
    %374 = arith.addi %6, %c7_i32_92 : i32
    %375 = arith.muli %7, %374 : i32
    %c23_i32_93 = arith.constant 23 : i32
    %376 = arith.subi %c23_i32_93, %374 : i32
    %377 = arith.muli %arg0, %376 : i32
    %378 = arith.addi %375, %377 : i32
    %379 = arith.muli %7, %c7_i32_92 : i32
    %c7_i32_94 = arith.constant 7 : i32
    %380 = arith.subi %c7_i32_94, %c7_i32_92 : i32
    %381 = arith.muli %arg0, %380 : i32
    %382 = arith.addi %379, %381 : i32
    %383 = arith.index_cast %382 : i32 to index
    %c0_95 = arith.constant 0 : index
    %c0_96 = arith.constant 0 : index
    %384 = vector.load %arg3[%383, %c0_95, %c0_96] : memref<8x8x512xbf16, #tpu.memory_space<vmem>>, vector<1x8x512xbf16>
    %385 = vector.shape_cast %384 : vector<1x8x512xbf16> to vector<8x512xbf16>
    %386 = arith.extf %385 : vector<8x512xbf16> to vector<8x512xf32>
    %387 = arith.truncf %372 : vector<8x128xf32> to vector<8x128xbf16>
    %cst_97 = arith.constant dense<0.000000e+00> : vector<8x512xf32>
    %388 = tpu.matmul %387, %5, %cst_97 {dimension_numbers = #tpu.dot_dimension_numbers<[1], [0], [0], [1], [0, 0, 1, 1], [], []>} : vector<8x128xbf16>, vector<128x512xbf16>, vector<8x512xf32> -> vector<8x512xf32>
    %389 = arith.addf %386, %388 : vector<8x512xf32>
    %390 = vector.extract_strided_slice %389 {offsets = [0, 0], sizes = [8, 128], strides = [1, 1]} : vector<8x512xf32> to vector<8x128xf32>
    %391 = arith.negf %390 : vector<8x128xf32>
    %392 = math.exp %391 : vector<8x128xf32>
    %cst_98 = arith.constant 1.000000e+00 : f32
    %393 = vector.broadcast %cst_98 : f32 to vector<8x128xf32>
    %394 = arith.addf %393, %392 : vector<8x128xf32>
    %395 = arith.divf %393, %394 : vector<8x128xf32>
    %396 = vector.extract_strided_slice %389 {offsets = [0, 128], sizes = [8, 128], strides = [1, 1]} : vector<8x512xf32> to vector<8x128xf32>
    %397 = arith.negf %396 : vector<8x128xf32>
    %398 = math.exp %397 : vector<8x128xf32>
    %cst_99 = arith.constant 1.000000e+00 : f32
    %399 = vector.broadcast %cst_99 : f32 to vector<8x128xf32>
    %400 = arith.addf %399, %398 : vector<8x128xf32>
    %401 = arith.divf %399, %400 : vector<8x128xf32>
    %402 = vector.extract_strided_slice %389 {offsets = [0, 256], sizes = [8, 128], strides = [1, 1]} : vector<8x512xf32> to vector<8x128xf32>
    %403 = math.tanh %402 : vector<8x128xf32>
    %404 = vector.extract_strided_slice %389 {offsets = [0, 384], sizes = [8, 128], strides = [1, 1]} : vector<8x512xf32> to vector<8x128xf32>
    %405 = arith.negf %404 : vector<8x128xf32>
    %406 = math.exp %405 : vector<8x128xf32>
    %cst_100 = arith.constant 1.000000e+00 : f32
    %407 = vector.broadcast %cst_100 : f32 to vector<8x128xf32>
    %408 = arith.addf %407, %406 : vector<8x128xf32>
    %409 = arith.divf %407, %408 : vector<8x128xf32>
    %410 = arith.mulf %401, %373 : vector<8x128xf32>
    %411 = arith.mulf %395, %403 : vector<8x128xf32>
    %412 = arith.addf %410, %411 : vector<8x128xf32>
    %413 = math.tanh %412 : vector<8x128xf32>
    %414 = arith.mulf %409, %413 : vector<8x128xf32>
    %415 = vector.broadcast %378 : i32 to vector<8x128xi32>
    %416 = arith.cmpi slt, %415, %3 : vector<8x128xi32>
    %cst_101 = arith.constant 0.000000e+00 : f32
    %417 = vector.broadcast %cst_101 : f32 to vector<8x128xf32>
    %418 = arith.select %416, %414, %417 : vector<8x128xi1>, vector<8x128xf32>
    %419 = arith.truncf %418 : vector<8x128xf32> to vector<8x128xbf16>
    %c0_102 = arith.constant 0 : index
    %420 = arith.index_cast %382 : i32 to index
    %c0_103 = arith.constant 0 : index
    %c0_104 = arith.constant 0 : index
    %421 = vector.load %arg5[%c0_102, %420, %c0_103, %c0_104] : memref<1x8x8x128xbf16, #tpu.memory_space<vmem>>, vector<1x1x8x128xbf16>
    %422 = vector.shape_cast %421 : vector<1x1x8x128xbf16> to vector<8x128xbf16>
    %423 = vector.shape_cast %419 : vector<8x128xbf16> to vector<1x1x8x128xbf16>
    tpu.vector_store %arg5[%c0_102, %420, %c0_103, %c0_104], %423 {strides = array<i32>} : memref<1x8x8x128xbf16, #tpu.memory_space<vmem>>, vector<1x1x8x128xbf16>,
    %424 = arith.select %416, %414, %372 : vector<8x128xi1>, vector<8x128xf32>
    %425 = arith.select %416, %412, %373 : vector<8x128xi1>, vector<8x128xf32>
    %c8_i32_105 = arith.constant 8 : i32
    %c0_106 = arith.constant 0 : index
    %c0_107 = arith.constant 0 : index
    %426 = vector.load %arg6[%c0_106, %c0_107] : memref<8x128xf32, #tpu.memory_space<vmem>>, vector<8x128xf32>
    tpu.vector_store %arg6[%c0_106, %c0_107], %424 {strides = array<i32>} : memref<8x128xf32, #tpu.memory_space<vmem>>, vector<8x128xf32>,
    %c0_108 = arith.constant 0 : index
    %c0_109 = arith.constant 0 : index
    %427 = vector.load %arg7[%c0_108, %c0_109] : memref<8x128xf32, #tpu.memory_space<vmem>>, vector<8x128xf32>
    tpu.vector_store %arg7[%c0_108, %c0_109], %425 {strides = array<i32>} : memref<8x128xf32, #tpu.memory_space<vmem>>, vector<8x128xf32>,
    return
  }
  func.func @transform_0(%arg0: i32, %arg1: i32) -> (i32, i32) {
    %c0_i32 = arith.constant 0 : i32
    %c0_i32_0 = arith.constant 0 : i32
    %c0_i32_1 = arith.constant 0 : i32
    return %c0_i32, %c0_i32_0 : i32, i32
  }
  func.func @transform_1(%arg0: i32, %arg1: i32) -> (i32, i32, i32) {
    %c1_i32 = arith.constant 1 : i32
    %0 = arith.subi %c1_i32, %arg0 : i32
    %1 = arith.muli %arg1, %0 : i32
    %c2_i32 = arith.constant 2 : i32
    %2 = arith.subi %c2_i32, %arg1 : i32
    %3 = arith.muli %2, %arg0 : i32
    %4 = arith.addi %1, %3 : i32
    %c0_i32 = arith.constant 0 : i32
    %c0_i32_0 = arith.constant 0 : i32
    return %4, %c0_i32, %arg0 : i32, i32, i32
  }
  func.func @transform_2(%arg0: i32, %arg1: i32) -> (i32, i32, i32) {
    %c0_i32 = arith.constant 0 : i32
    %c0_i32_0 = arith.constant 0 : i32
    %c0_i32_1 = arith.constant 0 : i32
    return %arg0, %c0_i32, %c0_i32_0 : i32, i32, i32
  }
  func.func @transform_3(%arg0: i32, %arg1: i32) -> (i32, i32, i32, i32) {
    %c1_i32 = arith.constant 1 : i32
    %0 = arith.subi %c1_i32, %arg0 : i32
    %1 = arith.muli %arg1, %0 : i32
    %c2_i32 = arith.constant 2 : i32
    %2 = arith.subi %c2_i32, %arg1 : i32
    %3 = arith.muli %2, %arg0 : i32
    %4 = arith.addi %1, %3 : i32
    %c0_i32 = arith.constant 0 : i32
    %c0_i32_0 = arith.constant 0 : i32
    %c0_i32_1 = arith.constant 0 : i32
    return %arg0, %4, %c0_i32, %c0_i32_0 : i32, i32, i32, i32
  }
}

module attributes {stable_mosaic.version = 11 : i64} {
  func.func @_gemm_kernel(%arg0: i32, %arg1: i32, %arg2: i32, %arg3: memref<1x192x128xbf16, #tpu.memory_space<vmem>>, %arg4: memref<1x128x256xbf16, #tpu.memory_space<vmem>>, %arg5: memref<1x256xf32, #tpu.memory_space<vmem>>, %arg6: memref<192x256xbf16, #tpu.memory_space<vmem>>, %arg7: memref<192x256xf32, #tpu.memory_space<vmem>>) attributes {dimension_semantics = [#tpu.dimension_semantics<parallel>, #tpu.dimension_semantics<parallel>, #tpu.dimension_semantics<arbitrary>], iteration_bounds = array<i64: 1, 1, 2>, scalar_prefetch = 0 : i64, scratch_operands = 1 : i64, tpu.core_type = #tpu.core_type<tc>, window_params = [{transform_indices = @transform_0, window_bounds = array<i64: 1, 192, 128>}, {transform_indices = @transform_1, window_bounds = array<i64: 1, 128, 256>}, {transform_indices = @transform_2, window_bounds = array<i64: 1, 256>}, {transform_indices = @transform_3, window_bounds = array<i64: 192, 256>}]} {
    %c0_i32 = arith.constant 0 : i32
    %0 = arith.cmpi eq, %arg2, %c0_i32 : i32
    %1 = arith.extui %0 : i1 to i32
    %c0_i32_0 = arith.constant 0 : i32
    %2 = arith.cmpi ne, %1, %c0_i32_0 : i32
    scf.if %2 {
      %cst_11 = arith.constant 0.000000e+00 : f32
      %14 = vector.broadcast %cst_11 : f32 to vector<192x256xf32>
      %c0_12 = arith.constant 0 : index
      %c0_13 = arith.constant 0 : index
      %15 = vector.load %arg7[%c0_12, %c0_13] : memref<192x256xf32, #tpu.memory_space<vmem>>, vector<192x256xf32>
      tpu.vector_store %arg7[%c0_12, %c0_13], %14 {strides = array<i32>} : memref<192x256xf32, #tpu.memory_space<vmem>>, vector<192x256xf32>,
    } else {
    }
    %c0 = arith.constant 0 : index
    %c0_1 = arith.constant 0 : index
    %3 = vector.load %arg7[%c0, %c0_1] : memref<192x256xf32, #tpu.memory_space<vmem>>, vector<192x256xf32>
    %c0_2 = arith.constant 0 : index
    %c0_3 = arith.constant 0 : index
    %c0_4 = arith.constant 0 : index
    %4 = vector.load %arg3[%c0_2, %c0_3, %c0_4] : memref<1x192x128xbf16, #tpu.memory_space<vmem>>, vector<1x192x128xbf16>
    %5 = vector.shape_cast %4 : vector<1x192x128xbf16> to vector<192x128xbf16>
    %c0_5 = arith.constant 0 : index
    %c0_6 = arith.constant 0 : index
    %c0_7 = arith.constant 0 : index
    %6 = vector.load %arg4[%c0_5, %c0_6, %c0_7] : memref<1x128x256xbf16, #tpu.memory_space<vmem>>, vector<1x128x256xbf16>
    %7 = vector.shape_cast %6 : vector<1x128x256xbf16> to vector<128x256xbf16>
    %cst = arith.constant dense<0.000000e+00> : vector<192x256xf32>
    %8 = tpu.matmul %5, %7, %cst {dimension_numbers = #tpu.dot_dimension_numbers<[1], [0], [0], [1], [0, 0, 1, 1], [], []>} : vector<192x128xbf16>, vector<128x256xbf16>, vector<192x256xf32> -> vector<192x256xf32>
    %9 = arith.addf %3, %8 : vector<192x256xf32>
    %c0_8 = arith.constant 0 : index
    %c0_9 = arith.constant 0 : index
    %10 = vector.load %arg7[%c0_8, %c0_9] : memref<192x256xf32, #tpu.memory_space<vmem>>, vector<192x256xf32>
    tpu.vector_store %arg7[%c0_8, %c0_9], %9 {strides = array<i32>} : memref<192x256xf32, #tpu.memory_space<vmem>>, vector<192x256xf32>,
    %c1_i32 = arith.constant 1 : i32
    %11 = arith.cmpi eq, %arg2, %c1_i32 : i32
    %12 = arith.extui %11 : i1 to i32
    %c0_i32_10 = arith.constant 0 : i32
    %13 = arith.cmpi ne, %12, %c0_i32_10 : i32
    scf.if %13 {
      %c0_11 = arith.constant 0 : index
      %c0_12 = arith.constant 0 : index
      %14 = vector.load %arg7[%c0_11, %c0_12] : memref<192x256xf32, #tpu.memory_space<vmem>>, vector<192x256xf32>
      %c0_13 = arith.constant 0 : index
      %c0_14 = arith.constant 0 : index
      %15 = vector.load %arg5[%c0_13, %c0_14] : memref<1x256xf32, #tpu.memory_space<vmem>>, vector<1x256xf32>
      %16 = vector.broadcast %15 : vector<1x256xf32> to vector<192x256xf32>
      %17 = arith.addf %14, %16 : vector<192x256xf32>
      %18 = math.tanh %17 : vector<192x256xf32>
      %19 = arith.truncf %18 : vector<192x256xf32> to vector<192x256xbf16>
      %c0_15 = arith.constant 0 : index
      %c0_16 = arith.constant 0 : index
      %20 = vector.load %arg6[%c0_15, %c0_16] : memref<192x256xbf16, #tpu.memory_space<vmem>>, vector<192x256xbf16>
      tpu.vector_store %arg6[%c0_15, %c0_16], %19 {strides = array<i32>} : memref<192x256xbf16, #tpu.memory_space<vmem>>, vector<192x256xbf16>,
    } else {
    }
    return
  }
  func.func @transform_0(%arg0: i32, %arg1: i32, %arg2: i32) -> (i32, i32, i32) {
    %c0_i32 = arith.constant 0 : i32
    %c0_i32_0 = arith.constant 0 : i32
    return %arg2, %arg0, %c0_i32 : i32, i32, i32
  }
  func.func @transform_1(%arg0: i32, %arg1: i32, %arg2: i32) -> (i32, i32, i32) {
    %c0_i32 = arith.constant 0 : i32
    %c0_i32_0 = arith.constant 0 : i32
    return %arg2, %c0_i32, %arg1 : i32, i32, i32
  }
  func.func @transform_2(%arg0: i32, %arg1: i32, %arg2: i32) -> (i32, i32) {
    %c0_i32 = arith.constant 0 : i32
    %c0_i32_0 = arith.constant 0 : i32
    return %c0_i32, %arg1 : i32, i32
  }
  func.func @transform_3(%arg0: i32, %arg1: i32, %arg2: i32) -> (i32, i32) {
    %c0_i32 = arith.constant 0 : i32
    return %arg0, %arg1 : i32, i32
  }
}

module attributes {stable_mosaic.version = 11 : i64} {
  func.func @_gemm_kernel(%arg0: i32, %arg1: i32, %arg2: i32, %arg3: memref<1x128x128xbf16, #tpu.memory_space<vmem>>, %arg4: memref<1x128x256xbf16, #tpu.memory_space<vmem>>, %arg5: memref<1x256xf32, #tpu.memory_space<vmem>>, %arg6: memref<128x256xf32, #tpu.memory_space<vmem>>, %arg7: memref<128x256xf32, #tpu.memory_space<vmem>>) attributes {dimension_semantics = [#tpu.dimension_semantics<parallel>, #tpu.dimension_semantics<parallel>, #tpu.dimension_semantics<arbitrary>], iteration_bounds = array<i64: 1, 1, 2>, scalar_prefetch = 0 : i64, scratch_operands = 1 : i64, tpu.core_type = #tpu.core_type<tc>, window_params = [{transform_indices = @transform_0, window_bounds = array<i64: 1, 128, 128>}, {transform_indices = @transform_1, window_bounds = array<i64: 1, 128, 256>}, {transform_indices = @transform_2, window_bounds = array<i64: 1, 256>}, {transform_indices = @transform_3, window_bounds = array<i64: 128, 256>}]} {
    %c0_i32 = arith.constant 0 : i32
    %0 = arith.cmpi eq, %arg2, %c0_i32 : i32
    %1 = arith.extui %0 : i1 to i32
    %c0_i32_0 = arith.constant 0 : i32
    %2 = arith.cmpi ne, %1, %c0_i32_0 : i32
    scf.if %2 {
      %cst_11 = arith.constant 0.000000e+00 : f32
      %14 = vector.broadcast %cst_11 : f32 to vector<128x256xf32>
      %c0_12 = arith.constant 0 : index
      %c0_13 = arith.constant 0 : index
      %15 = vector.load %arg7[%c0_12, %c0_13] : memref<128x256xf32, #tpu.memory_space<vmem>>, vector<128x256xf32>
      tpu.vector_store %arg7[%c0_12, %c0_13], %14 {strides = array<i32>} : memref<128x256xf32, #tpu.memory_space<vmem>>, vector<128x256xf32>,
    } else {
    }
    %c0 = arith.constant 0 : index
    %c0_1 = arith.constant 0 : index
    %3 = vector.load %arg7[%c0, %c0_1] : memref<128x256xf32, #tpu.memory_space<vmem>>, vector<128x256xf32>
    %c0_2 = arith.constant 0 : index
    %c0_3 = arith.constant 0 : index
    %c0_4 = arith.constant 0 : index
    %4 = vector.load %arg3[%c0_2, %c0_3, %c0_4] : memref<1x128x128xbf16, #tpu.memory_space<vmem>>, vector<1x128x128xbf16>
    %5 = vector.shape_cast %4 : vector<1x128x128xbf16> to vector<128x128xbf16>
    %c0_5 = arith.constant 0 : index
    %c0_6 = arith.constant 0 : index
    %c0_7 = arith.constant 0 : index
    %6 = vector.load %arg4[%c0_5, %c0_6, %c0_7] : memref<1x128x256xbf16, #tpu.memory_space<vmem>>, vector<1x128x256xbf16>
    %7 = vector.shape_cast %6 : vector<1x128x256xbf16> to vector<128x256xbf16>
    %cst = arith.constant dense<0.000000e+00> : vector<128x256xf32>
    %8 = tpu.matmul %5, %7, %cst {dimension_numbers = #tpu.dot_dimension_numbers<[1], [0], [0], [1], [0, 0, 1, 1], [], []>} : vector<128x128xbf16>, vector<128x256xbf16>, vector<128x256xf32> -> vector<128x256xf32>
    %9 = arith.addf %3, %8 : vector<128x256xf32>
    %c0_8 = arith.constant 0 : index
    %c0_9 = arith.constant 0 : index
    %10 = vector.load %arg7[%c0_8, %c0_9] : memref<128x256xf32, #tpu.memory_space<vmem>>, vector<128x256xf32>
    tpu.vector_store %arg7[%c0_8, %c0_9], %9 {strides = array<i32>} : memref<128x256xf32, #tpu.memory_space<vmem>>, vector<128x256xf32>,
    %c1_i32 = arith.constant 1 : i32
    %11 = arith.cmpi eq, %arg2, %c1_i32 : i32
    %12 = arith.extui %11 : i1 to i32
    %c0_i32_10 = arith.constant 0 : i32
    %13 = arith.cmpi ne, %12, %c0_i32_10 : i32
    scf.if %13 {
      %c0_11 = arith.constant 0 : index
      %c0_12 = arith.constant 0 : index
      %14 = vector.load %arg7[%c0_11, %c0_12] : memref<128x256xf32, #tpu.memory_space<vmem>>, vector<128x256xf32>
      %c0_13 = arith.constant 0 : index
      %c0_14 = arith.constant 0 : index
      %15 = vector.load %arg5[%c0_13, %c0_14] : memref<1x256xf32, #tpu.memory_space<vmem>>, vector<1x256xf32>
      %16 = vector.broadcast %15 : vector<1x256xf32> to vector<128x256xf32>
      %17 = arith.addf %14, %16 : vector<128x256xf32>
      %18 = math.tanh %17 : vector<128x256xf32>
      %c0_15 = arith.constant 0 : index
      %c0_16 = arith.constant 0 : index
      %19 = vector.load %arg6[%c0_15, %c0_16] : memref<128x256xf32, #tpu.memory_space<vmem>>, vector<128x256xf32>
      tpu.vector_store %arg6[%c0_15, %c0_16], %18 {strides = array<i32>} : memref<128x256xf32, #tpu.memory_space<vmem>>, vector<128x256xf32>,
    } else {
    }
    return
  }
  func.func @transform_0(%arg0: i32, %arg1: i32, %arg2: i32) -> (i32, i32, i32) {
    %c0_i32 = arith.constant 0 : i32
    %c0_i32_0 = arith.constant 0 : i32
    return %arg2, %arg0, %c0_i32 : i32, i32, i32
  }
  func.func @transform_1(%arg0: i32, %arg1: i32, %arg2: i32) -> (i32, i32, i32) {
    %c0_i32 = arith.constant 0 : i32
    %c0_i32_0 = arith.constant 0 : i32
    return %arg2, %c0_i32, %arg1 : i32, i32, i32
  }
  func.func @transform_2(%arg0: i32, %arg1: i32, %arg2: i32) -> (i32, i32) {
    %c0_i32 = arith.constant 0 : i32
    %c0_i32_0 = arith.constant 0 : i32
    return %c0_i32, %arg1 : i32, i32
  }
  func.func @transform_3(%arg0: i32, %arg1: i32, %arg2: i32) -> (i32, i32) {
    %c0_i32 = arith.constant 0 : i32
    return %arg0, %arg1 : i32, i32
  }
}

module attributes {stable_mosaic.version = 11 : i64} {
  func.func @_gemm_kernel(%arg0: i32, %arg1: i32, %arg2: i32, %arg3: memref<1x192x256xbf16, #tpu.memory_space<vmem>>, %arg4: memref<1x256x512xbf16, #tpu.memory_space<vmem>>, %arg5: memref<1x512xf32, #tpu.memory_space<vmem>>, %arg6: memref<192x512xbf16, #tpu.memory_space<vmem>>, %arg7: memref<192x512xf32, #tpu.memory_space<vmem>>) attributes {dimension_semantics = [#tpu.dimension_semantics<parallel>, #tpu.dimension_semantics<parallel>, #tpu.dimension_semantics<arbitrary>], iteration_bounds = array<i64: 1, 2, 1>, scalar_prefetch = 0 : i64, scratch_operands = 1 : i64, tpu.core_type = #tpu.core_type<tc>, window_params = [{transform_indices = @transform_0, window_bounds = array<i64: 1, 192, 256>}, {transform_indices = @transform_1, window_bounds = array<i64: 1, 256, 512>}, {transform_indices = @transform_2, window_bounds = array<i64: 1, 512>}, {transform_indices = @transform_3, window_bounds = array<i64: 192, 512>}]} {
    %c0_i32 = arith.constant 0 : i32
    %0 = arith.cmpi eq, %arg2, %c0_i32 : i32
    %1 = arith.extui %0 : i1 to i32
    %c0_i32_0 = arith.constant 0 : i32
    %2 = arith.cmpi ne, %1, %c0_i32_0 : i32
    scf.if %2 {
      %cst_12 = arith.constant 0.000000e+00 : f32
      %14 = vector.broadcast %cst_12 : f32 to vector<192x512xf32>
      %c0_13 = arith.constant 0 : index
      %c0_14 = arith.constant 0 : index
      %15 = vector.load %arg7[%c0_13, %c0_14] : memref<192x512xf32, #tpu.memory_space<vmem>>, vector<192x512xf32>
      tpu.vector_store %arg7[%c0_13, %c0_14], %14 {strides = array<i32>} : memref<192x512xf32, #tpu.memory_space<vmem>>, vector<192x512xf32>,
    } else {
    }
    %c0 = arith.constant 0 : index
    %c0_1 = arith.constant 0 : index
    %3 = vector.load %arg7[%c0, %c0_1] : memref<192x512xf32, #tpu.memory_space<vmem>>, vector<192x512xf32>
    %c0_2 = arith.constant 0 : index
    %c0_3 = arith.constant 0 : index
    %c0_4 = arith.constant 0 : index
    %4 = vector.load %arg3[%c0_2, %c0_3, %c0_4] : memref<1x192x256xbf16, #tpu.memory_space<vmem>>, vector<1x192x256xbf16>
    %5 = vector.shape_cast %4 : vector<1x192x256xbf16> to vector<192x256xbf16>
    %c0_5 = arith.constant 0 : index
    %c0_6 = arith.constant 0 : index
    %c0_7 = arith.constant 0 : index
    %6 = vector.load %arg4[%c0_5, %c0_6, %c0_7] : memref<1x256x512xbf16, #tpu.memory_space<vmem>>, vector<1x256x512xbf16>
    %7 = vector.shape_cast %6 : vector<1x256x512xbf16> to vector<256x512xbf16>
    %cst = arith.constant dense<0.000000e+00> : vector<192x512xf32>
    %8 = tpu.matmul %5, %7, %cst {dimension_numbers = #tpu.dot_dimension_numbers<[1], [0], [0], [1], [0, 0, 1, 1], [], []>} : vector<192x256xbf16>, vector<256x512xbf16>, vector<192x512xf32> -> vector<192x512xf32>
    %9 = arith.addf %3, %8 : vector<192x512xf32>
    %c0_8 = arith.constant 0 : index
    %c0_9 = arith.constant 0 : index
    %10 = vector.load %arg7[%c0_8, %c0_9] : memref<192x512xf32, #tpu.memory_space<vmem>>, vector<192x512xf32>
    tpu.vector_store %arg7[%c0_8, %c0_9], %9 {strides = array<i32>} : memref<192x512xf32, #tpu.memory_space<vmem>>, vector<192x512xf32>,
    %c0_i32_10 = arith.constant 0 : i32
    %11 = arith.cmpi eq, %arg2, %c0_i32_10 : i32
    %12 = arith.extui %11 : i1 to i32
    %c0_i32_11 = arith.constant 0 : i32
    %13 = arith.cmpi ne, %12, %c0_i32_11 : i32
    scf.if %13 {
      %c0_12 = arith.constant 0 : index
      %c0_13 = arith.constant 0 : index
      %14 = vector.load %arg7[%c0_12, %c0_13] : memref<192x512xf32, #tpu.memory_space<vmem>>, vector<192x512xf32>
      %c0_14 = arith.constant 0 : index
      %c0_15 = arith.constant 0 : index
      %15 = vector.load %arg5[%c0_14, %c0_15] : memref<1x512xf32, #tpu.memory_space<vmem>>, vector<1x512xf32>
      %16 = vector.broadcast %15 : vector<1x512xf32> to vector<192x512xf32>
      %17 = arith.addf %14, %16 : vector<192x512xf32>
      %18 = arith.truncf %17 : vector<192x512xf32> to vector<192x512xbf16>
      %c0_16 = arith.constant 0 : index
      %c0_17 = arith.constant 0 : index
      %19 = vector.load %arg6[%c0_16, %c0_17] : memref<192x512xbf16, #tpu.memory_space<vmem>>, vector<192x512xbf16>
      tpu.vector_store %arg6[%c0_16, %c0_17], %18 {strides = array<i32>} : memref<192x512xbf16, #tpu.memory_space<vmem>>, vector<192x512xbf16>,
    } else {
    }
    return
  }
  func.func @transform_0(%arg0: i32, %arg1: i32, %arg2: i32) -> (i32, i32, i32) {
    %c0_i32 = arith.constant 0 : i32
    %c0_i32_0 = arith.constant 0 : i32
    return %arg2, %arg0, %c0_i32 : i32, i32, i32
  }
  func.func @transform_1(%arg0: i32, %arg1: i32, %arg2: i32) -> (i32, i32, i32) {
    %c0_i32 = arith.constant 0 : i32
    %c0_i32_0 = arith.constant 0 : i32
    return %arg2, %c0_i32, %arg1 : i32, i32, i32
  }
  func.func @transform_2(%arg0: i32, %arg1: i32, %arg2: i32) -> (i32, i32) {
    %c0_i32 = arith.constant 0 : i32
    %c0_i32_0 = arith.constant 0 : i32
    return %c0_i32, %arg1 : i32, i32
  }
  func.func @transform_3(%arg0: i32, %arg1: i32, %arg2: i32) -> (i32, i32) {
    %c0_i32 = arith.constant 0 : i32
    return %arg0, %arg1 : i32, i32
  }
}

</mosaic_0001>

<bundles_post_ra>
// kernel: _lambda_.7
= control target key start
LH: loop header
LB: loop body
LE: loop exit
PB: predicated region body
PF: predicated region fallthrough
CT: control target
= control target key end

     0   :  { %s3027_s0 = inlined_call_operand.vmem [shape: s32[8,128], index: 0, kind: input, shape index: {}]   ;;  %s3028_s1 = inlined_call_operand.vmem [shape: bf16[24,8,1024], index: 1, kind: input, shape index: {}]   ;;  %s3029_s2 = inlined_call_operand.vmem [shape: bf16[2,128,512], index: 2, kind: input, shape index: {}]   ;;  %s3030_s3 = inlined_call_operand.vmem [shape: bf16[2,24,8,128], index: 3, kind: output, shape index: {}]  }
   0x1   :  { %3031 = sst [smem:[#allocation5_spill]] %s3028_s1 }
   0x2   :  { %s2257_s12 = smov 0   ;;  %s2259_s13 = smov 0  }
   0x3   :  { %s2261_s14 = smov 0   ;;  %s2263_s15 = smov 0  }
   0x4   :  { %s2265_s16 = smov 0   ;;  %s2267_s17 = smov 0  }
   0x5   :  { %s2269_s18 = smov 0  }
   0x6 LB: > { %s22_s19 = sadd.s32 1, %s2225_s16  ;;  %s25_s20 = sadd.s32 1, %s2229_s17  ;;  %s2233_s18 = sphi %s2269_s18, %s13_s18   ;;  %s2229_s17 = sphi %s2267_s17, %s3038_s17   ;;  %s2225_s16 = sphi %s2265_s16, %s3037_s16   ;;  %s2221_s15 = sphi %s2263_s15, %s3036_s15   ;;  %s2217_s14 = sphi %s2261_s14, %s3035_s14   ;;  %s2213_s13 = sphi %s2259_s13, %s3034_s13   ;;  %s2209_s12 = sphi %s2257_s12, %s3033_s12  }
   0x7   : > { %p23_p0 = scmp.ge.s32.totalorder %s22_s19, 3  ;;  %s50_s21 = ssub.s32 1, %s2229_s17 }
   0x8   : > { %s52_s22 = ssub.s32 2, %s2225_s16  ;;  %s51_s23 = smul.u32 %s2225_s16, %s50_s21 }
   0x9   : > { %s3040_s19 = smov (%p23_p0, %s22_s19), 0  ;;  %s3042_s20 = smov (!%p23_p0, %s25_s20), %s2229_s17 }
   0xa   : > { %p27_p1 = scmp.ge.s32.totalorder %s3042_s20, 2  ;;  %s53_s24 = smul.u32 %s2229_s17, %s52_s22 }
   0xb   : > { %s57_s25 = ssub.s32 2, %s3040_s19  ;;  %p72_p2 = scmp.ne.s32.totalorder %s2213_s13, %s2209_s12 }
   0xc   : > { %s3044_s20 = smov (%p27_p1, %s3042_s20), 0  ;;  %p73_p3 = scmp.eq.s32.totalorder %s2233_s18, 0 }
   0xd   : > { %s55_s26 = ssub.s32 1, %s3044_s20  ;;  %s58_s27 = smul.u32 %s57_s25, %s3044_s20 }
   0xe   : > { %s54_s28 = sadd.s32 %s53_s24, %s51_s23  ;;  %s56_s29 = smul.u32 %s55_s26, %s3040_s19 }
   0xf   : > { %s61_s30 = ssub.s32 %s2229_s17, %s3044_s20  ;;  %p74_p4 = por %p73_p3, %p72_p2 }
  0x10   : > { %s59_s4 = sadd.s32 %s58_s27, %s56_s29  ;;  %s65_s7 = sadd.s32 1, %s2213_s13 }
  0x11   : > { %s60_s5 = ssub.s32 %s54_s28, %s59_s4  ;;  %p1799_p6 = scmp.ge.s32.totalorder %s2233_s18, 6 }
  0x12   : > { %s62_s6 = sor.u32 %s61_s30, %s60_s5 }
  0x13   : > { %p63_p5 = scmp.eq.s32.totalorder %s62_s6, 0  ;;  %165 = sbr.rel (%p1799_p6) target bundleno = 44 (0x2c), region = 20 }
  0x15   : > { %s2314_s8 = scalar_select %p63_p5, %s2213_s13, %s65_s7  }
  0x1a   : > { %168 = sbr.rel (!%p74_p4) target bundleno = 44 (0x2c), region = 24  ;;  %s170_s9 = sand.u32 (%p74_p4), 1, %s2213_s13  }
  0x1b   : > { %s1802_s10 = sshll.u32 (%p74_p4), %s2229_s17, 2  ;;  %s1800_s11 = sshll.u32 (%p74_p4), %s170_s9, 7 }
  0x1c   : > { %s1899_s21 = sshll.u32 (%p74_p4), %s54_s28, 6  ;;  %s3032_s1 = sld [smem:[#allocation5_spill]] (%p74_p4) }
  0x1d   : > { %s181_s22 = sadd.s32 (%p74_p4), %s1899_s21, %s1802_s10  ;;  %s172_s27 = scalar_lea.vmem (%p74_p4), [#allocation4], %s1800_s11 }
  0x1e   : > { %s1804_s23 = sshll.u32 (%p74_p4), %s181_s22, 2 }
  0x22   : > { %s2322_s26 = scalar_lea.vmem %s3032_s1, %s1804_s23 }
  0x23   : > { %v196_v0 = vld [vmem:[%s2322_s26] sm:$0xff]  ;;  %v198_v1 = vld [vmem:[%s2322_s26 + $0x8] sm:$0xff] }
  0x24   : > { %v200_v2 = vld [vmem:[%s2322_s26 + $0x20] sm:$0xff]  ;;  %197 = vst [vmem:[%s172_s27] sm:$0xff] %v196_v0  ;;  %199 = vst [vmem:[%s172_s27 + $0x8] sm:$0xff] %v198_v1  ;;  %v202_v3 = vld [vmem:[%s2322_s26 + $0x28] sm:$0xff] }
  0x25   : > { %201 = vst [vmem:[%s172_s27 + $0x10] sm:$0xff] %v200_v2  ;;  %v204_v4 = vld [vmem:[%s2322_s26 + $0x40] sm:$0xff]  ;;  %v206_v5 = vld [vmem:[%s2322_s26 + $0x48] sm:$0xff]  ;;  %203 = vst [vmem:[%s172_s27 + $0x18] sm:$0xff] %v202_v3 }
  0x26   : > { %205 = vst [vmem:[%s172_s27 + $0x20] sm:$0xff] %v204_v4  ;;  %207 = vst [vmem:[%s172_s27 + $0x28] sm:$0xff] %v206_v5  ;;  %v208_v6 = vld [vmem:[%s2322_s26 + $0x60] sm:$0xff]  ;;  %v210_v7 = vld [vmem:[%s2322_s26 + $0x68] sm:$0xff] }
  0x27   : > { %v212_v8 = vld [vmem:[%s2322_s26 + $0x80] sm:$0xff]  ;;  %209 = vst [vmem:[%s172_s27 + $0x30] sm:$0xff] %v208_v6  ;;  %211 = vst [vmem:[%s172_s27 + $0x38] sm:$0xff] %v210_v7  ;;  %v214_v9 = vld [vmem:[%s2322_s26 + $0x88] sm:$0xff] }
  0x28   : > { %213 = vst [vmem:[%s172_s27 + $0x40] sm:$0xff] %v212_v8  ;;  %v216_v10 = vld [vmem:[%s2322_s26 + $0xa0] sm:$0xff]  ;;  %v218_v11 = vld [vmem:[%s2322_s26 + $0xa8] sm:$0xff]  ;;  %215 = vst [vmem:[%s172_s27 + $0x48] sm:$0xff] %v214_v9 }
  0x29   : > { %217 = vst [vmem:[%s172_s27 + $0x50] sm:$0xff] %v216_v10  ;;  %219 = vst [vmem:[%s172_s27 + $0x58] sm:$0xff] %v218_v11  ;;  %v220_v12 = vld [vmem:[%s2322_s26 + $0xc0] sm:$0xff]  ;;  %v222_v13 = vld [vmem:[%s2322_s26 + $0xc8] sm:$0xff] }
  0x2a   : > { %v224_v14 = vld [vmem:[%s2322_s26 + $0xe0] sm:$0xff]  ;;  %221 = vst [vmem:[%s172_s27 + $0x60] sm:$0xff] %v220_v12  ;;  %223 = vst [vmem:[%s172_s27 + $0x68] sm:$0xff] %v222_v13  ;;  %v226_v15 = vld [vmem:[%s2322_s26 + $0xe8] sm:$0xff] }
  0x2b   : > { %225 = vst [vmem:[%s172_s27 + $0x70] sm:$0xff] %v224_v14  ;;  %227 = vst [vmem:[%s172_s27 + $0x78] sm:$0xff] %v226_v15 }
  0x2c PF: > { %p1805_p7 = scmp.ge.s32.totalorder %s2233_s18, 1  ;;  %p240_p8 = scmp.lt.s32.totalorder %s2233_s18, 7 }
  0x2e   : > { %p241_p9 = pnand %p1805_p7, %p240_p8 }
  0x2f   : > { %s247_s28 = sand.u32 (!%p241_p9), 1, %s2209_s12   ;;  %p291_p10 = scmp.lt.s32.totalorder (!%p241_p9), %s2221_s15, 1 }
  0x30   : > { %244 = sbr.rel (%p241_p9) target bundleno = 2186 (0x88a), region = 51  ;;  %s1806_s29 = sshll.u32 (!%p241_p9), %s247_s28, 7 }
  0x31   : > { %s2345_s30 = ssub.s32 (!%p241_p9), 1, %s2221_s15  ;;  %s298_s6 = ssub.s32 (!%p241_p9), 2, %s2217_s14 }
  0x32   : > { %s297_s4 = smul.u32 (!%p241_p9), %s2217_s14, %s2345_s30  ;;  %s2362_s1 = scalar_lea.vmem (!%p241_p9), [#allocation4], %s1806_s29 }
  0x33   : > { %s299_s9 = smul.u32 (!%p241_p9), %s2221_s15, %s298_s6  ;;  %p1811_p12 = scmp.ne.s32.totalorder (!%p241_p9), %s2217_s14, 0 }
  0x35   : > { %s300_s22 = sadd.s32 (!%p241_p9), %s299_s9, %s297_s4 }
  0x36   : > { %s1809_s23 = sshll.u32 (!%p241_p9), %s300_s22, 3 }
  0x37   : > { %s292_s5 = scalar_select %p291_p10, %s2221_s15, 1 }
  0x38   : > { %p304_p11 = scmp.lt.s32.totalorder %s1809_s23, 23  ;;  %320 = sbr.rel (%p1811_p12) target bundleno = 63 (0x3f), region = 59  ;;  %v2235_v16 = vmov (!%p1811_p12), 0.0  }
  0x39   : > { %s1900_s7 = sshll.u32 %s292_s5, 8  ;;  %s1911_s24 = smul.u32 24, %s292_s5  ;;  %321 = vst [vmem:[#allocation2] sm:$0xff] (!%p1811_p12), %v2235_v16  ;;  %322 = vst [vmem:[#allocation3] sm:$0xff] (!%p1811_p12), %v2235_v16 }
  0x3a   : > { %s2355_s21 = scalar_lea.vmem %s3029_s2, %s1900_s7  ;;  %s3046_s23 = smov (!%p304_p11, %s1809_s23), 23 }
  0x3b   : > { %s307_s12 = sadd.s32 %s1911_s24, %s3046_s23 }
  0x3c   : > { %s1810_s25 = sshll.u32 %s307_s12, 2 }
  0x3d   : > { %s2360_s28 = scalar_lea.vmem %s3030_s3, %s1810_s25 }
  0x3f PF: > { %v2366_v17 = vld [vmem:[%s2355_s21 + $0x4] ss:$16 sps:$4 sm:$0xff]   ;;  %v2369_v18 = vld [vmem:[%s2355_s21] ss:$16 sps:$4 sm:$0xff]   ;;  %v2236_v19 = vmov 0   ;;  %s1901_s29 = smul.u32 112, %s2221_s15 }
  0x40   : > { %567 = vmatprep.mubr.bf16.mxu0 %v2236_v19  ;;  %608 = vmatprep.mubr.bf16.mxu1 %v2236_v19  ;;  %v2375_v20 = vld [vmem:[%s2355_s21 + $0x24] ss:$16 sps:$4 sm:$0xff]   ;;  %v2379_v21 = vld [vmem:[%s2355_s21 + $0x20] ss:$16 sps:$4 sm:$0xff]   ;;  %v2386_v23 = vld [vmem:[%s2355_s21 + $0xc] ss:$16 sps:$4 sm:$0xff]  }
  0x41   : > { %535 = vmatprep.subr.bf16.mxu0 %v2366_v17  ;;  %v2383_v22 = vld [vmem:[%s2355_s21 + $0x44] ss:$16 sps:$4 sm:$0xff]   ;;  %v2389_v24 = vld [vmem:[%s2355_s21 + $0x8] ss:$16 sps:$4 sm:$0xff]   ;;  %v2393_v25 = vld [vmem:[%s2355_s21 + $0x40] ss:$16 sps:$4 sm:$0xff]   ;;  %576 = vmatprep.subr.bf16.mxu1 %v2386_v23  ;;  %s367_s4 = scalar_lea.vmem %s2362_s1, %s1901_s29 [#allocation4] }
  0x42   : > { %536 = vmatpush1.bf16.msra.mxu0 %v2369_v18  ;;  %v2398_v26 = vld [vmem:[%s2355_s21 + $0x64] ss:$16 sps:$4 sm:$0xff]   ;;  %577 = vmatpush1.bf16.msra.mxu1 %v2389_v24  ;;  %v2402_v27 = vld [vmem:[%s2355_s21 + $0x2c] ss:$16 sps:$4 sm:$0xff]   ;;  %v2405_v28 = vld [vmem:[%s2355_s21 + $0x28] ss:$16 sps:$4 sm:$0xff]  }
  0x43   : > { %537 = vmatprep.subr.bf16.mxu0 %v2375_v20  ;;  %578 = vmatprep.subr.bf16.mxu1 %v2402_v27  ;;  %v2410_v29 = vld [vmem:[%s2355_s21 + $0x60] ss:$16 sps:$4 sm:$0xff]   ;;  %v2413_v30 = vld [vmem:[%s2355_s21 + $0x84] ss:$16 sps:$4 sm:$0xff]   ;;  %v2416_v31 = vld [vmem:[%s2355_s21 + $0x4c] ss:$16 sps:$4 sm:$0xff]  }
  0x44   : > { %v2421_v32 = vld [vmem:[%s2355_s21 + $0x48] ss:$16 sps:$4 sm:$0xff]   ;;  %v2425_v33 = vld [vmem:[%s2355_s21 + $0x6c] ss:$16 sps:$4 sm:$0xff]   ;;  %v2429_v34 = vld [vmem:[%s2355_s21 + $0x80] ss:$16 sps:$4 sm:$0xff]  }
  0x45   : > { %v2433_v35 = vld [vmem:[%s2355_s21 + $0xa4] ss:$16 sps:$4 sm:$0xff]   ;;  %v2437_v36 = vld [vmem:[%s2355_s21 + $0x68] ss:$16 sps:$4 sm:$0xff]   ;;  %v2441_v37 = vld [vmem:[%s2355_s21 + $0x8c] ss:$16 sps:$4 sm:$0xff]  }
  0x46   : > { %538 = vmatpush1.bf16.msra.mxu0 %v2379_v21  ;;  %579 = vmatpush1.bf16.msra.mxu1 %v2405_v28  ;;  %v2444_v38 = vld [vmem:[%s2355_s21 + $0xa0] ss:$16 sps:$4 sm:$0xff]   ;;  %v2448_v39 = vld [vmem:[%s2355_s21 + $0xc4] ss:$16 sps:$4 sm:$0xff]   ;;  %v2453_v40 = vld [vmem:[%s2355_s21 + $0x88] ss:$16 sps:$4 sm:$0xff]  }
  0x47   : > { %539 = vmatprep.subr.bf16.mxu0 %v2383_v22  ;;  %580 = vmatprep.subr.bf16.mxu1 %v2416_v31  ;;  %v2457_v41 = vld [vmem:[%s2355_s21 + $0xac] ss:$16 sps:$4 sm:$0xff]   ;;  %v2461_v42 = vld [vmem:[%s2355_s21 + $0xc0] ss:$16 sps:$4 sm:$0xff]   ;;  %v2465_v43 = vld [vmem:[%s2355_s21 + $0xe4] ss:$16 sps:$4 sm:$0xff]  }
  0x48   : > { %v2469_v44 = vld [vmem:[%s2355_s21 + $0xa8] ss:$16 sps:$4 sm:$0xff]   ;;  %v2473_v45 = vld [vmem:[%s2355_s21 + $0xcc] ss:$16 sps:$4 sm:$0xff]   ;;  %v2477_v46 = vld [vmem:[%s2355_s21 + $0xe0] ss:$16 sps:$4 sm:$0xff]  }
  0x49   : > { %v2479_v47 = vld [vmem:[#allocation2] sm:$0xff]  ;;  %v2484_v48 = vld [vmem:[%s2355_s21 + $0xc8] ss:$16 sps:$4 sm:$0xff]   ;;  %v2488_v49 = vld [vmem:[%s2355_s21 + $0xec] ss:$16 sps:$4 sm:$0xff]   ;;  %s2538_s5 = sshll.u32 %s2217_s14, 3 }
  0x4a   : > { %540 = vmatpush1.bf16.msra.mxu0 %v2393_v25  ;;  %581 = vmatpush1.bf16.msra.mxu1 %v2421_v32  ;;  %v374_v50 = vpack.c.bf16 %v2479_v47, %v2479_v47  ;;  %v2495_v51 = vld [vmem:[%s2355_s21 + $0xe8] ss:$16 sps:$4 sm:$0xff]   ;;  %v368_v52 = vld [vmem:[%s367_s4] sm:$0xff]  ;;  %s361_s6 = ssub.s32 23, %s2538_s5  ;;  %s360_s7 = smul.u32 %s2538_s5, %s2345_s30 }
  0x4b   : > { %541 = vmatprep.subr.bf16.mxu0 %v2398_v26  ;;  %582 = vmatprep.subr.bf16.mxu1 %v2425_v33  ;;  %v370_v53 = vunpack.c.l.bf16 %v368_v52  ;;  %v371_v54 = vunpack.c.h.bf16 %v368_v52  ;;  %v369_v56 = vld [vmem:[%s367_s4 + $0x8] sm:$0xff]  ;;  %s362_s9 = smul.u32 %s2221_s15, %s361_s6  ;;  %v2547_v52 = vld [vmem:[%s3027_s0] sm:$0xff]  ;;  %s654_s27 = sadd.s32 1, %s2538_s5 }
  0x4c   : > { %v373_v63 = vunpack.c.h.bf16 %v369_v56  ;;  %v372_v5 = vunpack.c.l.bf16 %v369_v56  ;;  %v359_v15 = vld [vmem:[#allocation3] sm:$0xff]  ;;  %s1902_s22 = smul.u32 28, %s2221_s15  ;;  %s656_s29 = ssub.s32 22, %s2538_s5 }
  0x4d   : > { %s363_s10 = sadd.s32 %s362_s9, %s360_s7  ;;  %s659_s24 = smul.u32 6, %s2221_s15 }
  0x4e   : > { %542 = vmatpush1.bf16.msra.mxu0 %v2410_v29  ;;  %583 = vmatpush1.bf16.msra.mxu1 %v2437_v36  ;;  %s650_s23 = scalar_lea.vmem %s2360_s28, %s1902_s22  ;;  %s655_s4 = smul.u32 %s654_s27, %s2345_s30 }
  0x4f   : > { %543 = vmatprep.subr.bf16.mxu0 %v2413_v30  ;;  %584 = vmatprep.subr.bf16.mxu1 %v2441_v37  ;;  %s2595_s12 = sadd.s32 %s659_s24, %s2345_s30  ;;  %s657_s6 = smul.u32 %s2221_s15, %s656_s29 }
  0x50   : > { %s1903_s25 = sshll.u32 %s2595_s12, 4  ;;  %s1856_s9 = sshll.u32 %s2595_s12, 2 }
  0x51   : > { %s663_s26 = scalar_lea.vmem %s2362_s1, %s1903_s25 [#allocation4]  ;;  %s658_s7 = sadd.s32 %s657_s6, %s655_s4 }
  0x52   : > { %544 = vmatpush1.bf16.msra.mxu0 %v2429_v34  ;;  %585 = vmatpush1.bf16.msra.mxu1 %v2453_v40  ;;  %s796_s14 = smul.u32 5, %s2221_s15  ;;  %s1857_s11 = sshll.u32 %s2345_s30, 1 }
  0x53   : > { %545 = vmatprep.subr.bf16.mxu0 %v2433_v35  ;;  %586 = vmatprep.subr.bf16.mxu1 %v2457_v41  ;;  %s790_s12 = sadd.s32 2, %s2538_s5  ;;  %s792_s25 = ssub.s32 21, %s2538_s5 }
  0x54   : > { %s2651_s22 = sadd.s32 %s1857_s11, %s796_s14  ;;  %s793_s27 = smul.u32 %s2221_s15, %s792_s25 }
  0x55   : > { %s1863_s4 = sshll.u32 %s2651_s22, 2 }
  0x56   : > { %546 = vmatpush1.bf16.msra.mxu0 %v2444_v38  ;;  %587 = vmatpush1.bf16.msra.mxu1 %v2469_v44  ;;  %s923_s6 = scalar_lea.vmem %s2360_s28, %s1863_s4  ;;  %s1871_s4 = sshll.u32 %s2345_s30, 2 }
  0x57   : > { %547 = vmatprep.subr.bf16.mxu0 %v2448_v39  ;;  %588 = vmatprep.subr.bf16.mxu1 %v2473_v45 }
  0x5a   : > { %548 = vmatpush1.bf16.msra.mxu0 %v2461_v42  ;;  %589 = vmatpush1.bf16.msra.mxu1 %v2484_v48 }
  0x5b   : > { %549 = vmatprep.subr.bf16.mxu0 %v2465_v43  ;;  %590 = vmatprep.subr.bf16.mxu1 %v2488_v49 }
  0x5e   : > { %550 = vmatpush1.bf16.msra.mxu0 %v2477_v46  ;;  %591 = vmatpush1.bf16.msra.mxu1 %v2495_v51 }
  0x5f   : > { %671 = vmatprep.subr.bf16.mxu0 %v2366_v17  ;;  %712 = vmatprep.subr.bf16.mxu1 %v2386_v23 }
  0x61   : > { %568 = vmatmul.mubr.bf16.vlgmr.msra.gmra.mrb[0].mxu0 %v374_v50  ;;  %609 = vmatmul.mubr.bf16.vlgmr.msra.gmra.mrb[0].mxu1 %v374_v50 }
  0x62   : > { %672 = vmatpush1.bf16.msra.mxu0 %v2369_v18  ;;  %703 = vmatprep.mubr.bf16.mxu0 %v2236_v19 }
  0x63   : > { %673 = vmatprep.subr.bf16.mxu0 %v2375_v20  ;;  %713 = vmatpush1.bf16.msra.mxu1 %v2389_v24 }
  0x64   : > { %714 = vmatprep.subr.bf16.mxu1 %v2402_v27  ;;  %744 = vmatprep.mubr.bf16.mxu1 %v2236_v19 }
  0x66   : > { %674 = vmatpush1.bf16.msra.mxu0 %v2379_v21 }
  0x67   : > { %675 = vmatprep.subr.bf16.mxu0 %v2383_v22  ;;  %715 = vmatpush1.bf16.msra.mxu1 %v2405_v28 }
  0x68   : > { %716 = vmatprep.subr.bf16.mxu1 %v2416_v31 }
  0x6a   : > { %676 = vmatpush1.bf16.msra.mxu0 %v2393_v25 }
  0x6b   : > { %677 = vmatprep.subr.bf16.mxu0 %v2398_v26  ;;  %717 = vmatpush1.bf16.msra.mxu1 %v2421_v32 }
  0x6c   : > { %718 = vmatprep.subr.bf16.mxu1 %v2425_v33 }
  0x6e   : > { %678 = vmatpush1.bf16.msra.mxu0 %v2410_v29 }
  0x6f   : > { %679 = vmatprep.subr.bf16.mxu0 %v2413_v30  ;;  %719 = vmatpush1.bf16.msra.mxu1 %v2437_v36 }
  0x70   : > { %720 = vmatprep.subr.bf16.mxu1 %v2441_v37 }
  0x72   : > { %680 = vmatpush1.bf16.msra.mxu0 %v2429_v34 }
  0x73   : > { %681 = vmatprep.subr.bf16.mxu0 %v2433_v35  ;;  %721 = vmatpush1.bf16.msra.mxu1 %v2453_v40 }
  0x74   : > { %722 = vmatprep.subr.bf16.mxu1 %v2457_v41 }
  0x76   : > { %682 = vmatpush1.bf16.msra.mxu0 %v2444_v38 }
  0x77   : > { %683 = vmatprep.subr.bf16.mxu0 %v2448_v39  ;;  %723 = vmatpush1.bf16.msra.mxu1 %v2469_v44 }
  0x78   : > { %724 = vmatprep.subr.bf16.mxu1 %v2473_v45 }
  0x7a   : > { %684 = vmatpush1.bf16.msra.mxu0 %v2461_v42 }
  0x7b   : > { %685 = vmatprep.subr.bf16.mxu0 %v2465_v43  ;;  %725 = vmatpush1.bf16.msra.mxu1 %v2484_v48 }
  0x7c   : > { %726 = vmatprep.subr.bf16.mxu1 %v2488_v49 }
  0x7e   : > { %686 = vmatpush1.bf16.msra.mxu0 %v2477_v46 }
  0x7f   : > { %808 = vmatprep.subr.bf16.mxu0 %v2366_v17  ;;  %727 = vmatpush1.bf16.msra.mxu1 %v2495_v51 }
  0x80   : > { %849 = vmatprep.subr.bf16.mxu1 %v2386_v23 }
 0x134   : > { %v569_v55 = vpop.f32.mrb[0].mxu0  ;;  %v610_v1 = vpop.f32.mrb[0].mxu1 }
 0x135   : > { %v617_v57 = vadd.f32 %v569_v55, %v370_v53  ;;  %v571_v58 = vpop.f32.mrb[1].mxu0  ;;  %v612_v2 = vpop.f32.mrb[1].mxu1  ;;  %v619_v8 = vadd.f32 %v610_v1, %v372_v5  ;;  %v645_v53 = vstv %s363_s10  ;;  %s786_s10 = scalar_lea.vmem %s2360_s28, %s1856_s9  ;;  %s1864_s9 = sshll.u32 %s2221_s15, 2 }
 0x136   : > { %v618_v59 = vadd.f32 %v571_v58, %v371_v54  ;;  %v573_v60 = vpop.f32.mrb[2].mxu0  ;;  %v620_v3 = vadd.f32 %v612_v2, %v373_v63  ;;  %v614_v4 = vpop.f32.mrb[2].mxu1  ;;  %vm646_vm0 = vcmp.lt.s32.totalorder %v645_v53, %v2547_v52 }
 0x137   : > { %v1847_v61 = vmul.f32 -1.442695, %v617_v57  ;;  %v574_v62 = vpop.f32.mrb[3].mxu0  ;;  %v615_v6 = vpop.f32.mrb[3].mxu1 }
 0x138   : > { %v1848_v0 = vmul.f32 -1.442695, %v618_v59  ;;  %v1849_v7 = vmul.f32 -1.442695, %v620_v3 }
 0x139   : > { %2018 = vpow2.f32 %v1847_v61 }
 0x13a   : > { %2020 = vpow2.f32 %v1848_v0 }
 0x13b   : > { %2022 = vpow2.f32 %v1849_v7  ;;  %v665_v7 = vld [vmem:[%s663_s26 + $0x8] sm:$0xff] }
 0x13c   : > { %2024 = vtanh.f32 %v619_v8 }
 0x143   : > { %v2019_v9 = vpop.eup %2018 }
 0x144   : > { %v2021_v10 = vpop.eup %2020  ;;  %v624_v11 = vadd.f32 1.0, %v2019_v9 }
 0x145   : > { %v630_v12 = vadd.f32 1.0, %v2021_v10  ;;  %v2023_v13 = vpop.eup %2022 }
 0x146   : > { %2026 = vrcp.f32 %v624_v11  ;;  %v2025_v14 = vpop.eup %2024  ;;  %v637_v50 = vadd.f32 1.0, %v2023_v13 }
 0x147   : > { %2028 = vrcp.f32 %v630_v12 }
 0x148   : > { %2030 = vrcp.f32 %v637_v50  ;;  %v669_v50 = vunpack.c.h.bf16 %v665_v7 }
 0x150   : > { %v2027_v16 = vpop.eup %2026 }
 0x151   : > { %v2029_v54 = vpop.eup %2028  ;;  %v641_v55 = vmul.f32 %v2027_v16, %v2025_v14 }
 0x152   : > { %v640_v56 = vmul.f32 %v2029_v54, %v359_v15  ;;  %v2031_v59 = vpop.eup %2030  ;;  %v668_v54 = vunpack.c.l.bf16 %v665_v7 }
 0x154   : > { %v642_v57 = vadd.f32 %v641_v55, %v640_v56 }
 0x156   : > { %2032 = vtanh.f32 %v642_v57  ;;  %v2550_v58 = vsel %vm646_vm0, %v642_v57, %v359_v15 }
 0x160   : > { %v2033_v60 = vpop.eup %2032 }
 0x161   : > { %v644_v61 = vmul.f32 %v2033_v60, %v2031_v59 }
 0x163   : > { %v647_v62 = vsel %vm646_vm0, %v644_v61, 0.0  ;;  %v2555_v63 = vsel %vm646_vm0, %v644_v61, %v2479_v47  ;;  %v664_v47 = vld [vmem:[%s663_s26] sm:$0xff]  ;;  %s791_s26 = smul.u32 %s790_s12, %s2345_s30 }
 0x164   : > { %v648_v0 = vpack.c.bf16 %v647_v62, %v647_v62  ;;  %v670_v1 = vpack.c.bf16 %v2555_v63, %v2555_v63  ;;  %v666_v2 = vunpack.c.l.bf16 %v664_v47  ;;  %v667_v3 = vunpack.c.h.bf16 %v664_v47 }
 0x165   : > { %v781_v47 = vstv %s658_s7  ;;  %s794_s29 = sadd.s32 %s793_s27, %s791_s26  ;;  %s932_s7 = smul.u32 3, %s2345_s30 }
 0x166   : > { %651 = vst [vmem:[%s650_s23] sm:$0xf] %v648_v0  ;;  %704 = vmatmul.mubr.bf16.vlgmr.msra.gmra.mrb[4].mxu0 %v670_v1  ;;  %745 = vmatmul.mubr.bf16.vlgmr.msra.gmra.mrb[4].mxu1 %v670_v1  ;;  %vm782_vm1 = vcmp.lt.s32.totalorder %v781_v47, %v2547_v52  ;;  %s1904_s23 = sshll.u32 %s2651_s22, 4  ;;  %s927_s22 = sadd.s32 3, %s2538_s5 }
 0x167   : > { %809 = vmatpush1.bf16.msra.mxu0 %v2369_v18  ;;  %850 = vmatpush1.bf16.msra.mxu1 %v2389_v24  ;;  %s800_s24 = scalar_lea.vmem %s2362_s1, %s1904_s23 [#allocation4]  ;;  %s929_s23 = ssub.s32 20, %s2538_s5 }
 0x168   : > { %810 = vmatprep.subr.bf16.mxu0 %v2375_v20  ;;  %851 = vmatprep.subr.bf16.mxu1 %v2402_v27  ;;  %s930_s12 = smul.u32 %s2221_s15, %s929_s23 }
 0x169   : > { %840 = vmatprep.mubr.bf16.mxu0 %v2236_v19  ;;  %881 = vmatprep.mubr.bf16.mxu1 %v2236_v19 }
 0x16b   : > { %811 = vmatpush1.bf16.msra.mxu0 %v2379_v21  ;;  %852 = vmatpush1.bf16.msra.mxu1 %v2405_v28 }
 0x16c   : > { %812 = vmatprep.subr.bf16.mxu0 %v2383_v22  ;;  %853 = vmatprep.subr.bf16.mxu1 %v2416_v31 }
 0x16f   : > { %813 = vmatpush1.bf16.msra.mxu0 %v2393_v25  ;;  %854 = vmatpush1.bf16.msra.mxu1 %v2421_v32 }
 0x170   : > { %814 = vmatprep.subr.bf16.mxu0 %v2398_v26  ;;  %855 = vmatprep.subr.bf16.mxu1 %v2425_v33 }
 0x173   : > { %815 = vmatpush1.bf16.msra.mxu0 %v2410_v29  ;;  %856 = vmatpush1.bf16.msra.mxu1 %v2437_v36 }
 0x174   : > { %816 = vmatprep.subr.bf16.mxu0 %v2413_v30  ;;  %857 = vmatprep.subr.bf16.mxu1 %v2441_v37 }
 0x177   : > { %817 = vmatpush1.bf16.msra.mxu0 %v2429_v34  ;;  %858 = vmatpush1.bf16.msra.mxu1 %v2453_v40 }
 0x178   : > { %818 = vmatprep.subr.bf16.mxu0 %v2433_v35  ;;  %859 = vmatprep.subr.bf16.mxu1 %v2457_v41 }
 0x17b   : > { %819 = vmatpush1.bf16.msra.mxu0 %v2444_v38  ;;  %860 = vmatpush1.bf16.msra.mxu1 %v2469_v44 }
 0x17c   : > { %820 = vmatprep.subr.bf16.mxu0 %v2448_v39  ;;  %861 = vmatprep.subr.bf16.mxu1 %v2473_v45 }
 0x17f   : > { %821 = vmatpush1.bf16.msra.mxu0 %v2461_v42  ;;  %862 = vmatpush1.bf16.msra.mxu1 %v2484_v48 }
 0x180   : > { %822 = vmatprep.subr.bf16.mxu0 %v2465_v43  ;;  %863 = vmatprep.subr.bf16.mxu1 %v2488_v49 }
 0x183   : > { %823 = vmatpush1.bf16.msra.mxu0 %v2477_v46  ;;  %864 = vmatpush1.bf16.msra.mxu1 %v2495_v51 }
 0x184   : > { %945 = vmatprep.subr.bf16.mxu0 %v2366_v17  ;;  %986 = vmatprep.subr.bf16.mxu1 %v2386_v23 }
 0x239   : > { %v705_v4 = vpop.f32.mrb[4].mxu0  ;;  %v746_v5 = vpop.f32.mrb[4].mxu1 }
 0x23a   : > { %v753_v6 = vadd.f32 %v705_v4, %v666_v2  ;;  %v707_v8 = vpop.f32.mrb[5].mxu0  ;;  %v748_v9 = vpop.f32.mrb[5].mxu1  ;;  %v755_v56 = vadd.f32 %v746_v5, %v668_v54  ;;  %v802_v54 = vld [vmem:[%s800_s24 + $0x8] sm:$0xff] }
 0x23b   : > { %v754_v10 = vadd.f32 %v707_v8, %v667_v3  ;;  %v709_v11 = vpop.f32.mrb[6].mxu0  ;;  %v750_v12 = vpop.f32.mrb[6].mxu1  ;;  %v756_v53 = vadd.f32 %v748_v9, %v669_v50  ;;  %v806_v47 = vunpack.c.h.bf16 %v802_v54 }
 0x23c   : > { %v1853_v13 = vmul.f32 -1.442695, %v753_v6  ;;  %v710_v14 = vpop.f32.mrb[7].mxu0  ;;  %v751_v15 = vpop.f32.mrb[7].mxu1 }
 0x23d   : > { %v1854_v16 = vmul.f32 -1.442695, %v754_v10  ;;  %v1855_v55 = vmul.f32 -1.442695, %v756_v53 }
 0x23e   : > { %2034 = vpow2.f32 %v1853_v13 }
 0x23f   : > { %2036 = vpow2.f32 %v1854_v16 }
 0x240   : > { %2038 = vpow2.f32 %v1855_v55 }
 0x241   : > { %2040 = vtanh.f32 %v755_v56 }
 0x248   : > { %v2035_v57 = vpop.eup %2034 }
 0x249   : > { %v2037_v59 = vpop.eup %2036  ;;  %v760_v60 = vadd.f32 1.0, %v2035_v57 }
 0x24a   : > { %v766_v61 = vadd.f32 1.0, %v2037_v59  ;;  %v2039_v62 = vpop.eup %2038 }
 0x24b   : > { %2042 = vrcp.f32 %v760_v60  ;;  %v2041_v0 = vpop.eup %2040  ;;  %v773_v4 = vadd.f32 1.0, %v2039_v62 }
 0x24c   : > { %2044 = vrcp.f32 %v766_v61 }
 0x24d   : > { %2046 = vrcp.f32 %v773_v4 }
 0x255   : > { %v2043_v1 = vpop.eup %2042 }
 0x256   : > { %v2045_v2 = vpop.eup %2044  ;;  %v777_v3 = vmul.f32 %v2043_v1, %v2041_v0 }
 0x257   : > { %v776_v5 = vmul.f32 %v2045_v2, %v2550_v58  ;;  %v2047_v8 = vpop.eup %2046 }
 0x259   : > { %v778_v6 = vadd.f32 %v777_v3, %v776_v5  ;;  %v805_v3 = vunpack.c.l.bf16 %v802_v54 }
 0x25b   : > { %2048 = vtanh.f32 %v778_v6  ;;  %v2606_v7 = vsel %vm782_vm1, %v778_v6, %v2550_v58  ;;  %v801_v58 = vld [vmem:[%s800_s24] sm:$0xff]  ;;  %s928_s24 = smul.u32 %s927_s22, %s2345_s30 }
 0x25c   : > { %v804_v15 = vunpack.c.h.bf16 %v801_v58 }
 0x25d   : > { %s931_s25 = sadd.s32 %s930_s12, %s928_s24 }
 0x265   : > { %v2049_v9 = vpop.eup %2048 }
 0x266   : > { %v780_v10 = vmul.f32 %v2049_v9, %v2047_v8 }
 0x268   : > { %v783_v11 = vsel %vm782_vm1, %v780_v10, 0.0  ;;  %v2611_v12 = vsel %vm782_vm1, %v780_v10, %v2555_v63  ;;  %v803_v63 = vunpack.c.l.bf16 %v801_v58  ;;  %v918_v58 = vstv %s794_s29  ;;  %s1070_s29 = smul.u32 3, %s2221_s15 }
 0x269   : > { %v784_v13 = vpack.c.bf16 %v783_v11, %v783_v11  ;;  %v807_v14 = vpack.c.bf16 %v2611_v12, %v2611_v12  ;;  %vm919_vm2 = vcmp.lt.s32.totalorder %v918_v58, %v2547_v52 }
 0x26b   : > { %787 = vst [vmem:[%s786_s10] sm:$0xf] %v784_v13  ;;  %841 = vmatmul.mubr.bf16.vlgmr.msra.gmra.mrb[8].mxu0 %v807_v14  ;;  %882 = vmatmul.mubr.bf16.vlgmr.msra.gmra.mrb[8].mxu1 %v807_v14  ;;  %s2707_s10 = sadd.s32 %s1864_s9, %s932_s7 }
 0x26c   : > { %946 = vmatpush1.bf16.msra.mxu0 %v2369_v18  ;;  %987 = vmatpush1.bf16.msra.mxu1 %v2389_v24  ;;  %s1905_s14 = sshll.u32 %s2707_s10, 4  ;;  %s1870_s26 = sshll.u32 %s2707_s10, 2 }
 0x26d   : > { %947 = vmatprep.subr.bf16.mxu0 %v2375_v20  ;;  %988 = vmatprep.subr.bf16.mxu1 %v2402_v27  ;;  %s937_s11 = scalar_lea.vmem %s2362_s1, %s1905_s14 [#allocation4]  ;;  %s1060_s27 = scalar_lea.vmem %s2360_s28, %s1870_s26 }
 0x26e   : > { %977 = vmatprep.mubr.bf16.mxu0 %v2236_v19  ;;  %1018 = vmatprep.mubr.bf16.mxu1 %v2236_v19  ;;  %s1064_s10 = sadd.s32 4, %s2538_s5  ;;  %s1066_s14 = ssub.s32 19, %s2538_s5 }
 0x26f   : > { %s1067_s22 = smul.u32 %s2221_s15, %s1066_s14  ;;  %s1878_s26 = sshll.u32 %s2221_s15, 1 }
 0x270   : > { %948 = vmatpush1.bf16.msra.mxu0 %v2379_v21  ;;  %989 = vmatpush1.bf16.msra.mxu1 %v2405_v28 }
 0x271   : > { %949 = vmatprep.subr.bf16.mxu0 %v2383_v22  ;;  %990 = vmatprep.subr.bf16.mxu1 %v2416_v31 }
 0x274   : > { %950 = vmatpush1.bf16.msra.mxu0 %v2393_v25  ;;  %991 = vmatpush1.bf16.msra.mxu1 %v2421_v32 }
 0x275   : > { %951 = vmatprep.subr.bf16.mxu0 %v2398_v26  ;;  %992 = vmatprep.subr.bf16.mxu1 %v2425_v33 }
 0x278   : > { %952 = vmatpush1.bf16.msra.mxu0 %v2410_v29  ;;  %993 = vmatpush1.bf16.msra.mxu1 %v2437_v36 }
 0x279   : > { %953 = vmatprep.subr.bf16.mxu0 %v2413_v30  ;;  %994 = vmatprep.subr.bf16.mxu1 %v2441_v37 }
 0x27c   : > { %954 = vmatpush1.bf16.msra.mxu0 %v2429_v34  ;;  %995 = vmatpush1.bf16.msra.mxu1 %v2453_v40 }
 0x27d   : > { %955 = vmatprep.subr.bf16.mxu0 %v2433_v35  ;;  %996 = vmatprep.subr.bf16.mxu1 %v2457_v41 }
 0x280   : > { %956 = vmatpush1.bf16.msra.mxu0 %v2444_v38  ;;  %997 = vmatpush1.bf16.msra.mxu1 %v2469_v44 }
 0x281   : > { %957 = vmatprep.subr.bf16.mxu0 %v2448_v39  ;;  %998 = vmatprep.subr.bf16.mxu1 %v2473_v45 }
 0x284   : > { %958 = vmatpush1.bf16.msra.mxu0 %v2461_v42  ;;  %999 = vmatpush1.bf16.msra.mxu1 %v2484_v48 }
 0x285   : > { %959 = vmatprep.subr.bf16.mxu0 %v2465_v43  ;;  %1000 = vmatprep.subr.bf16.mxu1 %v2488_v49 }
 0x288   : > { %960 = vmatpush1.bf16.msra.mxu0 %v2477_v46  ;;  %1001 = vmatpush1.bf16.msra.mxu1 %v2495_v51 }
 0x289   : > { %1082 = vmatprep.subr.bf16.mxu0 %v2366_v17  ;;  %1123 = vmatprep.subr.bf16.mxu1 %v2386_v23 }
 0x33e   : > { %v842_v16 = vpop.f32.mrb[8].mxu0  ;;  %v883_v50 = vpop.f32.mrb[8].mxu1 }
 0x33f   : > { %v890_v53 = vadd.f32 %v842_v16, %v803_v63  ;;  %v844_v55 = vpop.f32.mrb[9].mxu0  ;;  %v885_v56 = vpop.f32.mrb[9].mxu1  ;;  %v892_v5 = vadd.f32 %v883_v50, %v805_v3  ;;  %v939_v3 = vld [vmem:[%s937_s11 + $0x8] sm:$0xff] }
 0x340   : > { %v891_v57 = vadd.f32 %v844_v55, %v804_v15  ;;  %v846_v59 = vpop.f32.mrb[10].mxu0  ;;  %v887_v60 = vpop.f32.mrb[10].mxu1  ;;  %v893_v2 = vadd.f32 %v885_v56, %v806_v47  ;;  %v942_v58 = vunpack.c.l.bf16 %v939_v3 }
 0x341   : > { %v1860_v61 = vmul.f32 -1.442695, %v890_v53  ;;  %v847_v62 = vpop.f32.mrb[11].mxu0  ;;  %v888_v0 = vpop.f32.mrb[11].mxu1 }
 0x342   : > { %v1861_v1 = vmul.f32 -1.442695, %v891_v57  ;;  %v1862_v4 = vmul.f32 -1.442695, %v893_v2 }
 0x343   : > { %2050 = vpow2.f32 %v1860_v61 }
 0x344   : > { %2052 = vpow2.f32 %v1861_v1 }
 0x345   : > { %2054 = vpow2.f32 %v1862_v4 }
 0x346   : > { %2056 = vtanh.f32 %v892_v5 }
 0x34d   : > { %v2051_v6 = vpop.eup %2050 }
 0x34e   : > { %v2053_v8 = vpop.eup %2052  ;;  %v897_v9 = vadd.f32 1.0, %v2051_v6 }
 0x34f   : > { %v903_v10 = vadd.f32 1.0, %v2053_v8  ;;  %v2055_v11 = vpop.eup %2054 }
 0x350   : > { %2058 = vrcp.f32 %v897_v9  ;;  %v2057_v13 = vpop.eup %2056  ;;  %v910_v16 = vadd.f32 1.0, %v2055_v11 }
 0x351   : > { %2060 = vrcp.f32 %v903_v10 }
 0x352   : > { %2062 = vrcp.f32 %v910_v16 }
 0x35a   : > { %v2059_v14 = vpop.eup %2058 }
 0x35b   : > { %v2061_v63 = vpop.eup %2060  ;;  %v914_v15 = vmul.f32 %v2059_v14, %v2057_v13  ;;  %v943_v13 = vunpack.c.h.bf16 %v939_v3 }
 0x35c   : > { %v913_v50 = vmul.f32 %v2061_v63, %v2606_v7  ;;  %v2063_v55 = vpop.eup %2062 }
 0x35e   : > { %v915_v53 = vadd.f32 %v914_v15, %v913_v50 }
 0x360   : > { %2064 = vtanh.f32 %v915_v53  ;;  %v2662_v54 = vsel %vm919_vm2, %v915_v53, %v2606_v7  ;;  %v938_v7 = vld [vmem:[%s937_s11] sm:$0xff]  ;;  %s1065_s11 = smul.u32 %s1064_s10, %s2345_s30 }
 0x361   : > { %v941_v0 = vunpack.c.h.bf16 %v938_v7 }
 0x362   : > { %s1068_s23 = sadd.s32 %s1067_s22, %s1065_s11  ;;  %s1343_s22 = smul.u32 6, %s2345_s30 }
 0x36a   : > { %v2065_v56 = vpop.eup %2064 }
 0x36b   : > { %v917_v57 = vmul.f32 %v2065_v56, %v2063_v55 }
 0x36d   : > { %v920_v59 = vsel %vm919_vm2, %v917_v57, 0.0  ;;  %v2667_v60 = vsel %vm919_vm2, %v917_v57, %v2611_v12  ;;  %v940_v12 = vunpack.c.l.bf16 %v938_v7 }
 0x36e   : > { %v921_v61 = vpack.c.bf16 %v920_v59, %v920_v59  ;;  %v944_v62 = vpack.c.bf16 %v2667_v60, %v2667_v60 }
 0x370   : > { %924 = vst [vmem:[%s923_s6] sm:$0xf] %v921_v61  ;;  %978 = vmatmul.mubr.bf16.vlgmr.msra.gmra.mrb[12].mxu0 %v944_v62  ;;  %1019 = vmatmul.mubr.bf16.vlgmr.msra.gmra.mrb[12].mxu1 %v944_v62  ;;  %v1055_v61 = vstv %s931_s25  ;;  %s2769_s6 = sadd.s32 %s1871_s4, %s1070_s29  ;;  %s1206_s25 = smul.u32 5, %s2345_s30 }
 0x371   : > { %1083 = vmatpush1.bf16.msra.mxu0 %v2369_v18  ;;  %1124 = vmatpush1.bf16.msra.mxu1 %v2389_v24  ;;  %vm1056_vm3 = vcmp.lt.s32.totalorder %v1055_v61, %v2547_v52  ;;  %s1906_s7 = sshll.u32 %s2769_s6, 4  ;;  %s1877_s24 = sshll.u32 %s2769_s6, 2  ;;  %v2808_v61 = vld [vmem:[%s2355_s21 + $0x20] ss:$16 sps:$4 sm:$0xff]  }
 0x372   : > { %1084 = vmatprep.subr.bf16.mxu0 %v2375_v20  ;;  %1125 = vmatprep.subr.bf16.mxu1 %v2402_v27  ;;  %s1074_s9 = scalar_lea.vmem %s2362_s1, %s1906_s7 [#allocation4]  ;;  %s1197_s12 = scalar_lea.vmem %s2360_s28, %s1877_s24 }
 0x373   : > { %1114 = vmatprep.mubr.bf16.mxu0 %v2236_v19  ;;  %1155 = vmatprep.mubr.bf16.mxu1 %v2236_v19  ;;  %s1203_s6 = ssub.s32 18, %s2538_s5 }
 0x375   : > { %1085 = vmatpush1.bf16.msra.mxu0 %v2379_v21  ;;  %1126 = vmatpush1.bf16.msra.mxu1 %v2405_v28 }
 0x376   : > { %1086 = vmatprep.subr.bf16.mxu0 %v2383_v22  ;;  %1127 = vmatprep.subr.bf16.mxu1 %v2416_v31 }
 0x379   : > { %1087 = vmatpush1.bf16.msra.mxu0 %v2393_v25  ;;  %1128 = vmatpush1.bf16.msra.mxu1 %v2421_v32 }
 0x37a   : > { %1088 = vmatprep.subr.bf16.mxu0 %v2398_v26  ;;  %1129 = vmatprep.subr.bf16.mxu1 %v2425_v33 }
 0x37d   : > { %1089 = vmatpush1.bf16.msra.mxu0 %v2410_v29  ;;  %1130 = vmatpush1.bf16.msra.mxu1 %v2437_v36 }
 0x37e   : > { %1090 = vmatprep.subr.bf16.mxu0 %v2413_v30  ;;  %1131 = vmatprep.subr.bf16.mxu1 %v2441_v37 }
 0x381   : > { %1091 = vmatpush1.bf16.msra.mxu0 %v2429_v34  ;;  %1132 = vmatpush1.bf16.msra.mxu1 %v2453_v40 }
 0x382   : > { %1092 = vmatprep.subr.bf16.mxu0 %v2433_v35  ;;  %1133 = vmatprep.subr.bf16.mxu1 %v2457_v41 }
 0x385   : > { %1093 = vmatpush1.bf16.msra.mxu0 %v2444_v38  ;;  %1134 = vmatpush1.bf16.msra.mxu1 %v2469_v44 }
 0x386   : > { %1094 = vmatprep.subr.bf16.mxu0 %v2448_v39  ;;  %1135 = vmatprep.subr.bf16.mxu1 %v2473_v45 }
 0x389   : > { %1095 = vmatpush1.bf16.msra.mxu0 %v2461_v42  ;;  %1136 = vmatpush1.bf16.msra.mxu1 %v2484_v48 }
 0x38a   : > { %1096 = vmatprep.subr.bf16.mxu0 %v2465_v43  ;;  %1137 = vmatprep.subr.bf16.mxu1 %v2488_v49 }
 0x38d   : > { %1097 = vmatpush1.bf16.msra.mxu0 %v2477_v46  ;;  %1138 = vmatpush1.bf16.msra.mxu1 %v2495_v51 }
 0x38e   : > { %1219 = vmatprep.subr.bf16.mxu0 %v2366_v17  ;;  %1260 = vmatprep.subr.bf16.mxu1 %v2386_v23 }
 0x443   : > { %v979_v1 = vpop.f32.mrb[12].mxu0  ;;  %v1020_v47 = vpop.f32.mrb[12].mxu1 }
 0x444   : > { %v1027_v2 = vadd.f32 %v979_v1, %v940_v12  ;;  %v981_v4 = vpop.f32.mrb[13].mxu0  ;;  %v1022_v5 = vpop.f32.mrb[13].mxu1  ;;  %v1029_v15 = vadd.f32 %v1020_v47, %v942_v58 }
 0x445   : > { %v1028_v6 = vadd.f32 %v981_v4, %v941_v0  ;;  %v983_v17 = vpop.f32.mrb[14].mxu0  ;;  %v1024_v8 = vpop.f32.mrb[14].mxu1  ;;  %v1030_v14 = vadd.f32 %v1022_v5, %v943_v13 }
 0x446   : > { %v1867_v23 = vmul.f32 -1.442695, %v1027_v2  ;;  %v984_v9 = vpop.f32.mrb[15].mxu0  ;;  %v1025_v10 = vpop.f32.mrb[15].mxu1 }
 0x447   : > { %v1868_v11 = vmul.f32 -1.442695, %v1028_v6  ;;  %v1869_v63 = vmul.f32 -1.442695, %v1030_v14 }
 0x448   : > { %2066 = vpow2.f32 %v1867_v23 }
 0x449   : > { %2068 = vpow2.f32 %v1868_v11 }
 0x44a   : > { %2070 = vpow2.f32 %v1869_v63 }
 0x44b   : > { %2072 = vtanh.f32 %v1029_v15 }
 0x452   : > { %v2067_v16 = vpop.eup %2066 }
 0x453   : > { %v2069_v50 = vpop.eup %2068  ;;  %v1034_v53 = vadd.f32 1.0, %v2067_v16 }
 0x454   : > { %v1040_v55 = vadd.f32 1.0, %v2069_v50  ;;  %v2071_v56 = vpop.eup %2070 }
 0x455   : > { %2074 = vrcp.f32 %v1034_v53  ;;  %v2073_v57 = vpop.eup %2072  ;;  %v1047_v12 = vadd.f32 1.0, %v2071_v56  ;;  %v2794_v56 = vld [vmem:[%s2355_s21 + $0x8] ss:$16 sps:$4 sm:$0xff]  }
 0x456   : > { %2076 = vrcp.f32 %v1040_v55  ;;  %v2790_v55 = vld [vmem:[%s2355_s21] ss:$16 sps:$4 sm:$0xff]  }
 0x457   : > { %2078 = vrcp.f32 %v1047_v12  ;;  %v2820_v12 = vld [vmem:[%s2355_s21 + $0x4c] ss:$16 sps:$4 sm:$0xff]  }
 0x45f   : > { %v2075_v59 = vpop.eup %2074 }
 0x460   : > { %v2077_v62 = vpop.eup %2076  ;;  %v1051_v7 = vmul.f32 %v2075_v59, %v2073_v57  ;;  %v2798_v57 = vld [vmem:[%s2355_s21 + $0x24] ss:$16 sps:$4 sm:$0xff]   ;;  %v2802_v59 = vld [vmem:[%s2355_s21 + $0x2c] ss:$16 sps:$4 sm:$0xff]  }
 0x461   : > { %v1050_v0 = vmul.f32 %v2077_v62, %v2662_v54  ;;  %v2079_v2 = vpop.eup %2078  ;;  %v2812_v62 = vld [vmem:[%s2355_s21 + $0x28] ss:$16 sps:$4 sm:$0xff]  }
 0x463   : > { %v1052_v1 = vadd.f32 %v1051_v7, %v1050_v0  ;;  %v2816_v7 = vld [vmem:[%s2355_s21 + $0x44] ss:$16 sps:$4 sm:$0xff]   ;;  %v2824_v0 = vld [vmem:[%s2355_s21 + $0x40] ss:$16 sps:$4 sm:$0xff]  }
 0x465   : > { %2080 = vtanh.f32 %v1052_v1  ;;  %v2718_v47 = vsel %vm1056_vm3, %v1052_v1, %v2662_v54  ;;  %v1192_v54 = vstv %s1068_s23  ;;  %v2828_v1 = vld [vmem:[%s2355_s21 + $0x48] ss:$16 sps:$4 sm:$0xff]   ;;  %s2969_s23 = sadd.s32 %s2221_s15, %s1343_s22 }
 0x466   : > { %vm1193_vm4 = vcmp.lt.s32.totalorder %v1192_v54, %v2547_v52  ;;  %s1908_s24 = sshll.u32 %s2969_s23, 4 }
 0x46f   : > { %v2081_v3 = vpop.eup %2080 }
 0x470   : > { %v1054_v4 = vmul.f32 %v2081_v3, %v2079_v2  ;;  %v2836_v2 = vld [vmem:[%s2355_s21 + $0x6c] ss:$16 sps:$4 sm:$0xff]   ;;  %v2840_v3 = vld [vmem:[%s2355_s21 + $0x60] ss:$16 sps:$4 sm:$0xff]  }
 0x472   : > { %v1057_v5 = vsel %vm1056_vm3, %v1054_v4, 0.0  ;;  %v2723_v6 = vsel %vm1056_vm3, %v1054_v4, %v2667_v60  ;;  %v2844_v4 = vld [vmem:[%s2355_s21 + $0x68] ss:$16 sps:$4 sm:$0xff]  }
 0x473   : > { %v1058_v17 = vpack.c.bf16 %v1057_v5, %v1057_v5  ;;  %v1081_v8 = vpack.c.bf16 %v2723_v6, %v2723_v6  ;;  %v2848_v5 = vld [vmem:[%s2355_s21 + $0x84] ss:$16 sps:$4 sm:$0xff]  }
 0x475   : > { %1061 = vst [vmem:[%s1060_s27] sm:$0xf] %v1058_v17  ;;  %1115 = vmatmul.mubr.bf16.vlgmr.msra.gmra.mrb[16].mxu0 %v1081_v8  ;;  %1156 = vmatmul.mubr.bf16.vlgmr.msra.gmra.mrb[16].mxu1 %v1081_v8  ;;  %v2856_v17 = vld [vmem:[%s2355_s21 + $0x80] ss:$16 sps:$4 sm:$0xff]   ;;  %v2860_v8 = vld [vmem:[%s2355_s21 + $0x88] ss:$16 sps:$4 sm:$0xff]   ;;  %s2915_s27 = sadd.s32 %s1878_s26, %s1206_s25  ;;  %s1338_s25 = sadd.s32 6, %s2538_s5 }
 0x476   : > { %1220 = vmatpush1.bf16.msra.mxu0 %v2369_v18  ;;  %1261 = vmatpush1.bf16.msra.mxu1 %v2389_v24  ;;  %v2760_v18 = vld [vmem:[%s2355_s21 + $0x4] ss:$16 sps:$4 sm:$0xff]   ;;  %s1907_s29 = sshll.u32 %s2915_s27, 4  ;;  %s1884_s14 = sshll.u32 %s2915_s27, 2 }
 0x477   : > { %1221 = vmatprep.subr.bf16.mxu0 %v2375_v20  ;;  %1262 = vmatprep.subr.bf16.mxu1 %v2402_v27  ;;  %v2764_v20 = vld [vmem:[%s2355_s21 + $0xc] ss:$16 sps:$4 sm:$0xff]   ;;  %s1211_s4 = scalar_lea.vmem %s2362_s1, %s1907_s29 [#allocation4]  ;;  %s1334_s11 = scalar_lea.vmem %s2360_s28, %s1884_s14 }
 0x478   : > { %1251 = vmatprep.mubr.bf16.mxu0 %v2236_v19  ;;  %1292 = vmatprep.mubr.bf16.mxu1 %v2236_v19  ;;  %s1340_s26 = ssub.s32 17, %s2538_s5  ;;  %s1339_s27 = smul.u32 %s1338_s25, %s2345_s30 }
 0x479   : > { %s1341_s29 = smul.u32 %s2221_s15, %s1340_s26 }
 0x47a   : > { %1222 = vmatpush1.bf16.msra.mxu0 %v2379_v21  ;;  %1263 = vmatpush1.bf16.msra.mxu1 %v2405_v28  ;;  %v1075_v21 = vld [vmem:[%s1074_s9] sm:$0xff]  ;;  %v1076_v28 = vld [vmem:[%s1074_s9 + $0x8] sm:$0xff]  ;;  %s1204_s9 = smul.u32 %s2221_s15, %s1203_s6 }
 0x47b   : > { %1223 = vmatprep.subr.bf16.mxu0 %v2383_v22  ;;  %1264 = vmatprep.subr.bf16.mxu1 %v2416_v31  ;;  %v1077_v22 = vunpack.c.l.bf16 %v1075_v21  ;;  %v1078_v24 = vunpack.c.h.bf16 %v1075_v21  ;;  %v2864_v21 = vld [vmem:[%s2355_s21 + $0xa4] ss:$16 sps:$4 sm:$0xff]  }
 0x47e   : > { %1224 = vmatpush1.bf16.msra.mxu0 %v2393_v25  ;;  %1265 = vmatpush1.bf16.msra.mxu1 %v2421_v32 }
 0x47f   : > { %1225 = vmatprep.subr.bf16.mxu0 %v2398_v26  ;;  %1266 = vmatprep.subr.bf16.mxu1 %v2425_v33 }
 0x482   : > { %1226 = vmatpush1.bf16.msra.mxu0 %v2410_v29  ;;  %1267 = vmatpush1.bf16.msra.mxu1 %v2437_v36 }
 0x483   : > { %1227 = vmatprep.subr.bf16.mxu0 %v2413_v30  ;;  %1268 = vmatprep.subr.bf16.mxu1 %v2441_v37 }
 0x486   : > { %1228 = vmatpush1.bf16.msra.mxu0 %v2429_v34  ;;  %1269 = vmatpush1.bf16.msra.mxu1 %v2453_v40  ;;  %v1079_v40 = vunpack.c.l.bf16 %v1076_v28 }
 0x487   : > { %1229 = vmatprep.subr.bf16.mxu0 %v2433_v35  ;;  %1270 = vmatprep.subr.bf16.mxu1 %v2457_v41 }
 0x48a   : > { %1230 = vmatpush1.bf16.msra.mxu0 %v2444_v38  ;;  %1271 = vmatpush1.bf16.msra.mxu1 %v2469_v44  ;;  %v1080_v38 = vunpack.c.h.bf16 %v1076_v28  ;;  %v2888_v28 = vld [vmem:[%s2355_s21 + $0xc0] ss:$16 sps:$4 sm:$0xff]  }
 0x48b   : > { %1231 = vmatprep.subr.bf16.mxu0 %v2448_v39  ;;  %1272 = vmatprep.subr.bf16.mxu1 %v2473_v45 }
 0x48e   : > { %1232 = vmatpush1.bf16.msra.mxu0 %v2461_v42  ;;  %1273 = vmatpush1.bf16.msra.mxu1 %v2484_v48 }
 0x48f   : > { %1233 = vmatprep.subr.bf16.mxu0 %v2465_v43  ;;  %1274 = vmatprep.subr.bf16.mxu1 %v2488_v49 }
 0x492   : > { %1234 = vmatpush1.bf16.msra.mxu0 %v2477_v46  ;;  %1275 = vmatpush1.bf16.msra.mxu1 %v2495_v51 }
 0x493   : > { %1355 = vmatprep.subr.bf16.mxu0 %v2760_v18  ;;  %1396 = vmatprep.subr.bf16.mxu1 %v2764_v20 }
 0x548   : > { %v1116_v25 = vpop.f32.mrb[16].mxu0  ;;  %v1157_v26 = vpop.f32.mrb[16].mxu1 }
 0x549   : > { %v1164_v27 = vadd.f32 %v1116_v25, %v1077_v22  ;;  %v1118_v29 = vpop.f32.mrb[17].mxu0  ;;  %v1159_v30 = vpop.f32.mrb[17].mxu1  ;;  %v1166_v42 = vadd.f32 %v1157_v26, %v1079_v40  ;;  %v2868_v22 = vld [vmem:[%s2355_s21 + $0xac] ss:$16 sps:$4 sm:$0xff]   ;;  %v2876_v25 = vld [vmem:[%s2355_s21 + $0xa8] ss:$16 sps:$4 sm:$0xff]  }
 0x54a   : > { %v1165_v31 = vadd.f32 %v1118_v29, %v1078_v24  ;;  %v1120_v32 = vpop.f32.mrb[18].mxu0  ;;  %v1161_v33 = vpop.f32.mrb[18].mxu1  ;;  %v1167_v39 = vadd.f32 %v1159_v30, %v1080_v38  ;;  %v2872_v24 = vld [vmem:[%s2355_s21 + $0xa0] ss:$16 sps:$4 sm:$0xff]   ;;  %v2880_v26 = vld [vmem:[%s2355_s21 + $0xc4] ss:$16 sps:$4 sm:$0xff]  }
 0x54b   : > { %v1874_v34 = vmul.f32 -1.442695, %v1164_v27  ;;  %v1121_v35 = vpop.f32.mrb[19].mxu0  ;;  %v1162_v36 = vpop.f32.mrb[19].mxu1  ;;  %v2884_v27 = vld [vmem:[%s2355_s21 + $0xcc] ss:$16 sps:$4 sm:$0xff]  }
 0x54c   : > { %v1875_v37 = vmul.f32 -1.442695, %v1165_v31  ;;  %v1876_v41 = vmul.f32 -1.442695, %v1167_v39  ;;  %v2892_v29 = vld [vmem:[%s2355_s21 + $0xc8] ss:$16 sps:$4 sm:$0xff]  }
 0x54d   : > { %2082 = vpow2.f32 %v1874_v34  ;;  %v2896_v30 = vld [vmem:[%s2355_s21 + $0xe4] ss:$16 sps:$4 sm:$0xff]   ;;  %v2900_v31 = vld [vmem:[%s2355_s21 + $0xec] ss:$16 sps:$4 sm:$0xff]   ;;  %v2904_v32 = vld [vmem:[%s2355_s21 + $0xe0] ss:$16 sps:$4 sm:$0xff]  }
 0x54e   : > { %2084 = vpow2.f32 %v1875_v37  ;;  %v2908_v33 = vld [vmem:[%s2355_s21 + $0xe8] ss:$16 sps:$4 sm:$0xff]   ;;  %v1212_v34 = vld [vmem:[%s1211_s4] sm:$0xff] }
 0x54f   : > { %2086 = vpow2.f32 %v1876_v41  ;;  %v1214_v35 = vunpack.c.l.bf16 %v1212_v34  ;;  %v1215_v36 = vunpack.c.h.bf16 %v1212_v34  ;;  %v1213_v40 = vld [vmem:[%s1211_s4 + $0x8] sm:$0xff]  ;;  %s1342_s4 = sadd.s32 %s1341_s29, %s1339_s27 }
 0x550   : > { %2088 = vtanh.f32 %v1166_v42  ;;  %v1216_v54 = vunpack.c.l.bf16 %v1213_v40 }
 0x557   : > { %v2083_v43 = vpop.eup %2082 }
 0x558   : > { %v2085_v44 = vpop.eup %2084  ;;  %v1171_v45 = vadd.f32 1.0, %v2083_v43 }
 0x559   : > { %v1177_v46 = vadd.f32 1.0, %v2085_v44  ;;  %v2087_v48 = vpop.eup %2086 }
 0x55a   : > { %2090 = vrcp.f32 %v1171_v45  ;;  %v2089_v49 = vpop.eup %2088  ;;  %v1184_v9 = vadd.f32 1.0, %v2087_v48 }
 0x55b   : > { %2092 = vrcp.f32 %v1177_v46 }
 0x55c   : > { %2094 = vrcp.f32 %v1184_v9 }
 0x564   : > { %v2091_v51 = vpop.eup %2090 }
 0x565   : > { %v2093_v60 = vpop.eup %2092  ;;  %v1188_v23 = vmul.f32 %v2091_v51, %v2089_v49  ;;  %v1217_v49 = vunpack.c.h.bf16 %v1213_v40 }
 0x566   : > { %v1187_v10 = vmul.f32 %v2093_v60, %v2718_v47  ;;  %v2095_v14 = vpop.eup %2094 }
 0x568   : > { %v1189_v11 = vadd.f32 %v1188_v23, %v1187_v10 }
 0x56a   : > { %2096 = vtanh.f32 %v1189_v11  ;;  %v2780_v13 = vsel %vm1193_vm4, %v1189_v11, %v2718_v47  ;;  %v2832_v47 = vld [vmem:[%s2355_s21 + $0x64] ss:$16 sps:$4 sm:$0xff]  }
 0x574   : > { %v2097_v58 = vpop.eup %2096 }
 0x575   : > { %v1191_v63 = vmul.f32 %v2097_v58, %v2095_v14 }
 0x577   : > { %v1194_v15 = vsel %vm1193_vm4, %v1191_v63, 0.0  ;;  %v2785_v16 = vsel %vm1193_vm4, %v1191_v63, %v2723_v6  ;;  %v2852_v6 = vld [vmem:[%s2355_s21 + $0x8c] ss:$16 sps:$4 sm:$0xff]   ;;  %s1201_s21 = sadd.s32 5, %s2538_s5 }
 0x578   : > { %v1195_v50 = vpack.c.bf16 %v1194_v15, %v1194_v15  ;;  %v1218_v53 = vpack.c.bf16 %v2785_v16, %v2785_v16  ;;  %s1202_s7 = smul.u32 %s1201_s21, %s2345_s30 }
 0x57a   : > { %1198 = vst [vmem:[%s1197_s12] sm:$0xf] %v1195_v50  ;;  %1252 = vmatmul.mubr.bf16.vlgmr.msra.gmra.mrb[20].mxu0 %v1218_v53  ;;  %1293 = vmatmul.mubr.bf16.vlgmr.msra.gmra.mrb[20].mxu1 %v1218_v53  ;;  %s1205_s10 = sadd.s32 %s1204_s9, %s1202_s7  ;;  %s1347_s12 = scalar_lea.vmem %s2362_s1, %s1908_s24 [#allocation4] }
 0x57b   : > { %1356 = vmatpush1.bf16.msra.mxu0 %v2790_v55  ;;  %1397 = vmatpush1.bf16.msra.mxu1 %v2794_v56  ;;  %v1329_v50 = vstv %s1205_s10  ;;  %s1890_s7 = sshll.u32 %s2969_s23, 2  ;;  %s1909_s10 = smul.u32 112, %s2345_s30 }
 0x57c   : > { %1357 = vmatprep.subr.bf16.mxu0 %v2798_v57  ;;  %1398 = vmatprep.subr.bf16.mxu1 %v2802_v59  ;;  %vm1330_vm5 = vcmp.lt.s32.totalorder %v1329_v50, %v2547_v52  ;;  %s1470_s9 = scalar_lea.vmem %s2360_s28, %s1890_s7 }
 0x57d   : > { %1387 = vmatprep.mubr.bf16.mxu0 %v2236_v19  ;;  %1428 = vmatprep.mubr.bf16.mxu1 %v2236_v19  ;;  %s1482_s14 = scalar_lea.vmem %s2362_s1, %s1909_s10 [#allocation4]  ;;  %s1474_s1 = sadd.s32 7, %s2538_s5 }
 0x57e   : > { %s1475_s22 = smul.u32 %s1474_s1, %s2345_s30 }
 0x57f   : > { %1358 = vmatpush1.bf16.msra.mxu0 %v2808_v61  ;;  %1399 = vmatpush1.bf16.msra.mxu1 %v2812_v62 }
 0x580   : > { %1359 = vmatprep.subr.bf16.mxu0 %v2816_v7  ;;  %1400 = vmatprep.subr.bf16.mxu1 %v2820_v12 }
 0x583   : > { %1360 = vmatpush1.bf16.msra.mxu0 %v2824_v0  ;;  %1401 = vmatpush1.bf16.msra.mxu1 %v2828_v1 }
 0x584   : > { %1361 = vmatprep.subr.bf16.mxu0 %v2832_v47  ;;  %1402 = vmatprep.subr.bf16.mxu1 %v2836_v2 }
 0x587   : > { %1362 = vmatpush1.bf16.msra.mxu0 %v2840_v3  ;;  %1403 = vmatpush1.bf16.msra.mxu1 %v2844_v4 }
 0x588   : > { %1363 = vmatprep.subr.bf16.mxu0 %v2848_v5  ;;  %1404 = vmatprep.subr.bf16.mxu1 %v2852_v6 }
 0x58b   : > { %1364 = vmatpush1.bf16.msra.mxu0 %v2856_v17  ;;  %1405 = vmatpush1.bf16.msra.mxu1 %v2860_v8 }
 0x58c   : > { %1365 = vmatprep.subr.bf16.mxu0 %v2864_v21  ;;  %1406 = vmatprep.subr.bf16.mxu1 %v2868_v22 }
 0x58f   : > { %1366 = vmatpush1.bf16.msra.mxu0 %v2872_v24  ;;  %1407 = vmatpush1.bf16.msra.mxu1 %v2876_v25 }
 0x590   : > { %1367 = vmatprep.subr.bf16.mxu0 %v2880_v26  ;;  %1408 = vmatprep.subr.bf16.mxu1 %v2884_v27 }
 0x593   : > { %1368 = vmatpush1.bf16.msra.mxu0 %v2888_v28  ;;  %1409 = vmatpush1.bf16.msra.mxu1 %v2892_v29 }
 0x594   : > { %1369 = vmatprep.subr.bf16.mxu0 %v2896_v30  ;;  %1410 = vmatprep.subr.bf16.mxu1 %v2900_v31 }
 0x597   : > { %1370 = vmatpush1.bf16.msra.mxu0 %v2904_v32  ;;  %1411 = vmatpush1.bf16.msra.mxu1 %v2908_v33 }
 0x598   : > { %1490 = vmatprep.subr.bf16.mxu0 %v2760_v18  ;;  %1531 = vmatprep.subr.bf16.mxu1 %v2764_v20 }
 0x64d   : > { %v1253_v37 = vpop.f32.mrb[20].mxu0  ;;  %v1294_v38 = vpop.f32.mrb[20].mxu1 }
 0x64e   : > { %v1301_v39 = vadd.f32 %v1253_v37, %v1214_v35  ;;  %v1255_v41 = vpop.f32.mrb[21].mxu0  ;;  %v1296_v42 = vpop.f32.mrb[21].mxu1  ;;  %v1303_v23 = vadd.f32 %v1294_v38, %v1216_v54 }
 0x64f   : > { %v1302_v43 = vadd.f32 %v1255_v41, %v1215_v36  ;;  %v1257_v18 = vpop.f32.mrb[22].mxu0  ;;  %v1298_v44 = vpop.f32.mrb[22].mxu1  ;;  %v1304_v51 = vadd.f32 %v1296_v42, %v1217_v49 }
 0x650   : > { %v1881_v20 = vmul.f32 -1.442695, %v1301_v39  ;;  %v1258_v45 = vpop.f32.mrb[23].mxu0  ;;  %v1299_v46 = vpop.f32.mrb[23].mxu1 }
 0x651   : > { %v1882_v48 = vmul.f32 -1.442695, %v1302_v43  ;;  %v1883_v60 = vmul.f32 -1.442695, %v1304_v51 }
 0x652   : > { %2098 = vpow2.f32 %v1881_v20 }
 0x653   : > { %2100 = vpow2.f32 %v1882_v48 }
 0x654   : > { %2102 = vpow2.f32 %v1883_v60 }
 0x655   : > { %2104 = vtanh.f32 %v1303_v23 }
 0x65c   : > { %v2099_v9 = vpop.eup %2098 }
 0x65d   : > { %v2101_v10 = vpop.eup %2100  ;;  %v1308_v11 = vadd.f32 1.0, %v2099_v9  ;;  %v1483_v9 = vld [vmem:[%s1482_s14] sm:$0xff] }
 0x65e   : > { %v1314_v14 = vadd.f32 1.0, %v2101_v10  ;;  %v2103_v58 = vpop.eup %2102  ;;  %v1485_v10 = vunpack.c.l.bf16 %v1483_v9 }
 0x65f   : > { %2106 = vrcp.f32 %v1308_v11  ;;  %v2105_v63 = vpop.eup %2104  ;;  %v1321_v35 = vadd.f32 1.0, %v2103_v58  ;;  %v1486_v11 = vunpack.c.h.bf16 %v1483_v9 }
 0x660   : > { %2108 = vrcp.f32 %v1314_v14 }
 0x661   : > { %2110 = vrcp.f32 %v1321_v35 }
 0x669   : > { %v2107_v15 = vpop.eup %2106 }
 0x66a   : > { %v2109_v53 = vpop.eup %2108  ;;  %v1325_v34 = vmul.f32 %v2107_v15, %v2105_v63  ;;  %v1484_v15 = vld [vmem:[%s1482_s14 + $0x8] sm:$0xff] }
 0x66b   : > { %v1324_v36 = vmul.f32 %v2109_v53, %v2780_v13  ;;  %v2111_v39 = vpop.eup %2110 }
 0x66d   : > { %v1326_v37 = vadd.f32 %v1325_v34, %v1324_v36 }
 0x66f   : > { %2112 = vtanh.f32 %v1326_v37  ;;  %v2926_v38 = vsel %vm1330_vm5, %v1326_v37, %v2780_v13 }
 0x679   : > { %v2113_v40 = vpop.eup %2112 }
 0x67a   : > { %v1328_v41 = vmul.f32 %v2113_v40, %v2111_v39 }
 0x67c   : > { %v1331_v42 = vsel %vm1330_vm5, %v1328_v41, 0.0  ;;  %v2931_v43 = vsel %vm1330_vm5, %v1328_v41, %v2785_v16  ;;  %v1488_v41 = vunpack.c.h.bf16 %v1484_v15 }
 0x67d   : > { %v1332_v18 = vpack.c.bf16 %v1331_v42, %v1331_v42  ;;  %v1354_v44 = vpack.c.bf16 %v2931_v43, %v2931_v43 }
 0x67f   : > { %1335 = vst [vmem:[%s1334_s11] sm:$0xf] %v1332_v18  ;;  %1388 = vmatmul.mubr.bf16.vlgmr.msra.gmra.mrb[24].mxu0 %v1354_v44  ;;  %1429 = vmatmul.mubr.bf16.vlgmr.msra.gmra.mrb[24].mxu1 %v1354_v44  ;;  %s1476_s11 = ssub.s32 16, %s2538_s5 }
 0x680   : > { %1491 = vmatpush1.bf16.msra.mxu0 %v2790_v55  ;;  %1532 = vmatpush1.bf16.msra.mxu1 %v2794_v56  ;;  %s1477_s23 = smul.u32 %s2221_s15, %s1476_s11 }
 0x681   : > { %1492 = vmatprep.subr.bf16.mxu0 %v2798_v57  ;;  %1533 = vmatprep.subr.bf16.mxu1 %v2802_v59  ;;  %v1349_v57 = vld [vmem:[%s1347_s12 + $0x8] sm:$0xff]  ;;  %s1910_s15 = smul.u32 28, %s2345_s30 }
 0x682   : > { %1522 = vmatprep.mubr.bf16.mxu0 %v2236_v19  ;;  %1563 = vmatprep.mubr.bf16.mxu1 %v2236_v19  ;;  %v1348_v19 = vld [vmem:[%s1347_s12] sm:$0xff]  ;;  %s1478_s24 = sadd.s32 %s1477_s23, %s1475_s22 }
 0x683   : > { %v1350_v52 = vunpack.c.l.bf16 %v1348_v19  ;;  %v1351_v13 = vunpack.c.h.bf16 %v1348_v19  ;;  %s1605_s5 = scalar_lea.vmem %s2360_s28, %s1910_s15 }
 0x684   : > { %1493 = vmatpush1.bf16.msra.mxu0 %v2808_v61  ;;  %1534 = vmatpush1.bf16.msra.mxu1 %v2812_v62 }
 0x685   : > { %1494 = vmatprep.subr.bf16.mxu0 %v2816_v7  ;;  %1535 = vmatprep.subr.bf16.mxu1 %v2820_v12 }
 0x688   : > { %1495 = vmatpush1.bf16.msra.mxu0 %v2824_v0  ;;  %1536 = vmatpush1.bf16.msra.mxu1 %v2828_v1 }
 0x689   : > { %1496 = vmatprep.subr.bf16.mxu0 %v2832_v47  ;;  %1537 = vmatprep.subr.bf16.mxu1 %v2836_v2 }
 0x68c   : > { %1497 = vmatpush1.bf16.msra.mxu0 %v2840_v3  ;;  %1538 = vmatpush1.bf16.msra.mxu1 %v2844_v4  ;;  %v1353_v3 = vunpack.c.h.bf16 %v1349_v57 }
 0x68d   : > { %1498 = vmatprep.subr.bf16.mxu0 %v2848_v5  ;;  %1539 = vmatprep.subr.bf16.mxu1 %v2852_v6  ;;  %v1352_v5 = vunpack.c.l.bf16 %v1349_v57 }
 0x690   : > { %1499 = vmatpush1.bf16.msra.mxu0 %v2856_v17  ;;  %1540 = vmatpush1.bf16.msra.mxu1 %v2860_v8 }
 0x691   : > { %1500 = vmatprep.subr.bf16.mxu0 %v2864_v21  ;;  %1541 = vmatprep.subr.bf16.mxu1 %v2868_v22 }
 0x694   : > { %1501 = vmatpush1.bf16.msra.mxu0 %v2872_v24  ;;  %1542 = vmatpush1.bf16.msra.mxu1 %v2876_v25 }
 0x695   : > { %1502 = vmatprep.subr.bf16.mxu0 %v2880_v26  ;;  %1543 = vmatprep.subr.bf16.mxu1 %v2884_v27 }
 0x698   : > { %1503 = vmatpush1.bf16.msra.mxu0 %v2888_v28  ;;  %1544 = vmatpush1.bf16.msra.mxu1 %v2892_v29  ;;  %v1465_v28 = vstv %s1342_s4 }
 0x699   : > { %1504 = vmatprep.subr.bf16.mxu0 %v2896_v30  ;;  %1545 = vmatprep.subr.bf16.mxu1 %v2900_v31 }
 0x69c   : > { %1505 = vmatpush1.bf16.msra.mxu0 %v2904_v32  ;;  %1546 = vmatpush1.bf16.msra.mxu1 %v2908_v33  ;;  %v2981_v33 = vld [vmem:[%s3027_s0] sm:$0xff] }
 0x69d   : > { %vm1466_vm6 = vcmp.lt.s32.totalorder %v1465_v28, %v2981_v33 }
 0x752   : > { %v1389_v16 = vpop.f32.mrb[24].mxu0  ;;  %v1430_v55 = vpop.f32.mrb[24].mxu1 }
 0x753   : > { %v1437_v56 = vadd.f32 %v1389_v16, %v1350_v52  ;;  %v1391_v59 = vpop.f32.mrb[25].mxu0  ;;  %v1432_v61 = vpop.f32.mrb[25].mxu1  ;;  %v1439_v17 = vadd.f32 %v1430_v55, %v1352_v5 }
 0x754   : > { %v1438_v62 = vadd.f32 %v1391_v59, %v1351_v13  ;;  %v1393_v7 = vpop.f32.mrb[26].mxu0  ;;  %v1434_v12 = vpop.f32.mrb[26].mxu1  ;;  %v1440_v4 = vadd.f32 %v1432_v61, %v1353_v3  ;;  %v1600_v59 = vstv %s1478_s24 }
 0x755   : > { %v1887_v0 = vmul.f32 -1.442695, %v1437_v56  ;;  %v1394_v1 = vpop.f32.mrb[27].mxu0  ;;  %v1435_v47 = vpop.f32.mrb[27].mxu1  ;;  %vm1601_vm7 = vcmp.lt.s32.totalorder %v1600_v59, %v2981_v33 }
 0x756   : > { %v1888_v2 = vmul.f32 -1.442695, %v1438_v62  ;;  %v1889_v6 = vmul.f32 -1.442695, %v1440_v4 }
 0x757   : > { %2114 = vpow2.f32 %v1887_v0 }
 0x758   : > { %2116 = vpow2.f32 %v1888_v2 }
 0x759   : > { %2118 = vpow2.f32 %v1889_v6 }
 0x75a   : > { %2120 = vtanh.f32 %v1439_v17 }
 0x761   : > { %v2115_v8 = vpop.eup %2114 }
 0x762   : > { %v2117_v21 = vpop.eup %2116  ;;  %v1444_v22 = vadd.f32 1.0, %v2115_v8 }
 0x763   : > { %v1450_v24 = vadd.f32 1.0, %v2117_v21  ;;  %v2119_v25 = vpop.eup %2118 }
 0x764   : > { %2122 = vrcp.f32 %v1444_v22  ;;  %v2121_v26 = vpop.eup %2120  ;;  %v1457_v31 = vadd.f32 1.0, %v2119_v25 }
 0x765   : > { %2124 = vrcp.f32 %v1450_v24 }
 0x766   : > { %2126 = vrcp.f32 %v1457_v31 }
 0x76e   : > { %v2123_v27 = vpop.eup %2122 }
 0x76f   : > { %v2125_v29 = vpop.eup %2124  ;;  %v1461_v30 = vmul.f32 %v2123_v27, %v2121_v26 }
 0x770   : > { %v1460_v32 = vmul.f32 %v2125_v29, %v2926_v38  ;;  %v2127_v46 = vpop.eup %2126 }
 0x772   : > { %v1462_v20 = vadd.f32 %v1461_v30, %v1460_v32 }
 0x774   : > { %2128 = vtanh.f32 %v1462_v20  ;;  %v2985_v45 = vsel %vm1466_vm6, %v1462_v20, %v2926_v38 }
 0x77e   : > { %v2129_v48 = vpop.eup %2128 }
 0x77f   : > { %v1464_v49 = vmul.f32 %v2129_v48, %v2127_v46 }
 0x781   : > { %v1467_v51 = vsel %vm1466_vm6, %v1464_v49, 0.0  ;;  %v2990_v54 = vsel %vm1466_vm6, %v1464_v49, %v2931_v43  ;;  %v1487_v43 = vunpack.c.l.bf16 %v1484_v15 }
 0x782   : > { %v1468_v60 = vpack.c.bf16 %v1467_v51, %v1467_v51  ;;  %v1489_v23 = vpack.c.bf16 %v2990_v54, %v2990_v54 }
 0x784   : > { %1471 = vst [vmem:[%s1470_s9] sm:$0xf] %v1468_v60  ;;  %1523 = vmatmul.mubr.bf16.vlgmr.msra.gmra.mrb[28].mxu0 %v1489_v23  ;;  %1564 = vmatmul.mubr.bf16.vlgmr.msra.gmra.mrb[28].mxu1 %v1489_v23 }
 0x857   : > { %v1524_v14 = vpop.f32.mrb[28].mxu0  ;;  %v1565_v58 = vpop.f32.mrb[28].mxu1 }
 0x858   : > { %v1572_v63 = vadd.f32 %v1524_v14, %v1485_v10  ;;  %v1526_v50 = vpop.f32.mrb[29].mxu0  ;;  %v1567_v53 = vpop.f32.mrb[29].mxu1  ;;  %v1574_v44 = vadd.f32 %v1565_v58, %v1487_v43 }
 0x859   : > { %v1573_v34 = vadd.f32 %v1526_v50, %v1486_v11  ;;  %v1528_v35 = vpop.f32.mrb[30].mxu0  ;;  %v1569_v36 = vpop.f32.mrb[30].mxu1  ;;  %v1575_v42 = vadd.f32 %v1567_v53, %v1488_v41 }
 0x85a   : > { %v1893_v37 = vmul.f32 -1.442695, %v1572_v63  ;;  %v1529_v38 = vpop.f32.mrb[31].mxu0  ;;  %v1570_v39 = vpop.f32.mrb[31].mxu1 }
 0x85b   : > { %v1894_v40 = vmul.f32 -1.442695, %v1573_v34  ;;  %v1895_v18 = vmul.f32 -1.442695, %v1575_v42 }
 0x85c   : > { %2130 = vpow2.f32 %v1893_v37 }
 0x85d   : > { %2132 = vpow2.f32 %v1894_v40 }
 0x85e   : > { %2134 = vpow2.f32 %v1895_v18 }
 0x85f   : > { %2136 = vtanh.f32 %v1574_v44 }
 0x866   : > { %v2131_v19 = vpop.eup %2130 }
 0x867   : > { %v2133_v52 = vpop.eup %2132  ;;  %v1579_v13 = vadd.f32 1.0, %v2131_v19 }
 0x868   : > { %v1585_v16 = vadd.f32 1.0, %v2133_v52  ;;  %v2135_v55 = vpop.eup %2134 }
 0x869   : > { %2138 = vrcp.f32 %v1579_v13  ;;  %v2137_v56 = vpop.eup %2136  ;;  %v1592_v7 = vadd.f32 1.0, %v2135_v55 }
 0x86a   : > { %2140 = vrcp.f32 %v1585_v16 }
 0x86b   : > { %2142 = vrcp.f32 %v1592_v7 }
 0x873   : > { %v2139_v57 = vpop.eup %2138 }
 0x874   : > { %v2141_v61 = vpop.eup %2140  ;;  %v1596_v62 = vmul.f32 %v2139_v57, %v2137_v56 }
 0x875   : > { %v1595_v12 = vmul.f32 %v2141_v61, %v2985_v45  ;;  %v2143_v47 = vpop.eup %2142 }
 0x877   : > { %v1597_v0 = vadd.f32 %v1596_v62, %v1595_v12 }
 0x879   : > { %2144 = vtanh.f32 %v1597_v0  ;;  %v1608_v1 = vsel %vm1601_vm7, %v1597_v0, %v2985_v45 }
 0x87a   : > { %1610 = vst [vmem:[#allocation3] sm:$0xff] %v1608_v1 }
 0x883   : > { %v2145_v2 = vpop.eup %2144 }
 0x884   : > { %v1599_v3 = vmul.f32 %v2145_v2, %v2143_v47 }
 0x886   : > { %v1602_v4 = vsel %vm1601_vm7, %v1599_v3, 0.0  ;;  %v1607_v5 = vsel %vm1601_vm7, %v1599_v3, %v2990_v54 }
 0x887   : > { %v1603_v6 = vpack.c.bf16 %v1602_v4, %v1602_v4  ;;  %1609 = vst [vmem:[#allocation2] sm:$0xff] %v1607_v5 }
 0x889   : > { %1606 = vst [vmem:[%s1605_s5] sm:$0xf] %v1603_v6 }
 0x88a PF: > { %s13_s18 = sadd.s32 1, %s2233_s18   ;;  %s3033_s12 = smov %s2213_s13 }
 0x88b   : > { %p10_p13 = scmp.ge.s32.totalorder %s13_s18, 8   ;;  %s3034_s13 = smov %s2314_s8 }
 0x88c   : > { %s3035_s14 = smov %s2225_s16  ;;  %s3036_s15 = smov %s2229_s17 }
 0x88d   : > { %s3037_s16 = smov %s3040_s19  ;;  %s3038_s17 = smov %s3044_s20 }
 0x88e   :  { %12 = sbr.rel (!%p10_p13) target bundleno = 6 (0x6), region = 113 }

// kernel: _lambda_.8
= control target key start
LH: loop header
LB: loop body
LE: loop exit
PB: predicated region body
PF: predicated region fallthrough
CT: control target
= control target key end

     0   :  { %s1577_s12 = smov 0   ;;  %s1579_s13 = smov 0   ;;  %s1787_s0 = inlined_call_operand.vmem [shape: bf16[2,192,128], index: 0, kind: input, shape index: {}]   ;;  %s1788_s1 = inlined_call_operand.vmem [shape: bf16[2,128,256], index: 1, kind: input, shape index: {}]   ;;  %s1789_s2 = inlined_call_operand.vmem [shape: f32[1,256], index: 2, kind: input, shape index: {}]   ;;  %s1790_s3 = inlined_call_operand.vmem [shape: bf16[192,256], index: 3, kind: output, shape index: {}]  }
   0x1   :  { %s1581_s14 = smov 0  }
   0x2 LB: > { %s25_s15 = sadd.s32 1, %s1549_s13  ;;  %p1269_p0 = scmp.ge.s32.totalorder %s1553_s14, 1  ;;  %s1553_s14 = sphi %s1581_s14, %s13_s14   ;;  %s1549_s13 = sphi %s1579_s13, %s1792_s13   ;;  %s1545_s12 = sphi %s1577_s12, %s1791_s12  }
   0x3   : > { %p26_p1 = scmp.ge.s32.totalorder %s25_s15, 2  ;;  %p192_p2 = scmp.lt.s32.totalorder %s1553_s14, 3 }
   0x5   : > { %s1794_s15 = smov (%p26_p1, %s25_s15), 0  ;;  %p193_p3 = pnand %p1269_p0, %p192_p2 }
   0x6   : > { %p239_p4 = scmp.lt.s32.totalorder (!%p193_p3), %s1545_s12, 1  ;;  %p1273_p5 = scmp.ne.s32.totalorder (!%p193_p3), %s1545_s12, 0 }
   0x7   : > { %196 = sbr.rel (%p193_p3) target bundleno = 383 (0x17f), region = 32 }
   0xe   : > { %s240_s16 = scalar_select %p239_p4, %s1545_s12, 1 }
   0xf   : > { %279 = sbr.rel (%p1273_p5) target bundleno = 40 (0x28), region = 36  ;;  %v1555_v0 = vmov (!%p1273_p5), 0.0  }
  0x10   : > { %s1372_s17 = smul.u32 96, %s240_s16  ;;  %s1331_s18 = sshll.u32 %s240_s16, 7  ;;  %280 = vst [vmem:[#allocation2] sm:$0xff] (!%p1273_p5), %v1555_v0  ;;  %281 = vst [vmem:[#allocation2 + $0x8] sm:$0xff] (!%p1273_p5), %v1555_v0 }
  0x11   : > { %s1602_s21 = scalar_lea.vmem %s1788_s1, %s1331_s18  ;;  %282 = vst [vmem:[#allocation2 + $0x10] sm:$0xff] (!%p1273_p5), %v1555_v0  ;;  %283 = vst [vmem:[#allocation2 + $0x18] sm:$0xff] (!%p1273_p5), %v1555_v0 }
  0x12   : > { %s1607_s24 = scalar_lea.vmem %s1787_s0, %s1372_s17  ;;  %284 = vst [vmem:[#allocation2 + $0x20] sm:$0xff] (!%p1273_p5), %v1555_v0  ;;  %285 = vst [vmem:[#allocation2 + $0x28] sm:$0xff] (!%p1273_p5), %v1555_v0 }
  0x13   : > { %286 = vst [vmem:[#allocation2 + $0x30] sm:$0xff] (!%p1273_p5), %v1555_v0  ;;  %287 = vst [vmem:[#allocation2 + $0x38] sm:$0xff] (!%p1273_p5), %v1555_v0 }
  0x14   : > { %288 = vst [vmem:[#allocation2 + $0x40] sm:$0xff] (!%p1273_p5), %v1555_v0  ;;  %289 = vst [vmem:[#allocation2 + $0x48] sm:$0xff] (!%p1273_p5), %v1555_v0 }
  0x15   : > { %290 = vst [vmem:[#allocation2 + $0x50] sm:$0xff] (!%p1273_p5), %v1555_v0  ;;  %291 = vst [vmem:[#allocation2 + $0x58] sm:$0xff] (!%p1273_p5), %v1555_v0 }
  0x16   : > { %292 = vst [vmem:[#allocation2 + $0x60] sm:$0xff] %v1555_v0  ;;  %293 = vst [vmem:[#allocation2 + $0x68] sm:$0xff] %v1555_v0 }
  0x17   : > { %294 = vst [vmem:[#allocation2 + $0x70] sm:$0xff] %v1555_v0  ;;  %295 = vst [vmem:[#allocation2 + $0x78] sm:$0xff] %v1555_v0 }
  0x18   : > { %296 = vst [vmem:[#allocation2 + $0x80] sm:$0xff] %v1555_v0  ;;  %297 = vst [vmem:[#allocation2 + $0x88] sm:$0xff] %v1555_v0 }
  0x19   : > { %298 = vst [vmem:[#allocation2 + $0x90] sm:$0xff] %v1555_v0  ;;  %299 = vst [vmem:[#allocation2 + $0x98] sm:$0xff] %v1555_v0 }
  0x1a   : > { %300 = vst [vmem:[#allocation2 + $0xa0] sm:$0xff] %v1555_v0  ;;  %301 = vst [vmem:[#allocation2 + $0xa8] sm:$0xff] %v1555_v0 }
  0x1b   : > { %302 = vst [vmem:[#allocation2 + $0xb0] sm:$0xff] %v1555_v0  ;;  %303 = vst [vmem:[#allocation2 + $0xb8] sm:$0xff] %v1555_v0 }
  0x1c   : > { %304 = vst [vmem:[#allocation2 + $0xc0] sm:$0xff] %v1555_v0  ;;  %305 = vst [vmem:[#allocation2 + $0xc8] sm:$0xff] %v1555_v0 }
  0x1d   : > { %306 = vst [vmem:[#allocation2 + $0xd0] sm:$0xff] %v1555_v0  ;;  %307 = vst [vmem:[#allocation2 + $0xd8] sm:$0xff] %v1555_v0 }
  0x1e   : > { %308 = vst [vmem:[#allocation2 + $0xe0] sm:$0xff] %v1555_v0  ;;  %309 = vst [vmem:[#allocation2 + $0xe8] sm:$0xff] %v1555_v0 }
  0x1f   : > { %310 = vst [vmem:[#allocation2 + $0xf0] sm:$0xff] %v1555_v0  ;;  %311 = vst [vmem:[#allocation2 + $0xf8] sm:$0xff] %v1555_v0 }
  0x20   : > { %312 = vst [vmem:[#allocation2 + $0x100] sm:$0xff] %v1555_v0  ;;  %313 = vst [vmem:[#allocation2 + $0x108] sm:$0xff] %v1555_v0 }
  0x21   : > { %314 = vst [vmem:[#allocation2 + $0x110] sm:$0xff] %v1555_v0  ;;  %315 = vst [vmem:[#allocation2 + $0x118] sm:$0xff] %v1555_v0 }
  0x22   : > { %316 = vst [vmem:[#allocation2 + $0x120] sm:$0xff] %v1555_v0  ;;  %317 = vst [vmem:[#allocation2 + $0x128] sm:$0xff] %v1555_v0 }
  0x23   : > { %318 = vst [vmem:[#allocation2 + $0x130] sm:$0xff] %v1555_v0  ;;  %319 = vst [vmem:[#allocation2 + $0x138] sm:$0xff] %v1555_v0 }
  0x24   : > { %320 = vst [vmem:[#allocation2 + $0x140] sm:$0xff] %v1555_v0  ;;  %321 = vst [vmem:[#allocation2 + $0x148] sm:$0xff] %v1555_v0 }
  0x25   : > { %322 = vst [vmem:[#allocation2 + $0x150] sm:$0xff] %v1555_v0  ;;  %323 = vst [vmem:[#allocation2 + $0x158] sm:$0xff] %v1555_v0 }
  0x26   : > { %324 = vst [vmem:[#allocation2 + $0x160] sm:$0xff] %v1555_v0  ;;  %325 = vst [vmem:[#allocation2 + $0x168] sm:$0xff] %v1555_v0 }
  0x27   : > { %326 = vst [vmem:[#allocation2 + $0x170] sm:$0xff] %v1555_v0  ;;  %327 = vst [vmem:[#allocation2 + $0x178] sm:$0xff] %v1555_v0 }
  0x28 PF: > { %v1399_v1 = vld [vmem:[%s1602_s21 + $0x4] ss:$8 sps:$4 sm:$0xff]   ;;  %v1401_v2 = vld [vmem:[%s1602_s21] ss:$8 sps:$4 sm:$0xff]   ;;  %v1556_v3 = vmov 0   ;;  %v1424_v19 = vld [vmem:[%s1607_s24 + $0x30] sm:$0xff]  }
  0x29   : > { %600 = vmatprep.mubr.bf16.mxu0 %v1556_v3  ;;  %660 = vmatprep.mubr.bf16.mxu1 %v1556_v3  ;;  %v1402_v4 = vld [vmem:[%s1602_s21 + $0x14] ss:$8 sps:$4 sm:$0xff]   ;;  %v1404_v5 = vld [vmem:[%s1602_s21 + $0x10] ss:$8 sps:$4 sm:$0xff]   ;;  %v1405_v6 = vld [vmem:[%s1602_s21 + $0x24] ss:$8 sps:$4 sm:$0xff]  }
  0x2a   : > { %568 = vmatprep.subr.bf16.mxu0 %v1399_v1  ;;  %1356 = vmatprep.subr.bf16.mxu1 %v1399_v1  ;;  %v1407_v7 = vld [vmem:[%s1602_s21 + $0x20] ss:$8 sps:$4 sm:$0xff]   ;;  %v1408_v8 = vld [vmem:[%s1602_s21 + $0x34] ss:$8 sps:$4 sm:$0xff]   ;;  %v1410_v9 = vld [vmem:[%s1602_s21 + $0x30] ss:$8 sps:$4 sm:$0xff]  }
  0x2b   : > { %569 = vmatpush1.bf16.msra.mxu0 %v1401_v2  ;;  %1364 = vmatpush1.bf16.msra.mxu1 %v1401_v2  ;;  %v1411_v10 = vld [vmem:[%s1602_s21 + $0x44] ss:$8 sps:$4 sm:$0xff]   ;;  %v1413_v11 = vld [vmem:[%s1602_s21 + $0x40] ss:$8 sps:$4 sm:$0xff]   ;;  %v1414_v12 = vld [vmem:[%s1602_s21 + $0x54] ss:$8 sps:$4 sm:$0xff]  }
  0x2c   : > { %570 = vmatprep.subr.bf16.mxu0 %v1402_v4  ;;  %1357 = vmatprep.subr.bf16.mxu1 %v1402_v4  ;;  %v1416_v13 = vld [vmem:[%s1602_s21 + $0x50] ss:$8 sps:$4 sm:$0xff]   ;;  %v1417_v14 = vld [vmem:[%s1602_s21 + $0x64] ss:$8 sps:$4 sm:$0xff]   ;;  %v1419_v15 = vld [vmem:[%s1602_s21 + $0x60] ss:$8 sps:$4 sm:$0xff]  }
  0x2d   : > { %v1420_v16 = vld [vmem:[%s1602_s21 + $0x74] ss:$8 sps:$4 sm:$0xff]   ;;  %v1422_v17 = vld [vmem:[%s1602_s21 + $0x70] ss:$8 sps:$4 sm:$0xff]   ;;  %v1423_v18 = vld [vmem:[%s1607_s24] sm:$0xff]   ;;  %p1302_p6 = scmp.ne.s32.totalorder %s1545_s12, 1 }
  0x2e   : > { %v1425_v20 = vld [vmem:[%s1607_s24 + $0x8] sm:$0xff]   ;;  %v1426_v21 = vld [vmem:[%s1607_s24 + $0x38] sm:$0xff]   ;;  %v1427_v22 = vld [vmem:[%s1607_s24 + $0x10] sm:$0xff]  }
  0x2f   : > { %571 = vmatpush1.bf16.msra.mxu0 %v1404_v5  ;;  %1365 = vmatpush1.bf16.msra.mxu1 %v1404_v5  ;;  %v1428_v23 = vld [vmem:[%s1607_s24 + $0x40] sm:$0xff]   ;;  %v1429_v24 = vld [vmem:[%s1607_s24 + $0x18] sm:$0xff]   ;;  %v1430_v25 = vld [vmem:[%s1607_s24 + $0x48] sm:$0xff]  }
  0x30   : > { %572 = vmatprep.subr.bf16.mxu0 %v1405_v6  ;;  %1358 = vmatprep.subr.bf16.mxu1 %v1405_v6  ;;  %v1431_v26 = vld [vmem:[%s1607_s24 + $0x20] sm:$0xff]   ;;  %v1432_v27 = vld [vmem:[%s1607_s24 + $0x50] sm:$0xff]   ;;  %v1433_v28 = vld [vmem:[%s1607_s24 + $0x28] sm:$0xff]  }
  0x31   : > { %v1434_v29 = vld [vmem:[%s1607_s24 + $0x58] sm:$0xff]   ;;  %v328_v30 = vld [vmem:[#allocation2] sm:$0xff]  ;;  %v329_v32 = vld [vmem:[#allocation2 + $0x8] sm:$0xff] }
  0x32   : > { %v352_v31 = vld [vmem:[#allocation2 + $0xc0] sm:$0xff]  ;;  %v353_v33 = vld [vmem:[#allocation2 + $0xc8] sm:$0xff]  ;;  %v330_v36 = vld [vmem:[#allocation2 + $0x10] sm:$0xff] }
  0x33   : > { %573 = vmatpush1.bf16.msra.mxu0 %v1407_v7  ;;  %1366 = vmatpush1.bf16.msra.mxu1 %v1407_v7  ;;  %v354_v37 = vld [vmem:[#allocation2 + $0xd0] sm:$0xff]  ;;  %v331_v42 = vld [vmem:[#allocation2 + $0x18] sm:$0xff]  ;;  %v332_v54 = vld [vmem:[#allocation2 + $0x20] sm:$0xff] }
  0x34   : > { %574 = vmatprep.subr.bf16.mxu0 %v1408_v8  ;;  %1359 = vmatprep.subr.bf16.mxu1 %v1408_v8  ;;  %v355_v43 = vld [vmem:[#allocation2 + $0xd8] sm:$0xff]  ;;  %v356_v55 = vld [vmem:[#allocation2 + $0xe0] sm:$0xff]  ;;  %v333_v56 = vld [vmem:[#allocation2 + $0x28] sm:$0xff] }
  0x35   : > { %v357_v57 = vld [vmem:[#allocation2 + $0xe8] sm:$0xff]  ;;  %v334_v60 = vld [vmem:[#allocation2 + $0x30] sm:$0xff]  ;;  %v335_v2 = vld [vmem:[#allocation2 + $0x38] sm:$0xff] }
  0x36   : > { %v358_v61 = vld [vmem:[#allocation2 + $0xf0] sm:$0xff] }
  0x37   : > { %575 = vmatpush1.bf16.msra.mxu0 %v1410_v9  ;;  %1367 = vmatpush1.bf16.msra.mxu1 %v1410_v9 }
  0x38   : > { %576 = vmatprep.subr.bf16.mxu0 %v1411_v10  ;;  %1360 = vmatprep.subr.bf16.mxu1 %v1411_v10 }
  0x3b   : > { %577 = vmatpush1.bf16.msra.mxu0 %v1413_v11  ;;  %1368 = vmatpush1.bf16.msra.mxu1 %v1413_v11 }
  0x3c   : > { %578 = vmatprep.subr.bf16.mxu0 %v1414_v12  ;;  %1361 = vmatprep.subr.bf16.mxu1 %v1414_v12 }
  0x3f   : > { %579 = vmatpush1.bf16.msra.mxu0 %v1416_v13  ;;  %1369 = vmatpush1.bf16.msra.mxu1 %v1416_v13 }
  0x40   : > { %580 = vmatprep.subr.bf16.mxu0 %v1417_v14  ;;  %1362 = vmatprep.subr.bf16.mxu1 %v1417_v14  ;;  %v336_v14 = vld [vmem:[#allocation2 + $0x40] sm:$0xff] }
  0x43   : > { %581 = vmatpush1.bf16.msra.mxu0 %v1419_v15  ;;  %1370 = vmatpush1.bf16.msra.mxu1 %v1419_v15  ;;  %v360_v15 = vld [vmem:[#allocation2 + $0x100] sm:$0xff] }
  0x44   : > { %582 = vmatprep.subr.bf16.mxu0 %v1420_v16  ;;  %1363 = vmatprep.subr.bf16.mxu1 %v1420_v16  ;;  %v337_v16 = vld [vmem:[#allocation2 + $0x48] sm:$0xff] }
  0x47   : > { %583 = vmatpush1.bf16.msra.mxu0 %v1422_v17  ;;  %1371 = vmatpush1.bf16.msra.mxu1 %v1422_v17  ;;  %v361_v17 = vld [vmem:[#allocation2 + $0x108] sm:$0xff] }
  0x4a   : > { %601 = vmatmul.mubr.bf16.vlgmr.msra.gmra.mrb[0].mxu0 %v1423_v18  ;;  %661 = vmatmul.mubr.bf16.vlgmr.msra.gmra.mrb[0].mxu1 %v1424_v19 }
  0x4b   : > { %610 = vmatprep.mubr.bf16.mxu0 %v1556_v3  ;;  %670 = vmatprep.mubr.bf16.mxu1 %v1556_v3 }
  0x52   : > { %611 = vmatmul.mubr.bf16.gmra.mrb[4].mxu0 %v1425_v20  ;;  %671 = vmatmul.mubr.bf16.gmra.mrb[4].mxu1 %v1426_v21  ;;  %v338_v20 = vld [vmem:[#allocation2 + $0x50] sm:$0xff] }
  0x53   : > { %620 = vmatprep.mubr.bf16.mxu0 %v1556_v3  ;;  %680 = vmatprep.mubr.bf16.mxu1 %v1556_v3  ;;  %v362_v21 = vld [vmem:[#allocation2 + $0x110] sm:$0xff] }
  0x5a   : > { %621 = vmatmul.mubr.bf16.gmra.mrb[8].mxu0 %v1427_v22  ;;  %681 = vmatmul.mubr.bf16.gmra.mrb[8].mxu1 %v1428_v23 }
  0x5b   : > { %630 = vmatprep.mubr.bf16.mxu0 %v1556_v3  ;;  %690 = vmatprep.mubr.bf16.mxu1 %v1556_v3 }
  0x62   : > { %631 = vmatmul.mubr.bf16.gmra.mrb[12].mxu0 %v1429_v24  ;;  %691 = vmatmul.mubr.bf16.gmra.mrb[12].mxu1 %v1430_v25 }
  0x63   : > { %640 = vmatprep.mubr.bf16.mxu0 %v1556_v3  ;;  %700 = vmatprep.mubr.bf16.mxu1 %v1556_v3 }
  0x6a   : > { %641 = vmatmul.mubr.bf16.gmra.mrb[16].mxu0 %v1431_v26  ;;  %701 = vmatmul.mubr.bf16.gmra.mrb[16].mxu1 %v1432_v27  ;;  %v339_v26 = vld [vmem:[#allocation2 + $0x58] sm:$0xff] }
  0x6b   : > { %650 = vmatprep.mubr.bf16.mxu0 %v1556_v3  ;;  %710 = vmatprep.mubr.bf16.mxu1 %v1556_v3  ;;  %v359_v3 = vld [vmem:[#allocation2 + $0xf8] sm:$0xff] }
  0x6c   : > { %v363_v27 = vld [vmem:[#allocation2 + $0x118] sm:$0xff] }
  0x72   : > { %651 = vmatmul.mubr.bf16.gmra.mrb[20].mxu0 %v1433_v28  ;;  %711 = vmatmul.mubr.bf16.gmra.mrb[20].mxu1 %v1434_v29 }
 0x11d   : > { %v602_v34 = vpop.f32.mrb[0].mxu0  ;;  %v662_v35 = vpop.f32.mrb[0].mxu1 }
 0x11e   : > { %v721_v38 = vadd.f32 %v602_v34, %v328_v30  ;;  %v745_v39 = vadd.f32 %v662_v35, %v352_v31  ;;  %v604_v40 = vpop.f32.mrb[1].mxu0  ;;  %v664_v41 = vpop.f32.mrb[1].mxu1 }
 0x11f   : > { %v722_v44 = vadd.f32 %v604_v40, %v329_v32  ;;  %v746_v45 = vadd.f32 %v664_v41, %v353_v33  ;;  %v606_v46 = vpop.f32.mrb[2].mxu0  ;;  %v666_v47 = vpop.f32.mrb[2].mxu1  ;;  %v341_v40 = vld [vmem:[#allocation2 + $0x68] sm:$0xff] }
 0x120   : > { %769 = vst [vmem:[#allocation2] sm:$0xff] %v721_v38  ;;  %793 = vst [vmem:[#allocation2 + $0xc0] sm:$0xff] %v745_v39  ;;  %v723_v48 = vadd.f32 %v606_v46, %v330_v36  ;;  %v747_v49 = vadd.f32 %v666_v47, %v354_v37  ;;  %v608_v50 = vpop.f32.mrb[3].mxu0  ;;  %v668_v51 = vpop.f32.mrb[3].mxu1  ;;  %v340_v38 = vld [vmem:[#allocation2 + $0x60] sm:$0xff]  ;;  %v365_v41 = vld [vmem:[#allocation2 + $0x128] sm:$0xff] }
 0x121   : > { %770 = vst [vmem:[#allocation2 + $0x8] sm:$0xff] %v722_v44  ;;  %794 = vst [vmem:[#allocation2 + $0xc8] sm:$0xff] %v746_v45  ;;  %v724_v52 = vadd.f32 %v608_v50, %v331_v42  ;;  %v748_v53 = vadd.f32 %v668_v51, %v355_v43  ;;  %v364_v39 = vld [vmem:[#allocation2 + $0x120] sm:$0xff]  ;;  %v342_v44 = vld [vmem:[#allocation2 + $0x70] sm:$0xff] }
 0x122   : > { %771 = vst [vmem:[#allocation2 + $0x10] sm:$0xff] %v723_v48  ;;  %795 = vst [vmem:[#allocation2 + $0xd0] sm:$0xff] %v747_v49  ;;  %v366_v45 = vld [vmem:[#allocation2 + $0x130] sm:$0xff]  ;;  %v343_v50 = vld [vmem:[#allocation2 + $0x78] sm:$0xff] }
 0x123   : > { %772 = vst [vmem:[#allocation2 + $0x18] sm:$0xff] %v724_v52  ;;  %796 = vst [vmem:[#allocation2 + $0xd8] sm:$0xff] %v748_v53  ;;  %v367_v51 = vld [vmem:[#allocation2 + $0x138] sm:$0xff] }
 0x125   : > { %v612_v58 = vpop.f32.mrb[4].mxu0  ;;  %v672_v59 = vpop.f32.mrb[4].mxu1 }
 0x126   : > { %v725_v62 = vadd.f32 %v612_v58, %v332_v54  ;;  %v749_v63 = vadd.f32 %v672_v59, %v356_v55  ;;  %v614_v0 = vpop.f32.mrb[5].mxu0  ;;  %v674_v1 = vpop.f32.mrb[5].mxu1 }
 0x127   : > { %v726_v4 = vadd.f32 %v614_v0, %v333_v56  ;;  %v750_v5 = vadd.f32 %v674_v1, %v357_v57  ;;  %v616_v6 = vpop.f32.mrb[6].mxu0  ;;  %v676_v7 = vpop.f32.mrb[6].mxu1  ;;  %v345_v0 = vld [vmem:[#allocation2 + $0x88] sm:$0xff] }
 0x128   : > { %773 = vst [vmem:[#allocation2 + $0x20] sm:$0xff] %v725_v62  ;;  %797 = vst [vmem:[#allocation2 + $0xe0] sm:$0xff] %v749_v63  ;;  %v727_v8 = vadd.f32 %v616_v6, %v334_v60  ;;  %v751_v9 = vadd.f32 %v676_v7, %v358_v61  ;;  %v618_v10 = vpop.f32.mrb[7].mxu0  ;;  %v678_v11 = vpop.f32.mrb[7].mxu1  ;;  %v344_v62 = vld [vmem:[#allocation2 + $0x80] sm:$0xff]  ;;  %v369_v1 = vld [vmem:[#allocation2 + $0x148] sm:$0xff] }
 0x129   : > { %774 = vst [vmem:[#allocation2 + $0x28] sm:$0xff] %v726_v4  ;;  %798 = vst [vmem:[#allocation2 + $0xe8] sm:$0xff] %v750_v5  ;;  %v728_v12 = vadd.f32 %v618_v10, %v335_v2  ;;  %v752_v13 = vadd.f32 %v678_v11, %v359_v3  ;;  %v368_v63 = vld [vmem:[#allocation2 + $0x140] sm:$0xff]  ;;  %v346_v4 = vld [vmem:[#allocation2 + $0x90] sm:$0xff] }
 0x12a   : > { %775 = vst [vmem:[#allocation2 + $0x30] sm:$0xff] %v727_v8  ;;  %799 = vst [vmem:[#allocation2 + $0xf0] sm:$0xff] %v751_v9  ;;  %v370_v5 = vld [vmem:[#allocation2 + $0x150] sm:$0xff]  ;;  %v347_v10 = vld [vmem:[#allocation2 + $0x98] sm:$0xff] }
 0x12b   : > { %776 = vst [vmem:[#allocation2 + $0x38] sm:$0xff] %v728_v12  ;;  %800 = vst [vmem:[#allocation2 + $0xf8] sm:$0xff] %v752_v13  ;;  %v371_v11 = vld [vmem:[#allocation2 + $0x158] sm:$0xff] }
 0x12d   : > { %v622_v18 = vpop.f32.mrb[8].mxu0  ;;  %v682_v19 = vpop.f32.mrb[8].mxu1 }
 0x12e   : > { %v729_v22 = vadd.f32 %v622_v18, %v336_v14  ;;  %v753_v23 = vadd.f32 %v682_v19, %v360_v15  ;;  %v624_v24 = vpop.f32.mrb[9].mxu0  ;;  %v684_v25 = vpop.f32.mrb[9].mxu1 }
 0x12f   : > { %v730_v28 = vadd.f32 %v624_v24, %v337_v16  ;;  %v754_v29 = vadd.f32 %v684_v25, %v361_v17  ;;  %v626_v30 = vpop.f32.mrb[10].mxu0  ;;  %v686_v31 = vpop.f32.mrb[10].mxu1  ;;  %v349_v24 = vld [vmem:[#allocation2 + $0xa8] sm:$0xff] }
 0x130   : > { %777 = vst [vmem:[#allocation2 + $0x40] sm:$0xff] %v729_v22  ;;  %801 = vst [vmem:[#allocation2 + $0x100] sm:$0xff] %v753_v23  ;;  %v731_v32 = vadd.f32 %v626_v30, %v338_v20  ;;  %v755_v33 = vadd.f32 %v686_v31, %v362_v21  ;;  %v628_v34 = vpop.f32.mrb[11].mxu0  ;;  %v688_v35 = vpop.f32.mrb[11].mxu1  ;;  %v348_v22 = vld [vmem:[#allocation2 + $0xa0] sm:$0xff]  ;;  %v373_v25 = vld [vmem:[#allocation2 + $0x168] sm:$0xff] }
 0x131   : > { %778 = vst [vmem:[#allocation2 + $0x48] sm:$0xff] %v730_v28  ;;  %802 = vst [vmem:[#allocation2 + $0x108] sm:$0xff] %v754_v29  ;;  %v732_v36 = vadd.f32 %v628_v34, %v339_v26  ;;  %v756_v37 = vadd.f32 %v688_v35, %v363_v27  ;;  %v372_v23 = vld [vmem:[#allocation2 + $0x160] sm:$0xff]  ;;  %v350_v28 = vld [vmem:[#allocation2 + $0xb0] sm:$0xff] }
 0x132   : > { %779 = vst [vmem:[#allocation2 + $0x50] sm:$0xff] %v731_v32  ;;  %803 = vst [vmem:[#allocation2 + $0x110] sm:$0xff] %v755_v33  ;;  %v374_v29 = vld [vmem:[#allocation2 + $0x170] sm:$0xff]  ;;  %v351_v34 = vld [vmem:[#allocation2 + $0xb8] sm:$0xff] }
 0x133   : > { %780 = vst [vmem:[#allocation2 + $0x58] sm:$0xff] %v732_v36  ;;  %804 = vst [vmem:[#allocation2 + $0x118] sm:$0xff] %v756_v37  ;;  %v375_v35 = vld [vmem:[#allocation2 + $0x178] sm:$0xff] }
 0x135   : > { %v632_v42 = vpop.f32.mrb[12].mxu0  ;;  %v692_v43 = vpop.f32.mrb[12].mxu1 }
 0x136   : > { %v733_v46 = vadd.f32 %v632_v42, %v340_v38  ;;  %v757_v47 = vadd.f32 %v692_v43, %v364_v39  ;;  %v634_v48 = vpop.f32.mrb[13].mxu0  ;;  %v694_v49 = vpop.f32.mrb[13].mxu1 }
 0x137   : > { %v734_v52 = vadd.f32 %v634_v48, %v341_v40  ;;  %v758_v53 = vadd.f32 %v694_v49, %v365_v41  ;;  %v636_v54 = vpop.f32.mrb[14].mxu0  ;;  %v696_v55 = vpop.f32.mrb[14].mxu1  ;;  %v869_v48 = vld [vmem:[%s1789_s2] sm:$0x3] (!%p1302_p6) }
 0x138   : > { %781 = vst [vmem:[#allocation2 + $0x60] sm:$0xff] %v733_v46  ;;  %805 = vst [vmem:[#allocation2 + $0x120] sm:$0xff] %v757_v47  ;;  %v735_v56 = vadd.f32 %v636_v54, %v342_v44  ;;  %v759_v57 = vadd.f32 %v696_v55, %v366_v45  ;;  %v638_v58 = vpop.f32.mrb[15].mxu0  ;;  %v698_v59 = vpop.f32.mrb[15].mxu1  ;;  %v871_v46 = vlaneseq (!%p1302_p6) }
 0x139   : > { %782 = vst [vmem:[#allocation2 + $0x68] sm:$0xff] %v734_v52  ;;  %806 = vst [vmem:[#allocation2 + $0x128] sm:$0xff] %v758_v53  ;;  %v736_v60 = vadd.f32 %v638_v58, %v343_v50  ;;  %v760_v61 = vadd.f32 %v698_v59, %v367_v51  ;;  %v821_v51 = vld [vmem:[#allocation2] sm:$0xff] (!%p1302_p6)  ;;  %v822_v52 = vld [vmem:[#allocation2 + $0x8] sm:$0xff] (!%p1302_p6) }
 0x13a   : > { %783 = vst [vmem:[#allocation2 + $0x70] sm:$0xff] %v735_v56  ;;  %807 = vst [vmem:[#allocation2 + $0x130] sm:$0xff] %v759_v57  ;;  %v872_v47 = vshrl.u32 (!%p1302_p6), %v871_v46, 7  ;;  %v823_v53 = vld [vmem:[#allocation2 + $0x10] sm:$0xff] (!%p1302_p6)  ;;  %v824_v56 = vld [vmem:[#allocation2 + $0x18] sm:$0xff] (!%p1302_p6) }
 0x13b   : > { %784 = vst [vmem:[#allocation2 + $0x78] sm:$0xff] %v736_v60  ;;  %808 = vst [vmem:[#allocation2 + $0x138] sm:$0xff] %v760_v61  ;;  %v825_v57 = vld [vmem:[#allocation2 + $0x20] sm:$0xff] (!%p1302_p6)  ;;  %v826_v61 = vld [vmem:[#allocation2 + $0x28] sm:$0xff] (!%p1302_p6) }
 0x13c   : > { %v873_v49 = vsub.s32 (!%p1302_p6), 0, %v872_v47  ;;  %v877_v50 = vsub.s32 (!%p1302_p6), 1, %v872_v47  ;;  %v845_v46 = vld [vmem:[#allocation2 + $0xc0] sm:$0xff] (!%p1302_p6) }
 0x13d   : > { %v642_v2 = vpop.f32.mrb[16].mxu0  ;;  %v702_v3 = vpop.f32.mrb[16].mxu1 }
 0x13e   : > { %v737_v6 = vadd.f32 %v642_v2, %v344_v62  ;;  %v761_v7 = vadd.f32 %v702_v3, %v368_v63  ;;  %v644_v8 = vpop.f32.mrb[17].mxu0  ;;  %v704_v9 = vpop.f32.mrb[17].mxu1  ;;  %v1654_v54 = vrot.slane (!%p1302_p6), %v869_v48, %v873_v49  ;;  %v1656_v55 = vrot.slane (!%p1302_p6), %v869_v48, %v877_v50  ;;  %v827_v63 = vld [vmem:[#allocation2 + $0x30] sm:$0xff] (!%p1302_p6)  ;;  %v829_v3 = vld [vmem:[#allocation2 + $0x40] sm:$0xff] (!%p1302_p6)  ;;  %v846_v50 = vld [vmem:[#allocation2 + $0xc8] sm:$0xff] (!%p1302_p6) }
 0x13f   : > { %v738_v12 = vadd.f32 %v644_v8, %v345_v0  ;;  %v762_v13 = vadd.f32 %v704_v9, %v369_v1  ;;  %v646_v14 = vpop.f32.mrb[18].mxu0  ;;  %v706_v15 = vpop.f32.mrb[18].mxu1  ;;  %v828_v1 = vld [vmem:[#allocation2 + $0x38] sm:$0xff] (!%p1302_p6) }
 0x140   : > { %785 = vst [vmem:[#allocation2 + $0x80] sm:$0xff] %v737_v6  ;;  %809 = vst [vmem:[#allocation2 + $0x140] sm:$0xff] %v761_v7  ;;  %v739_v16 = vadd.f32 %v646_v14, %v346_v4  ;;  %v763_v17 = vadd.f32 %v706_v15, %v370_v5  ;;  %v648_v18 = vpop.f32.mrb[19].mxu0  ;;  %v708_v19 = vpop.f32.mrb[19].mxu1  ;;  %v881_v58 = vadd.f32 (!%p1302_p6), %v1654_v54, %v821_v51  ;;  %v830_v5 = vld [vmem:[#allocation2 + $0x48] sm:$0xff] (!%p1302_p6)  ;;  %v831_v7 = vld [vmem:[#allocation2 + $0x50] sm:$0xff] (!%p1302_p6) }
 0x141   : > { %786 = vst [vmem:[#allocation2 + $0x88] sm:$0xff] %v738_v12  ;;  %810 = vst [vmem:[#allocation2 + $0x148] sm:$0xff] %v762_v13  ;;  %v740_v20 = vadd.f32 %v648_v18, %v347_v10  ;;  %v764_v21 = vadd.f32 %v708_v19, %v371_v11  ;;  %v882_v59 = vadd.f32 (!%p1302_p6), %v1656_v55, %v822_v52  ;;  %v832_v9 = vld [vmem:[#allocation2 + $0x58] sm:$0xff] (!%p1302_p6)  ;;  %v833_v11 = vld [vmem:[#allocation2 + $0x60] sm:$0xff] (!%p1302_p6) }
 0x142   : > { %787 = vst [vmem:[#allocation2 + $0x90] sm:$0xff] %v739_v16  ;;  %811 = vst [vmem:[#allocation2 + $0x150] sm:$0xff] %v763_v17  ;;  %v883_v60 = vadd.f32 (!%p1302_p6), %v1654_v54, %v823_v53  ;;  %v884_v62 = vadd.f32 (!%p1302_p6), %v1656_v55, %v824_v56  ;;  %1435 = vtanh.f32 (!%p1302_p6), %v881_v58  ;;  %v885_v0 = vadd.f32 (!%p1302_p6), %v1654_v54, %v825_v57  ;;  %v834_v13 = vld [vmem:[#allocation2 + $0x68] sm:$0xff] (!%p1302_p6)  ;;  %v835_v15 = vld [vmem:[#allocation2 + $0x70] sm:$0xff] (!%p1302_p6) }
 0x143   : > { %788 = vst [vmem:[#allocation2 + $0x98] sm:$0xff] %v740_v20  ;;  %812 = vst [vmem:[#allocation2 + $0x158] sm:$0xff] %v764_v21  ;;  %1437 = vtanh.f32 (!%p1302_p6), %v882_v59  ;;  %v886_v2 = vadd.f32 (!%p1302_p6), %v1656_v55, %v826_v61  ;;  %v887_v4 = vadd.f32 (!%p1302_p6), %v1654_v54, %v827_v63  ;;  %v888_v6 = vadd.f32 (!%p1302_p6), %v1656_v55, %v828_v1  ;;  %v836_v17 = vld [vmem:[#allocation2 + $0x78] sm:$0xff] (!%p1302_p6)  ;;  %v847_v53 = vld [vmem:[#allocation2 + $0xd0] sm:$0xff] (!%p1302_p6) }
 0x144   : > { %1439 = vtanh.f32 (!%p1302_p6), %v883_v60  ;;  %v889_v8 = vadd.f32 (!%p1302_p6), %v1654_v54, %v829_v3  ;;  %v890_v10 = vadd.f32 (!%p1302_p6), %v1656_v55, %v830_v5  ;;  %v891_v12 = vadd.f32 (!%p1302_p6), %v1654_v54, %v831_v7  ;;  %v848_v59 = vld [vmem:[#allocation2 + $0xd8] sm:$0xff] (!%p1302_p6)  ;;  %v851_v5 = vld [vmem:[#allocation2 + $0xf0] sm:$0xff] (!%p1302_p6) }
 0x145   : > { %v652_v26 = vpop.f32.mrb[20].mxu0  ;;  %v712_v27 = vpop.f32.mrb[20].mxu1  ;;  %820 = sbr.rel (%p1302_p6) target bundleno = 383 (0x17f), region = 40  ;;  %1441 = vtanh.f32 (!%p1302_p6), %v884_v62  ;;  %v892_v14 = vadd.f32 (!%p1302_p6), %v1656_v55, %v832_v9  ;;  %v893_v16 = vadd.f32 (!%p1302_p6), %v1654_v54, %v833_v11  ;;  %v894_v18 = vadd.f32 (!%p1302_p6), %v1656_v55, %v834_v13  ;;  %v849_v62 = vld [vmem:[#allocation2 + $0xe0] sm:$0xff] (!%p1302_p6)  ;;  %v852_v9 = vld [vmem:[#allocation2 + $0xf8] sm:$0xff] (!%p1302_p6) }
 0x146   : > { %v741_v30 = vadd.f32 %v652_v26, %v348_v22  ;;  %v765_v31 = vadd.f32 %v712_v27, %v372_v23  ;;  %v654_v32 = vpop.f32.mrb[21].mxu0  ;;  %v714_v33 = vpop.f32.mrb[21].mxu1  ;;  %1443 = vtanh.f32 (!%p1302_p6), %v885_v0  ;;  %v895_v21 = vadd.f32 (!%p1302_p6), %v1654_v54, %v835_v15 }
 0x147   : > { %v742_v36 = vadd.f32 %v654_v32, %v349_v24  ;;  %v766_v37 = vadd.f32 %v714_v33, %v373_v25  ;;  %v656_v38 = vpop.f32.mrb[22].mxu0  ;;  %v716_v39 = vpop.f32.mrb[22].mxu1  ;;  %1445 = vtanh.f32 (!%p1302_p6), %v886_v2  ;;  %v837_v19 = vld [vmem:[#allocation2 + $0x80] sm:$0xff] (!%p1302_p6)  ;;  %v896_v24 = vadd.f32 (!%p1302_p6), %v1656_v55, %v836_v17  ;;  %v850_v2 = vld [vmem:[#allocation2 + $0xe8] sm:$0xff] (!%p1302_p6) }
 0x148   : > { %789 = vst [vmem:[#allocation2 + $0xa0] sm:$0xff] %v741_v30  ;;  %813 = vst [vmem:[#allocation2 + $0x160] sm:$0xff] %v765_v31  ;;  %v743_v40 = vadd.f32 %v656_v38, %v350_v28  ;;  %v767_v41 = vadd.f32 %v716_v39, %v374_v29  ;;  %v658_v42 = vpop.f32.mrb[23].mxu0  ;;  %v718_v43 = vpop.f32.mrb[23].mxu1  ;;  %1447 = vtanh.f32 (!%p1302_p6), %v887_v4  ;;  %v838_v22 = vld [vmem:[#allocation2 + $0x88] sm:$0xff] (!%p1302_p6)  ;;  %v897_v28 = vadd.f32 (!%p1302_p6), %v1654_v54, %v837_v19  ;;  %v855_v19 = vld [vmem:[#allocation2 + $0x110] sm:$0xff] (!%p1302_p6) }
 0x149   : > { %790 = vst [vmem:[#allocation2 + $0xa8] sm:$0xff] %v742_v36  ;;  %814 = vst [vmem:[#allocation2 + $0x168] sm:$0xff] %v766_v37  ;;  %v744_v44 = vadd.f32 %v658_v42, %v351_v34  ;;  %v768_v45 = vadd.f32 %v718_v43, %v375_v35  ;;  %1449 = vtanh.f32 (!%p1302_p6), %v888_v6  ;;  %v839_v25 = vld [vmem:[#allocation2 + $0x90] sm:$0xff] (!%p1302_p6)  ;;  %v898_v31 = vadd.f32 (!%p1302_p6), %v1656_v55, %v838_v22 }
 0x14a   : > { %791 = vst [vmem:[#allocation2 + $0xb0] sm:$0xff] %v743_v40  ;;  %815 = vst [vmem:[#allocation2 + $0x170] sm:$0xff] %v767_v41  ;;  %1451 = vtanh.f32 (!%p1302_p6), %v889_v8  ;;  %v840_v29 = vld [vmem:[#allocation2 + $0x98] sm:$0xff] (!%p1302_p6)  ;;  %v899_v35 = vadd.f32 (!%p1302_p6), %v1654_v54, %v839_v25  ;;  %v905_v58 = vadd.f32 (!%p1302_p6), %v1654_v54, %v845_v46  ;;  %v906_v61 = vadd.f32 (!%p1302_p6), %v1656_v55, %v846_v50 }
 0x14b   : > { %792 = vst [vmem:[#allocation2 + $0xb8] sm:$0xff] %v744_v44  ;;  %816 = vst [vmem:[#allocation2 + $0x178] sm:$0xff] %v768_v45  ;;  %1453 = vtanh.f32 (!%p1302_p6), %v890_v10  ;;  %v900_v38 = vadd.f32 (!%p1302_p6), %v1656_v55, %v840_v29  ;;  %v907_v1 = vadd.f32 (!%p1302_p6), %v1654_v54, %v847_v53  ;;  %v908_v4 = vadd.f32 (!%p1302_p6), %v1656_v55, %v848_v59 }
 0x14c   : > { %v1436_v20 = vpop.eup %1435  ;;  %1455 = vtanh.f32 %v891_v12  ;;  %v909_v8 = vadd.f32 %v1654_v54, %v849_v62  ;;  %v910_v11 = vadd.f32 %v1656_v55, %v850_v2  ;;  %v853_v12 = vld [vmem:[#allocation2 + $0x100] sm:$0xff]  ;;  %v911_v15 = vadd.f32 %v1654_v54, %v851_v5 }
 0x14d   : > { %v1438_v23 = vpop.eup %1437  ;;  %1457 = vtanh.f32 %v892_v14  ;;  %v913_v22 = vadd.f32 %v1654_v54, %v853_v12  ;;  %v915_v29 = vadd.f32 %v1654_v54, %v855_v19 }
 0x14e   : > { %v1440_v26 = vpop.eup %1439  ;;  %v1332_v27 = vpack.c.bf16 %v1438_v23, %v1436_v20  ;;  %1459 = vtanh.f32 %v893_v16  ;;  %v854_v16 = vld [vmem:[#allocation2 + $0x108] sm:$0xff]  ;;  %v856_v23 = vld [vmem:[#allocation2 + $0x118] sm:$0xff] }
 0x14f   : > { %v1442_v30 = vpop.eup %1441  ;;  %1461 = vtanh.f32 %v894_v18  ;;  %v841_v32 = vld [vmem:[#allocation2 + $0xa0] sm:$0xff]  ;;  %v912_v18 = vadd.f32 %v1656_v55, %v852_v9  ;;  %v914_v25 = vadd.f32 %v1656_v55, %v854_v16 }
 0x150   : > { %v1444_v33 = vpop.eup %1443  ;;  %1121 = vst [vmem:[%s1790_s3] sm:$0xff] %v1332_v27  ;;  %v1333_v34 = vpack.c.bf16 %v1442_v30, %v1440_v26  ;;  %1463 = vtanh.f32 %v895_v21  ;;  %v842_v36 = vld [vmem:[#allocation2 + $0xa8] sm:$0xff]  ;;  %v901_v42 = vadd.f32 %v1654_v54, %v841_v32  ;;  %v857_v26 = vld [vmem:[#allocation2 + $0x120] sm:$0xff]  ;;  %v916_v32 = vadd.f32 %v1656_v55, %v856_v23 }
 0x151   : > { %v1446_v37 = vpop.eup %1445  ;;  %1465 = vtanh.f32 %v896_v24  ;;  %v843_v39 = vld [vmem:[#allocation2 + $0xb0] sm:$0xff]  ;;  %v902_v45 = vadd.f32 %v1656_v55, %v842_v36  ;;  %v858_v30 = vld [vmem:[#allocation2 + $0x128] sm:$0xff]  ;;  %v917_v36 = vadd.f32 %v1654_v54, %v857_v26 }
 0x152   : > { %v1448_v40 = vpop.eup %1447  ;;  %1122 = vst [vmem:[%s1790_s3 + $0x8] sm:$0xff] %v1333_v34  ;;  %v1334_v41 = vpack.c.bf16 %v1446_v37, %v1444_v33  ;;  %1467 = vtanh.f32 %v897_v28  ;;  %v844_v43 = vld [vmem:[#allocation2 + $0xb8] sm:$0xff]  ;;  %v903_v49 = vadd.f32 %v1654_v54, %v843_v39  ;;  %v859_v33 = vld [vmem:[#allocation2 + $0x130] sm:$0xff]  ;;  %v918_v39 = vadd.f32 %v1656_v55, %v858_v30 }
 0x153   : > { %v1450_v44 = vpop.eup %1449  ;;  %1469 = vtanh.f32 %v898_v31  ;;  %v904_v52 = vadd.f32 %v1656_v55, %v844_v43  ;;  %v860_v37 = vld [vmem:[#allocation2 + $0x138] sm:$0xff]  ;;  %v919_v43 = vadd.f32 %v1654_v54, %v859_v33 }
 0x154   : > { %v1452_v47 = vpop.eup %1451  ;;  %1123 = vst [vmem:[%s1790_s3 + $0x10] sm:$0xff] %v1334_v41  ;;  %v1335_v48 = vpack.c.bf16 %v1450_v44, %v1448_v40  ;;  %1471 = vtanh.f32 %v899_v35  ;;  %v861_v40 = vld [vmem:[#allocation2 + $0x140] sm:$0xff]  ;;  %v862_v44 = vld [vmem:[#allocation2 + $0x148] sm:$0xff]  ;;  %v920_v46 = vadd.f32 %v1656_v55, %v860_v37 }
 0x155   : > { %v1454_v51 = vpop.eup %1453  ;;  %1473 = vtanh.f32 %v900_v38  ;;  %v921_v50 = vadd.f32 %v1654_v54, %v861_v40  ;;  %v922_v53 = vadd.f32 %v1656_v55, %v862_v44 }
 0x156   : > { %v1456_v56 = vpop.eup %1455  ;;  %1124 = vst [vmem:[%s1790_s3 + $0x18] sm:$0xff] %v1335_v48  ;;  %v1336_v57 = vpack.c.bf16 %v1454_v51, %v1452_v47  ;;  %1475 = vtanh.f32 %v901_v42  ;;  %v863_v47 = vld [vmem:[#allocation2 + $0x150] sm:$0xff]  ;;  %v864_v51 = vld [vmem:[#allocation2 + $0x158] sm:$0xff] }
 0x157   : > { %v1458_v60 = vpop.eup %1457  ;;  %1477 = vtanh.f32 %v902_v45  ;;  %v923_v59 = vadd.f32 %v1654_v54, %v863_v47  ;;  %v924_v62 = vadd.f32 %v1656_v55, %v864_v51 }
 0x158   : > { %v1460_v63 = vpop.eup %1459  ;;  %1125 = vst [vmem:[%s1790_s3 + $0x20] sm:$0xff] %v1336_v57  ;;  %v1337_v0 = vpack.c.bf16 %v1458_v60, %v1456_v56  ;;  %1479 = vtanh.f32 %v903_v49  ;;  %v865_v56 = vld [vmem:[#allocation2 + $0x160] sm:$0xff]  ;;  %v866_v60 = vld [vmem:[#allocation2 + $0x168] sm:$0xff] }
 0x159   : > { %v1462_v3 = vpop.eup %1461  ;;  %1481 = vtanh.f32 %v904_v52  ;;  %v925_v2 = vadd.f32 %v1654_v54, %v865_v56  ;;  %v926_v5 = vadd.f32 %v1656_v55, %v866_v60 }
 0x15a   : > { %v1464_v6 = vpop.eup %1463  ;;  %1126 = vst [vmem:[%s1790_s3 + $0x28] sm:$0xff] %v1337_v0  ;;  %v1338_v7 = vpack.c.bf16 %v1462_v3, %v1460_v63  ;;  %1483 = vtanh.f32 %v905_v58  ;;  %v867_v63 = vld [vmem:[#allocation2 + $0x170] sm:$0xff]  ;;  %v868_v3 = vld [vmem:[#allocation2 + $0x178] sm:$0xff] }
 0x15b   : > { %v1466_v10 = vpop.eup %1465  ;;  %1485 = vtanh.f32 %v906_v61 }
 0x15c   : > { %v1468_v13 = vpop.eup %1467  ;;  %1127 = vst [vmem:[%s1790_s3 + $0x30] sm:$0xff] %v1338_v7  ;;  %v1339_v14 = vpack.c.bf16 %v1466_v10, %v1464_v6  ;;  %1487 = vtanh.f32 %v907_v1  ;;  %v928_v10 = vadd.f32 %v1656_v55, %v868_v3 }
 0x15d   : > { %v1470_v17 = vpop.eup %1469  ;;  %1489 = vtanh.f32 %v908_v4 }
 0x15e   : > { %v1472_v20 = vpop.eup %1471  ;;  %1128 = vst [vmem:[%s1790_s3 + $0x38] sm:$0xff] %v1339_v14  ;;  %v1340_v21 = vpack.c.bf16 %v1470_v17, %v1468_v13  ;;  %1491 = vtanh.f32 %v909_v8  ;;  %v927_v8 = vadd.f32 %v1654_v54, %v867_v63 }
 0x15f   : > { %v1474_v24 = vpop.eup %1473  ;;  %1493 = vtanh.f32 %v910_v11 }
 0x160   : > { %v1476_v27 = vpop.eup %1475  ;;  %1129 = vst [vmem:[%s1790_s3 + $0x40] sm:$0xff] %v1340_v21  ;;  %v1341_v28 = vpack.c.bf16 %v1474_v24, %v1472_v20  ;;  %1495 = vtanh.f32 %v911_v15 }
 0x161   : > { %v1478_v31 = vpop.eup %1477  ;;  %1497 = vtanh.f32 %v912_v18 }
 0x162   : > { %v1480_v34 = vpop.eup %1479  ;;  %1130 = vst [vmem:[%s1790_s3 + $0x48] sm:$0xff] %v1341_v28  ;;  %v1342_v35 = vpack.c.bf16 %v1478_v31, %v1476_v27  ;;  %1499 = vtanh.f32 %v913_v22 }
 0x163   : > { %v1482_v38 = vpop.eup %1481  ;;  %1501 = vtanh.f32 %v914_v25 }
 0x164   : > { %v1484_v41 = vpop.eup %1483  ;;  %1131 = vst [vmem:[%s1790_s3 + $0x50] sm:$0xff] %v1342_v35  ;;  %v1343_v42 = vpack.c.bf16 %v1482_v38, %v1480_v34  ;;  %1503 = vtanh.f32 %v915_v29 }
 0x165   : > { %v1486_v45 = vpop.eup %1485  ;;  %1505 = vtanh.f32 %v916_v32 }
 0x166   : > { %v1488_v48 = vpop.eup %1487  ;;  %1132 = vst [vmem:[%s1790_s3 + $0x58] sm:$0xff] %v1343_v42  ;;  %v1344_v49 = vpack.c.bf16 %v1486_v45, %v1484_v41  ;;  %1507 = vtanh.f32 %v917_v36 }
 0x167   : > { %v1490_v52 = vpop.eup %1489  ;;  %1509 = vtanh.f32 %v918_v39 }
 0x168   : > { %v1492_v57 = vpop.eup %1491  ;;  %1133 = vst [vmem:[%s1790_s3 + $0x60] sm:$0xff] %v1344_v49  ;;  %v1345_v58 = vpack.c.bf16 %v1490_v52, %v1488_v48  ;;  %1511 = vtanh.f32 %v919_v43 }
 0x169   : > { %v1494_v61 = vpop.eup %1493  ;;  %1513 = vtanh.f32 %v920_v46 }
 0x16a   : > { %v1496_v0 = vpop.eup %1495  ;;  %1134 = vst [vmem:[%s1790_s3 + $0x68] sm:$0xff] %v1345_v58  ;;  %v1346_v1 = vpack.c.bf16 %v1494_v61, %v1492_v57  ;;  %1515 = vtanh.f32 %v921_v50 }
 0x16b   : > { %v1498_v4 = vpop.eup %1497  ;;  %1517 = vtanh.f32 %v922_v53 }
 0x16c   : > { %v1500_v6 = vpop.eup %1499  ;;  %1135 = vst [vmem:[%s1790_s3 + $0x70] sm:$0xff] %v1346_v1  ;;  %v1347_v7 = vpack.c.bf16 %v1498_v4, %v1496_v0  ;;  %1519 = vtanh.f32 %v923_v59 }
 0x16d   : > { %v1502_v9 = vpop.eup %1501  ;;  %1521 = vtanh.f32 %v924_v62 }
 0x16e   : > { %v1504_v11 = vpop.eup %1503  ;;  %1136 = vst [vmem:[%s1790_s3 + $0x78] sm:$0xff] %v1347_v7  ;;  %v1348_v12 = vpack.c.bf16 %v1502_v9, %v1500_v6  ;;  %1523 = vtanh.f32 %v925_v2 }
 0x16f   : > { %v1506_v13 = vpop.eup %1505  ;;  %1525 = vtanh.f32 %v926_v5 }
 0x170   : > { %v1508_v14 = vpop.eup %1507  ;;  %1137 = vst [vmem:[%s1790_s3 + $0x80] sm:$0xff] %v1348_v12  ;;  %v1349_v15 = vpack.c.bf16 %v1506_v13, %v1504_v11  ;;  %1527 = vtanh.f32 %v927_v8 }
 0x171   : > { %v1510_v54 = vpop.eup %1509  ;;  %1529 = vtanh.f32 %v928_v10 }
 0x172   : > { %v1512_v16 = vpop.eup %1511  ;;  %1138 = vst [vmem:[%s1790_s3 + $0x88] sm:$0xff] %v1349_v15  ;;  %v1350_v55 = vpack.c.bf16 %v1510_v54, %v1508_v14 }
 0x173   : > { %v1514_v17 = vpop.eup %1513 }
 0x174   : > { %v1516_v18 = vpop.eup %1515  ;;  %1139 = vst [vmem:[%s1790_s3 + $0x90] sm:$0xff] %v1350_v55  ;;  %v1351_v19 = vpack.c.bf16 %v1514_v17, %v1512_v16 }
 0x175   : > { %v1518_v20 = vpop.eup %1517 }
 0x176   : > { %v1520_v21 = vpop.eup %1519  ;;  %1140 = vst [vmem:[%s1790_s3 + $0x98] sm:$0xff] %v1351_v19  ;;  %v1352_v22 = vpack.c.bf16 %v1518_v20, %v1516_v18 }
 0x177   : > { %v1522_v23 = vpop.eup %1521 }
 0x178   : > { %v1524_v24 = vpop.eup %1523  ;;  %1141 = vst [vmem:[%s1790_s3 + $0xa0] sm:$0xff] %v1352_v22  ;;  %v1353_v25 = vpack.c.bf16 %v1522_v23, %v1520_v21 }
 0x179   : > { %v1526_v26 = vpop.eup %1525 }
 0x17a   : > { %v1528_v27 = vpop.eup %1527  ;;  %1142 = vst [vmem:[%s1790_s3 + $0xa8] sm:$0xff] %v1353_v25  ;;  %v1354_v28 = vpack.c.bf16 %v1526_v26, %v1524_v24 }
 0x17b   : > { %v1530_v29 = vpop.eup %1529 }
 0x17c   : > { %1143 = vst [vmem:[%s1790_s3 + $0xb0] sm:$0xff] %v1354_v28  ;;  %v1355_v30 = vpack.c.bf16 %v1530_v29, %v1528_v27 }
 0x17e   : > { %1144 = vst [vmem:[%s1790_s3 + $0xb8] sm:$0xff] %v1355_v30 }
 0x17f PF: > { %s13_s14 = sadd.s32 1, %s1553_s14   ;;  %s1791_s12 = smov %s1549_s13 }
 0x180   : > { %p10_p7 = scmp.ge.s32.totalorder %s13_s14, 4   ;;  %s1792_s13 = smov %s1794_s15 }
 0x182   :  { %12 = sbr.rel (!%p10_p7) target bundleno = 2 (0x2), region = 76 }

// kernel: _lambda_.6
= control target key start
LH: loop header
LB: loop body
LE: loop exit
PB: predicated region body
PF: predicated region fallthrough
CT: control target
= control target key end

     0   :  { %s2414_s12 = smov 0   ;;  %s2416_s13 = smov 0   ;;  %s2908_s0 = inlined_call_operand.vmem [shape: bf16[1,192,128], index: 0, kind: input, shape index: {}]   ;;  %s2909_s1 = inlined_call_operand.vmem [shape: bf16[1,128,1024], index: 1, kind: input, shape index: {}]   ;;  %s2910_s2 = inlined_call_operand.vmem [shape: f32[1,1024], index: 2, kind: input, shape index: {}]   ;;  %s2911_s3 = inlined_call_operand.vmem [shape: bf16[192,1024], index: 3, kind: output, shape index: {}]  }
   0x1   :  { %s2418_s14 = smov 0   ;;  %s2420_s15 = smov 0  }
   0x2   :  { %s2422_s16 = smov 0  }
   0x3 LB: > { %s28_s17 = sadd.s32 1, %s2387_s15  ;;  %s2094_s18 = sadd.s32 4294967295, %s2391_s16   ;;  %s2391_s16 = sphi %s2422_s16, %s13_s16   ;;  %s2387_s15 = sphi %s2420_s15, %s2916_s15   ;;  %s2383_s14 = sphi %s2418_s14, %s2915_s14   ;;  %s2379_s13 = sphi %s2416_s13, %s2914_s13   ;;  %s2375_s12 = sphi %s2414_s12, %s2913_s12  }
   0x4   : > { %p30_p0 = scmp.ge.s32.totalorder %s28_s17, 2  ;;  %p76_p1 = scmp.ne.s32.totalorder %s2379_s13, %s2375_s12 }
   0x5   : > { %p77_p2 = scmp.eq.s32.totalorder %s2391_s16, 0  ;;  %p134_p4 = scmp.eq.s32.totalorder %s2094_s18, 1 }
   0x6   : > { %s2918_s17 = smov (%p30_p0, %s28_s17), 0  ;;  %s69_s20 = sadd.s32 1, %s2379_s13 }
   0x7   : > { %p78_p3 = por %p77_p2, %p76_p1  ;;  %s65_s19 = ssub.s32 %s2387_s15, %s2918_s17 }
   0x8   : > { %p67_p5 = scmp.eq.s32.totalorder %s65_s19, 0  ;;  %p2449_p6 = por %p134_p4, %p76_p1 }
   0x9   : > { %p2098_p7 = scmp.ge.s32.totalorder %s2391_s16, 2 }
   0xa   : > { %s2454_s22 = scalar_select %p67_p5, %s2379_s13, %s69_s20  }
   0xb   : > { %169 = sbr.rel (%p2098_p7) target bundleno = 38 (0x26), region = 20 }
  0x12   : > { %172 = sbr.rel (!%p78_p3) target bundleno = 38 (0x26), region = 24  ;;  %s174_s23 = sand.u32 (%p78_p3), 1, %s2379_s13  }
  0x13   : > { %s2201_s24 = sshll.u32 (%p78_p3), %s2387_s15, 4  ;;  %s2099_s25 = sshll.u32 (%p78_p3), %s174_s23, 8 }
  0x14   : > { %s2462_s28 = scalar_lea.vmem (%p78_p3), %s2909_s1, %s2201_s24  ;;  %s2467_s29 = scalar_lea.vmem (%p78_p3), [#allocation3], %s2099_s25 }
  0x15   : > { %v194_v0 = vld [vmem:[%s2462_s28] sm:$0xff] (%p78_p3)  ;;  %v196_v1 = vld [vmem:[%s2462_s28 + $0x8] sm:$0xff] (%p78_p3) }
  0x16   : > { %v198_v2 = vld [vmem:[%s2462_s28 + $0x20] sm:$0xff] (%p78_p3)  ;;  %195 = vst [vmem:[%s2467_s29] sm:$0xff] (%p78_p3), %v194_v0  ;;  %197 = vst [vmem:[%s2467_s29 + $0x8] sm:$0xff] (%p78_p3), %v196_v1  ;;  %v200_v3 = vld [vmem:[%s2462_s28 + $0x28] sm:$0xff] (%p78_p3) }
  0x17   : > { %199 = vst [vmem:[%s2467_s29 + $0x10] sm:$0xff] (%p78_p3), %v198_v2  ;;  %v202_v4 = vld [vmem:[%s2462_s28 + $0x40] sm:$0xff] (%p78_p3)  ;;  %v204_v5 = vld [vmem:[%s2462_s28 + $0x48] sm:$0xff] (%p78_p3)  ;;  %201 = vst [vmem:[%s2467_s29 + $0x18] sm:$0xff] (%p78_p3), %v200_v3 }
  0x18   : > { %203 = vst [vmem:[%s2467_s29 + $0x20] sm:$0xff] (%p78_p3), %v202_v4  ;;  %205 = vst [vmem:[%s2467_s29 + $0x28] sm:$0xff] (%p78_p3), %v204_v5  ;;  %v206_v6 = vld [vmem:[%s2462_s28 + $0x60] sm:$0xff] (%p78_p3)  ;;  %v208_v7 = vld [vmem:[%s2462_s28 + $0x68] sm:$0xff] (%p78_p3) }
  0x19   : > { %v210_v8 = vld [vmem:[%s2462_s28 + $0x80] sm:$0xff]  ;;  %207 = vst [vmem:[%s2467_s29 + $0x30] sm:$0xff] %v206_v6  ;;  %209 = vst [vmem:[%s2467_s29 + $0x38] sm:$0xff] %v208_v7  ;;  %v212_v9 = vld [vmem:[%s2462_s28 + $0x88] sm:$0xff] }
  0x1a   : > { %211 = vst [vmem:[%s2467_s29 + $0x40] sm:$0xff] %v210_v8  ;;  %v214_v10 = vld [vmem:[%s2462_s28 + $0xa0] sm:$0xff]  ;;  %v216_v11 = vld [vmem:[%s2462_s28 + $0xa8] sm:$0xff]  ;;  %213 = vst [vmem:[%s2467_s29 + $0x48] sm:$0xff] %v212_v9 }
  0x1b   : > { %215 = vst [vmem:[%s2467_s29 + $0x50] sm:$0xff] %v214_v10  ;;  %217 = vst [vmem:[%s2467_s29 + $0x58] sm:$0xff] %v216_v11  ;;  %v218_v12 = vld [vmem:[%s2462_s28 + $0xc0] sm:$0xff]  ;;  %v220_v13 = vld [vmem:[%s2462_s28 + $0xc8] sm:$0xff] }
  0x1c   : > { %v222_v14 = vld [vmem:[%s2462_s28 + $0xe0] sm:$0xff]  ;;  %219 = vst [vmem:[%s2467_s29 + $0x60] sm:$0xff] %v218_v12  ;;  %221 = vst [vmem:[%s2467_s29 + $0x68] sm:$0xff] %v220_v13  ;;  %v224_v15 = vld [vmem:[%s2462_s28 + $0xe8] sm:$0xff] }
  0x1d   : > { %223 = vst [vmem:[%s2467_s29 + $0x70] sm:$0xff] %v222_v14  ;;  %v226_v16 = vld [vmem:[%s2462_s28 + $0x100] sm:$0xff]  ;;  %v228_v17 = vld [vmem:[%s2462_s28 + $0x108] sm:$0xff]  ;;  %225 = vst [vmem:[%s2467_s29 + $0x78] sm:$0xff] %v224_v15 }
  0x1e   : > { %227 = vst [vmem:[%s2467_s29 + $0x80] sm:$0xff] %v226_v16  ;;  %229 = vst [vmem:[%s2467_s29 + $0x88] sm:$0xff] %v228_v17  ;;  %v230_v18 = vld [vmem:[%s2462_s28 + $0x120] sm:$0xff]  ;;  %v232_v19 = vld [vmem:[%s2462_s28 + $0x128] sm:$0xff] }
  0x1f   : > { %v234_v20 = vld [vmem:[%s2462_s28 + $0x140] sm:$0xff]  ;;  %231 = vst [vmem:[%s2467_s29 + $0x90] sm:$0xff] %v230_v18  ;;  %233 = vst [vmem:[%s2467_s29 + $0x98] sm:$0xff] %v232_v19  ;;  %v236_v21 = vld [vmem:[%s2462_s28 + $0x148] sm:$0xff] }
  0x20   : > { %235 = vst [vmem:[%s2467_s29 + $0xa0] sm:$0xff] %v234_v20  ;;  %v238_v22 = vld [vmem:[%s2462_s28 + $0x160] sm:$0xff]  ;;  %v240_v23 = vld [vmem:[%s2462_s28 + $0x168] sm:$0xff]  ;;  %237 = vst [vmem:[%s2467_s29 + $0xa8] sm:$0xff] %v236_v21 }
  0x21   : > { %239 = vst [vmem:[%s2467_s29 + $0xb0] sm:$0xff] %v238_v22  ;;  %241 = vst [vmem:[%s2467_s29 + $0xb8] sm:$0xff] %v240_v23  ;;  %v242_v24 = vld [vmem:[%s2462_s28 + $0x180] sm:$0xff]  ;;  %v244_v25 = vld [vmem:[%s2462_s28 + $0x188] sm:$0xff] }
  0x22   : > { %v246_v26 = vld [vmem:[%s2462_s28 + $0x1a0] sm:$0xff]  ;;  %243 = vst [vmem:[%s2467_s29 + $0xc0] sm:$0xff] %v242_v24  ;;  %245 = vst [vmem:[%s2467_s29 + $0xc8] sm:$0xff] %v244_v25  ;;  %v248_v27 = vld [vmem:[%s2462_s28 + $0x1a8] sm:$0xff] }
  0x23   : > { %247 = vst [vmem:[%s2467_s29 + $0xd0] sm:$0xff] %v246_v26  ;;  %v250_v28 = vld [vmem:[%s2462_s28 + $0x1c0] sm:$0xff]  ;;  %v252_v29 = vld [vmem:[%s2462_s28 + $0x1c8] sm:$0xff]  ;;  %249 = vst [vmem:[%s2467_s29 + $0xd8] sm:$0xff] %v248_v27 }
  0x24   : > { %251 = vst [vmem:[%s2467_s29 + $0xe0] sm:$0xff] %v250_v28  ;;  %253 = vst [vmem:[%s2467_s29 + $0xe8] sm:$0xff] %v252_v29  ;;  %v254_v30 = vld [vmem:[%s2462_s28 + $0x1e0] sm:$0xff]  ;;  %v256_v31 = vld [vmem:[%s2462_s28 + $0x1e8] sm:$0xff] }
  0x25   : > { %255 = vst [vmem:[%s2467_s29 + $0xf0] sm:$0xff] %v254_v30  ;;  %257 = vst [vmem:[%s2467_s29 + $0xf8] sm:$0xff] %v256_v31 }
  0x26 PF: > { %p2102_p8 = scmp.ge.s32.totalorder %s2391_s16, 1  ;;  %p270_p9 = scmp.lt.s32.totalorder %s2391_s16, 3 }
  0x28   : > { %p271_p10 = pnand %p2102_p8, %p270_p9 }
  0x29   : > { %s277_s30 = sand.u32 (!%p271_p10), 1, %s2375_s12   ;;  %v2393_v32 = vmov (!%p271_p10), 0   ;;  %v2341_v1 = vld [vmem:[%s2908_s0] sm:$0xff] (!%p271_p10)   ;;  %v2342_v2 = vld [vmem:[%s2908_s0 + $0x8] sm:$0xff] (!%p271_p10)   ;;  %v2343_v3 = vld [vmem:[%s2908_s0 + $0x10] sm:$0xff] (!%p271_p10)   ;;  %s2104_s18 = sshll.u32 (!%p271_p10), %s2383_s14, 2  ;;  %v1414_v13 = vlaneseq (!%p271_p10) }
  0x2a   : > { %274 = sbr.rel (%p271_p10) target bundleno = 394 (0x18a), region = 51  ;;  %s2103_s4 = sshll.u32 (!%p271_p10), %s277_s30, 8  ;;  %847 = vmatprep.mubr.bf16.mxu0 (!%p271_p10), %v2393_v32  ;;  %1000 = vmatprep.mubr.bf16.mxu1 (!%p271_p10), %v2393_v32  ;;  %v2344_v4 = vld [vmem:[%s2908_s0 + $0x18] sm:$0xff] (!%p271_p10)   ;;  %v2345_v5 = vld [vmem:[%s2908_s0 + $0x20] sm:$0xff] (!%p271_p10)   ;;  %v2346_v6 = vld [vmem:[%s2908_s0 + $0x28] sm:$0xff] (!%p271_p10)  }
  0x2b   : > { %s2537_s5 = scalar_lea.vmem (!%p271_p10), [#allocation3], %s2103_s4  ;;  %v2347_v7 = vld [vmem:[%s2908_s0 + $0x30] sm:$0xff] (!%p271_p10)   ;;  %v2348_v8 = vld [vmem:[%s2908_s0 + $0x38] sm:$0xff] (!%p271_p10)   ;;  %v2349_v9 = vld [vmem:[%s2908_s0 + $0x40] sm:$0xff] (!%p271_p10)   ;;  %p324_p11 = scmp.lt.s32.totalorder (!%p271_p10), %s2104_s18, 7  ;;  %v1415_v14 = vshrl.u32 (!%p271_p10), %v1414_v13, 7 }
  0x2c   : > { %v2293_v33 = vld [vmem:[%s2537_s5 + $0x4] ss:$16 sps:$4 sm:$0xff] (!%p271_p10)   ;;  %v2295_v34 = vld [vmem:[%s2537_s5 + $0xc] ss:$16 sps:$4 sm:$0xff] (!%p271_p10)   ;;  %v2297_v35 = vld [vmem:[%s2537_s5] ss:$16 sps:$4 sm:$0xff] (!%p271_p10)  }
  0x2d   : > { %815 = vmatprep.subr.bf16.mxu0 (!%p271_p10), %v2293_v33  ;;  %v2298_v36 = vld [vmem:[%s2537_s5 + $0x8] ss:$16 sps:$4 sm:$0xff] (!%p271_p10)   ;;  %968 = vmatprep.subr.bf16.mxu1 (!%p271_p10), %v2295_v34  ;;  %v2299_v37 = vld [vmem:[%s2537_s5 + $0x24] ss:$16 sps:$4 sm:$0xff] (!%p271_p10)   ;;  %v2301_v38 = vld [vmem:[%s2537_s5 + $0x2c] ss:$16 sps:$4 sm:$0xff] (!%p271_p10)  }
  0x2e   : > { %816 = vmatpush1.bf16.msra.mxu0 (!%p271_p10), %v2297_v35  ;;  %969 = vmatpush1.bf16.msra.mxu1 (!%p271_p10), %v2298_v36  ;;  %v2303_v39 = vld [vmem:[%s2537_s5 + $0x20] ss:$16 sps:$4 sm:$0xff] (!%p271_p10)   ;;  %v2304_v40 = vld [vmem:[%s2537_s5 + $0x28] ss:$16 sps:$4 sm:$0xff] (!%p271_p10)   ;;  %v2305_v41 = vld [vmem:[%s2537_s5 + $0x44] ss:$16 sps:$4 sm:$0xff] (!%p271_p10)  }
  0x2f   : > { %817 = vmatprep.subr.bf16.mxu0 (!%p271_p10), %v2299_v37  ;;  %970 = vmatprep.subr.bf16.mxu1 (!%p271_p10), %v2301_v38  ;;  %v2307_v42 = vld [vmem:[%s2537_s5 + $0x4c] ss:$16 sps:$4 sm:$0xff] (!%p271_p10)   ;;  %v2309_v43 = vld [vmem:[%s2537_s5 + $0x40] ss:$16 sps:$4 sm:$0xff] (!%p271_p10)   ;;  %v2310_v44 = vld [vmem:[%s2537_s5 + $0x48] ss:$16 sps:$4 sm:$0xff] (!%p271_p10)  }
  0x30   : > { %v2311_v45 = vld [vmem:[%s2537_s5 + $0x64] ss:$16 sps:$4 sm:$0xff] (!%p271_p10)   ;;  %v2313_v46 = vld [vmem:[%s2537_s5 + $0x6c] ss:$16 sps:$4 sm:$0xff] (!%p271_p10)   ;;  %v2315_v47 = vld [vmem:[%s2537_s5 + $0x60] ss:$16 sps:$4 sm:$0xff] (!%p271_p10)  }
  0x31   : > { %v2316_v48 = vld [vmem:[%s2537_s5 + $0x68] ss:$16 sps:$4 sm:$0xff]   ;;  %v2317_v49 = vld [vmem:[%s2537_s5 + $0x84] ss:$16 sps:$4 sm:$0xff]   ;;  %v2319_v50 = vld [vmem:[%s2537_s5 + $0x8c] ss:$16 sps:$4 sm:$0xff]  }
  0x32   : > { %818 = vmatpush1.bf16.msra.mxu0 %v2303_v39  ;;  %971 = vmatpush1.bf16.msra.mxu1 %v2304_v40  ;;  %v2321_v51 = vld [vmem:[%s2537_s5 + $0x80] ss:$16 sps:$4 sm:$0xff]   ;;  %v2322_v52 = vld [vmem:[%s2537_s5 + $0x88] ss:$16 sps:$4 sm:$0xff]   ;;  %v2323_v53 = vld [vmem:[%s2537_s5 + $0xa4] ss:$16 sps:$4 sm:$0xff]  }
  0x33   : > { %819 = vmatprep.subr.bf16.mxu0 %v2305_v41  ;;  %972 = vmatprep.subr.bf16.mxu1 %v2307_v42  ;;  %v2325_v54 = vld [vmem:[%s2537_s5 + $0xac] ss:$16 sps:$4 sm:$0xff]   ;;  %v2327_v55 = vld [vmem:[%s2537_s5 + $0xa0] ss:$16 sps:$4 sm:$0xff]   ;;  %v2328_v56 = vld [vmem:[%s2537_s5 + $0xa8] ss:$16 sps:$4 sm:$0xff]  }
  0x34   : > { %v2329_v57 = vld [vmem:[%s2537_s5 + $0xc4] ss:$16 sps:$4 sm:$0xff]   ;;  %v2331_v58 = vld [vmem:[%s2537_s5 + $0xcc] ss:$16 sps:$4 sm:$0xff]   ;;  %v2333_v59 = vld [vmem:[%s2537_s5 + $0xc0] ss:$16 sps:$4 sm:$0xff]  }
  0x35   : > { %v2334_v60 = vld [vmem:[%s2537_s5 + $0xc8] ss:$16 sps:$4 sm:$0xff]   ;;  %v2335_v61 = vld [vmem:[%s2537_s5 + $0xe4] ss:$16 sps:$4 sm:$0xff]   ;;  %v2337_v62 = vld [vmem:[%s2537_s5 + $0xec] ss:$16 sps:$4 sm:$0xff]  }
  0x36   : > { %820 = vmatpush1.bf16.msra.mxu0 %v2309_v43  ;;  %973 = vmatpush1.bf16.msra.mxu1 %v2310_v44  ;;  %v2339_v63 = vld [vmem:[%s2537_s5 + $0xe0] ss:$16 sps:$4 sm:$0xff]   ;;  %v2340_v0 = vld [vmem:[%s2537_s5 + $0xe8] ss:$16 sps:$4 sm:$0xff]   ;;  %s2920_s18 = smov (!%p324_p11, %s2104_s18), 7  ;;  %v1416_v15 = vsub.s32 0, %v1415_v14 }
  0x37   : > { %821 = vmatprep.subr.bf16.mxu0 %v2311_v45  ;;  %974 = vmatprep.subr.bf16.mxu1 %v2313_v46  ;;  %v2350_v10 = vld [vmem:[%s2908_s0 + $0x48] sm:$0xff]   ;;  %v2351_v11 = vld [vmem:[%s2908_s0 + $0x50] sm:$0xff]   ;;  %v2352_v12 = vld [vmem:[%s2908_s0 + $0x58] sm:$0xff]   ;;  %s326_s23 = scalar_lea.vmem %s2910_s2, %s2920_s18  ;;  %v1424_v16 = vsub.s32 2, %v1415_v14  ;;  %v1420_v18 = vsub.s32 1, %v1415_v14  ;;  %v1428_v19 = vsub.s32 3, %v1415_v14 }
  0x38   : > { %v1412_v17 = vld [vmem:[%s326_s23] sm:$0xf]  ;;  %s2251_s24 = smul.u32 384, %s277_s30  ;;  %s2250_s30 = sshll.u32 (%p2449_p6), %s2383_s14, 4 }
  0x39   : > { %v2633_v20 = vrot.slane %v1412_v17, %v1416_v15  ;;  %v2635_v21 = vrot.slane %v1412_v17, %v1424_v16  ;;  %v2637_v22 = vrot.slane %v1412_v17, %v1420_v18  ;;  %v2639_v23 = vrot.slane %v1412_v17, %v1428_v19  ;;  %s2798_s27 = scalar_lea.vmem (%p2449_p6), %s2911_s3, %s2250_s30 }
  0x3a   : > { %822 = vmatpush1.bf16.msra.mxu0 %v2315_v47  ;;  %975 = vmatpush1.bf16.msra.mxu1 %v2316_v48  ;;  %s2651_s12 = scalar_lea.vmem [#allocation4], %s2251_s24 }
  0x3b   : > { %823 = vmatprep.subr.bf16.mxu0 %v2317_v49  ;;  %976 = vmatprep.subr.bf16.mxu1 %v2319_v50 }
  0x3e   : > { %824 = vmatpush1.bf16.msra.mxu0 %v2321_v51  ;;  %977 = vmatpush1.bf16.msra.mxu1 %v2322_v52 }
  0x3f   : > { %825 = vmatprep.subr.bf16.mxu0 %v2323_v53  ;;  %978 = vmatprep.subr.bf16.mxu1 %v2325_v54 }
  0x42   : > { %826 = vmatpush1.bf16.msra.mxu0 %v2327_v55  ;;  %979 = vmatpush1.bf16.msra.mxu1 %v2328_v56 }
  0x43   : > { %827 = vmatprep.subr.bf16.mxu0 %v2329_v57  ;;  %980 = vmatprep.subr.bf16.mxu1 %v2331_v58 }
  0x46   : > { %828 = vmatpush1.bf16.msra.mxu0 %v2333_v59  ;;  %981 = vmatpush1.bf16.msra.mxu1 %v2334_v60 }
  0x47   : > { %829 = vmatprep.subr.bf16.mxu0 %v2335_v61  ;;  %982 = vmatprep.subr.bf16.mxu1 %v2337_v62 }
  0x4a   : > { %830 = vmatpush1.bf16.msra.mxu0 %v2339_v63  ;;  %983 = vmatpush1.bf16.msra.mxu1 %v2340_v0 }
  0x4d   : > { %848 = vmatmul.mubr.bf16.vlgmr.msra.gmra.mrb[0].mxu0 %v2341_v1  ;;  %1001 = vmatmul.mubr.bf16.vlgmr.msra.gmra.mrb[0].mxu1 %v2341_v1 }
  0x4e   : > { %857 = vmatprep.mubr.bf16.mxu0 %v2393_v32  ;;  %1010 = vmatprep.mubr.bf16.mxu1 %v2393_v32 }
  0x55   : > { %858 = vmatmul.mubr.bf16.gmra.mrb[4].mxu0 %v2342_v2  ;;  %1011 = vmatmul.mubr.bf16.gmra.mrb[4].mxu1 %v2342_v2 }
  0x56   : > { %867 = vmatprep.mubr.bf16.mxu0 %v2393_v32  ;;  %1020 = vmatprep.mubr.bf16.mxu1 %v2393_v32 }
  0x5d   : > { %868 = vmatmul.mubr.bf16.gmra.mrb[8].mxu0 %v2343_v3  ;;  %1021 = vmatmul.mubr.bf16.gmra.mrb[8].mxu1 %v2343_v3 }
  0x5e   : > { %877 = vmatprep.mubr.bf16.mxu0 %v2393_v32  ;;  %1030 = vmatprep.mubr.bf16.mxu1 %v2393_v32 }
  0x65   : > { %878 = vmatmul.mubr.bf16.gmra.mrb[12].mxu0 %v2344_v4  ;;  %1031 = vmatmul.mubr.bf16.gmra.mrb[12].mxu1 %v2344_v4 }
  0x66   : > { %887 = vmatprep.mubr.bf16.mxu0 %v2393_v32  ;;  %1040 = vmatprep.mubr.bf16.mxu1 %v2393_v32 }
  0x6d   : > { %888 = vmatmul.mubr.bf16.gmra.mrb[16].mxu0 %v2345_v5  ;;  %1041 = vmatmul.mubr.bf16.gmra.mrb[16].mxu1 %v2345_v5 }
  0x6e   : > { %897 = vmatprep.mubr.bf16.mxu0 %v2393_v32  ;;  %1050 = vmatprep.mubr.bf16.mxu1 %v2393_v32 }
  0x75   : > { %898 = vmatmul.mubr.bf16.gmra.mrb[20].mxu0 %v2346_v6  ;;  %1051 = vmatmul.mubr.bf16.gmra.mrb[20].mxu1 %v2346_v6 }
  0x76   : > { %907 = vmatprep.mubr.bf16.mxu0 %v2393_v32  ;;  %1060 = vmatprep.mubr.bf16.mxu1 %v2393_v32 }
  0x7d   : > { %908 = vmatmul.mubr.bf16.gmra.mrb[24].mxu0 %v2347_v7  ;;  %1061 = vmatmul.mubr.bf16.gmra.mrb[24].mxu1 %v2347_v7 }
  0x7e   : > { %917 = vmatprep.mubr.bf16.mxu0 %v2393_v32  ;;  %1070 = vmatprep.mubr.bf16.mxu1 %v2393_v32 }
  0x85   : > { %918 = vmatmul.mubr.bf16.gmra.mrb[28].mxu0 %v2348_v8  ;;  %1071 = vmatmul.mubr.bf16.gmra.mrb[28].mxu1 %v2348_v8 }
  0x86   : > { %927 = vmatprep.mubr.bf16.mxu0 %v2393_v32  ;;  %1080 = vmatprep.mubr.bf16.mxu1 %v2393_v32 }
  0x8d   : > { %928 = vmatmul.mubr.bf16.gmra.mrb[32].mxu0 %v2349_v9  ;;  %1081 = vmatmul.mubr.bf16.gmra.mrb[32].mxu1 %v2349_v9 }
  0x8e   : > { %937 = vmatprep.mubr.bf16.mxu0 %v2393_v32  ;;  %1090 = vmatprep.mubr.bf16.mxu1 %v2393_v32 }
  0x95   : > { %938 = vmatmul.mubr.bf16.gmra.mrb[36].mxu0 %v2350_v10  ;;  %1091 = vmatmul.mubr.bf16.gmra.mrb[36].mxu1 %v2350_v10 }
  0x96   : > { %947 = vmatprep.mubr.bf16.mxu0 %v2393_v32  ;;  %1100 = vmatprep.mubr.bf16.mxu1 %v2393_v32 }
  0x9d   : > { %948 = vmatmul.mubr.bf16.gmra.mrb[40].mxu0 %v2351_v11  ;;  %1101 = vmatmul.mubr.bf16.gmra.mrb[40].mxu1 %v2351_v11 }
  0x9e   : > { %957 = vmatprep.mubr.bf16.mxu0 %v2393_v32  ;;  %1110 = vmatprep.mubr.bf16.mxu1 %v2393_v32 }
  0xa5   : > { %958 = vmatmul.mubr.bf16.gmra.mrb[44].mxu0 %v2352_v12  ;;  %1111 = vmatmul.mubr.bf16.gmra.mrb[44].mxu1 %v2352_v12 }
 0x120   : > { %v849_v24 = vpop.f32.mrb[0].mxu0  ;;  %v1002_v25 = vpop.f32.mrb[0].mxu1 }
 0x121   : > { %v1434_v26 = vadd.f32 %v2633_v20, %v849_v24  ;;  %v1436_v27 = vadd.f32 %v2635_v21, %v1002_v25  ;;  %v851_v28 = vpop.f32.mrb[1].mxu0  ;;  %v1004_v29 = vpop.f32.mrb[1].mxu1 }
 0x122   : > { %v1435_v30 = vadd.f32 %v2637_v22, %v851_v28  ;;  %v1437_v31 = vadd.f32 %v2639_v23, %v1004_v29  ;;  %v853_v32 = vpop.f32.mrb[2].mxu0  ;;  %v1006_v33 = vpop.f32.mrb[2].mxu1 }
 0x123   : > { %v1438_v34 = vadd.f32 %v2633_v20, %v853_v32  ;;  %v1440_v35 = vadd.f32 %v2635_v21, %v1006_v33  ;;  %v855_v36 = vpop.f32.mrb[3].mxu0  ;;  %v1008_v37 = vpop.f32.mrb[3].mxu1 }
 0x124   : > { %v2202_v38 = vpack.c.bf16 %v1435_v30, %v1434_v26  ;;  %v2203_v39 = vpack.c.bf16 %v1437_v31, %v1436_v27  ;;  %v1439_v40 = vadd.f32 %v2637_v22, %v855_v36  ;;  %v1441_v41 = vadd.f32 %v2639_v23, %v1008_v37 }
 0x126   : > { %1818 = vst [vmem:[%s2651_s12] sm:$0xff] %v2202_v38  ;;  %1819 = vst [vmem:[%s2651_s12 + $0x8] sm:$0xff] %v2203_v39  ;;  %v2204_v42 = vpack.c.bf16 %v1439_v40, %v1438_v34  ;;  %v2205_v43 = vpack.c.bf16 %v1441_v41, %v1440_v35 }
 0x128   : > { %1820 = vst [vmem:[%s2651_s12 + $0x10] sm:$0xff] %v2204_v42  ;;  %1821 = vst [vmem:[%s2651_s12 + $0x18] sm:$0xff] %v2205_v43  ;;  %v859_v44 = vpop.f32.mrb[4].mxu0  ;;  %v1012_v45 = vpop.f32.mrb[4].mxu1 }
 0x129   : > { %v1442_v46 = vadd.f32 %v2633_v20, %v859_v44  ;;  %v1444_v47 = vadd.f32 %v2635_v21, %v1012_v45  ;;  %v861_v48 = vpop.f32.mrb[5].mxu0  ;;  %v1014_v49 = vpop.f32.mrb[5].mxu1 }
 0x12a   : > { %v1443_v50 = vadd.f32 %v2637_v22, %v861_v48  ;;  %v1445_v51 = vadd.f32 %v2639_v23, %v1014_v49  ;;  %v863_v52 = vpop.f32.mrb[6].mxu0  ;;  %v1016_v53 = vpop.f32.mrb[6].mxu1 }
 0x12b   : > { %v1446_v54 = vadd.f32 %v2633_v20, %v863_v52  ;;  %v1448_v55 = vadd.f32 %v2635_v21, %v1016_v53  ;;  %v865_v56 = vpop.f32.mrb[7].mxu0  ;;  %v1018_v57 = vpop.f32.mrb[7].mxu1 }
 0x12c   : > { %v2206_v58 = vpack.c.bf16 %v1443_v50, %v1442_v46  ;;  %v2207_v59 = vpack.c.bf16 %v1445_v51, %v1444_v47  ;;  %v1447_v60 = vadd.f32 %v2637_v22, %v865_v56  ;;  %v1449_v61 = vadd.f32 %v2639_v23, %v1018_v57 }
 0x12e   : > { %1822 = vst [vmem:[%s2651_s12 + $0x20] sm:$0xff] %v2206_v58  ;;  %1823 = vst [vmem:[%s2651_s12 + $0x28] sm:$0xff] %v2207_v59  ;;  %v2208_v62 = vpack.c.bf16 %v1447_v60, %v1446_v54  ;;  %v2209_v63 = vpack.c.bf16 %v1449_v61, %v1448_v55 }
 0x130   : > { %1824 = vst [vmem:[%s2651_s12 + $0x30] sm:$0xff] %v2208_v62  ;;  %1825 = vst [vmem:[%s2651_s12 + $0x38] sm:$0xff] %v2209_v63  ;;  %v869_v0 = vpop.f32.mrb[8].mxu0  ;;  %v1022_v1 = vpop.f32.mrb[8].mxu1 }
 0x131   : > { %v1450_v2 = vadd.f32 %v2633_v20, %v869_v0  ;;  %v1452_v3 = vadd.f32 %v2635_v21, %v1022_v1  ;;  %v871_v4 = vpop.f32.mrb[9].mxu0  ;;  %v1024_v5 = vpop.f32.mrb[9].mxu1 }
 0x132   : > { %v1451_v6 = vadd.f32 %v2637_v22, %v871_v4  ;;  %v1453_v7 = vadd.f32 %v2639_v23, %v1024_v5  ;;  %v873_v8 = vpop.f32.mrb[10].mxu0  ;;  %v1026_v9 = vpop.f32.mrb[10].mxu1 }
 0x133   : > { %v1454_v10 = vadd.f32 %v2633_v20, %v873_v8  ;;  %v1456_v11 = vadd.f32 %v2635_v21, %v1026_v9  ;;  %v875_v12 = vpop.f32.mrb[11].mxu0  ;;  %v1028_v13 = vpop.f32.mrb[11].mxu1 }
 0x134   : > { %v2210_v14 = vpack.c.bf16 %v1451_v6, %v1450_v2  ;;  %v2211_v15 = vpack.c.bf16 %v1453_v7, %v1452_v3  ;;  %v1455_v16 = vadd.f32 %v2637_v22, %v875_v12  ;;  %v1457_v17 = vadd.f32 %v2639_v23, %v1028_v13 }
 0x136   : > { %1826 = vst [vmem:[%s2651_s12 + $0x40] sm:$0xff] %v2210_v14  ;;  %1827 = vst [vmem:[%s2651_s12 + $0x48] sm:$0xff] %v2211_v15  ;;  %v2212_v18 = vpack.c.bf16 %v1455_v16, %v1454_v10  ;;  %v2213_v19 = vpack.c.bf16 %v1457_v17, %v1456_v11 }
 0x138   : > { %1828 = vst [vmem:[%s2651_s12 + $0x50] sm:$0xff] %v2212_v18  ;;  %1829 = vst [vmem:[%s2651_s12 + $0x58] sm:$0xff] %v2213_v19  ;;  %v879_v24 = vpop.f32.mrb[12].mxu0  ;;  %v1032_v25 = vpop.f32.mrb[12].mxu1 }
 0x139   : > { %v1458_v26 = vadd.f32 %v2633_v20, %v879_v24  ;;  %v1460_v27 = vadd.f32 %v2635_v21, %v1032_v25  ;;  %v881_v28 = vpop.f32.mrb[13].mxu0  ;;  %v1034_v29 = vpop.f32.mrb[13].mxu1 }
 0x13a   : > { %v1459_v30 = vadd.f32 %v2637_v22, %v881_v28  ;;  %v1461_v31 = vadd.f32 %v2639_v23, %v1034_v29  ;;  %v883_v32 = vpop.f32.mrb[14].mxu0  ;;  %v1036_v33 = vpop.f32.mrb[14].mxu1 }
 0x13b   : > { %v1462_v34 = vadd.f32 %v2633_v20, %v883_v32  ;;  %v1464_v35 = vadd.f32 %v2635_v21, %v1036_v33  ;;  %v885_v36 = vpop.f32.mrb[15].mxu0  ;;  %v1038_v37 = vpop.f32.mrb[15].mxu1 }
 0x13c   : > { %v2214_v38 = vpack.c.bf16 %v1459_v30, %v1458_v26  ;;  %v2215_v39 = vpack.c.bf16 %v1461_v31, %v1460_v27  ;;  %v1463_v40 = vadd.f32 %v2637_v22, %v885_v36  ;;  %v1465_v41 = vadd.f32 %v2639_v23, %v1038_v37 }
 0x13e   : > { %1830 = vst [vmem:[%s2651_s12 + $0x60] sm:$0xff] %v2214_v38  ;;  %1831 = vst [vmem:[%s2651_s12 + $0x68] sm:$0xff] %v2215_v39  ;;  %v2216_v42 = vpack.c.bf16 %v1463_v40, %v1462_v34  ;;  %v2217_v43 = vpack.c.bf16 %v1465_v41, %v1464_v35 }
 0x140   : > { %1832 = vst [vmem:[%s2651_s12 + $0x70] sm:$0xff] %v2216_v42  ;;  %1833 = vst [vmem:[%s2651_s12 + $0x78] sm:$0xff] %v2217_v43  ;;  %v889_v44 = vpop.f32.mrb[16].mxu0  ;;  %v1042_v45 = vpop.f32.mrb[16].mxu1 }
 0x141   : > { %v1466_v46 = vadd.f32 %v2633_v20, %v889_v44  ;;  %v1468_v47 = vadd.f32 %v2635_v21, %v1042_v45  ;;  %v891_v48 = vpop.f32.mrb[17].mxu0  ;;  %v1044_v49 = vpop.f32.mrb[17].mxu1 }
 0x142   : > { %v1467_v50 = vadd.f32 %v2637_v22, %v891_v48  ;;  %v1469_v51 = vadd.f32 %v2639_v23, %v1044_v49  ;;  %v893_v52 = vpop.f32.mrb[18].mxu0  ;;  %v1046_v53 = vpop.f32.mrb[18].mxu1 }
 0x143   : > { %v1470_v54 = vadd.f32 %v2633_v20, %v893_v52  ;;  %v1472_v55 = vadd.f32 %v2635_v21, %v1046_v53  ;;  %v895_v56 = vpop.f32.mrb[19].mxu0  ;;  %v1048_v57 = vpop.f32.mrb[19].mxu1 }
 0x144   : > { %v2218_v58 = vpack.c.bf16 %v1467_v50, %v1466_v46  ;;  %v2219_v59 = vpack.c.bf16 %v1469_v51, %v1468_v47  ;;  %v1471_v60 = vadd.f32 %v2637_v22, %v895_v56  ;;  %v1473_v61 = vadd.f32 %v2639_v23, %v1048_v57 }
 0x146   : > { %1834 = vst [vmem:[%s2651_s12 + $0x80] sm:$0xff] %v2218_v58  ;;  %1835 = vst [vmem:[%s2651_s12 + $0x88] sm:$0xff] %v2219_v59  ;;  %v2220_v62 = vpack.c.bf16 %v1471_v60, %v1470_v54  ;;  %v2221_v63 = vpack.c.bf16 %v1473_v61, %v1472_v55 }
 0x148   : > { %1836 = vst [vmem:[%s2651_s12 + $0x90] sm:$0xff] %v2220_v62  ;;  %1837 = vst [vmem:[%s2651_s12 + $0x98] sm:$0xff] %v2221_v63  ;;  %v899_v0 = vpop.f32.mrb[20].mxu0  ;;  %v1052_v1 = vpop.f32.mrb[20].mxu1 }
 0x149   : > { %v1474_v2 = vadd.f32 %v2633_v20, %v899_v0  ;;  %v1476_v3 = vadd.f32 %v2635_v21, %v1052_v1  ;;  %v901_v4 = vpop.f32.mrb[21].mxu0  ;;  %v1054_v5 = vpop.f32.mrb[21].mxu1 }
 0x14a   : > { %v1475_v6 = vadd.f32 %v2637_v22, %v901_v4  ;;  %v1477_v7 = vadd.f32 %v2639_v23, %v1054_v5  ;;  %v903_v8 = vpop.f32.mrb[22].mxu0  ;;  %v1056_v9 = vpop.f32.mrb[22].mxu1 }
 0x14b   : > { %v1478_v10 = vadd.f32 %v2633_v20, %v903_v8  ;;  %v1480_v11 = vadd.f32 %v2635_v21, %v1056_v9  ;;  %v905_v12 = vpop.f32.mrb[23].mxu0  ;;  %v1058_v13 = vpop.f32.mrb[23].mxu1 }
 0x14c   : > { %v2222_v14 = vpack.c.bf16 %v1475_v6, %v1474_v2  ;;  %v2223_v15 = vpack.c.bf16 %v1477_v7, %v1476_v3  ;;  %v1479_v16 = vadd.f32 %v2637_v22, %v905_v12  ;;  %v1481_v17 = vadd.f32 %v2639_v23, %v1058_v13 }
 0x14e   : > { %1838 = vst [vmem:[%s2651_s12 + $0xa0] sm:$0xff] %v2222_v14  ;;  %1839 = vst [vmem:[%s2651_s12 + $0xa8] sm:$0xff] %v2223_v15  ;;  %v2224_v18 = vpack.c.bf16 %v1479_v16, %v1478_v10  ;;  %v2225_v19 = vpack.c.bf16 %v1481_v17, %v1480_v11 }
 0x150   : > { %1840 = vst [vmem:[%s2651_s12 + $0xb0] sm:$0xff] %v2224_v18  ;;  %1841 = vst [vmem:[%s2651_s12 + $0xb8] sm:$0xff] %v2225_v19  ;;  %v909_v24 = vpop.f32.mrb[24].mxu0  ;;  %v1062_v25 = vpop.f32.mrb[24].mxu1 }
 0x151   : > { %v1482_v26 = vadd.f32 %v2633_v20, %v909_v24  ;;  %v1484_v27 = vadd.f32 %v2635_v21, %v1062_v25  ;;  %v911_v28 = vpop.f32.mrb[25].mxu0  ;;  %v1064_v29 = vpop.f32.mrb[25].mxu1 }
 0x152   : > { %v1483_v30 = vadd.f32 %v2637_v22, %v911_v28  ;;  %v1485_v31 = vadd.f32 %v2639_v23, %v1064_v29  ;;  %v913_v32 = vpop.f32.mrb[26].mxu0  ;;  %v1066_v33 = vpop.f32.mrb[26].mxu1 }
 0x153   : > { %v1486_v34 = vadd.f32 %v2633_v20, %v913_v32  ;;  %v1488_v35 = vadd.f32 %v2635_v21, %v1066_v33  ;;  %v915_v36 = vpop.f32.mrb[27].mxu0  ;;  %v1068_v37 = vpop.f32.mrb[27].mxu1 }
 0x154   : > { %v2226_v38 = vpack.c.bf16 %v1483_v30, %v1482_v26  ;;  %v2227_v39 = vpack.c.bf16 %v1485_v31, %v1484_v27  ;;  %v1487_v40 = vadd.f32 %v2637_v22, %v915_v36  ;;  %v1489_v41 = vadd.f32 %v2639_v23, %v1068_v37 }
 0x156   : > { %1842 = vst [vmem:[%s2651_s12 + $0xc0] sm:$0xff] %v2226_v38  ;;  %1843 = vst [vmem:[%s2651_s12 + $0xc8] sm:$0xff] %v2227_v39  ;;  %v2228_v42 = vpack.c.bf16 %v1487_v40, %v1486_v34  ;;  %v2229_v43 = vpack.c.bf16 %v1489_v41, %v1488_v35 }
 0x158   : > { %1844 = vst [vmem:[%s2651_s12 + $0xd0] sm:$0xff] %v2228_v42  ;;  %1845 = vst [vmem:[%s2651_s12 + $0xd8] sm:$0xff] %v2229_v43  ;;  %v919_v44 = vpop.f32.mrb[28].mxu0  ;;  %v1072_v45 = vpop.f32.mrb[28].mxu1 }
 0x159   : > { %v1490_v46 = vadd.f32 %v2633_v20, %v919_v44  ;;  %v1492_v47 = vadd.f32 %v2635_v21, %v1072_v45  ;;  %v921_v48 = vpop.f32.mrb[29].mxu0  ;;  %v1074_v49 = vpop.f32.mrb[29].mxu1 }
 0x15a   : > { %v1491_v50 = vadd.f32 %v2637_v22, %v921_v48  ;;  %v1493_v51 = vadd.f32 %v2639_v23, %v1074_v49  ;;  %v923_v52 = vpop.f32.mrb[30].mxu0  ;;  %v1076_v53 = vpop.f32.mrb[30].mxu1 }
 0x15b   : > { %v1494_v54 = vadd.f32 %v2633_v20, %v923_v52  ;;  %v1496_v55 = vadd.f32 %v2635_v21, %v1076_v53  ;;  %v925_v56 = vpop.f32.mrb[31].mxu0  ;;  %v1078_v57 = vpop.f32.mrb[31].mxu1 }
 0x15c   : > { %v2230_v58 = vpack.c.bf16 %v1491_v50, %v1490_v46  ;;  %v2231_v59 = vpack.c.bf16 %v1493_v51, %v1492_v47  ;;  %v1495_v60 = vadd.f32 %v2637_v22, %v925_v56  ;;  %v1497_v61 = vadd.f32 %v2639_v23, %v1078_v57 }
 0x15e   : > { %1846 = vst [vmem:[%s2651_s12 + $0xe0] sm:$0xff] %v2230_v58  ;;  %1847 = vst [vmem:[%s2651_s12 + $0xe8] sm:$0xff] %v2231_v59  ;;  %v2232_v62 = vpack.c.bf16 %v1495_v60, %v1494_v54  ;;  %v2233_v63 = vpack.c.bf16 %v1497_v61, %v1496_v55 }
 0x160   : > { %1848 = vst [vmem:[%s2651_s12 + $0xf0] sm:$0xff] %v2232_v62  ;;  %1849 = vst [vmem:[%s2651_s12 + $0xf8] sm:$0xff] %v2233_v63  ;;  %v929_v0 = vpop.f32.mrb[32].mxu0  ;;  %v1082_v1 = vpop.f32.mrb[32].mxu1 }
 0x161   : > { %v1498_v2 = vadd.f32 %v2633_v20, %v929_v0  ;;  %v1500_v3 = vadd.f32 %v2635_v21, %v1082_v1  ;;  %v931_v4 = vpop.f32.mrb[33].mxu0  ;;  %v1084_v5 = vpop.f32.mrb[33].mxu1 }
 0x162   : > { %v1499_v6 = vadd.f32 %v2637_v22, %v931_v4  ;;  %v1501_v7 = vadd.f32 %v2639_v23, %v1084_v5  ;;  %v933_v8 = vpop.f32.mrb[34].mxu0  ;;  %v1086_v9 = vpop.f32.mrb[34].mxu1 }
 0x163   : > { %v1502_v10 = vadd.f32 %v2633_v20, %v933_v8  ;;  %v1504_v11 = vadd.f32 %v2635_v21, %v1086_v9  ;;  %v935_v12 = vpop.f32.mrb[35].mxu0  ;;  %v1088_v13 = vpop.f32.mrb[35].mxu1 }
 0x164   : > { %v2234_v14 = vpack.c.bf16 %v1499_v6, %v1498_v2  ;;  %v2235_v15 = vpack.c.bf16 %v1501_v7, %v1500_v3  ;;  %v1503_v16 = vadd.f32 %v2637_v22, %v935_v12  ;;  %v1505_v17 = vadd.f32 %v2639_v23, %v1088_v13 }
 0x166   : > { %1850 = vst [vmem:[%s2651_s12 + $0x100] sm:$0xff] %v2234_v14  ;;  %1851 = vst [vmem:[%s2651_s12 + $0x108] sm:$0xff] %v2235_v15  ;;  %v2236_v18 = vpack.c.bf16 %v1503_v16, %v1502_v10  ;;  %v2237_v19 = vpack.c.bf16 %v1505_v17, %v1504_v11 }
 0x168   : > { %1852 = vst [vmem:[%s2651_s12 + $0x110] sm:$0xff] %v2236_v18  ;;  %1853 = vst [vmem:[%s2651_s12 + $0x118] sm:$0xff] %v2237_v19  ;;  %v939_v24 = vpop.f32.mrb[36].mxu0  ;;  %v1092_v25 = vpop.f32.mrb[36].mxu1 }
 0x169   : > { %v1506_v26 = vadd.f32 %v2633_v20, %v939_v24  ;;  %v1508_v27 = vadd.f32 %v2635_v21, %v1092_v25  ;;  %v941_v28 = vpop.f32.mrb[37].mxu0  ;;  %v1094_v29 = vpop.f32.mrb[37].mxu1  ;;  %v1899_v24 = vld [vmem:[%s2651_s12 + $0x20] sm:$0xff] (%p2449_p6)  ;;  %v1901_v25 = vld [vmem:[%s2651_s12 + $0x28] sm:$0xff] (%p2449_p6) }
 0x16a   : > { %v1507_v30 = vadd.f32 %v2637_v22, %v941_v28  ;;  %v1509_v31 = vadd.f32 %v2639_v23, %v1094_v29  ;;  %v943_v32 = vpop.f32.mrb[38].mxu0  ;;  %v1096_v33 = vpop.f32.mrb[38].mxu1  ;;  %1900 = vst [vmem:[%s2798_s27 + $0x40] sm:$0xff] (%p2449_p6), %v1899_v24  ;;  %1902 = vst [vmem:[%s2798_s27 + $0x48] sm:$0xff] (%p2449_p6), %v1901_v25  ;;  %v1907_v28 = vld [vmem:[%s2651_s12 + $0x40] sm:$0xff] (%p2449_p6)  ;;  %v1909_v29 = vld [vmem:[%s2651_s12 + $0x48] sm:$0xff] (%p2449_p6) }
 0x16b   : > { %v1510_v34 = vadd.f32 %v2633_v20, %v943_v32  ;;  %v1512_v35 = vadd.f32 %v2635_v21, %v1096_v33  ;;  %v945_v36 = vpop.f32.mrb[39].mxu0  ;;  %v1098_v37 = vpop.f32.mrb[39].mxu1  ;;  %1908 = vst [vmem:[%s2798_s27 + $0x80] sm:$0xff] (%p2449_p6), %v1907_v28  ;;  %1910 = vst [vmem:[%s2798_s27 + $0x88] sm:$0xff] (%p2449_p6), %v1909_v29  ;;  %v1915_v32 = vld [vmem:[%s2651_s12 + $0x60] sm:$0xff] (%p2449_p6)  ;;  %v1917_v33 = vld [vmem:[%s2651_s12 + $0x68] sm:$0xff] (%p2449_p6) }
 0x16c   : > { %v2238_v38 = vpack.c.bf16 %v1507_v30, %v1506_v26  ;;  %v2239_v39 = vpack.c.bf16 %v1509_v31, %v1508_v27  ;;  %v1511_v40 = vadd.f32 %v2637_v22, %v945_v36  ;;  %v1513_v41 = vadd.f32 %v2639_v23, %v1098_v37  ;;  %v1903_v26 = vld [vmem:[%s2651_s12 + $0x30] sm:$0xff] (%p2449_p6)  ;;  %v1905_v27 = vld [vmem:[%s2651_s12 + $0x38] sm:$0xff] (%p2449_p6)  ;;  %1916 = vst [vmem:[%s2798_s27 + $0xc0] sm:$0xff] (%p2449_p6), %v1915_v32  ;;  %v1923_v36 = vld [vmem:[%s2651_s12 + $0x80] sm:$0xff] (%p2449_p6) }
 0x16d   : > { %1904 = vst [vmem:[%s2798_s27 + $0x60] sm:$0xff] (%p2449_p6), %v1903_v26  ;;  %1906 = vst [vmem:[%s2798_s27 + $0x68] sm:$0xff] (%p2449_p6), %v1905_v27  ;;  %v1911_v30 = vld [vmem:[%s2651_s12 + $0x50] sm:$0xff] (%p2449_p6)  ;;  %v1913_v31 = vld [vmem:[%s2651_s12 + $0x58] sm:$0xff] (%p2449_p6) }
 0x16e   : > { %1854 = vst [vmem:[%s2651_s12 + $0x120] sm:$0xff] %v2238_v38  ;;  %1855 = vst [vmem:[%s2651_s12 + $0x128] sm:$0xff] %v2239_v39  ;;  %v2240_v42 = vpack.c.bf16 %v1511_v40, %v1510_v34  ;;  %v2241_v43 = vpack.c.bf16 %v1513_v41, %v1512_v35  ;;  %v1919_v34 = vld [vmem:[%s2651_s12 + $0x70] sm:$0xff] (%p2449_p6)  ;;  %v1921_v35 = vld [vmem:[%s2651_s12 + $0x78] sm:$0xff] (%p2449_p6) }
 0x16f   : > { %1912 = vst [vmem:[%s2798_s27 + $0xa0] sm:$0xff] (%p2449_p6), %v1911_v30  ;;  %1914 = vst [vmem:[%s2798_s27 + $0xa8] sm:$0xff] (%p2449_p6), %v1913_v31  ;;  %v1925_v37 = vld [vmem:[%s2651_s12 + $0x88] sm:$0xff] (%p2449_p6)  ;;  %v1927_v38 = vld [vmem:[%s2651_s12 + $0x90] sm:$0xff] (%p2449_p6) }
 0x170   : > { %1856 = vst [vmem:[%s2651_s12 + $0x130] sm:$0xff] %v2240_v42  ;;  %1857 = vst [vmem:[%s2651_s12 + $0x138] sm:$0xff] %v2241_v43  ;;  %v949_v44 = vpop.f32.mrb[40].mxu0  ;;  %v1102_v45 = vpop.f32.mrb[40].mxu1  ;;  %v1929_v39 = vld [vmem:[%s2651_s12 + $0x98] sm:$0xff] (%p2449_p6)  ;;  %v1931_v40 = vld [vmem:[%s2651_s12 + $0xa0] sm:$0xff] (%p2449_p6) }
 0x171   : > { %v1514_v46 = vadd.f32 %v2633_v20, %v949_v44  ;;  %v1516_v47 = vadd.f32 %v2635_v21, %v1102_v45  ;;  %v951_v48 = vpop.f32.mrb[41].mxu0  ;;  %v1104_v49 = vpop.f32.mrb[41].mxu1  ;;  %1918 = vst [vmem:[%s2798_s27 + $0xc8] sm:$0xff] (%p2449_p6), %v1917_v33  ;;  %1920 = vst [vmem:[%s2798_s27 + $0xe0] sm:$0xff] (%p2449_p6), %v1919_v34  ;;  %v1933_v41 = vld [vmem:[%s2651_s12 + $0xa8] sm:$0xff] (%p2449_p6)  ;;  %v1935_v42 = vld [vmem:[%s2651_s12 + $0xb0] sm:$0xff] (%p2449_p6) }
 0x172   : > { %v1515_v50 = vadd.f32 %v2637_v22, %v951_v48  ;;  %v1517_v51 = vadd.f32 %v2639_v23, %v1104_v49  ;;  %v953_v52 = vpop.f32.mrb[42].mxu0  ;;  %v1106_v53 = vpop.f32.mrb[42].mxu1  ;;  %1922 = vst [vmem:[%s2798_s27 + $0xe8] sm:$0xff] (%p2449_p6), %v1921_v35  ;;  %1924 = vst [vmem:[%s2798_s27 + $0x100] sm:$0xff] (%p2449_p6), %v1923_v36  ;;  %v1937_v43 = vld [vmem:[%s2651_s12 + $0xb8] sm:$0xff] (%p2449_p6)  ;;  %v1939_v44 = vld [vmem:[%s2651_s12 + $0xc0] sm:$0xff] (%p2449_p6) }
 0x173   : > { %v1518_v54 = vadd.f32 %v2633_v20, %v953_v52  ;;  %v1520_v55 = vadd.f32 %v2635_v21, %v1106_v53  ;;  %v955_v56 = vpop.f32.mrb[43].mxu0  ;;  %v1108_v57 = vpop.f32.mrb[43].mxu1  ;;  %1926 = vst [vmem:[%s2798_s27 + $0x108] sm:$0xff] (%p2449_p6), %v1925_v37  ;;  %1928 = vst [vmem:[%s2798_s27 + $0x120] sm:$0xff] (%p2449_p6), %v1927_v38  ;;  %v1941_v45 = vld [vmem:[%s2651_s12 + $0xc8] sm:$0xff] (%p2449_p6)  ;;  %v1947_v48 = vld [vmem:[%s2651_s12 + $0xe0] sm:$0xff] (%p2449_p6) }
 0x174   : > { %v2242_v58 = vpack.c.bf16 %v1515_v50, %v1514_v46  ;;  %v2243_v59 = vpack.c.bf16 %v1517_v51, %v1516_v47  ;;  %v1519_v60 = vadd.f32 %v2637_v22, %v955_v56  ;;  %v1521_v61 = vadd.f32 %v2639_v23, %v1108_v57  ;;  %1930 = vst [vmem:[%s2798_s27 + $0x128] sm:$0xff] (%p2449_p6), %v1929_v39  ;;  %v1943_v46 = vld [vmem:[%s2651_s12 + $0xd0] sm:$0xff] (%p2449_p6)  ;;  %v1945_v47 = vld [vmem:[%s2651_s12 + $0xd8] sm:$0xff] (%p2449_p6)  ;;  %v1949_v49 = vld [vmem:[%s2651_s12 + $0xe8] sm:$0xff] (%p2449_p6) }
 0x175   : > { %1932 = vst [vmem:[%s2798_s27 + $0x140] sm:$0xff] (%p2449_p6), %v1931_v40  ;;  %1934 = vst [vmem:[%s2798_s27 + $0x148] sm:$0xff] (%p2449_p6), %v1933_v41  ;;  %v1951_v50 = vld [vmem:[%s2651_s12 + $0xf0] sm:$0xff] (%p2449_p6)  ;;  %v1953_v51 = vld [vmem:[%s2651_s12 + $0xf8] sm:$0xff] (%p2449_p6) }
 0x176   : > { %1858 = vst [vmem:[%s2651_s12 + $0x140] sm:$0xff] %v2242_v58  ;;  %1859 = vst [vmem:[%s2651_s12 + $0x148] sm:$0xff] %v2243_v59  ;;  %v2244_v62 = vpack.c.bf16 %v1519_v60, %v1518_v54  ;;  %v2245_v63 = vpack.c.bf16 %v1521_v61, %v1520_v55  ;;  %v1955_v52 = vld [vmem:[%s2651_s12 + $0x100] sm:$0xff] (%p2449_p6)  ;;  %v1957_v53 = vld [vmem:[%s2651_s12 + $0x108] sm:$0xff] (%p2449_p6) }
 0x177   : > { %1936 = vst [vmem:[%s2798_s27 + $0x160] sm:$0xff] (%p2449_p6), %v1935_v42  ;;  %1938 = vst [vmem:[%s2798_s27 + $0x168] sm:$0xff] (%p2449_p6), %v1937_v43  ;;  %v1959_v54 = vld [vmem:[%s2651_s12 + $0x110] sm:$0xff] (%p2449_p6)  ;;  %v1961_v55 = vld [vmem:[%s2651_s12 + $0x118] sm:$0xff] (%p2449_p6) }
 0x178   : > { %1860 = vst [vmem:[%s2651_s12 + $0x150] sm:$0xff] %v2244_v62  ;;  %1861 = vst [vmem:[%s2651_s12 + $0x158] sm:$0xff] %v2245_v63  ;;  %v959_v0 = vpop.f32.mrb[44].mxu0  ;;  %v1112_v1 = vpop.f32.mrb[44].mxu1  ;;  %v1963_v56 = vld [vmem:[%s2651_s12 + $0x120] sm:$0xff] (%p2449_p6)  ;;  %v1965_v57 = vld [vmem:[%s2651_s12 + $0x128] sm:$0xff] (%p2449_p6) }
 0x179   : > { %v1522_v2 = vadd.f32 %v2633_v20, %v959_v0  ;;  %v1524_v3 = vadd.f32 %v2635_v21, %v1112_v1  ;;  %v961_v4 = vpop.f32.mrb[45].mxu0  ;;  %v1114_v5 = vpop.f32.mrb[45].mxu1  ;;  %1940 = vst [vmem:[%s2798_s27 + $0x180] sm:$0xff] (%p2449_p6), %v1939_v44  ;;  %1942 = vst [vmem:[%s2798_s27 + $0x188] sm:$0xff] (%p2449_p6), %v1941_v45  ;;  %v1967_v58 = vld [vmem:[%s2651_s12 + $0x130] sm:$0xff] (%p2449_p6)  ;;  %v1969_v59 = vld [vmem:[%s2651_s12 + $0x138] sm:$0xff] (%p2449_p6) }
 0x17a   : > { %v1523_v6 = vadd.f32 %v2637_v22, %v961_v4  ;;  %v1525_v7 = vadd.f32 %v2639_v23, %v1114_v5  ;;  %v963_v8 = vpop.f32.mrb[46].mxu0  ;;  %v1116_v9 = vpop.f32.mrb[46].mxu1  ;;  %1872 = sbr.rel (!%p2449_p6) target bundleno = 394 (0x18a), region = 67  ;;  %1944 = vst [vmem:[%s2798_s27 + $0x1a0] sm:$0xff] (%p2449_p6), %v1943_v46  ;;  %1946 = vst [vmem:[%s2798_s27 + $0x1a8] sm:$0xff] (%p2449_p6), %v1945_v47 }
 0x17b   : > { %v1526_v10 = vadd.f32 %v2633_v20, %v963_v8  ;;  %v1528_v11 = vadd.f32 %v2635_v21, %v1116_v9  ;;  %v965_v12 = vpop.f32.mrb[47].mxu0  ;;  %v1118_v13 = vpop.f32.mrb[47].mxu1  ;;  %v1891_v20 = vld [vmem:[%s2651_s12] sm:$0xff] (%p2449_p6)  ;;  %v1893_v21 = vld [vmem:[%s2651_s12 + $0x8] sm:$0xff] (%p2449_p6)  ;;  %1948 = vst [vmem:[%s2798_s27 + $0x1c0] sm:$0xff] (%p2449_p6), %v1947_v48  ;;  %1950 = vst [vmem:[%s2798_s27 + $0x1c8] sm:$0xff] (%p2449_p6), %v1949_v49 }
 0x17c   : > { %v2246_v14 = vpack.c.bf16 %v1523_v6, %v1522_v2  ;;  %v2247_v15 = vpack.c.bf16 %v1525_v7, %v1524_v3  ;;  %v1527_v16 = vadd.f32 %v2637_v22, %v965_v12  ;;  %v1529_v17 = vadd.f32 %v2639_v23, %v1118_v13  ;;  %v1895_v22 = vld [vmem:[%s2651_s12 + $0x10] sm:$0xff] (%p2449_p6)  ;;  %v1897_v23 = vld [vmem:[%s2651_s12 + $0x18] sm:$0xff] (%p2449_p6)  ;;  %1892 = vst [vmem:[%s2798_s27] sm:$0xff] (%p2449_p6), %v1891_v20 }
 0x17d   : > { %1894 = vst [vmem:[%s2798_s27 + $0x8] sm:$0xff] (%p2449_p6), %v1893_v21  ;;  %1896 = vst [vmem:[%s2798_s27 + $0x20] sm:$0xff] (%p2449_p6), %v1895_v22  ;;  %v1971_v60 = vld [vmem:[%s2651_s12 + $0x140] sm:$0xff] (%p2449_p6)  ;;  %v1973_v61 = vld [vmem:[%s2651_s12 + $0x148] sm:$0xff] (%p2449_p6) }
 0x17e   : > { %1862 = vst [vmem:[%s2651_s12 + $0x160] sm:$0xff] %v2246_v14  ;;  %1863 = vst [vmem:[%s2651_s12 + $0x168] sm:$0xff] %v2247_v15  ;;  %v2248_v18 = vpack.c.bf16 %v1527_v16, %v1526_v10  ;;  %v2249_v19 = vpack.c.bf16 %v1529_v17, %v1528_v11 }
 0x17f   : > { %1898 = vst [vmem:[%s2798_s27 + $0x28] sm:$0xff] (%p2449_p6), %v1897_v23  ;;  %1952 = vst [vmem:[%s2798_s27 + $0x1e0] sm:$0xff] (%p2449_p6), %v1951_v50  ;;  %v1975_v62 = vld [vmem:[%s2651_s12 + $0x150] sm:$0xff] (%p2449_p6)  ;;  %v1977_v63 = vld [vmem:[%s2651_s12 + $0x158] sm:$0xff] (%p2449_p6) }
 0x180   : > { %1864 = vst [vmem:[%s2651_s12 + $0x170] sm:$0xff] %v2248_v18  ;;  %1865 = vst [vmem:[%s2651_s12 + $0x178] sm:$0xff] %v2249_v19 }
 0x181   : > { %1954 = vst [vmem:[%s2798_s27 + $0x1e8] sm:$0xff] %v1953_v51  ;;  %1956 = vst [vmem:[%s2798_s27 + $0x200] sm:$0xff] %v1955_v52 }
 0x182   : > { %1958 = vst [vmem:[%s2798_s27 + $0x208] sm:$0xff] %v1957_v53  ;;  %1960 = vst [vmem:[%s2798_s27 + $0x220] sm:$0xff] %v1959_v54 }
 0x183   : > { %1962 = vst [vmem:[%s2798_s27 + $0x228] sm:$0xff] %v1961_v55  ;;  %1964 = vst [vmem:[%s2798_s27 + $0x240] sm:$0xff] %v1963_v56 }
 0x184   : > { %1966 = vst [vmem:[%s2798_s27 + $0x248] sm:$0xff] %v1965_v57  ;;  %1968 = vst [vmem:[%s2798_s27 + $0x260] sm:$0xff] %v1967_v58 }
 0x185   : > { %1970 = vst [vmem:[%s2798_s27 + $0x268] sm:$0xff] %v1969_v59  ;;  %1972 = vst [vmem:[%s2798_s27 + $0x280] sm:$0xff] %v1971_v60  ;;  %v1979_v0 = vld [vmem:[%s2651_s12 + $0x160] sm:$0xff]  ;;  %v1981_v1 = vld [vmem:[%s2651_s12 + $0x168] sm:$0xff] }
 0x186   : > { %1974 = vst [vmem:[%s2798_s27 + $0x288] sm:$0xff] %v1973_v61  ;;  %1976 = vst [vmem:[%s2798_s27 + $0x2a0] sm:$0xff] %v1975_v62 }
 0x187   : > { %1978 = vst [vmem:[%s2798_s27 + $0x2a8] sm:$0xff] %v1977_v63  ;;  %1980 = vst [vmem:[%s2798_s27 + $0x2c0] sm:$0xff] %v1979_v0  ;;  %v1983_v2 = vld [vmem:[%s2651_s12 + $0x170] sm:$0xff]  ;;  %v1985_v3 = vld [vmem:[%s2651_s12 + $0x178] sm:$0xff] }
 0x188   : > { %1982 = vst [vmem:[%s2798_s27 + $0x2c8] sm:$0xff] %v1981_v1  ;;  %1984 = vst [vmem:[%s2798_s27 + $0x2e0] sm:$0xff] %v1983_v2 }
 0x189   : > { %1986 = vst [vmem:[%s2798_s27 + $0x2e8] sm:$0xff] %v1985_v3 }
 0x18a PF: > { %s13_s16 = sadd.s32 1, %s2391_s16   ;;  %s2913_s12 = smov %s2379_s13 }
 0x18b   : > { %p10_p12 = scmp.ge.s32.totalorder %s13_s16, 4   ;;  %s2914_s13 = smov %s2454_s22 }
 0x18c   : > { %s2915_s14 = smov %s2387_s15  ;;  %s2916_s15 = smov %s2918_s17 }
 0x18d   :  { %12 = sbr.rel (!%p10_p12) target bundleno = 3 (0x3), region = 127 }

// kernel: _lambda_.11
= control target key start
LH: loop header
LB: loop body
LE: loop exit
PB: predicated region body
PF: predicated region fallthrough
CT: control target
= control target key end

     0   :  { %s1170_s12 = smov 0   ;;  %s1172_s13 = smov 0   ;;  %s1380_s0 = inlined_call_operand.vmem [shape: bf16[2,128,128], index: 0, kind: input, shape index: {}]   ;;  %s1381_s1 = inlined_call_operand.vmem [shape: bf16[2,128,256], index: 1, kind: input, shape index: {}]   ;;  %s1382_s2 = inlined_call_operand.vmem [shape: f32[1,256], index: 2, kind: input, shape index: {}]   ;;  %s1383_s3 = inlined_call_operand.vmem [shape: f32[128,256], index: 3, kind: output, shape index: {}]  }
   0x1   :  { %s1174_s14 = smov 0  }
   0x2 LB: > { %s25_s15 = sadd.s32 1, %s1142_s13  ;;  %p949_p0 = scmp.ge.s32.totalorder %s1146_s14, 1  ;;  %s1146_s14 = sphi %s1174_s14, %s13_s14   ;;  %s1142_s13 = sphi %s1172_s13, %s1385_s13   ;;  %s1138_s12 = sphi %s1170_s12, %s1384_s12  }
   0x3   : > { %p26_p1 = scmp.ge.s32.totalorder %s25_s15, 2  ;;  %p192_p2 = scmp.lt.s32.totalorder %s1146_s14, 3 }
   0x5   : > { %s1387_s15 = smov (%p26_p1, %s25_s15), 0  ;;  %p193_p3 = pnand %p949_p0, %p192_p2 }
   0x6   : > { %p239_p4 = scmp.lt.s32.totalorder (!%p193_p3), %s1138_s12, 1  ;;  %p954_p5 = scmp.ne.s32.totalorder (!%p193_p3), %s1138_s12, 0 }
   0x7   : > { %196 = sbr.rel (%p193_p3) target bundleno = 345 (0x159), region = 32 }
   0xe   : > { %s240_s16 = scalar_select %p239_p4, %s1138_s12, 1 }
   0xf   : > { %279 = sbr.rel (%p954_p5) target bundleno = 32 (0x20), region = 36  ;;  %v1148_v0 = vmov (!%p954_p5), 0.0  }
  0x10   : > { %s984_s17 = sshll.u32 %s240_s16, 6  ;;  %s985_s18 = sshll.u32 %s240_s16, 7  ;;  %280 = vst [vmem:[#allocation2] sm:$0xff] (!%p954_p5), %v1148_v0  ;;  %281 = vst [vmem:[#allocation2 + $0x8] sm:$0xff] (!%p954_p5), %v1148_v0 }
  0x11   : > { %s1195_s21 = scalar_lea.vmem %s1380_s0, %s984_s17  ;;  %s1200_s24 = scalar_lea.vmem %s1381_s1, %s985_s18  ;;  %282 = vst [vmem:[#allocation2 + $0x10] sm:$0xff] (!%p954_p5), %v1148_v0  ;;  %283 = vst [vmem:[#allocation2 + $0x18] sm:$0xff] (!%p954_p5), %v1148_v0 }
  0x12   : > { %284 = vst [vmem:[#allocation2 + $0x20] sm:$0xff] (!%p954_p5), %v1148_v0  ;;  %285 = vst [vmem:[#allocation2 + $0x28] sm:$0xff] (!%p954_p5), %v1148_v0 }
  0x13   : > { %286 = vst [vmem:[#allocation2 + $0x30] sm:$0xff] (!%p954_p5), %v1148_v0  ;;  %287 = vst [vmem:[#allocation2 + $0x38] sm:$0xff] (!%p954_p5), %v1148_v0 }
  0x14   : > { %288 = vst [vmem:[#allocation2 + $0x40] sm:$0xff] (!%p954_p5), %v1148_v0  ;;  %289 = vst [vmem:[#allocation2 + $0x48] sm:$0xff] (!%p954_p5), %v1148_v0 }
  0x15   : > { %290 = vst [vmem:[#allocation2 + $0x50] sm:$0xff] (!%p954_p5), %v1148_v0  ;;  %291 = vst [vmem:[#allocation2 + $0x58] sm:$0xff] (!%p954_p5), %v1148_v0 }
  0x16   : > { %292 = vst [vmem:[#allocation2 + $0x60] sm:$0xff] %v1148_v0  ;;  %293 = vst [vmem:[#allocation2 + $0x68] sm:$0xff] %v1148_v0 }
  0x17   : > { %294 = vst [vmem:[#allocation2 + $0x70] sm:$0xff] %v1148_v0  ;;  %295 = vst [vmem:[#allocation2 + $0x78] sm:$0xff] %v1148_v0 }
  0x18   : > { %296 = vst [vmem:[#allocation2 + $0x80] sm:$0xff] %v1148_v0  ;;  %297 = vst [vmem:[#allocation2 + $0x88] sm:$0xff] %v1148_v0 }
  0x19   : > { %298 = vst [vmem:[#allocation2 + $0x90] sm:$0xff] %v1148_v0  ;;  %299 = vst [vmem:[#allocation2 + $0x98] sm:$0xff] %v1148_v0 }
  0x1a   : > { %300 = vst [vmem:[#allocation2 + $0xa0] sm:$0xff] %v1148_v0  ;;  %301 = vst [vmem:[#allocation2 + $0xa8] sm:$0xff] %v1148_v0 }
  0x1b   : > { %302 = vst [vmem:[#allocation2 + $0xb0] sm:$0xff] %v1148_v0  ;;  %303 = vst [vmem:[#allocation2 + $0xb8] sm:$0xff] %v1148_v0 }
  0x1c   : > { %304 = vst [vmem:[#allocation2 + $0xc0] sm:$0xff] %v1148_v0  ;;  %305 = vst [vmem:[#allocation2 + $0xc8] sm:$0xff] %v1148_v0 }
  0x1d   : > { %306 = vst [vmem:[#allocation2 + $0xd0] sm:$0xff] %v1148_v0  ;;  %307 = vst [vmem:[#allocation2 + $0xd8] sm:$0xff] %v1148_v0 }
  0x1e   : > { %308 = vst [vmem:[#allocation2 + $0xe0] sm:$0xff] %v1148_v0  ;;  %309 = vst [vmem:[#allocation2 + $0xe8] sm:$0xff] %v1148_v0 }
  0x1f   : > { %310 = vst [vmem:[#allocation2 + $0xf0] sm:$0xff] %v1148_v0  ;;  %311 = vst [vmem:[#allocation2 + $0xf8] sm:$0xff] %v1148_v0 }
  0x20 PF: > { %v1028_v1 = vld [vmem:[%s1200_s24 + $0x4] ss:$8 sps:$4 sm:$0xff]   ;;  %v1030_v2 = vld [vmem:[%s1200_s24] ss:$8 sps:$4 sm:$0xff]   ;;  %v1149_v3 = vmov 0   ;;  %v1056_v22 = vld [vmem:[%s1195_s21 + $0x10] sm:$0xff]  }
  0x21   : > { %536 = vmatprep.mubr.bf16.mxu0 %v1149_v3  ;;  %576 = vmatprep.mubr.bf16.mxu1 %v1149_v3  ;;  %v1031_v4 = vld [vmem:[%s1200_s24 + $0x14] ss:$8 sps:$4 sm:$0xff]   ;;  %v1033_v5 = vld [vmem:[%s1200_s24 + $0x10] ss:$8 sps:$4 sm:$0xff]   ;;  %v1034_v6 = vld [vmem:[%s1200_s24 + $0x24] ss:$8 sps:$4 sm:$0xff]  }
  0x22   : > { %504 = vmatprep.subr.bf16.mxu0 %v1028_v1  ;;  %986 = vmatprep.subr.bf16.mxu1 %v1028_v1  ;;  %v1036_v7 = vld [vmem:[%s1200_s24 + $0x20] ss:$8 sps:$4 sm:$0xff]   ;;  %v1037_v8 = vld [vmem:[%s1200_s24 + $0x34] ss:$8 sps:$4 sm:$0xff]   ;;  %v1039_v9 = vld [vmem:[%s1200_s24 + $0x30] ss:$8 sps:$4 sm:$0xff]  }
  0x23   : > { %505 = vmatpush1.bf16.msra.mxu0 %v1030_v2  ;;  %994 = vmatpush1.bf16.msra.mxu1 %v1030_v2  ;;  %v1040_v10 = vld [vmem:[%s1200_s24 + $0x44] ss:$8 sps:$4 sm:$0xff]   ;;  %v1042_v11 = vld [vmem:[%s1200_s24 + $0x40] ss:$8 sps:$4 sm:$0xff]   ;;  %v1043_v12 = vld [vmem:[%s1200_s24 + $0x54] ss:$8 sps:$4 sm:$0xff]  }
  0x24   : > { %506 = vmatprep.subr.bf16.mxu0 %v1031_v4  ;;  %987 = vmatprep.subr.bf16.mxu1 %v1031_v4  ;;  %v1045_v13 = vld [vmem:[%s1200_s24 + $0x50] ss:$8 sps:$4 sm:$0xff]   ;;  %v1046_v14 = vld [vmem:[%s1200_s24 + $0x64] ss:$8 sps:$4 sm:$0xff]   ;;  %v1048_v15 = vld [vmem:[%s1200_s24 + $0x60] ss:$8 sps:$4 sm:$0xff]  }
  0x25   : > { %v1049_v16 = vld [vmem:[%s1200_s24 + $0x74] ss:$8 sps:$4 sm:$0xff]   ;;  %v1051_v17 = vld [vmem:[%s1200_s24 + $0x70] ss:$8 sps:$4 sm:$0xff]   ;;  %v1052_v18 = vld [vmem:[%s1195_s21] sm:$0xff]   ;;  %p979_p6 = scmp.ne.s32.totalorder %s1138_s12, 1 }
  0x26   : > { %v1053_v19 = vld [vmem:[%s1195_s21 + $0x20] sm:$0xff]   ;;  %v1054_v20 = vld [vmem:[%s1195_s21 + $0x8] sm:$0xff]   ;;  %v1057_v23 = vld [vmem:[%s1195_s21 + $0x30] sm:$0xff]  }
  0x27   : > { %507 = vmatpush1.bf16.msra.mxu0 %v1033_v5  ;;  %995 = vmatpush1.bf16.msra.mxu1 %v1033_v5  ;;  %v1055_v21 = vld [vmem:[%s1195_s21 + $0x28] sm:$0xff]   ;;  %v1058_v24 = vld [vmem:[%s1195_s21 + $0x18] sm:$0xff]   ;;  %v312_v26 = vld [vmem:[#allocation2] sm:$0xff] }
  0x28   : > { %508 = vmatprep.subr.bf16.mxu0 %v1034_v6  ;;  %988 = vmatprep.subr.bf16.mxu1 %v1034_v6  ;;  %v1059_v25 = vld [vmem:[%s1195_s21 + $0x38] sm:$0xff]   ;;  %v328_v27 = vld [vmem:[#allocation2 + $0x80] sm:$0xff]  ;;  %v313_v28 = vld [vmem:[#allocation2 + $0x8] sm:$0xff] }
  0x29   : > { %v329_v29 = vld [vmem:[#allocation2 + $0x88] sm:$0xff]  ;;  %v314_v32 = vld [vmem:[#allocation2 + $0x10] sm:$0xff]  ;;  %v315_v38 = vld [vmem:[#allocation2 + $0x18] sm:$0xff] }
  0x2a   : > { %v330_v33 = vld [vmem:[#allocation2 + $0x90] sm:$0xff]  ;;  %v331_v39 = vld [vmem:[#allocation2 + $0x98] sm:$0xff]  ;;  %v316_v50 = vld [vmem:[#allocation2 + $0x20] sm:$0xff] }
  0x2b   : > { %509 = vmatpush1.bf16.msra.mxu0 %v1036_v7  ;;  %996 = vmatpush1.bf16.msra.mxu1 %v1036_v7  ;;  %v332_v51 = vld [vmem:[#allocation2 + $0xa0] sm:$0xff]  ;;  %v317_v52 = vld [vmem:[#allocation2 + $0x28] sm:$0xff]  ;;  %v318_v56 = vld [vmem:[#allocation2 + $0x30] sm:$0xff] }
  0x2c   : > { %510 = vmatprep.subr.bf16.mxu0 %v1037_v8  ;;  %989 = vmatprep.subr.bf16.mxu1 %v1037_v8  ;;  %v333_v53 = vld [vmem:[#allocation2 + $0xa8] sm:$0xff]  ;;  %v334_v57 = vld [vmem:[#allocation2 + $0xb0] sm:$0xff]  ;;  %v319_v62 = vld [vmem:[#allocation2 + $0x38] sm:$0xff] }
  0x2d   : > { %v335_v63 = vld [vmem:[#allocation2 + $0xb8] sm:$0xff] }
  0x2f   : > { %511 = vmatpush1.bf16.msra.mxu0 %v1039_v9  ;;  %997 = vmatpush1.bf16.msra.mxu1 %v1039_v9 }
  0x30   : > { %512 = vmatprep.subr.bf16.mxu0 %v1040_v10  ;;  %990 = vmatprep.subr.bf16.mxu1 %v1040_v10  ;;  %v320_v10 = vld [vmem:[#allocation2 + $0x40] sm:$0xff] }
  0x33   : > { %513 = vmatpush1.bf16.msra.mxu0 %v1042_v11  ;;  %998 = vmatpush1.bf16.msra.mxu1 %v1042_v11  ;;  %v336_v11 = vld [vmem:[#allocation2 + $0xc0] sm:$0xff] }
  0x34   : > { %514 = vmatprep.subr.bf16.mxu0 %v1043_v12  ;;  %991 = vmatprep.subr.bf16.mxu1 %v1043_v12  ;;  %v321_v12 = vld [vmem:[#allocation2 + $0x48] sm:$0xff] }
  0x37   : > { %515 = vmatpush1.bf16.msra.mxu0 %v1045_v13  ;;  %999 = vmatpush1.bf16.msra.mxu1 %v1045_v13  ;;  %v337_v13 = vld [vmem:[#allocation2 + $0xc8] sm:$0xff] }
  0x38   : > { %516 = vmatprep.subr.bf16.mxu0 %v1046_v14  ;;  %992 = vmatprep.subr.bf16.mxu1 %v1046_v14 }
  0x3b   : > { %517 = vmatpush1.bf16.msra.mxu0 %v1048_v15  ;;  %1000 = vmatpush1.bf16.msra.mxu1 %v1048_v15 }
  0x3c   : > { %518 = vmatprep.subr.bf16.mxu0 %v1049_v16  ;;  %993 = vmatprep.subr.bf16.mxu1 %v1049_v16  ;;  %v322_v16 = vld [vmem:[#allocation2 + $0x50] sm:$0xff] }
  0x3f   : > { %519 = vmatpush1.bf16.msra.mxu0 %v1051_v17  ;;  %1001 = vmatpush1.bf16.msra.mxu1 %v1051_v17  ;;  %v338_v17 = vld [vmem:[#allocation2 + $0xd0] sm:$0xff] }
  0x42   : > { %537 = vmatmul.mubr.bf16.vlgmr.msra.gmra.mrb[0].mxu0 %v1052_v18  ;;  %577 = vmatmul.mubr.bf16.vlgmr.msra.gmra.mrb[0].mxu1 %v1053_v19 }
  0x43   : > { %546 = vmatprep.mubr.bf16.mxu0 %v1149_v3  ;;  %586 = vmatprep.mubr.bf16.mxu1 %v1149_v3 }
  0x4a   : > { %547 = vmatmul.mubr.bf16.gmra.mrb[4].mxu0 %v1054_v20  ;;  %587 = vmatmul.mubr.bf16.gmra.mrb[4].mxu1 %v1055_v21 }
  0x4b   : > { %556 = vmatprep.mubr.bf16.mxu0 %v1149_v3  ;;  %596 = vmatprep.mubr.bf16.mxu1 %v1149_v3 }
  0x52   : > { %557 = vmatmul.mubr.bf16.gmra.mrb[8].mxu0 %v1056_v22  ;;  %597 = vmatmul.mubr.bf16.gmra.mrb[8].mxu1 %v1057_v23  ;;  %v323_v22 = vld [vmem:[#allocation2 + $0x58] sm:$0xff] }
  0x53   : > { %566 = vmatprep.mubr.bf16.mxu0 %v1149_v3  ;;  %606 = vmatprep.mubr.bf16.mxu1 %v1149_v3  ;;  %v339_v23 = vld [vmem:[#allocation2 + $0xd8] sm:$0xff] }
  0x5a   : > { %567 = vmatmul.mubr.bf16.gmra.mrb[12].mxu0 %v1058_v24  ;;  %607 = vmatmul.mubr.bf16.gmra.mrb[12].mxu1 %v1059_v25 }
 0x115   : > { %v538_v30 = vpop.f32.mrb[0].mxu0  ;;  %v578_v31 = vpop.f32.mrb[0].mxu1 }
 0x116   : > { %v617_v34 = vadd.f32 %v538_v30, %v312_v26  ;;  %v633_v35 = vadd.f32 %v578_v31, %v328_v27  ;;  %v540_v36 = vpop.f32.mrb[1].mxu0  ;;  %v580_v37 = vpop.f32.mrb[1].mxu1 }
 0x117   : > { %v618_v40 = vadd.f32 %v540_v36, %v313_v28  ;;  %v634_v41 = vadd.f32 %v580_v37, %v329_v29  ;;  %v542_v42 = vpop.f32.mrb[2].mxu0  ;;  %v582_v43 = vpop.f32.mrb[2].mxu1  ;;  %v325_v36 = vld [vmem:[#allocation2 + $0x68] sm:$0xff] }
 0x118   : > { %649 = vst [vmem:[#allocation2] sm:$0xff] %v617_v34  ;;  %665 = vst [vmem:[#allocation2 + $0x80] sm:$0xff] %v633_v35  ;;  %v619_v44 = vadd.f32 %v542_v42, %v314_v32  ;;  %v635_v45 = vadd.f32 %v582_v43, %v330_v33  ;;  %v544_v46 = vpop.f32.mrb[3].mxu0  ;;  %v584_v47 = vpop.f32.mrb[3].mxu1  ;;  %v324_v34 = vld [vmem:[#allocation2 + $0x60] sm:$0xff]  ;;  %v341_v37 = vld [vmem:[#allocation2 + $0xe8] sm:$0xff] }
 0x119   : > { %650 = vst [vmem:[#allocation2 + $0x8] sm:$0xff] %v618_v40  ;;  %666 = vst [vmem:[#allocation2 + $0x88] sm:$0xff] %v634_v41  ;;  %v620_v48 = vadd.f32 %v544_v46, %v315_v38  ;;  %v636_v49 = vadd.f32 %v584_v47, %v331_v39  ;;  %v340_v35 = vld [vmem:[#allocation2 + $0xe0] sm:$0xff]  ;;  %v326_v40 = vld [vmem:[#allocation2 + $0x70] sm:$0xff] }
 0x11a   : > { %651 = vst [vmem:[#allocation2 + $0x10] sm:$0xff] %v619_v44  ;;  %667 = vst [vmem:[#allocation2 + $0x90] sm:$0xff] %v635_v45  ;;  %v342_v41 = vld [vmem:[#allocation2 + $0xf0] sm:$0xff]  ;;  %v327_v46 = vld [vmem:[#allocation2 + $0x78] sm:$0xff] }
 0x11b   : > { %652 = vst [vmem:[#allocation2 + $0x18] sm:$0xff] %v620_v48  ;;  %668 = vst [vmem:[#allocation2 + $0x98] sm:$0xff] %v636_v49  ;;  %v343_v47 = vld [vmem:[#allocation2 + $0xf8] sm:$0xff] }
 0x11d   : > { %v548_v54 = vpop.f32.mrb[4].mxu0  ;;  %v588_v55 = vpop.f32.mrb[4].mxu1 }
 0x11e   : > { %v621_v58 = vadd.f32 %v548_v54, %v316_v50  ;;  %v637_v59 = vadd.f32 %v588_v55, %v332_v51  ;;  %v550_v60 = vpop.f32.mrb[5].mxu0  ;;  %v590_v61 = vpop.f32.mrb[5].mxu1 }
 0x11f   : > { %v622_v0 = vadd.f32 %v550_v60, %v317_v52  ;;  %v638_v1 = vadd.f32 %v590_v61, %v333_v53  ;;  %v552_v2 = vpop.f32.mrb[6].mxu0  ;;  %v592_v3 = vpop.f32.mrb[6].mxu1  ;;  %v717_v60 = vld [vmem:[%s1382_s2] sm:$0x3] (!%p979_p6) }
 0x120   : > { %653 = vst [vmem:[#allocation2 + $0x20] sm:$0xff] %v621_v58  ;;  %669 = vst [vmem:[#allocation2 + $0xa0] sm:$0xff] %v637_v59  ;;  %v623_v4 = vadd.f32 %v552_v2, %v318_v56  ;;  %v639_v5 = vadd.f32 %v592_v3, %v334_v57  ;;  %v554_v6 = vpop.f32.mrb[7].mxu0  ;;  %v594_v7 = vpop.f32.mrb[7].mxu1  ;;  %v719_v58 = vlaneseq (!%p979_p6) }
 0x121   : > { %654 = vst [vmem:[#allocation2 + $0x28] sm:$0xff] %v622_v0  ;;  %670 = vst [vmem:[#allocation2 + $0xa8] sm:$0xff] %v638_v1  ;;  %v624_v8 = vadd.f32 %v554_v6, %v319_v62  ;;  %v640_v9 = vadd.f32 %v594_v7, %v335_v63  ;;  %v685_v63 = vld [vmem:[#allocation2] sm:$0xff] (!%p979_p6)  ;;  %v686_v0 = vld [vmem:[#allocation2 + $0x8] sm:$0xff] (!%p979_p6) }
 0x122   : > { %655 = vst [vmem:[#allocation2 + $0x30] sm:$0xff] %v623_v4  ;;  %671 = vst [vmem:[#allocation2 + $0xb0] sm:$0xff] %v639_v5  ;;  %v720_v59 = vshrl.u32 (!%p979_p6), %v719_v58, 7  ;;  %v687_v1 = vld [vmem:[#allocation2 + $0x10] sm:$0xff] (!%p979_p6)  ;;  %v688_v4 = vld [vmem:[#allocation2 + $0x18] sm:$0xff] (!%p979_p6) }
 0x123   : > { %656 = vst [vmem:[#allocation2 + $0x38] sm:$0xff] %v624_v8  ;;  %672 = vst [vmem:[#allocation2 + $0xb8] sm:$0xff] %v640_v9 }
 0x124   : > { %v721_v61 = vsub.s32 (!%p979_p6), 0, %v720_v59  ;;  %v725_v62 = vsub.s32 (!%p979_p6), 1, %v720_v59 }
 0x125   : > { %v558_v14 = vpop.f32.mrb[8].mxu0  ;;  %v598_v15 = vpop.f32.mrb[8].mxu1 }
 0x126   : > { %v625_v18 = vadd.f32 %v558_v14, %v320_v10  ;;  %v641_v19 = vadd.f32 %v598_v15, %v336_v11  ;;  %v560_v20 = vpop.f32.mrb[9].mxu0  ;;  %v600_v21 = vpop.f32.mrb[9].mxu1  ;;  %v1239_v2 = vrot.slane (!%p979_p6), %v717_v60, %v721_v61  ;;  %v1241_v3 = vrot.slane (!%p979_p6), %v717_v60, %v725_v62 }
 0x127   : > { %v626_v24 = vadd.f32 %v560_v20, %v321_v12  ;;  %v642_v25 = vadd.f32 %v600_v21, %v337_v13  ;;  %v562_v26 = vpop.f32.mrb[10].mxu0  ;;  %v602_v27 = vpop.f32.mrb[10].mxu1  ;;  %v689_v5 = vld [vmem:[#allocation2 + $0x20] sm:$0xff] (!%p979_p6) }
 0x128   : > { %657 = vst [vmem:[#allocation2 + $0x40] sm:$0xff] %v625_v18  ;;  %673 = vst [vmem:[#allocation2 + $0xc0] sm:$0xff] %v641_v19  ;;  %v627_v28 = vadd.f32 %v562_v26, %v322_v16  ;;  %v643_v29 = vadd.f32 %v602_v27, %v338_v17  ;;  %v564_v30 = vpop.f32.mrb[11].mxu0  ;;  %v604_v31 = vpop.f32.mrb[11].mxu1  ;;  %v729_v6 = vadd.f32 (!%p979_p6), %v1239_v2, %v685_v63  ;;  %v690_v9 = vld [vmem:[#allocation2 + $0x28] sm:$0xff] (!%p979_p6) }
 0x129   : > { %658 = vst [vmem:[#allocation2 + $0x48] sm:$0xff] %v626_v24  ;;  %674 = vst [vmem:[#allocation2 + $0xc8] sm:$0xff] %v642_v25  ;;  %v628_v32 = vadd.f32 %v564_v30, %v323_v22  ;;  %v644_v33 = vadd.f32 %v604_v31, %v339_v23  ;;  %v730_v7 = vadd.f32 (!%p979_p6), %v1241_v3, %v686_v0  ;;  %v691_v11 = vld [vmem:[#allocation2 + $0x30] sm:$0xff] (!%p979_p6)  ;;  %v701_v31 = vld [vmem:[#allocation2 + $0x80] sm:$0xff] (!%p979_p6) }
 0x12a   : > { %659 = vst [vmem:[#allocation2 + $0x50] sm:$0xff] %v627_v28  ;;  %675 = vst [vmem:[#allocation2 + $0xd0] sm:$0xff] %v643_v29  ;;  %v731_v8 = vadd.f32 (!%p979_p6), %v1239_v2, %v687_v1  ;;  %v732_v10 = vadd.f32 (!%p979_p6), %v1241_v3, %v688_v4  ;;  %1060 = vtanh.f32 (!%p979_p6), %v729_v6  ;;  %v733_v12 = vadd.f32 (!%p979_p6), %v1239_v2, %v689_v5  ;;  %v692_v13 = vld [vmem:[#allocation2 + $0x38] sm:$0xff] (!%p979_p6) }
 0x12b   : > { %660 = vst [vmem:[#allocation2 + $0x58] sm:$0xff] %v628_v32  ;;  %676 = vst [vmem:[#allocation2 + $0xd8] sm:$0xff] %v644_v33  ;;  %1062 = vtanh.f32 (!%p979_p6), %v730_v7  ;;  %v734_v14 = vadd.f32 (!%p979_p6), %v1241_v3, %v690_v9  ;;  %v735_v16 = vadd.f32 (!%p979_p6), %v1239_v2, %v691_v11  ;;  %v736_v18 = vadd.f32 (!%p979_p6), %v1241_v3, %v692_v13 }
 0x12c   : > { %1064 = vtanh.f32 (!%p979_p6), %v731_v8 }
 0x12d   : > { %v568_v38 = vpop.f32.mrb[12].mxu0  ;;  %v608_v39 = vpop.f32.mrb[12].mxu1  ;;  %684 = sbr.rel (%p979_p6) target bundleno = 345 (0x159), region = 40  ;;  %1066 = vtanh.f32 (!%p979_p6), %v732_v10 }
 0x12e   : > { %v629_v42 = vadd.f32 %v568_v38, %v324_v34  ;;  %v645_v43 = vadd.f32 %v608_v39, %v340_v35  ;;  %v570_v44 = vpop.f32.mrb[13].mxu0  ;;  %v610_v45 = vpop.f32.mrb[13].mxu1  ;;  %1068 = vtanh.f32 (!%p979_p6), %v733_v12  ;;  %v702_v34 = vld [vmem:[#allocation2 + $0x88] sm:$0xff] (!%p979_p6)  ;;  %v745_v39 = vadd.f32 (!%p979_p6), %v1239_v2, %v701_v31 }
 0x12f   : > { %v630_v48 = vadd.f32 %v570_v44, %v325_v36  ;;  %v646_v49 = vadd.f32 %v610_v45, %v341_v37  ;;  %v572_v50 = vpop.f32.mrb[14].mxu0  ;;  %v612_v51 = vpop.f32.mrb[14].mxu1  ;;  %v693_v15 = vld [vmem:[#allocation2 + $0x40] sm:$0xff] (!%p979_p6)  ;;  %1070 = vtanh.f32 (!%p979_p6), %v734_v14  ;;  %v703_v37 = vld [vmem:[#allocation2 + $0x90] sm:$0xff] (!%p979_p6) }
 0x130   : > { %661 = vst [vmem:[#allocation2 + $0x60] sm:$0xff] %v629_v42  ;;  %677 = vst [vmem:[#allocation2 + $0xe0] sm:$0xff] %v645_v43  ;;  %v631_v52 = vadd.f32 %v572_v50, %v326_v40  ;;  %v647_v53 = vadd.f32 %v612_v51, %v342_v41  ;;  %v574_v54 = vpop.f32.mrb[15].mxu0  ;;  %v614_v55 = vpop.f32.mrb[15].mxu1  ;;  %v694_v17 = vld [vmem:[#allocation2 + $0x48] sm:$0xff] (!%p979_p6)  ;;  %v737_v20 = vadd.f32 (!%p979_p6), %v1239_v2, %v693_v15  ;;  %1072 = vtanh.f32 (!%p979_p6), %v735_v16  ;;  %v704_v40 = vld [vmem:[#allocation2 + $0x98] sm:$0xff] (!%p979_p6) }
 0x131   : > { %662 = vst [vmem:[#allocation2 + $0x68] sm:$0xff] %v630_v48  ;;  %678 = vst [vmem:[#allocation2 + $0xe8] sm:$0xff] %v646_v49  ;;  %v632_v56 = vadd.f32 %v574_v54, %v327_v46  ;;  %v648_v57 = vadd.f32 %v614_v55, %v343_v47  ;;  %v695_v19 = vld [vmem:[#allocation2 + $0x50] sm:$0xff] (!%p979_p6)  ;;  %v738_v22 = vadd.f32 (!%p979_p6), %v1241_v3, %v694_v17  ;;  %1074 = vtanh.f32 (!%p979_p6), %v736_v18  ;;  %v705_v43 = vld [vmem:[#allocation2 + $0xa0] sm:$0xff] (!%p979_p6) }
 0x132   : > { %663 = vst [vmem:[#allocation2 + $0x70] sm:$0xff] %v631_v52  ;;  %679 = vst [vmem:[#allocation2 + $0xf0] sm:$0xff] %v647_v53  ;;  %v696_v21 = vld [vmem:[#allocation2 + $0x58] sm:$0xff] (!%p979_p6)  ;;  %v739_v24 = vadd.f32 (!%p979_p6), %v1239_v2, %v695_v19  ;;  %1076 = vtanh.f32 (!%p979_p6), %v737_v20  ;;  %v746_v42 = vadd.f32 (!%p979_p6), %v1241_v3, %v702_v34  ;;  %v747_v45 = vadd.f32 (!%p979_p6), %v1239_v2, %v703_v37  ;;  %v706_v46 = vld [vmem:[#allocation2 + $0xa8] sm:$0xff] (!%p979_p6) }
 0x133   : > { %664 = vst [vmem:[#allocation2 + $0x78] sm:$0xff] %v632_v56  ;;  %680 = vst [vmem:[#allocation2 + $0xf8] sm:$0xff] %v648_v57  ;;  %v740_v26 = vadd.f32 (!%p979_p6), %v1241_v3, %v696_v21  ;;  %1078 = vtanh.f32 (!%p979_p6), %v738_v22  ;;  %v748_v48 = vadd.f32 (!%p979_p6), %v1241_v3, %v704_v40  ;;  %v707_v49 = vld [vmem:[#allocation2 + $0xb0] sm:$0xff] (!%p979_p6)  ;;  %v749_v51 = vadd.f32 (!%p979_p6), %v1239_v2, %v705_v43  ;;  %v708_v52 = vld [vmem:[#allocation2 + $0xb8] sm:$0xff] (!%p979_p6) }
 0x134   : > { %v1061_v32 = vpop.eup %1060  ;;  %1080 = vtanh.f32 %v739_v24  ;;  %v750_v54 = vadd.f32 %v1241_v3, %v706_v46  ;;  %v709_v55 = vld [vmem:[#allocation2 + $0xc0] sm:$0xff]  ;;  %v751_v57 = vadd.f32 %v1239_v2, %v707_v49  ;;  %v710_v58 = vld [vmem:[#allocation2 + $0xc8] sm:$0xff]  ;;  %v752_v60 = vadd.f32 %v1241_v3, %v708_v52  ;;  %v711_v61 = vld [vmem:[#allocation2 + $0xd0] sm:$0xff] }
 0x135   : > { %v1063_v35 = vpop.eup %1062  ;;  %793 = vst [vmem:[%s1383_s3] sm:$0xff] %v1061_v32  ;;  %1082 = vtanh.f32 %v740_v26  ;;  %v753_v63 = vadd.f32 %v1239_v2, %v709_v55  ;;  %v712_v0 = vld [vmem:[#allocation2 + $0xd8] sm:$0xff]  ;;  %v754_v4 = vadd.f32 %v1241_v3, %v710_v58  ;;  %v755_v7 = vadd.f32 %v1239_v2, %v711_v61 }
 0x136   : > { %v1065_v38 = vpop.eup %1064  ;;  %794 = vst [vmem:[%s1383_s3 + $0x8] sm:$0xff] %v1063_v35  ;;  %v756_v10 = vadd.f32 %v1241_v3, %v712_v0 }
 0x137   : > { %v697_v23 = vld [vmem:[#allocation2 + $0x60] sm:$0xff]  ;;  %v1067_v41 = vpop.eup %1066  ;;  %795 = vst [vmem:[%s1383_s3 + $0x10] sm:$0xff] %v1065_v38 }
 0x138   : > { %v698_v25 = vld [vmem:[#allocation2 + $0x68] sm:$0xff]  ;;  %v741_v28 = vadd.f32 %v1239_v2, %v697_v23  ;;  %v1069_v44 = vpop.eup %1068  ;;  %796 = vst [vmem:[%s1383_s3 + $0x18] sm:$0xff] %v1067_v41  ;;  %v713_v5 = vld [vmem:[#allocation2 + $0xe0] sm:$0xff] }
 0x139   : > { %v699_v27 = vld [vmem:[#allocation2 + $0x70] sm:$0xff]  ;;  %v742_v30 = vadd.f32 %v1241_v3, %v698_v25  ;;  %v1071_v47 = vpop.eup %1070  ;;  %797 = vst [vmem:[%s1383_s3 + $0x20] sm:$0xff] %v1069_v44  ;;  %v714_v8 = vld [vmem:[#allocation2 + $0xe8] sm:$0xff]  ;;  %v757_v13 = vadd.f32 %v1239_v2, %v713_v5 }
 0x13a   : > { %v700_v29 = vld [vmem:[#allocation2 + $0x78] sm:$0xff]  ;;  %v743_v33 = vadd.f32 %v1239_v2, %v699_v27  ;;  %1084 = vtanh.f32 %v741_v28  ;;  %v1073_v50 = vpop.eup %1072  ;;  %798 = vst [vmem:[%s1383_s3 + $0x28] sm:$0xff] %v1071_v47  ;;  %v715_v11 = vld [vmem:[#allocation2 + $0xf0] sm:$0xff]  ;;  %v758_v16 = vadd.f32 %v1241_v3, %v714_v8 }
 0x13b   : > { %v744_v36 = vadd.f32 %v1241_v3, %v700_v29  ;;  %1086 = vtanh.f32 %v742_v30  ;;  %v1075_v53 = vpop.eup %1074  ;;  %799 = vst [vmem:[%s1383_s3 + $0x30] sm:$0xff] %v1073_v50  ;;  %v716_v14 = vld [vmem:[#allocation2 + $0xf8] sm:$0xff]  ;;  %v759_v18 = vadd.f32 %v1239_v2, %v715_v11 }
 0x13c   : > { %1088 = vtanh.f32 %v743_v33  ;;  %v1077_v56 = vpop.eup %1076  ;;  %800 = vst [vmem:[%s1383_s3 + $0x38] sm:$0xff] %v1075_v53  ;;  %v760_v20 = vadd.f32 %v1241_v3, %v716_v14 }
 0x13d   : > { %1090 = vtanh.f32 %v744_v36  ;;  %v1079_v59 = vpop.eup %1078  ;;  %801 = vst [vmem:[%s1383_s3 + $0x40] sm:$0xff] %v1077_v56 }
 0x13e   : > { %1092 = vtanh.f32 %v745_v39  ;;  %v1081_v62 = vpop.eup %1080  ;;  %802 = vst [vmem:[%s1383_s3 + $0x48] sm:$0xff] %v1079_v59 }
 0x13f   : > { %1094 = vtanh.f32 %v746_v42  ;;  %v1083_v1 = vpop.eup %1082  ;;  %803 = vst [vmem:[%s1383_s3 + $0x50] sm:$0xff] %v1081_v62 }
 0x140   : > { %1096 = vtanh.f32 %v747_v45  ;;  %804 = vst [vmem:[%s1383_s3 + $0x58] sm:$0xff] %v1083_v1 }
 0x141   : > { %1098 = vtanh.f32 %v748_v48 }
 0x142   : > { %1100 = vtanh.f32 %v749_v51 }
 0x143   : > { %1102 = vtanh.f32 %v750_v54 }
 0x144   : > { %v1085_v6 = vpop.eup %1084  ;;  %1104 = vtanh.f32 %v751_v57 }
 0x145   : > { %v1087_v9 = vpop.eup %1086  ;;  %805 = vst [vmem:[%s1383_s3 + $0x60] sm:$0xff] %v1085_v6  ;;  %1106 = vtanh.f32 %v752_v60 }
 0x146   : > { %v1089_v12 = vpop.eup %1088  ;;  %806 = vst [vmem:[%s1383_s3 + $0x68] sm:$0xff] %v1087_v9  ;;  %1108 = vtanh.f32 %v753_v63 }
 0x147   : > { %v1091_v15 = vpop.eup %1090  ;;  %807 = vst [vmem:[%s1383_s3 + $0x70] sm:$0xff] %v1089_v12  ;;  %1110 = vtanh.f32 %v754_v4 }
 0x148   : > { %v1093_v17 = vpop.eup %1092  ;;  %808 = vst [vmem:[%s1383_s3 + $0x78] sm:$0xff] %v1091_v15  ;;  %1112 = vtanh.f32 %v755_v7 }
 0x149   : > { %v1095_v19 = vpop.eup %1094  ;;  %809 = vst [vmem:[%s1383_s3 + $0x80] sm:$0xff] %v1093_v17  ;;  %1114 = vtanh.f32 %v756_v10 }
 0x14a   : > { %v1097_v21 = vpop.eup %1096  ;;  %810 = vst [vmem:[%s1383_s3 + $0x88] sm:$0xff] %v1095_v19  ;;  %1116 = vtanh.f32 %v757_v13 }
 0x14b   : > { %v1099_v22 = vpop.eup %1098  ;;  %811 = vst [vmem:[%s1383_s3 + $0x90] sm:$0xff] %v1097_v21  ;;  %1118 = vtanh.f32 %v758_v16 }
 0x14c   : > { %v1101_v2 = vpop.eup %1100  ;;  %812 = vst [vmem:[%s1383_s3 + $0x98] sm:$0xff] %v1099_v22  ;;  %1120 = vtanh.f32 %v759_v18 }
 0x14d   : > { %v1103_v23 = vpop.eup %1102  ;;  %813 = vst [vmem:[%s1383_s3 + $0xa0] sm:$0xff] %v1101_v2  ;;  %1122 = vtanh.f32 %v760_v20 }
 0x14e   : > { %v1105_v3 = vpop.eup %1104  ;;  %814 = vst [vmem:[%s1383_s3 + $0xa8] sm:$0xff] %v1103_v23 }
 0x14f   : > { %v1107_v24 = vpop.eup %1106  ;;  %815 = vst [vmem:[%s1383_s3 + $0xb0] sm:$0xff] %v1105_v3 }
 0x150   : > { %v1109_v25 = vpop.eup %1108  ;;  %816 = vst [vmem:[%s1383_s3 + $0xb8] sm:$0xff] %v1107_v24 }
 0x151   : > { %v1111_v26 = vpop.eup %1110  ;;  %817 = vst [vmem:[%s1383_s3 + $0xc0] sm:$0xff] %v1109_v25 }
 0x152   : > { %v1113_v27 = vpop.eup %1112  ;;  %818 = vst [vmem:[%s1383_s3 + $0xc8] sm:$0xff] %v1111_v26 }
 0x153   : > { %v1115_v28 = vpop.eup %1114  ;;  %819 = vst [vmem:[%s1383_s3 + $0xd0] sm:$0xff] %v1113_v27 }
 0x154   : > { %v1117_v29 = vpop.eup %1116  ;;  %820 = vst [vmem:[%s1383_s3 + $0xd8] sm:$0xff] %v1115_v28 }
 0x155   : > { %v1119_v30 = vpop.eup %1118  ;;  %821 = vst [vmem:[%s1383_s3 + $0xe0] sm:$0xff] %v1117_v29 }
 0x156   : > { %v1121_v31 = vpop.eup %1120  ;;  %822 = vst [vmem:[%s1383_s3 + $0xe8] sm:$0xff] %v1119_v30 }
 0x157   : > { %v1123_v32 = vpop.eup %1122  ;;  %823 = vst [vmem:[%s1383_s3 + $0xf0] sm:$0xff] %v1121_v31 }
 0x158   : > { %824 = vst [vmem:[%s1383_s3 + $0xf8] sm:$0xff] %v1123_v32 }
 0x159 PF: > { %s13_s14 = sadd.s32 1, %s1146_s14   ;;  %s1384_s12 = smov %s1142_s13 }
 0x15a   : > { %p10_p7 = scmp.ge.s32.totalorder %s13_s14, 4   ;;  %s1385_s13 = smov %s1387_s15 }
 0x15c   :  { %12 = sbr.rel (!%p10_p7) target bundleno = 2 (0x2), region = 76 }

// kernel: _lambda_.9
= control target key start
LH: loop header
LB: loop body
LE: loop exit
PB: predicated region body
PF: predicated region fallthrough
CT: control target
= control target key end

     0   :  { %s2837_s12 = smov 0   ;;  %s2839_s13 = smov 0   ;;  %s3439_s0 = inlined_call_operand.vmem [shape: bf16[1,192,256], index: 0, kind: input, shape index: {}]   ;;  %s3440_s1 = inlined_call_operand.vmem [shape: bf16[1,256,1024], index: 1, kind: input, shape index: {}]   ;;  %s3441_s2 = inlined_call_operand.vmem [shape: f32[1,1024], index: 2, kind: input, shape index: {}]   ;;  %s3442_s3 = inlined_call_operand.vmem [shape: bf16[192,1024], index: 3, kind: output, shape index: {}]  }
   0x1   :  { %s2841_s14 = smov 0   ;;  %s2843_s15 = smov 0  }
   0x2   :  { %s2845_s16 = smov 0  }
   0x3 LB: > { %s28_s17 = sadd.s32 1, %s2811_s15  ;;  %s2403_s18 = sadd.s32 4294967295, %s2815_s16   ;;  %s2815_s16 = sphi %s2845_s16, %s13_s16   ;;  %s2811_s15 = sphi %s2843_s15, %s3447_s15   ;;  %s2807_s14 = sphi %s2841_s14, %s3446_s14   ;;  %s2803_s13 = sphi %s2839_s13, %s3445_s13   ;;  %s2799_s12 = sphi %s2837_s12, %s3444_s12  }
   0x4   : > { %p30_p0 = scmp.ge.s32.totalorder %s28_s17, 2  ;;  %p76_p1 = scmp.ne.s32.totalorder %s2803_s13, %s2799_s12 }
   0x5   : > { %p77_p2 = scmp.eq.s32.totalorder %s2815_s16, 0  ;;  %p134_p4 = scmp.eq.s32.totalorder %s2403_s18, 1 }
   0x6   : > { %s3449_s17 = smov (%p30_p0, %s28_s17), 0  ;;  %s69_s20 = sadd.s32 1, %s2803_s13 }
   0x7   : > { %p78_p3 = por %p77_p2, %p76_p1  ;;  %s65_s19 = ssub.s32 %s2811_s15, %s3449_s17 }
   0x8   : > { %p67_p5 = scmp.eq.s32.totalorder %s65_s19, 0  ;;  %p2872_p6 = por %p134_p4, %p76_p1 }
   0x9   : > { %p2407_p7 = scmp.ge.s32.totalorder %s2815_s16, 2 }
   0xa   : > { %s2877_s22 = scalar_select %p67_p5, %s2803_s13, %s69_s20  }
   0xb   : > { %170 = sbr.rel (%p2407_p7) target bundleno = 54 (0x36), region = 20 }
  0x12   : > { %173 = sbr.rel (!%p78_p3) target bundleno = 54 (0x36), region = 24  ;;  %s175_s23 = sand.u32 (%p78_p3), 1, %s2803_s13  }
  0x13   : > { %s2554_s24 = sshll.u32 (%p78_p3), %s2811_s15, 4  ;;  %s2408_s25 = sshll.u32 (%p78_p3), %s175_s23, 9 }
  0x14   : > { %s2885_s28 = scalar_lea.vmem (%p78_p3), %s3440_s1, %s2554_s24  ;;  %s2890_s29 = scalar_lea.vmem (%p78_p3), [#allocation3], %s2408_s25 }
  0x15   : > { %v195_v0 = vld [vmem:[%s2885_s28] sm:$0xff] (%p78_p3)  ;;  %v197_v1 = vld [vmem:[%s2885_s28 + $0x8] sm:$0xff] (%p78_p3) }
  0x16   : > { %v199_v2 = vld [vmem:[%s2885_s28 + $0x20] sm:$0xff] (%p78_p3)  ;;  %196 = vst [vmem:[%s2890_s29] sm:$0xff] (%p78_p3), %v195_v0  ;;  %198 = vst [vmem:[%s2890_s29 + $0x8] sm:$0xff] (%p78_p3), %v197_v1  ;;  %v201_v3 = vld [vmem:[%s2885_s28 + $0x28] sm:$0xff] (%p78_p3) }
  0x17   : > { %200 = vst [vmem:[%s2890_s29 + $0x10] sm:$0xff] (%p78_p3), %v199_v2  ;;  %v203_v4 = vld [vmem:[%s2885_s28 + $0x40] sm:$0xff] (%p78_p3)  ;;  %v205_v5 = vld [vmem:[%s2885_s28 + $0x48] sm:$0xff] (%p78_p3)  ;;  %202 = vst [vmem:[%s2890_s29 + $0x18] sm:$0xff] (%p78_p3), %v201_v3 }
  0x18   : > { %204 = vst [vmem:[%s2890_s29 + $0x20] sm:$0xff] (%p78_p3), %v203_v4  ;;  %206 = vst [vmem:[%s2890_s29 + $0x28] sm:$0xff] (%p78_p3), %v205_v5  ;;  %v207_v6 = vld [vmem:[%s2885_s28 + $0x60] sm:$0xff] (%p78_p3)  ;;  %v209_v7 = vld [vmem:[%s2885_s28 + $0x68] sm:$0xff] (%p78_p3) }
  0x19   : > { %v211_v8 = vld [vmem:[%s2885_s28 + $0x80] sm:$0xff]  ;;  %208 = vst [vmem:[%s2890_s29 + $0x30] sm:$0xff] %v207_v6  ;;  %210 = vst [vmem:[%s2890_s29 + $0x38] sm:$0xff] %v209_v7  ;;  %v213_v9 = vld [vmem:[%s2885_s28 + $0x88] sm:$0xff] }
  0x1a   : > { %212 = vst [vmem:[%s2890_s29 + $0x40] sm:$0xff] %v211_v8  ;;  %v215_v10 = vld [vmem:[%s2885_s28 + $0xa0] sm:$0xff]  ;;  %v217_v11 = vld [vmem:[%s2885_s28 + $0xa8] sm:$0xff]  ;;  %214 = vst [vmem:[%s2890_s29 + $0x48] sm:$0xff] %v213_v9 }
  0x1b   : > { %216 = vst [vmem:[%s2890_s29 + $0x50] sm:$0xff] %v215_v10  ;;  %218 = vst [vmem:[%s2890_s29 + $0x58] sm:$0xff] %v217_v11  ;;  %v219_v12 = vld [vmem:[%s2885_s28 + $0xc0] sm:$0xff]  ;;  %v221_v13 = vld [vmem:[%s2885_s28 + $0xc8] sm:$0xff] }
  0x1c   : > { %v223_v14 = vld [vmem:[%s2885_s28 + $0xe0] sm:$0xff]  ;;  %220 = vst [vmem:[%s2890_s29 + $0x60] sm:$0xff] %v219_v12  ;;  %222 = vst [vmem:[%s2890_s29 + $0x68] sm:$0xff] %v221_v13  ;;  %v225_v15 = vld [vmem:[%s2885_s28 + $0xe8] sm:$0xff] }
  0x1d   : > { %224 = vst [vmem:[%s2890_s29 + $0x70] sm:$0xff] %v223_v14  ;;  %v227_v16 = vld [vmem:[%s2885_s28 + $0x100] sm:$0xff]  ;;  %v229_v17 = vld [vmem:[%s2885_s28 + $0x108] sm:$0xff]  ;;  %226 = vst [vmem:[%s2890_s29 + $0x78] sm:$0xff] %v225_v15 }
  0x1e   : > { %228 = vst [vmem:[%s2890_s29 + $0x80] sm:$0xff] %v227_v16  ;;  %230 = vst [vmem:[%s2890_s29 + $0x88] sm:$0xff] %v229_v17  ;;  %v231_v18 = vld [vmem:[%s2885_s28 + $0x120] sm:$0xff]  ;;  %v233_v19 = vld [vmem:[%s2885_s28 + $0x128] sm:$0xff] }
  0x1f   : > { %v235_v20 = vld [vmem:[%s2885_s28 + $0x140] sm:$0xff]  ;;  %232 = vst [vmem:[%s2890_s29 + $0x90] sm:$0xff] %v231_v18  ;;  %234 = vst [vmem:[%s2890_s29 + $0x98] sm:$0xff] %v233_v19  ;;  %v237_v21 = vld [vmem:[%s2885_s28 + $0x148] sm:$0xff] }
  0x20   : > { %236 = vst [vmem:[%s2890_s29 + $0xa0] sm:$0xff] %v235_v20  ;;  %v239_v22 = vld [vmem:[%s2885_s28 + $0x160] sm:$0xff]  ;;  %v241_v23 = vld [vmem:[%s2885_s28 + $0x168] sm:$0xff]  ;;  %238 = vst [vmem:[%s2890_s29 + $0xa8] sm:$0xff] %v237_v21 }
  0x21   : > { %240 = vst [vmem:[%s2890_s29 + $0xb0] sm:$0xff] %v239_v22  ;;  %242 = vst [vmem:[%s2890_s29 + $0xb8] sm:$0xff] %v241_v23  ;;  %v243_v24 = vld [vmem:[%s2885_s28 + $0x180] sm:$0xff]  ;;  %v245_v25 = vld [vmem:[%s2885_s28 + $0x188] sm:$0xff] }
  0x22   : > { %v247_v26 = vld [vmem:[%s2885_s28 + $0x1a0] sm:$0xff]  ;;  %244 = vst [vmem:[%s2890_s29 + $0xc0] sm:$0xff] %v243_v24  ;;  %246 = vst [vmem:[%s2890_s29 + $0xc8] sm:$0xff] %v245_v25  ;;  %v249_v27 = vld [vmem:[%s2885_s28 + $0x1a8] sm:$0xff] }
  0x23   : > { %248 = vst [vmem:[%s2890_s29 + $0xd0] sm:$0xff] %v247_v26  ;;  %v251_v28 = vld [vmem:[%s2885_s28 + $0x1c0] sm:$0xff]  ;;  %v253_v29 = vld [vmem:[%s2885_s28 + $0x1c8] sm:$0xff]  ;;  %250 = vst [vmem:[%s2890_s29 + $0xd8] sm:$0xff] %v249_v27 }
  0x24   : > { %252 = vst [vmem:[%s2890_s29 + $0xe0] sm:$0xff] %v251_v28  ;;  %254 = vst [vmem:[%s2890_s29 + $0xe8] sm:$0xff] %v253_v29  ;;  %v255_v30 = vld [vmem:[%s2885_s28 + $0x1e0] sm:$0xff]  ;;  %v257_v31 = vld [vmem:[%s2885_s28 + $0x1e8] sm:$0xff] }
  0x25   : > { %v259_v32 = vld [vmem:[%s2885_s28 + $0x200] sm:$0xff]  ;;  %256 = vst [vmem:[%s2890_s29 + $0xf0] sm:$0xff] %v255_v30  ;;  %258 = vst [vmem:[%s2890_s29 + $0xf8] sm:$0xff] %v257_v31  ;;  %v261_v33 = vld [vmem:[%s2885_s28 + $0x208] sm:$0xff] }
  0x26   : > { %260 = vst [vmem:[%s2890_s29 + $0x100] sm:$0xff] %v259_v32  ;;  %v263_v34 = vld [vmem:[%s2885_s28 + $0x220] sm:$0xff]  ;;  %v265_v35 = vld [vmem:[%s2885_s28 + $0x228] sm:$0xff]  ;;  %262 = vst [vmem:[%s2890_s29 + $0x108] sm:$0xff] %v261_v33 }
  0x27   : > { %264 = vst [vmem:[%s2890_s29 + $0x110] sm:$0xff] %v263_v34  ;;  %266 = vst [vmem:[%s2890_s29 + $0x118] sm:$0xff] %v265_v35  ;;  %v267_v36 = vld [vmem:[%s2885_s28 + $0x240] sm:$0xff]  ;;  %v269_v37 = vld [vmem:[%s2885_s28 + $0x248] sm:$0xff] }
  0x28   : > { %v271_v38 = vld [vmem:[%s2885_s28 + $0x260] sm:$0xff]  ;;  %268 = vst [vmem:[%s2890_s29 + $0x120] sm:$0xff] %v267_v36  ;;  %270 = vst [vmem:[%s2890_s29 + $0x128] sm:$0xff] %v269_v37  ;;  %v273_v39 = vld [vmem:[%s2885_s28 + $0x268] sm:$0xff] }
  0x29   : > { %272 = vst [vmem:[%s2890_s29 + $0x130] sm:$0xff] %v271_v38  ;;  %v275_v40 = vld [vmem:[%s2885_s28 + $0x280] sm:$0xff]  ;;  %v277_v41 = vld [vmem:[%s2885_s28 + $0x288] sm:$0xff]  ;;  %274 = vst [vmem:[%s2890_s29 + $0x138] sm:$0xff] %v273_v39 }
  0x2a   : > { %276 = vst [vmem:[%s2890_s29 + $0x140] sm:$0xff] %v275_v40  ;;  %278 = vst [vmem:[%s2890_s29 + $0x148] sm:$0xff] %v277_v41  ;;  %v279_v42 = vld [vmem:[%s2885_s28 + $0x2a0] sm:$0xff]  ;;  %v281_v43 = vld [vmem:[%s2885_s28 + $0x2a8] sm:$0xff] }
  0x2b   : > { %v283_v44 = vld [vmem:[%s2885_s28 + $0x2c0] sm:$0xff]  ;;  %280 = vst [vmem:[%s2890_s29 + $0x150] sm:$0xff] %v279_v42  ;;  %282 = vst [vmem:[%s2890_s29 + $0x158] sm:$0xff] %v281_v43  ;;  %v285_v45 = vld [vmem:[%s2885_s28 + $0x2c8] sm:$0xff] }
  0x2c   : > { %284 = vst [vmem:[%s2890_s29 + $0x160] sm:$0xff] %v283_v44  ;;  %v287_v46 = vld [vmem:[%s2885_s28 + $0x2e0] sm:$0xff]  ;;  %v289_v47 = vld [vmem:[%s2885_s28 + $0x2e8] sm:$0xff]  ;;  %286 = vst [vmem:[%s2890_s29 + $0x168] sm:$0xff] %v285_v45 }
  0x2d   : > { %288 = vst [vmem:[%s2890_s29 + $0x170] sm:$0xff] %v287_v46  ;;  %290 = vst [vmem:[%s2890_s29 + $0x178] sm:$0xff] %v289_v47  ;;  %v291_v48 = vld [vmem:[%s2885_s28 + $0x300] sm:$0xff]  ;;  %v293_v49 = vld [vmem:[%s2885_s28 + $0x308] sm:$0xff] }
  0x2e   : > { %v295_v50 = vld [vmem:[%s2885_s28 + $0x320] sm:$0xff]  ;;  %292 = vst [vmem:[%s2890_s29 + $0x180] sm:$0xff] %v291_v48  ;;  %294 = vst [vmem:[%s2890_s29 + $0x188] sm:$0xff] %v293_v49  ;;  %v297_v51 = vld [vmem:[%s2885_s28 + $0x328] sm:$0xff] }
  0x2f   : > { %296 = vst [vmem:[%s2890_s29 + $0x190] sm:$0xff] %v295_v50  ;;  %v299_v52 = vld [vmem:[%s2885_s28 + $0x340] sm:$0xff]  ;;  %v301_v53 = vld [vmem:[%s2885_s28 + $0x348] sm:$0xff]  ;;  %298 = vst [vmem:[%s2890_s29 + $0x198] sm:$0xff] %v297_v51 }
  0x30   : > { %300 = vst [vmem:[%s2890_s29 + $0x1a0] sm:$0xff] %v299_v52  ;;  %302 = vst [vmem:[%s2890_s29 + $0x1a8] sm:$0xff] %v301_v53  ;;  %v303_v54 = vld [vmem:[%s2885_s28 + $0x360] sm:$0xff]  ;;  %v305_v55 = vld [vmem:[%s2885_s28 + $0x368] sm:$0xff] }
  0x31   : > { %v307_v56 = vld [vmem:[%s2885_s28 + $0x380] sm:$0xff]  ;;  %304 = vst [vmem:[%s2890_s29 + $0x1b0] sm:$0xff] %v303_v54  ;;  %306 = vst [vmem:[%s2890_s29 + $0x1b8] sm:$0xff] %v305_v55  ;;  %v309_v57 = vld [vmem:[%s2885_s28 + $0x388] sm:$0xff] }
  0x32   : > { %308 = vst [vmem:[%s2890_s29 + $0x1c0] sm:$0xff] %v307_v56  ;;  %v311_v58 = vld [vmem:[%s2885_s28 + $0x3a0] sm:$0xff]  ;;  %v313_v59 = vld [vmem:[%s2885_s28 + $0x3a8] sm:$0xff]  ;;  %310 = vst [vmem:[%s2890_s29 + $0x1c8] sm:$0xff] %v309_v57 }
  0x33   : > { %312 = vst [vmem:[%s2890_s29 + $0x1d0] sm:$0xff] %v311_v58  ;;  %314 = vst [vmem:[%s2890_s29 + $0x1d8] sm:$0xff] %v313_v59  ;;  %v315_v60 = vld [vmem:[%s2885_s28 + $0x3c0] sm:$0xff]  ;;  %v317_v61 = vld [vmem:[%s2885_s28 + $0x3c8] sm:$0xff] }
  0x34   : > { %v319_v62 = vld [vmem:[%s2885_s28 + $0x3e0] sm:$0xff]  ;;  %316 = vst [vmem:[%s2890_s29 + $0x1e0] sm:$0xff] %v315_v60  ;;  %318 = vst [vmem:[%s2890_s29 + $0x1e8] sm:$0xff] %v317_v61  ;;  %v321_v63 = vld [vmem:[%s2885_s28 + $0x3e8] sm:$0xff] }
  0x35   : > { %320 = vst [vmem:[%s2890_s29 + $0x1f0] sm:$0xff] %v319_v62  ;;  %322 = vst [vmem:[%s2890_s29 + $0x1f8] sm:$0xff] %v321_v63 }
  0x36 PF: > { %p2411_p8 = scmp.ge.s32.totalorder %s2815_s16, 1  ;;  %p335_p9 = scmp.lt.s32.totalorder %s2815_s16, 3 }
  0x38   : > { %p336_p10 = pnand %p2411_p8, %p335_p9 }
  0x39   : > { %s342_s30 = sand.u32 (!%p336_p10), 1, %s2799_s12   ;;  %v2743_v0 = vld [vmem:[%s3439_s0 + $0x4] ss:$8 sps:$4 sm:$0xff] (!%p336_p10)   ;;  %s2413_s26 = sshll.u32 (!%p336_p10), %s2807_s14, 2 }
  0x3a   : > { %339 = sbr.rel (%p336_p10) target bundleno = 442 (0x1ba), region = 51  ;;  %s2412_s4 = sshll.u32 (!%p336_p10), %s342_s30, 9  ;;  %1153 = vmatprep.mubr.bf16.mxu0 (!%p336_p10), %v2743_v0  ;;  %1306 = vmatprep.mubr.bf16.mxu1 (!%p336_p10), %v2743_v0 }
  0x3b   : > { %s3025_s7 = scalar_lea.vmem (!%p336_p10), [#allocation3], %s2412_s4  ;;  %p391_p11 = scmp.lt.s32.totalorder (!%p336_p10), %s2413_s26, 7 }
  0x3c   : > { %v2645_v1 = vld [vmem:[%s3025_s7 + $0x4] ss:$16 sps:$4 sm:$0xff] (!%p336_p10)   ;;  %v2647_v2 = vld [vmem:[%s3025_s7 + $0xc] ss:$16 sps:$4 sm:$0xff] (!%p336_p10)   ;;  %v2649_v3 = vld [vmem:[%s3025_s7] ss:$16 sps:$4 sm:$0xff] (!%p336_p10)  }
  0x3d   : > { %1121 = vmatprep.subr.bf16.mxu0 (!%p336_p10), %v2645_v1  ;;  %v2650_v4 = vld [vmem:[%s3025_s7 + $0x8] ss:$16 sps:$4 sm:$0xff] (!%p336_p10)   ;;  %1274 = vmatprep.subr.bf16.mxu1 (!%p336_p10), %v2647_v2  ;;  %v2651_v5 = vld [vmem:[%s3025_s7 + $0x24] ss:$16 sps:$4 sm:$0xff] (!%p336_p10)   ;;  %v2653_v6 = vld [vmem:[%s3025_s7 + $0x2c] ss:$16 sps:$4 sm:$0xff] (!%p336_p10)  }
  0x3e   : > { %1122 = vmatpush1.bf16.msra.mxu0 (!%p336_p10), %v2649_v3  ;;  %1275 = vmatpush1.bf16.msra.mxu1 (!%p336_p10), %v2650_v4  ;;  %v2655_v7 = vld [vmem:[%s3025_s7 + $0x20] ss:$16 sps:$4 sm:$0xff] (!%p336_p10)   ;;  %v2656_v8 = vld [vmem:[%s3025_s7 + $0x28] ss:$16 sps:$4 sm:$0xff] (!%p336_p10)   ;;  %v2657_v9 = vld [vmem:[%s3025_s7 + $0x44] ss:$16 sps:$4 sm:$0xff] (!%p336_p10)  }
  0x3f   : > { %1123 = vmatprep.subr.bf16.mxu0 (!%p336_p10), %v2651_v5  ;;  %1276 = vmatprep.subr.bf16.mxu1 (!%p336_p10), %v2653_v6  ;;  %v2659_v10 = vld [vmem:[%s3025_s7 + $0x4c] ss:$16 sps:$4 sm:$0xff] (!%p336_p10)   ;;  %v2661_v11 = vld [vmem:[%s3025_s7 + $0x40] ss:$16 sps:$4 sm:$0xff] (!%p336_p10)   ;;  %v2662_v12 = vld [vmem:[%s3025_s7 + $0x48] ss:$16 sps:$4 sm:$0xff] (!%p336_p10)  }
  0x40   : > { %v2663_v13 = vld [vmem:[%s3025_s7 + $0x64] ss:$16 sps:$4 sm:$0xff] (!%p336_p10)   ;;  %v2665_v14 = vld [vmem:[%s3025_s7 + $0x6c] ss:$16 sps:$4 sm:$0xff] (!%p336_p10)   ;;  %v2667_v15 = vld [vmem:[%s3025_s7 + $0x60] ss:$16 sps:$4 sm:$0xff] (!%p336_p10)  }
  0x41   : > { %v2668_v16 = vld [vmem:[%s3025_s7 + $0x68] ss:$16 sps:$4 sm:$0xff]   ;;  %v2669_v17 = vld [vmem:[%s3025_s7 + $0x84] ss:$16 sps:$4 sm:$0xff]   ;;  %v2671_v18 = vld [vmem:[%s3025_s7 + $0x8c] ss:$16 sps:$4 sm:$0xff]  }
  0x42   : > { %1124 = vmatpush1.bf16.msra.mxu0 %v2655_v7  ;;  %1277 = vmatpush1.bf16.msra.mxu1 %v2656_v8  ;;  %v2673_v19 = vld [vmem:[%s3025_s7 + $0x80] ss:$16 sps:$4 sm:$0xff]   ;;  %v2674_v20 = vld [vmem:[%s3025_s7 + $0x88] ss:$16 sps:$4 sm:$0xff]   ;;  %v2675_v21 = vld [vmem:[%s3025_s7 + $0xa4] ss:$16 sps:$4 sm:$0xff]  }
  0x43   : > { %1125 = vmatprep.subr.bf16.mxu0 %v2657_v9  ;;  %1278 = vmatprep.subr.bf16.mxu1 %v2659_v10  ;;  %v2677_v22 = vld [vmem:[%s3025_s7 + $0xac] ss:$16 sps:$4 sm:$0xff]   ;;  %v2679_v23 = vld [vmem:[%s3025_s7 + $0xa0] ss:$16 sps:$4 sm:$0xff]   ;;  %v2680_v24 = vld [vmem:[%s3025_s7 + $0xa8] ss:$16 sps:$4 sm:$0xff]  }
  0x44   : > { %v2681_v25 = vld [vmem:[%s3025_s7 + $0xc4] ss:$16 sps:$4 sm:$0xff]   ;;  %v2683_v26 = vld [vmem:[%s3025_s7 + $0xcc] ss:$16 sps:$4 sm:$0xff]   ;;  %v2685_v27 = vld [vmem:[%s3025_s7 + $0xc0] ss:$16 sps:$4 sm:$0xff]  }
  0x45   : > { %v2686_v28 = vld [vmem:[%s3025_s7 + $0xc8] ss:$16 sps:$4 sm:$0xff]   ;;  %v2687_v29 = vld [vmem:[%s3025_s7 + $0xe4] ss:$16 sps:$4 sm:$0xff]   ;;  %v2689_v30 = vld [vmem:[%s3025_s7 + $0xec] ss:$16 sps:$4 sm:$0xff]  }
  0x46   : > { %1126 = vmatpush1.bf16.msra.mxu0 %v2661_v11  ;;  %1279 = vmatpush1.bf16.msra.mxu1 %v2662_v12  ;;  %v2691_v31 = vld [vmem:[%s3025_s7 + $0xe0] ss:$16 sps:$4 sm:$0xff]   ;;  %v2692_v32 = vld [vmem:[%s3025_s7 + $0xe8] ss:$16 sps:$4 sm:$0xff]   ;;  %v2693_v33 = vld [vmem:[%s3025_s7 + $0x104] ss:$16 sps:$4 sm:$0xff]  }
  0x47   : > { %1127 = vmatprep.subr.bf16.mxu0 %v2663_v13  ;;  %1280 = vmatprep.subr.bf16.mxu1 %v2665_v14  ;;  %v2695_v34 = vld [vmem:[%s3025_s7 + $0x10c] ss:$16 sps:$4 sm:$0xff]   ;;  %v2697_v35 = vld [vmem:[%s3025_s7 + $0x100] ss:$16 sps:$4 sm:$0xff]   ;;  %v2698_v36 = vld [vmem:[%s3025_s7 + $0x108] ss:$16 sps:$4 sm:$0xff]  }
  0x48   : > { %v2699_v37 = vld [vmem:[%s3025_s7 + $0x124] ss:$16 sps:$4 sm:$0xff]   ;;  %v2701_v38 = vld [vmem:[%s3025_s7 + $0x12c] ss:$16 sps:$4 sm:$0xff]   ;;  %v2703_v39 = vld [vmem:[%s3025_s7 + $0x120] ss:$16 sps:$4 sm:$0xff]  }
  0x49   : > { %v2704_v40 = vld [vmem:[%s3025_s7 + $0x128] ss:$16 sps:$4 sm:$0xff]   ;;  %v2705_v41 = vld [vmem:[%s3025_s7 + $0x144] ss:$16 sps:$4 sm:$0xff]   ;;  %v2707_v42 = vld [vmem:[%s3025_s7 + $0x14c] ss:$16 sps:$4 sm:$0xff]  }
  0x4a   : > { %1128 = vmatpush1.bf16.msra.mxu0 %v2667_v15  ;;  %1281 = vmatpush1.bf16.msra.mxu1 %v2668_v16  ;;  %v2709_v43 = vld [vmem:[%s3025_s7 + $0x140] ss:$16 sps:$4 sm:$0xff]   ;;  %v2710_v44 = vld [vmem:[%s3025_s7 + $0x148] ss:$16 sps:$4 sm:$0xff]   ;;  %v2711_v45 = vld [vmem:[%s3025_s7 + $0x164] ss:$16 sps:$4 sm:$0xff]  }
  0x4b   : > { %1129 = vmatprep.subr.bf16.mxu0 %v2669_v17  ;;  %1282 = vmatprep.subr.bf16.mxu1 %v2671_v18  ;;  %v2713_v46 = vld [vmem:[%s3025_s7 + $0x16c] ss:$16 sps:$4 sm:$0xff]   ;;  %v2715_v47 = vld [vmem:[%s3025_s7 + $0x160] ss:$16 sps:$4 sm:$0xff]   ;;  %v2716_v48 = vld [vmem:[%s3025_s7 + $0x168] ss:$16 sps:$4 sm:$0xff]  }
  0x4c   : > { %v2717_v49 = vld [vmem:[%s3025_s7 + $0x184] ss:$16 sps:$4 sm:$0xff]   ;;  %v2719_v50 = vld [vmem:[%s3025_s7 + $0x18c] ss:$16 sps:$4 sm:$0xff]   ;;  %v2721_v51 = vld [vmem:[%s3025_s7 + $0x180] ss:$16 sps:$4 sm:$0xff]  }
  0x4d   : > { %v2722_v52 = vld [vmem:[%s3025_s7 + $0x188] ss:$16 sps:$4 sm:$0xff]   ;;  %v2723_v53 = vld [vmem:[%s3025_s7 + $0x1a4] ss:$16 sps:$4 sm:$0xff]   ;;  %v2725_v54 = vld [vmem:[%s3025_s7 + $0x1ac] ss:$16 sps:$4 sm:$0xff]  }
  0x4e   : > { %1130 = vmatpush1.bf16.msra.mxu0 %v2673_v19  ;;  %1283 = vmatpush1.bf16.msra.mxu1 %v2674_v20  ;;  %v2727_v55 = vld [vmem:[%s3025_s7 + $0x1a0] ss:$16 sps:$4 sm:$0xff]   ;;  %v2728_v56 = vld [vmem:[%s3025_s7 + $0x1a8] ss:$16 sps:$4 sm:$0xff]   ;;  %v2729_v57 = vld [vmem:[%s3025_s7 + $0x1c4] ss:$16 sps:$4 sm:$0xff]  }
  0x4f   : > { %1131 = vmatprep.subr.bf16.mxu0 %v2675_v21  ;;  %1284 = vmatprep.subr.bf16.mxu1 %v2677_v22  ;;  %v2731_v58 = vld [vmem:[%s3025_s7 + $0x1cc] ss:$16 sps:$4 sm:$0xff]   ;;  %v2733_v59 = vld [vmem:[%s3025_s7 + $0x1c0] ss:$16 sps:$4 sm:$0xff]   ;;  %v2734_v60 = vld [vmem:[%s3025_s7 + $0x1c8] ss:$16 sps:$4 sm:$0xff]  }
  0x50   : > { %v2735_v61 = vld [vmem:[%s3025_s7 + $0x1e4] ss:$16 sps:$4 sm:$0xff]   ;;  %v2737_v62 = vld [vmem:[%s3025_s7 + $0x1ec] ss:$16 sps:$4 sm:$0xff]   ;;  %v2739_v63 = vld [vmem:[%s3025_s7 + $0x1e0] ss:$16 sps:$4 sm:$0xff]  }
  0x51   : > { %v2740_v0 = vld [vmem:[%s3025_s7 + $0x1e8] ss:$16 sps:$4 sm:$0xff]   ;;  %v2744_v2 = vld [vmem:[%s3439_s0 + $0x14] ss:$8 sps:$4 sm:$0xff]   ;;  %v2747_v4 = vld [vmem:[%s3439_s0 + $0x24] ss:$8 sps:$4 sm:$0xff]  }
  0x52   : > { %1132 = vmatpush1.bf16.msra.mxu0 %v2679_v23  ;;  %1285 = vmatpush1.bf16.msra.mxu1 %v2680_v24  ;;  %v2741_v1 = vld [vmem:[%s3439_s0] ss:$8 sps:$4 sm:$0xff]   ;;  %v2746_v3 = vld [vmem:[%s3439_s0 + $0x10] ss:$8 sps:$4 sm:$0xff]   ;;  %v2750_v6 = vld [vmem:[%s3439_s0 + $0x34] ss:$8 sps:$4 sm:$0xff]   ;;  %v1720_v24 = vlaneseq }
  0x53   : > { %1133 = vmatprep.subr.bf16.mxu0 %v2681_v25  ;;  %1286 = vmatprep.subr.bf16.mxu1 %v2683_v26  ;;  %v2749_v5 = vld [vmem:[%s3439_s0 + $0x20] ss:$8 sps:$4 sm:$0xff]   ;;  %v2752_v7 = vld [vmem:[%s3439_s0 + $0x30] ss:$8 sps:$4 sm:$0xff]   ;;  %v2753_v8 = vld [vmem:[%s3439_s0 + $0x44] ss:$8 sps:$4 sm:$0xff]  }
  0x54   : > { %v2755_v9 = vld [vmem:[%s3439_s0 + $0x40] ss:$8 sps:$4 sm:$0xff]   ;;  %v2756_v10 = vld [vmem:[%s3439_s0 + $0x54] ss:$8 sps:$4 sm:$0xff]   ;;  %v2758_v11 = vld [vmem:[%s3439_s0 + $0x50] ss:$8 sps:$4 sm:$0xff]  }
  0x55   : > { %v2759_v12 = vld [vmem:[%s3439_s0 + $0x64] ss:$8 sps:$4 sm:$0xff]   ;;  %v2761_v13 = vld [vmem:[%s3439_s0 + $0x60] ss:$8 sps:$4 sm:$0xff]   ;;  %v2762_v14 = vld [vmem:[%s3439_s0 + $0x74] ss:$8 sps:$4 sm:$0xff]  }
  0x56   : > { %1134 = vmatpush1.bf16.msra.mxu0 %v2685_v27  ;;  %1287 = vmatpush1.bf16.msra.mxu1 %v2686_v28  ;;  %v2764_v15 = vld [vmem:[%s3439_s0 + $0x70] ss:$8 sps:$4 sm:$0xff]   ;;  %v2765_v16 = vld [vmem:[%s3439_s0 + $0x84] ss:$8 sps:$4 sm:$0xff]   ;;  %v2767_v17 = vld [vmem:[%s3439_s0 + $0x80] ss:$8 sps:$4 sm:$0xff]  }
  0x57   : > { %1135 = vmatprep.subr.bf16.mxu0 %v2687_v29  ;;  %1288 = vmatprep.subr.bf16.mxu1 %v2689_v30  ;;  %v2768_v18 = vld [vmem:[%s3439_s0 + $0x94] ss:$8 sps:$4 sm:$0xff]   ;;  %v2770_v19 = vld [vmem:[%s3439_s0 + $0x90] ss:$8 sps:$4 sm:$0xff]   ;;  %v2771_v20 = vld [vmem:[%s3439_s0 + $0xa4] ss:$8 sps:$4 sm:$0xff]  }
  0x58   : > { %v2773_v21 = vld [vmem:[%s3439_s0 + $0xa0] ss:$8 sps:$4 sm:$0xff]   ;;  %v2774_v22 = vld [vmem:[%s3439_s0 + $0xb4] ss:$8 sps:$4 sm:$0xff]   ;;  %v2776_v23 = vld [vmem:[%s3439_s0 + $0xb0] ss:$8 sps:$4 sm:$0xff]  }
  0x59   : > { %s3451_s26 = smov (!%p391_p11, %s2413_s26), 7  ;;  %v1721_v25 = vshrl.u32 %v1720_v24, 7  ;;  %s2604_s4 = smul.u32 384, %s342_s30 }
  0x5a   : > { %1136 = vmatpush1.bf16.msra.mxu0 %v2691_v31  ;;  %1289 = vmatpush1.bf16.msra.mxu1 %v2692_v32  ;;  %s393_s29 = scalar_lea.vmem %s3441_s2, %s3451_s26  ;;  %s2603_s30 = sshll.u32 (%p2872_p6), %s2807_s14, 4 }
  0x5b   : > { %1137 = vmatprep.subr.bf16.mxu0 %v2693_v33  ;;  %1290 = vmatprep.subr.bf16.mxu1 %v2695_v34  ;;  %v1722_v26 = vsub.s32 0, %v1721_v25  ;;  %v1730_v27 = vsub.s32 2, %v1721_v25  ;;  %v1718_v28 = vld [vmem:[%s393_s29] sm:$0xf]  ;;  %v1726_v29 = vsub.s32 1, %v1721_v25  ;;  %v1734_v30 = vsub.s32 3, %v1721_v25  ;;  %s3329_s7 = scalar_lea.vmem (%p2872_p6), %s3442_s3, %s2603_s30 }
  0x5c   : > { %s3182_s12 = scalar_lea.vmem [#allocation4], %s2604_s4 }
  0x5d   : > { %v3164_v31 = vrot.slane %v1718_v28, %v1722_v26  ;;  %v3166_v32 = vrot.slane %v1718_v28, %v1730_v27  ;;  %v3168_v33 = vrot.slane %v1718_v28, %v1726_v29  ;;  %v3170_v34 = vrot.slane %v1718_v28, %v1734_v30 }
  0x5e   : > { %1138 = vmatpush1.bf16.msra.mxu0 %v2697_v35  ;;  %1291 = vmatpush1.bf16.msra.mxu1 %v2698_v36 }
  0x5f   : > { %1139 = vmatprep.subr.bf16.mxu0 %v2699_v37  ;;  %1292 = vmatprep.subr.bf16.mxu1 %v2701_v38 }
  0x62   : > { %1140 = vmatpush1.bf16.msra.mxu0 %v2703_v39  ;;  %1293 = vmatpush1.bf16.msra.mxu1 %v2704_v40 }
  0x63   : > { %1141 = vmatprep.subr.bf16.mxu0 %v2705_v41  ;;  %1294 = vmatprep.subr.bf16.mxu1 %v2707_v42 }
  0x66   : > { %1142 = vmatpush1.bf16.msra.mxu0 %v2709_v43  ;;  %1295 = vmatpush1.bf16.msra.mxu1 %v2710_v44 }
  0x67   : > { %1143 = vmatprep.subr.bf16.mxu0 %v2711_v45  ;;  %1296 = vmatprep.subr.bf16.mxu1 %v2713_v46 }
  0x6a   : > { %1144 = vmatpush1.bf16.msra.mxu0 %v2715_v47  ;;  %1297 = vmatpush1.bf16.msra.mxu1 %v2716_v48 }
  0x6b   : > { %1145 = vmatprep.subr.bf16.mxu0 %v2717_v49  ;;  %1298 = vmatprep.subr.bf16.mxu1 %v2719_v50 }
  0x6e   : > { %1146 = vmatpush1.bf16.msra.mxu0 %v2721_v51  ;;  %1299 = vmatpush1.bf16.msra.mxu1 %v2722_v52 }
  0x6f   : > { %1147 = vmatprep.subr.bf16.mxu0 %v2723_v53  ;;  %1300 = vmatprep.subr.bf16.mxu1 %v2725_v54 }
  0x72   : > { %1148 = vmatpush1.bf16.msra.mxu0 %v2727_v55  ;;  %1301 = vmatpush1.bf16.msra.mxu1 %v2728_v56 }
  0x73   : > { %1149 = vmatprep.subr.bf16.mxu0 %v2729_v57  ;;  %1302 = vmatprep.subr.bf16.mxu1 %v2731_v58 }
  0x76   : > { %1150 = vmatpush1.bf16.msra.mxu0 %v2733_v59  ;;  %1303 = vmatpush1.bf16.msra.mxu1 %v2734_v60 }
  0x77   : > { %1151 = vmatprep.subr.bf16.mxu0 %v2735_v61  ;;  %1304 = vmatprep.subr.bf16.mxu1 %v2737_v62 }
  0x7a   : > { %1152 = vmatpush1.bf16.msra.mxu0 %v2739_v63  ;;  %1305 = vmatpush1.bf16.msra.mxu1 %v2740_v0 }
  0x7d   : > { %1154 = vmatmul.mubr.bf16.vlgmr.msra.gmra.mrb[0].mxu0 %v2741_v1  ;;  %1307 = vmatmul.mubr.bf16.vlgmr.msra.gmra.mrb[0].mxu1 %v2741_v1 }
  0x7e   : > { %1163 = vmatprep.mubr.bf16.mxu0 %v2744_v2  ;;  %1316 = vmatprep.mubr.bf16.mxu1 %v2744_v2 }
  0x85   : > { %1164 = vmatmul.mubr.bf16.gmra.mrb[4].mxu0 %v2746_v3  ;;  %1317 = vmatmul.mubr.bf16.gmra.mrb[4].mxu1 %v2746_v3 }
  0x86   : > { %1173 = vmatprep.mubr.bf16.mxu0 %v2747_v4  ;;  %1326 = vmatprep.mubr.bf16.mxu1 %v2747_v4 }
  0x8d   : > { %1174 = vmatmul.mubr.bf16.gmra.mrb[8].mxu0 %v2749_v5  ;;  %1327 = vmatmul.mubr.bf16.gmra.mrb[8].mxu1 %v2749_v5 }
  0x8e   : > { %1183 = vmatprep.mubr.bf16.mxu0 %v2750_v6  ;;  %1336 = vmatprep.mubr.bf16.mxu1 %v2750_v6 }
  0x95   : > { %1184 = vmatmul.mubr.bf16.gmra.mrb[12].mxu0 %v2752_v7  ;;  %1337 = vmatmul.mubr.bf16.gmra.mrb[12].mxu1 %v2752_v7 }
  0x96   : > { %1193 = vmatprep.mubr.bf16.mxu0 %v2753_v8  ;;  %1346 = vmatprep.mubr.bf16.mxu1 %v2753_v8 }
  0x9d   : > { %1194 = vmatmul.mubr.bf16.gmra.mrb[16].mxu0 %v2755_v9  ;;  %1347 = vmatmul.mubr.bf16.gmra.mrb[16].mxu1 %v2755_v9 }
  0x9e   : > { %1203 = vmatprep.mubr.bf16.mxu0 %v2756_v10  ;;  %1356 = vmatprep.mubr.bf16.mxu1 %v2756_v10 }
  0xa5   : > { %1204 = vmatmul.mubr.bf16.gmra.mrb[20].mxu0 %v2758_v11  ;;  %1357 = vmatmul.mubr.bf16.gmra.mrb[20].mxu1 %v2758_v11 }
  0xa6   : > { %1213 = vmatprep.mubr.bf16.mxu0 %v2759_v12  ;;  %1366 = vmatprep.mubr.bf16.mxu1 %v2759_v12 }
  0xad   : > { %1214 = vmatmul.mubr.bf16.gmra.mrb[24].mxu0 %v2761_v13  ;;  %1367 = vmatmul.mubr.bf16.gmra.mrb[24].mxu1 %v2761_v13 }
  0xae   : > { %1223 = vmatprep.mubr.bf16.mxu0 %v2762_v14  ;;  %1376 = vmatprep.mubr.bf16.mxu1 %v2762_v14 }
  0xb5   : > { %1224 = vmatmul.mubr.bf16.gmra.mrb[28].mxu0 %v2764_v15  ;;  %1377 = vmatmul.mubr.bf16.gmra.mrb[28].mxu1 %v2764_v15 }
  0xb6   : > { %1233 = vmatprep.mubr.bf16.mxu0 %v2765_v16  ;;  %1386 = vmatprep.mubr.bf16.mxu1 %v2765_v16 }
  0xbd   : > { %1234 = vmatmul.mubr.bf16.gmra.mrb[32].mxu0 %v2767_v17  ;;  %1387 = vmatmul.mubr.bf16.gmra.mrb[32].mxu1 %v2767_v17 }
  0xbe   : > { %1243 = vmatprep.mubr.bf16.mxu0 %v2768_v18  ;;  %1396 = vmatprep.mubr.bf16.mxu1 %v2768_v18 }
  0xc5   : > { %1244 = vmatmul.mubr.bf16.gmra.mrb[36].mxu0 %v2770_v19  ;;  %1397 = vmatmul.mubr.bf16.gmra.mrb[36].mxu1 %v2770_v19 }
  0xc6   : > { %1253 = vmatprep.mubr.bf16.mxu0 %v2771_v20  ;;  %1406 = vmatprep.mubr.bf16.mxu1 %v2771_v20 }
  0xcd   : > { %1254 = vmatmul.mubr.bf16.gmra.mrb[40].mxu0 %v2773_v21  ;;  %1407 = vmatmul.mubr.bf16.gmra.mrb[40].mxu1 %v2773_v21 }
  0xce   : > { %1263 = vmatprep.mubr.bf16.mxu0 %v2774_v22  ;;  %1416 = vmatprep.mubr.bf16.mxu1 %v2774_v22 }
  0xd5   : > { %1264 = vmatmul.mubr.bf16.gmra.mrb[44].mxu0 %v2776_v23  ;;  %1417 = vmatmul.mubr.bf16.gmra.mrb[44].mxu1 %v2776_v23 }
 0x150   : > { %v1155_v35 = vpop.f32.mrb[0].mxu0  ;;  %v1308_v36 = vpop.f32.mrb[0].mxu1 }
 0x151   : > { %v1740_v37 = vadd.f32 %v3164_v31, %v1155_v35  ;;  %v1742_v38 = vadd.f32 %v3166_v32, %v1308_v36  ;;  %v1157_v39 = vpop.f32.mrb[1].mxu0  ;;  %v1310_v40 = vpop.f32.mrb[1].mxu1 }
 0x152   : > { %v1741_v41 = vadd.f32 %v3168_v33, %v1157_v39  ;;  %v1743_v42 = vadd.f32 %v3170_v34, %v1310_v40  ;;  %v1159_v43 = vpop.f32.mrb[2].mxu0  ;;  %v1312_v44 = vpop.f32.mrb[2].mxu1 }
 0x153   : > { %v1744_v45 = vadd.f32 %v3164_v31, %v1159_v43  ;;  %v1746_v46 = vadd.f32 %v3166_v32, %v1312_v44  ;;  %v1161_v47 = vpop.f32.mrb[3].mxu0  ;;  %v1314_v48 = vpop.f32.mrb[3].mxu1 }
 0x154   : > { %v2555_v49 = vpack.c.bf16 %v1741_v41, %v1740_v37  ;;  %v2556_v50 = vpack.c.bf16 %v1743_v42, %v1742_v38  ;;  %v1745_v51 = vadd.f32 %v3168_v33, %v1161_v47  ;;  %v1747_v52 = vadd.f32 %v3170_v34, %v1314_v48 }
 0x156   : > { %2124 = vst [vmem:[%s3182_s12] sm:$0xff] %v2555_v49  ;;  %2125 = vst [vmem:[%s3182_s12 + $0x8] sm:$0xff] %v2556_v50  ;;  %v2557_v53 = vpack.c.bf16 %v1745_v51, %v1744_v45  ;;  %v2558_v54 = vpack.c.bf16 %v1747_v52, %v1746_v46 }
 0x158   : > { %2126 = vst [vmem:[%s3182_s12 + $0x10] sm:$0xff] %v2557_v53  ;;  %2127 = vst [vmem:[%s3182_s12 + $0x18] sm:$0xff] %v2558_v54  ;;  %v1165_v55 = vpop.f32.mrb[4].mxu0  ;;  %v1318_v56 = vpop.f32.mrb[4].mxu1 }
 0x159   : > { %v1748_v57 = vadd.f32 %v3164_v31, %v1165_v55  ;;  %v1750_v58 = vadd.f32 %v3166_v32, %v1318_v56  ;;  %v1167_v59 = vpop.f32.mrb[5].mxu0  ;;  %v1320_v60 = vpop.f32.mrb[5].mxu1 }
 0x15a   : > { %v1749_v61 = vadd.f32 %v3168_v33, %v1167_v59  ;;  %v1751_v62 = vadd.f32 %v3170_v34, %v1320_v60  ;;  %v1169_v63 = vpop.f32.mrb[6].mxu0  ;;  %v1322_v0 = vpop.f32.mrb[6].mxu1 }
 0x15b   : > { %v1752_v1 = vadd.f32 %v3164_v31, %v1169_v63  ;;  %v1754_v2 = vadd.f32 %v3166_v32, %v1322_v0  ;;  %v1171_v3 = vpop.f32.mrb[7].mxu0  ;;  %v1324_v4 = vpop.f32.mrb[7].mxu1 }
 0x15c   : > { %v2559_v5 = vpack.c.bf16 %v1749_v61, %v1748_v57  ;;  %v2560_v6 = vpack.c.bf16 %v1751_v62, %v1750_v58  ;;  %v1753_v7 = vadd.f32 %v3168_v33, %v1171_v3  ;;  %v1755_v8 = vadd.f32 %v3170_v34, %v1324_v4 }
 0x15e   : > { %2128 = vst [vmem:[%s3182_s12 + $0x20] sm:$0xff] %v2559_v5  ;;  %2129 = vst [vmem:[%s3182_s12 + $0x28] sm:$0xff] %v2560_v6  ;;  %v2561_v9 = vpack.c.bf16 %v1753_v7, %v1752_v1  ;;  %v2562_v10 = vpack.c.bf16 %v1755_v8, %v1754_v2 }
 0x160   : > { %2130 = vst [vmem:[%s3182_s12 + $0x30] sm:$0xff] %v2561_v9  ;;  %2131 = vst [vmem:[%s3182_s12 + $0x38] sm:$0xff] %v2562_v10  ;;  %v1175_v11 = vpop.f32.mrb[8].mxu0  ;;  %v1328_v12 = vpop.f32.mrb[8].mxu1 }
 0x161   : > { %v1756_v13 = vadd.f32 %v3164_v31, %v1175_v11  ;;  %v1758_v14 = vadd.f32 %v3166_v32, %v1328_v12  ;;  %v1177_v15 = vpop.f32.mrb[9].mxu0  ;;  %v1330_v16 = vpop.f32.mrb[9].mxu1 }
 0x162   : > { %v1757_v17 = vadd.f32 %v3168_v33, %v1177_v15  ;;  %v1759_v18 = vadd.f32 %v3170_v34, %v1330_v16  ;;  %v1179_v19 = vpop.f32.mrb[10].mxu0  ;;  %v1332_v20 = vpop.f32.mrb[10].mxu1 }
 0x163   : > { %v1760_v21 = vadd.f32 %v3164_v31, %v1179_v19  ;;  %v1762_v22 = vadd.f32 %v3166_v32, %v1332_v20  ;;  %v1181_v23 = vpop.f32.mrb[11].mxu0  ;;  %v1334_v24 = vpop.f32.mrb[11].mxu1 }
 0x164   : > { %v2563_v25 = vpack.c.bf16 %v1757_v17, %v1756_v13  ;;  %v2564_v26 = vpack.c.bf16 %v1759_v18, %v1758_v14  ;;  %v1761_v27 = vadd.f32 %v3168_v33, %v1181_v23  ;;  %v1763_v28 = vadd.f32 %v3170_v34, %v1334_v24 }
 0x166   : > { %2132 = vst [vmem:[%s3182_s12 + $0x40] sm:$0xff] %v2563_v25  ;;  %2133 = vst [vmem:[%s3182_s12 + $0x48] sm:$0xff] %v2564_v26  ;;  %v2565_v29 = vpack.c.bf16 %v1761_v27, %v1760_v21  ;;  %v2566_v30 = vpack.c.bf16 %v1763_v28, %v1762_v22 }
 0x168   : > { %2134 = vst [vmem:[%s3182_s12 + $0x50] sm:$0xff] %v2565_v29  ;;  %2135 = vst [vmem:[%s3182_s12 + $0x58] sm:$0xff] %v2566_v30  ;;  %v1185_v35 = vpop.f32.mrb[12].mxu0  ;;  %v1338_v36 = vpop.f32.mrb[12].mxu1 }
 0x169   : > { %v1764_v37 = vadd.f32 %v3164_v31, %v1185_v35  ;;  %v1766_v38 = vadd.f32 %v3166_v32, %v1338_v36  ;;  %v1187_v39 = vpop.f32.mrb[13].mxu0  ;;  %v1340_v40 = vpop.f32.mrb[13].mxu1 }
 0x16a   : > { %v1765_v41 = vadd.f32 %v3168_v33, %v1187_v39  ;;  %v1767_v42 = vadd.f32 %v3170_v34, %v1340_v40  ;;  %v1189_v43 = vpop.f32.mrb[14].mxu0  ;;  %v1342_v44 = vpop.f32.mrb[14].mxu1 }
 0x16b   : > { %v1768_v45 = vadd.f32 %v3164_v31, %v1189_v43  ;;  %v1770_v46 = vadd.f32 %v3166_v32, %v1342_v44  ;;  %v1191_v47 = vpop.f32.mrb[15].mxu0  ;;  %v1344_v48 = vpop.f32.mrb[15].mxu1 }
 0x16c   : > { %v2567_v49 = vpack.c.bf16 %v1765_v41, %v1764_v37  ;;  %v2568_v50 = vpack.c.bf16 %v1767_v42, %v1766_v38  ;;  %v1769_v51 = vadd.f32 %v3168_v33, %v1191_v47  ;;  %v1771_v52 = vadd.f32 %v3170_v34, %v1344_v48 }
 0x16e   : > { %2136 = vst [vmem:[%s3182_s12 + $0x60] sm:$0xff] %v2567_v49  ;;  %2137 = vst [vmem:[%s3182_s12 + $0x68] sm:$0xff] %v2568_v50  ;;  %v2569_v53 = vpack.c.bf16 %v1769_v51, %v1768_v45  ;;  %v2570_v54 = vpack.c.bf16 %v1771_v52, %v1770_v46 }
 0x170   : > { %2138 = vst [vmem:[%s3182_s12 + $0x70] sm:$0xff] %v2569_v53  ;;  %2139 = vst [vmem:[%s3182_s12 + $0x78] sm:$0xff] %v2570_v54  ;;  %v1195_v55 = vpop.f32.mrb[16].mxu0  ;;  %v1348_v56 = vpop.f32.mrb[16].mxu1 }
 0x171   : > { %v1772_v57 = vadd.f32 %v3164_v31, %v1195_v55  ;;  %v1774_v58 = vadd.f32 %v3166_v32, %v1348_v56  ;;  %v1197_v59 = vpop.f32.mrb[17].mxu0  ;;  %v1350_v60 = vpop.f32.mrb[17].mxu1 }
 0x172   : > { %v1773_v61 = vadd.f32 %v3168_v33, %v1197_v59  ;;  %v1775_v62 = vadd.f32 %v3170_v34, %v1350_v60  ;;  %v1199_v63 = vpop.f32.mrb[18].mxu0  ;;  %v1352_v0 = vpop.f32.mrb[18].mxu1 }
 0x173   : > { %v1776_v1 = vadd.f32 %v3164_v31, %v1199_v63  ;;  %v1778_v2 = vadd.f32 %v3166_v32, %v1352_v0  ;;  %v1201_v3 = vpop.f32.mrb[19].mxu0  ;;  %v1354_v4 = vpop.f32.mrb[19].mxu1 }
 0x174   : > { %v2571_v5 = vpack.c.bf16 %v1773_v61, %v1772_v57  ;;  %v2572_v6 = vpack.c.bf16 %v1775_v62, %v1774_v58  ;;  %v1777_v7 = vadd.f32 %v3168_v33, %v1201_v3  ;;  %v1779_v8 = vadd.f32 %v3170_v34, %v1354_v4 }
 0x176   : > { %2140 = vst [vmem:[%s3182_s12 + $0x80] sm:$0xff] %v2571_v5  ;;  %2141 = vst [vmem:[%s3182_s12 + $0x88] sm:$0xff] %v2572_v6  ;;  %v2573_v9 = vpack.c.bf16 %v1777_v7, %v1776_v1  ;;  %v2574_v10 = vpack.c.bf16 %v1779_v8, %v1778_v2 }
 0x178   : > { %2142 = vst [vmem:[%s3182_s12 + $0x90] sm:$0xff] %v2573_v9  ;;  %2143 = vst [vmem:[%s3182_s12 + $0x98] sm:$0xff] %v2574_v10  ;;  %v1205_v11 = vpop.f32.mrb[20].mxu0  ;;  %v1358_v12 = vpop.f32.mrb[20].mxu1 }
 0x179   : > { %v1780_v13 = vadd.f32 %v3164_v31, %v1205_v11  ;;  %v1782_v14 = vadd.f32 %v3166_v32, %v1358_v12  ;;  %v1207_v15 = vpop.f32.mrb[21].mxu0  ;;  %v1360_v16 = vpop.f32.mrb[21].mxu1 }
 0x17a   : > { %v1781_v17 = vadd.f32 %v3168_v33, %v1207_v15  ;;  %v1783_v18 = vadd.f32 %v3170_v34, %v1360_v16  ;;  %v1209_v19 = vpop.f32.mrb[22].mxu0  ;;  %v1362_v20 = vpop.f32.mrb[22].mxu1 }
 0x17b   : > { %v1784_v21 = vadd.f32 %v3164_v31, %v1209_v19  ;;  %v1786_v22 = vadd.f32 %v3166_v32, %v1362_v20  ;;  %v1211_v23 = vpop.f32.mrb[23].mxu0  ;;  %v1364_v24 = vpop.f32.mrb[23].mxu1 }
 0x17c   : > { %v2575_v25 = vpack.c.bf16 %v1781_v17, %v1780_v13  ;;  %v2576_v26 = vpack.c.bf16 %v1783_v18, %v1782_v14  ;;  %v1785_v27 = vadd.f32 %v3168_v33, %v1211_v23  ;;  %v1787_v28 = vadd.f32 %v3170_v34, %v1364_v24 }
 0x17e   : > { %2144 = vst [vmem:[%s3182_s12 + $0xa0] sm:$0xff] %v2575_v25  ;;  %2145 = vst [vmem:[%s3182_s12 + $0xa8] sm:$0xff] %v2576_v26  ;;  %v2577_v29 = vpack.c.bf16 %v1785_v27, %v1784_v21  ;;  %v2578_v30 = vpack.c.bf16 %v1787_v28, %v1786_v22 }
 0x180   : > { %2146 = vst [vmem:[%s3182_s12 + $0xb0] sm:$0xff] %v2577_v29  ;;  %2147 = vst [vmem:[%s3182_s12 + $0xb8] sm:$0xff] %v2578_v30  ;;  %v1215_v35 = vpop.f32.mrb[24].mxu0  ;;  %v1368_v36 = vpop.f32.mrb[24].mxu1 }
 0x181   : > { %v1788_v37 = vadd.f32 %v3164_v31, %v1215_v35  ;;  %v1790_v38 = vadd.f32 %v3166_v32, %v1368_v36  ;;  %v1217_v39 = vpop.f32.mrb[25].mxu0  ;;  %v1370_v40 = vpop.f32.mrb[25].mxu1 }
 0x182   : > { %v1789_v41 = vadd.f32 %v3168_v33, %v1217_v39  ;;  %v1791_v42 = vadd.f32 %v3170_v34, %v1370_v40  ;;  %v1219_v43 = vpop.f32.mrb[26].mxu0  ;;  %v1372_v44 = vpop.f32.mrb[26].mxu1 }
 0x183   : > { %v1792_v45 = vadd.f32 %v3164_v31, %v1219_v43  ;;  %v1794_v46 = vadd.f32 %v3166_v32, %v1372_v44  ;;  %v1221_v47 = vpop.f32.mrb[27].mxu0  ;;  %v1374_v48 = vpop.f32.mrb[27].mxu1 }
 0x184   : > { %v2579_v49 = vpack.c.bf16 %v1789_v41, %v1788_v37  ;;  %v2580_v50 = vpack.c.bf16 %v1791_v42, %v1790_v38  ;;  %v1793_v51 = vadd.f32 %v3168_v33, %v1221_v47  ;;  %v1795_v52 = vadd.f32 %v3170_v34, %v1374_v48 }
 0x186   : > { %2148 = vst [vmem:[%s3182_s12 + $0xc0] sm:$0xff] %v2579_v49  ;;  %2149 = vst [vmem:[%s3182_s12 + $0xc8] sm:$0xff] %v2580_v50  ;;  %v2581_v53 = vpack.c.bf16 %v1793_v51, %v1792_v45  ;;  %v2582_v54 = vpack.c.bf16 %v1795_v52, %v1794_v46 }
 0x188   : > { %2150 = vst [vmem:[%s3182_s12 + $0xd0] sm:$0xff] %v2581_v53  ;;  %2151 = vst [vmem:[%s3182_s12 + $0xd8] sm:$0xff] %v2582_v54  ;;  %v1225_v55 = vpop.f32.mrb[28].mxu0  ;;  %v1378_v56 = vpop.f32.mrb[28].mxu1 }
 0x189   : > { %v1796_v57 = vadd.f32 %v3164_v31, %v1225_v55  ;;  %v1798_v58 = vadd.f32 %v3166_v32, %v1378_v56  ;;  %v1227_v59 = vpop.f32.mrb[29].mxu0  ;;  %v1380_v60 = vpop.f32.mrb[29].mxu1 }
 0x18a   : > { %v1797_v61 = vadd.f32 %v3168_v33, %v1227_v59  ;;  %v1799_v62 = vadd.f32 %v3170_v34, %v1380_v60  ;;  %v1229_v63 = vpop.f32.mrb[30].mxu0  ;;  %v1382_v0 = vpop.f32.mrb[30].mxu1 }
 0x18b   : > { %v1800_v1 = vadd.f32 %v3164_v31, %v1229_v63  ;;  %v1802_v2 = vadd.f32 %v3166_v32, %v1382_v0  ;;  %v1231_v3 = vpop.f32.mrb[31].mxu0  ;;  %v1384_v4 = vpop.f32.mrb[31].mxu1 }
 0x18c   : > { %v2583_v5 = vpack.c.bf16 %v1797_v61, %v1796_v57  ;;  %v2584_v6 = vpack.c.bf16 %v1799_v62, %v1798_v58  ;;  %v1801_v7 = vadd.f32 %v3168_v33, %v1231_v3  ;;  %v1803_v8 = vadd.f32 %v3170_v34, %v1384_v4 }
 0x18e   : > { %2152 = vst [vmem:[%s3182_s12 + $0xe0] sm:$0xff] %v2583_v5  ;;  %2153 = vst [vmem:[%s3182_s12 + $0xe8] sm:$0xff] %v2584_v6  ;;  %v2585_v9 = vpack.c.bf16 %v1801_v7, %v1800_v1  ;;  %v2586_v10 = vpack.c.bf16 %v1803_v8, %v1802_v2 }
 0x190   : > { %2154 = vst [vmem:[%s3182_s12 + $0xf0] sm:$0xff] %v2585_v9  ;;  %2155 = vst [vmem:[%s3182_s12 + $0xf8] sm:$0xff] %v2586_v10  ;;  %v1235_v11 = vpop.f32.mrb[32].mxu0  ;;  %v1388_v12 = vpop.f32.mrb[32].mxu1 }
 0x191   : > { %v1804_v13 = vadd.f32 %v3164_v31, %v1235_v11  ;;  %v1806_v14 = vadd.f32 %v3166_v32, %v1388_v12  ;;  %v1237_v15 = vpop.f32.mrb[33].mxu0  ;;  %v1390_v16 = vpop.f32.mrb[33].mxu1 }
 0x192   : > { %v1805_v17 = vadd.f32 %v3168_v33, %v1237_v15  ;;  %v1807_v18 = vadd.f32 %v3170_v34, %v1390_v16  ;;  %v1239_v19 = vpop.f32.mrb[34].mxu0  ;;  %v1392_v20 = vpop.f32.mrb[34].mxu1 }
 0x193   : > { %v1808_v21 = vadd.f32 %v3164_v31, %v1239_v19  ;;  %v1810_v22 = vadd.f32 %v3166_v32, %v1392_v20  ;;  %v1241_v23 = vpop.f32.mrb[35].mxu0  ;;  %v1394_v24 = vpop.f32.mrb[35].mxu1 }
 0x194   : > { %v2587_v25 = vpack.c.bf16 %v1805_v17, %v1804_v13  ;;  %v2588_v26 = vpack.c.bf16 %v1807_v18, %v1806_v14  ;;  %v1809_v27 = vadd.f32 %v3168_v33, %v1241_v23  ;;  %v1811_v28 = vadd.f32 %v3170_v34, %v1394_v24 }
 0x196   : > { %2156 = vst [vmem:[%s3182_s12 + $0x100] sm:$0xff] %v2587_v25  ;;  %2157 = vst [vmem:[%s3182_s12 + $0x108] sm:$0xff] %v2588_v26  ;;  %v2589_v29 = vpack.c.bf16 %v1809_v27, %v1808_v21  ;;  %v2590_v30 = vpack.c.bf16 %v1811_v28, %v1810_v22 }
 0x198   : > { %2158 = vst [vmem:[%s3182_s12 + $0x110] sm:$0xff] %v2589_v29  ;;  %2159 = vst [vmem:[%s3182_s12 + $0x118] sm:$0xff] %v2590_v30  ;;  %v1245_v35 = vpop.f32.mrb[36].mxu0  ;;  %v1398_v36 = vpop.f32.mrb[36].mxu1 }
 0x199   : > { %v1812_v37 = vadd.f32 %v3164_v31, %v1245_v35  ;;  %v1814_v38 = vadd.f32 %v3166_v32, %v1398_v36  ;;  %v1247_v39 = vpop.f32.mrb[37].mxu0  ;;  %v1400_v40 = vpop.f32.mrb[37].mxu1  ;;  %v2205_v35 = vld [vmem:[%s3182_s12 + $0x20] sm:$0xff] (%p2872_p6)  ;;  %v2207_v36 = vld [vmem:[%s3182_s12 + $0x28] sm:$0xff] (%p2872_p6) }
 0x19a   : > { %v1813_v41 = vadd.f32 %v3168_v33, %v1247_v39  ;;  %v1815_v42 = vadd.f32 %v3170_v34, %v1400_v40  ;;  %v1249_v43 = vpop.f32.mrb[38].mxu0  ;;  %v1402_v44 = vpop.f32.mrb[38].mxu1  ;;  %2206 = vst [vmem:[%s3329_s7 + $0x40] sm:$0xff] (%p2872_p6), %v2205_v35  ;;  %2208 = vst [vmem:[%s3329_s7 + $0x48] sm:$0xff] (%p2872_p6), %v2207_v36  ;;  %v2213_v39 = vld [vmem:[%s3182_s12 + $0x40] sm:$0xff] (%p2872_p6)  ;;  %v2215_v40 = vld [vmem:[%s3182_s12 + $0x48] sm:$0xff] (%p2872_p6) }
 0x19b   : > { %v1816_v45 = vadd.f32 %v3164_v31, %v1249_v43  ;;  %v1818_v46 = vadd.f32 %v3166_v32, %v1402_v44  ;;  %v1251_v47 = vpop.f32.mrb[39].mxu0  ;;  %v1404_v48 = vpop.f32.mrb[39].mxu1  ;;  %2214 = vst [vmem:[%s3329_s7 + $0x80] sm:$0xff] (%p2872_p6), %v2213_v39  ;;  %2216 = vst [vmem:[%s3329_s7 + $0x88] sm:$0xff] (%p2872_p6), %v2215_v40  ;;  %v2221_v43 = vld [vmem:[%s3182_s12 + $0x60] sm:$0xff] (%p2872_p6)  ;;  %v2223_v44 = vld [vmem:[%s3182_s12 + $0x68] sm:$0xff] (%p2872_p6) }
 0x19c   : > { %v2591_v49 = vpack.c.bf16 %v1813_v41, %v1812_v37  ;;  %v2592_v50 = vpack.c.bf16 %v1815_v42, %v1814_v38  ;;  %v1817_v51 = vadd.f32 %v3168_v33, %v1251_v47  ;;  %v1819_v52 = vadd.f32 %v3170_v34, %v1404_v48  ;;  %v2209_v37 = vld [vmem:[%s3182_s12 + $0x30] sm:$0xff] (%p2872_p6)  ;;  %v2211_v38 = vld [vmem:[%s3182_s12 + $0x38] sm:$0xff] (%p2872_p6)  ;;  %2222 = vst [vmem:[%s3329_s7 + $0xc0] sm:$0xff] (%p2872_p6), %v2221_v43  ;;  %v2229_v47 = vld [vmem:[%s3182_s12 + $0x80] sm:$0xff] (%p2872_p6) }
 0x19d   : > { %2210 = vst [vmem:[%s3329_s7 + $0x60] sm:$0xff] (%p2872_p6), %v2209_v37  ;;  %2212 = vst [vmem:[%s3329_s7 + $0x68] sm:$0xff] (%p2872_p6), %v2211_v38  ;;  %v2217_v41 = vld [vmem:[%s3182_s12 + $0x50] sm:$0xff] (%p2872_p6)  ;;  %v2219_v42 = vld [vmem:[%s3182_s12 + $0x58] sm:$0xff] (%p2872_p6) }
 0x19e   : > { %2160 = vst [vmem:[%s3182_s12 + $0x120] sm:$0xff] %v2591_v49  ;;  %2161 = vst [vmem:[%s3182_s12 + $0x128] sm:$0xff] %v2592_v50  ;;  %v2593_v53 = vpack.c.bf16 %v1817_v51, %v1816_v45  ;;  %v2594_v54 = vpack.c.bf16 %v1819_v52, %v1818_v46  ;;  %v2225_v45 = vld [vmem:[%s3182_s12 + $0x70] sm:$0xff] (%p2872_p6)  ;;  %v2227_v46 = vld [vmem:[%s3182_s12 + $0x78] sm:$0xff] (%p2872_p6) }
 0x19f   : > { %2218 = vst [vmem:[%s3329_s7 + $0xa0] sm:$0xff] (%p2872_p6), %v2217_v41  ;;  %2220 = vst [vmem:[%s3329_s7 + $0xa8] sm:$0xff] (%p2872_p6), %v2219_v42  ;;  %v2231_v48 = vld [vmem:[%s3182_s12 + $0x88] sm:$0xff] (%p2872_p6)  ;;  %v2233_v49 = vld [vmem:[%s3182_s12 + $0x90] sm:$0xff] (%p2872_p6) }
 0x1a0   : > { %2162 = vst [vmem:[%s3182_s12 + $0x130] sm:$0xff] %v2593_v53  ;;  %2163 = vst [vmem:[%s3182_s12 + $0x138] sm:$0xff] %v2594_v54  ;;  %v1255_v55 = vpop.f32.mrb[40].mxu0  ;;  %v1408_v56 = vpop.f32.mrb[40].mxu1  ;;  %v2235_v50 = vld [vmem:[%s3182_s12 + $0x98] sm:$0xff] (%p2872_p6)  ;;  %v2237_v51 = vld [vmem:[%s3182_s12 + $0xa0] sm:$0xff] (%p2872_p6) }
 0x1a1   : > { %v1820_v57 = vadd.f32 %v3164_v31, %v1255_v55  ;;  %v1822_v58 = vadd.f32 %v3166_v32, %v1408_v56  ;;  %v1257_v59 = vpop.f32.mrb[41].mxu0  ;;  %v1410_v60 = vpop.f32.mrb[41].mxu1  ;;  %2224 = vst [vmem:[%s3329_s7 + $0xc8] sm:$0xff] (%p2872_p6), %v2223_v44  ;;  %2226 = vst [vmem:[%s3329_s7 + $0xe0] sm:$0xff] (%p2872_p6), %v2225_v45  ;;  %v2239_v52 = vld [vmem:[%s3182_s12 + $0xa8] sm:$0xff] (%p2872_p6)  ;;  %v2241_v53 = vld [vmem:[%s3182_s12 + $0xb0] sm:$0xff] (%p2872_p6) }
 0x1a2   : > { %v1821_v61 = vadd.f32 %v3168_v33, %v1257_v59  ;;  %v1823_v62 = vadd.f32 %v3170_v34, %v1410_v60  ;;  %v1259_v63 = vpop.f32.mrb[42].mxu0  ;;  %v1412_v0 = vpop.f32.mrb[42].mxu1  ;;  %2228 = vst [vmem:[%s3329_s7 + $0xe8] sm:$0xff] (%p2872_p6), %v2227_v46  ;;  %2230 = vst [vmem:[%s3329_s7 + $0x100] sm:$0xff] (%p2872_p6), %v2229_v47  ;;  %v2243_v54 = vld [vmem:[%s3182_s12 + $0xb8] sm:$0xff] (%p2872_p6)  ;;  %v2245_v55 = vld [vmem:[%s3182_s12 + $0xc0] sm:$0xff] (%p2872_p6) }
 0x1a3   : > { %v1824_v1 = vadd.f32 %v3164_v31, %v1259_v63  ;;  %v1826_v2 = vadd.f32 %v3166_v32, %v1412_v0  ;;  %v1261_v3 = vpop.f32.mrb[43].mxu0  ;;  %v1414_v4 = vpop.f32.mrb[43].mxu1  ;;  %2232 = vst [vmem:[%s3329_s7 + $0x108] sm:$0xff] (%p2872_p6), %v2231_v48  ;;  %2234 = vst [vmem:[%s3329_s7 + $0x120] sm:$0xff] (%p2872_p6), %v2233_v49  ;;  %v2247_v56 = vld [vmem:[%s3182_s12 + $0xc8] sm:$0xff] (%p2872_p6)  ;;  %v2253_v59 = vld [vmem:[%s3182_s12 + $0xe0] sm:$0xff] (%p2872_p6) }
 0x1a4   : > { %v2595_v5 = vpack.c.bf16 %v1821_v61, %v1820_v57  ;;  %v2596_v6 = vpack.c.bf16 %v1823_v62, %v1822_v58  ;;  %v1825_v7 = vadd.f32 %v3168_v33, %v1261_v3  ;;  %v1827_v8 = vadd.f32 %v3170_v34, %v1414_v4  ;;  %2236 = vst [vmem:[%s3329_s7 + $0x128] sm:$0xff] (%p2872_p6), %v2235_v50  ;;  %v2249_v57 = vld [vmem:[%s3182_s12 + $0xd0] sm:$0xff] (%p2872_p6)  ;;  %v2251_v58 = vld [vmem:[%s3182_s12 + $0xd8] sm:$0xff] (%p2872_p6)  ;;  %v2255_v60 = vld [vmem:[%s3182_s12 + $0xe8] sm:$0xff] (%p2872_p6) }
 0x1a5   : > { %2238 = vst [vmem:[%s3329_s7 + $0x140] sm:$0xff] (%p2872_p6), %v2237_v51  ;;  %2240 = vst [vmem:[%s3329_s7 + $0x148] sm:$0xff] (%p2872_p6), %v2239_v52  ;;  %v2257_v61 = vld [vmem:[%s3182_s12 + $0xf0] sm:$0xff] (%p2872_p6)  ;;  %v2259_v62 = vld [vmem:[%s3182_s12 + $0xf8] sm:$0xff] (%p2872_p6) }
 0x1a6   : > { %2164 = vst [vmem:[%s3182_s12 + $0x140] sm:$0xff] %v2595_v5  ;;  %2165 = vst [vmem:[%s3182_s12 + $0x148] sm:$0xff] %v2596_v6  ;;  %v2597_v9 = vpack.c.bf16 %v1825_v7, %v1824_v1  ;;  %v2598_v10 = vpack.c.bf16 %v1827_v8, %v1826_v2  ;;  %v2261_v63 = vld [vmem:[%s3182_s12 + $0x100] sm:$0xff] (%p2872_p6)  ;;  %v2263_v0 = vld [vmem:[%s3182_s12 + $0x108] sm:$0xff] (%p2872_p6) }
 0x1a7   : > { %2242 = vst [vmem:[%s3329_s7 + $0x160] sm:$0xff] (%p2872_p6), %v2241_v53  ;;  %2244 = vst [vmem:[%s3329_s7 + $0x168] sm:$0xff] (%p2872_p6), %v2243_v54  ;;  %v2265_v1 = vld [vmem:[%s3182_s12 + $0x110] sm:$0xff] (%p2872_p6)  ;;  %v2267_v2 = vld [vmem:[%s3182_s12 + $0x118] sm:$0xff] (%p2872_p6) }
 0x1a8   : > { %2166 = vst [vmem:[%s3182_s12 + $0x150] sm:$0xff] %v2597_v9  ;;  %2167 = vst [vmem:[%s3182_s12 + $0x158] sm:$0xff] %v2598_v10  ;;  %v1265_v11 = vpop.f32.mrb[44].mxu0  ;;  %v1418_v12 = vpop.f32.mrb[44].mxu1  ;;  %v2269_v3 = vld [vmem:[%s3182_s12 + $0x120] sm:$0xff] (%p2872_p6)  ;;  %v2271_v4 = vld [vmem:[%s3182_s12 + $0x128] sm:$0xff] (%p2872_p6) }
 0x1a9   : > { %v1828_v13 = vadd.f32 %v3164_v31, %v1265_v11  ;;  %v1830_v14 = vadd.f32 %v3166_v32, %v1418_v12  ;;  %v1267_v15 = vpop.f32.mrb[45].mxu0  ;;  %v1420_v16 = vpop.f32.mrb[45].mxu1  ;;  %2246 = vst [vmem:[%s3329_s7 + $0x180] sm:$0xff] (%p2872_p6), %v2245_v55  ;;  %2248 = vst [vmem:[%s3329_s7 + $0x188] sm:$0xff] (%p2872_p6), %v2247_v56  ;;  %v2273_v5 = vld [vmem:[%s3182_s12 + $0x130] sm:$0xff] (%p2872_p6)  ;;  %v2275_v6 = vld [vmem:[%s3182_s12 + $0x138] sm:$0xff] (%p2872_p6) }
 0x1aa   : > { %v1829_v17 = vadd.f32 %v3168_v33, %v1267_v15  ;;  %v1831_v18 = vadd.f32 %v3170_v34, %v1420_v16  ;;  %v1269_v19 = vpop.f32.mrb[46].mxu0  ;;  %v1422_v20 = vpop.f32.mrb[46].mxu1  ;;  %2178 = sbr.rel (!%p2872_p6) target bundleno = 442 (0x1ba), region = 67  ;;  %2250 = vst [vmem:[%s3329_s7 + $0x1a0] sm:$0xff] (%p2872_p6), %v2249_v57  ;;  %2252 = vst [vmem:[%s3329_s7 + $0x1a8] sm:$0xff] (%p2872_p6), %v2251_v58 }
 0x1ab   : > { %v1832_v21 = vadd.f32 %v3164_v31, %v1269_v19  ;;  %v1834_v22 = vadd.f32 %v3166_v32, %v1422_v20  ;;  %v1271_v23 = vpop.f32.mrb[47].mxu0  ;;  %v1424_v24 = vpop.f32.mrb[47].mxu1  ;;  %v2197_v31 = vld [vmem:[%s3182_s12] sm:$0xff] (%p2872_p6)  ;;  %v2199_v32 = vld [vmem:[%s3182_s12 + $0x8] sm:$0xff] (%p2872_p6)  ;;  %2254 = vst [vmem:[%s3329_s7 + $0x1c0] sm:$0xff] (%p2872_p6), %v2253_v59  ;;  %2256 = vst [vmem:[%s3329_s7 + $0x1c8] sm:$0xff] (%p2872_p6), %v2255_v60 }
 0x1ac   : > { %v2599_v25 = vpack.c.bf16 %v1829_v17, %v1828_v13  ;;  %v2600_v26 = vpack.c.bf16 %v1831_v18, %v1830_v14  ;;  %v1833_v27 = vadd.f32 %v3168_v33, %v1271_v23  ;;  %v1835_v28 = vadd.f32 %v3170_v34, %v1424_v24  ;;  %v2201_v33 = vld [vmem:[%s3182_s12 + $0x10] sm:$0xff] (%p2872_p6)  ;;  %v2203_v34 = vld [vmem:[%s3182_s12 + $0x18] sm:$0xff] (%p2872_p6)  ;;  %2198 = vst [vmem:[%s3329_s7] sm:$0xff] (%p2872_p6), %v2197_v31 }
 0x1ad   : > { %2200 = vst [vmem:[%s3329_s7 + $0x8] sm:$0xff] (%p2872_p6), %v2199_v32  ;;  %2202 = vst [vmem:[%s3329_s7 + $0x20] sm:$0xff] (%p2872_p6), %v2201_v33  ;;  %v2277_v7 = vld [vmem:[%s3182_s12 + $0x140] sm:$0xff] (%p2872_p6)  ;;  %v2279_v8 = vld [vmem:[%s3182_s12 + $0x148] sm:$0xff] (%p2872_p6) }
 0x1ae   : > { %2168 = vst [vmem:[%s3182_s12 + $0x160] sm:$0xff] %v2599_v25  ;;  %2169 = vst [vmem:[%s3182_s12 + $0x168] sm:$0xff] %v2600_v26  ;;  %v2601_v29 = vpack.c.bf16 %v1833_v27, %v1832_v21  ;;  %v2602_v30 = vpack.c.bf16 %v1835_v28, %v1834_v22 }
 0x1af   : > { %2204 = vst [vmem:[%s3329_s7 + $0x28] sm:$0xff] (%p2872_p6), %v2203_v34  ;;  %2258 = vst [vmem:[%s3329_s7 + $0x1e0] sm:$0xff] (%p2872_p6), %v2257_v61  ;;  %v2281_v9 = vld [vmem:[%s3182_s12 + $0x150] sm:$0xff] (%p2872_p6)  ;;  %v2283_v10 = vld [vmem:[%s3182_s12 + $0x158] sm:$0xff] (%p2872_p6) }
 0x1b0   : > { %2170 = vst [vmem:[%s3182_s12 + $0x170] sm:$0xff] %v2601_v29  ;;  %2171 = vst [vmem:[%s3182_s12 + $0x178] sm:$0xff] %v2602_v30 }
 0x1b1   : > { %2260 = vst [vmem:[%s3329_s7 + $0x1e8] sm:$0xff] %v2259_v62  ;;  %2262 = vst [vmem:[%s3329_s7 + $0x200] sm:$0xff] %v2261_v63 }
 0x1b2   : > { %2264 = vst [vmem:[%s3329_s7 + $0x208] sm:$0xff] %v2263_v0  ;;  %2266 = vst [vmem:[%s3329_s7 + $0x220] sm:$0xff] %v2265_v1 }
 0x1b3   : > { %2268 = vst [vmem:[%s3329_s7 + $0x228] sm:$0xff] %v2267_v2  ;;  %2270 = vst [vmem:[%s3329_s7 + $0x240] sm:$0xff] %v2269_v3 }
 0x1b4   : > { %2272 = vst [vmem:[%s3329_s7 + $0x248] sm:$0xff] %v2271_v4  ;;  %2274 = vst [vmem:[%s3329_s7 + $0x260] sm:$0xff] %v2273_v5 }
 0x1b5   : > { %2276 = vst [vmem:[%s3329_s7 + $0x268] sm:$0xff] %v2275_v6  ;;  %2278 = vst [vmem:[%s3329_s7 + $0x280] sm:$0xff] %v2277_v7  ;;  %v2285_v11 = vld [vmem:[%s3182_s12 + $0x160] sm:$0xff]  ;;  %v2287_v12 = vld [vmem:[%s3182_s12 + $0x168] sm:$0xff] }
 0x1b6   : > { %2280 = vst [vmem:[%s3329_s7 + $0x288] sm:$0xff] %v2279_v8  ;;  %2282 = vst [vmem:[%s3329_s7 + $0x2a0] sm:$0xff] %v2281_v9 }
 0x1b7   : > { %2284 = vst [vmem:[%s3329_s7 + $0x2a8] sm:$0xff] %v2283_v10  ;;  %2286 = vst [vmem:[%s3329_s7 + $0x2c0] sm:$0xff] %v2285_v11  ;;  %v2289_v13 = vld [vmem:[%s3182_s12 + $0x170] sm:$0xff]  ;;  %v2291_v14 = vld [vmem:[%s3182_s12 + $0x178] sm:$0xff] }
 0x1b8   : > { %2288 = vst [vmem:[%s3329_s7 + $0x2c8] sm:$0xff] %v2287_v12  ;;  %2290 = vst [vmem:[%s3329_s7 + $0x2e0] sm:$0xff] %v2289_v13 }
 0x1b9   : > { %2292 = vst [vmem:[%s3329_s7 + $0x2e8] sm:$0xff] %v2291_v14 }
 0x1ba PF: > { %s13_s16 = sadd.s32 1, %s2815_s16   ;;  %s3444_s12 = smov %s2803_s13 }
 0x1bb   : > { %p10_p12 = scmp.ge.s32.totalorder %s13_s16, 4   ;;  %s3445_s13 = smov %s2877_s22 }
 0x1bc   : > { %s3446_s14 = smov %s2811_s15  ;;  %s3447_s15 = smov %s3449_s17 }
 0x1bd   :  { %12 = sbr.rel (!%p10_p12) target bundleno = 3 (0x3), region = 127 }

</bundles_post_ra>
